<compile_context>
chip_gen: v7x
topology: tpu7x:2x2x1
jax: 0.10.0
libtpu: 0.0.40
codegen_flags: <defaults>
</compile_context>

<pallas_src>
import functools

import jax
import jax.numpy as jnp
from jax.experimental import pallas as pl
from jax.experimental.pallas import tpu as pltpu


def _round_up(n, m):
    return ((n + m - 1) // m) * m


def _pad2d(a, rows, cols):
    a = a.astype(jnp.float32)
    r, c = a.shape
    return jnp.pad(a, ((0, rows - r), (0, cols - c)))


# ---------------------------------------------------------------------------
# Pallas kernel: fused embedding-gather + 4-layer MLP
# ---------------------------------------------------------------------------
def _fused_mlp_kernel(x_ref,                     # (TB, n_features)  raw input tile
                      tbl_ref,                   # (n_cat, embed_dim)
                      w1e_ref, w1f_ref, b1_ref,  # first Linear, split emb/feat
                      w2_ref, b2_ref,
                      w3_ref, b3_ref,
                      w4_ref, b4_ref,
                      o_ref):                    # (TB, d_out_padded)
    tb = x_ref.shape[0]
    n_cat = tbl_ref.shape[0]

    # --- embedding gather as one-hot matmul (MXU-friendly, always lowers) ---
    ids = x_ref[:, 0:1].astype(jnp.int32)                          # (TB, 1)
    iota = jax.lax.broadcasted_iota(jnp.int32, (tb, n_cat), 1)     # (TB, n_cat)
    onehot = (ids == iota).astype(jnp.float32)                     # (TB, n_cat)
    embed = jnp.dot(onehot, tbl_ref[...],
                    preferred_element_type=jnp.float32)            # (TB, E)

    feats = x_ref[:, 1:]                                           # (TB, F-1)

    # --- layer 1: concat(embed, feats) @ w1  ==  embed@w1e + feats@w1f ------
    h = (jnp.dot(embed, w1e_ref[...], preferred_element_type=jnp.float32)
         + jnp.dot(feats, w1f_ref[...], preferred_element_type=jnp.float32)
         + b1_ref[...])
    h = jnp.maximum(h, 0.0)

    h = jnp.dot(h, w2_ref[...], preferred_element_type=jnp.float32) + b2_ref[...]
    h = jnp.maximum(h, 0.0)

    h = jnp.dot(h, w3_ref[...], preferred_element_type=jnp.float32) + b3_ref[...]
    h = jnp.maximum(h, 0.0)

    # lane-dense (128-wide) output store
    o_ref[...] = (jnp.dot(h, w4_ref[...], preferred_element_type=jnp.float32)
                  + b4_ref[...])


def _mlp_pallas(xp, table, w1e, w1f, b1, w2, b2, w3, b3, w4, b4, *, tile_b):
    Bp, n_features = xp.shape
    n_cat, E = table.shape
    F1 = n_features - 1
    Hp = w2.shape[0]
    Dp = w4.shape[1]
    assert Bp % tile_b == 0

    grid = (Bp // tile_b,)

    full = lambda shape: pl.BlockSpec(shape, lambda i: (0, 0))

    flops = 2 * Bp * (n_cat * E + E * Hp + F1 * Hp + 2 * Hp * Hp + Hp * Dp)
    bytes_accessed = 4 * (Bp * n_features + n_cat * E + (E + F1) * Hp
                          + 3 * Hp + 2 * Hp * Hp + Hp * Dp + Dp + Bp * Dp)
    cost = pl.CostEstimate(flops=flops, transcendentals=0,
                           bytes_accessed=bytes_accessed)

    return pl.pallas_call(
        _fused_mlp_kernel,
        out_shape=jax.ShapeDtypeStruct((Bp, Dp), jnp.float32),
        grid_spec=pltpu.PrefetchScalarGridSpec(
            num_scalar_prefetch=0,
            grid=grid,
            in_specs=[
                pl.BlockSpec((tile_b, n_features), lambda i: (i, 0)),  # x tile
                full(table.shape),
                full(w1e.shape), full(w1f.shape), full(b1.shape),
                full(w2.shape), full(b2.shape),
                full(w3.shape), full(b3.shape),
                full(w4.shape), full(b4.shape),
            ],
            out_specs=pl.BlockSpec((tile_b, Dp), lambda i: (i, 0)),
        ),
        compiler_params=pltpu.CompilerParams(
            dimension_semantics=("parallel",)),
        cost_estimate=cost,
    )(xp, table, w1e, w1f, b1, w2, b2, w3, b3, w4, b4)


# ---------------------------------------------------------------------------
# Full forward pass (padding / weight-split glue in JAX, everything else fused)
# ---------------------------------------------------------------------------
@functools.partial(jax.jit, static_argnames=("tile_b",))
def quantile_regression_forward(x, params, *, tile_b=256):
    table = params["embedding"].astype(jnp.float32)       # (n_cat, E)
    n_cat, embed_dim = table.shape

    w1 = params["w1"]
    hidden = w1.shape[1]
    d_out = params["w4"].shape[1]
    n_features = x.shape[1]
    F1 = n_features - 1

    # pad hidden / output dims to lane multiples (zeros -> identical math)
    Hp = _round_up(hidden, 128)
    Dp = _round_up(d_out, 128)

    w1e = _pad2d(w1[:embed_dim], embed_dim, Hp)            # embed half of w1
    w1f = _pad2d(w1[embed_dim:], F1, Hp)                   # feature half of w1
    b1 = _pad2d(params["b1"].reshape(1, -1), 1, Hp)
    w2 = _pad2d(params["w2"], Hp, Hp)
    b2 = _pad2d(params["b2"].reshape(1, -1), 1, Hp)
    w3 = _pad2d(params["w3"], Hp, Hp)
    b3 = _pad2d(params["b3"].reshape(1, -1), 1, Hp)
    w4 = _pad2d(params["w4"], Hp, Dp)
    b4 = _pad2d(params["b4"].reshape(1, -1), 1, Dp)

    # pad batch to a tile multiple; padded rows are sliced off afterwards
    B = x.shape[0]
    Bp = _round_up(B, tile_b)
    xp = jnp.pad(x.astype(jnp.float32), ((0, Bp - B), (0, 0)))

    out = _mlp_pallas(xp, table, w1e, w1f, b1, w2, b2, w3, b3, w4, b4,
                      tile_b=tile_b)
    return out[:B, :d_out]


# ---------------------------------------------------------------------------
# Deterministic parameter construction (synthetic; shapes follow __init__)
# ---------------------------------------------------------------------------
def make_params(key, n_categories, embed_dim, n_features, hidden, out_dim):
    d_in = embed_dim + n_features - 1
    keys = jax.random.split(key, 9)

    def lin(kw, fan_in, fan_out):
        bound = 1.0 / jnp.sqrt(fan_in)
        return jax.random.uniform(kw, (fan_in, fan_out), jnp.float32,
                                  -bound, bound)

    return {
        "embedding": jax.random.normal(keys[0], (n_categories, embed_dim),
                                       jnp.float32),
        "w1": lin(keys[1], d_in, hidden),
        "b1": jax.random.uniform(keys[2], (1, hidden), jnp.float32, -0.05, 0.05),
        "w2": lin(keys[3], hidden, hidden),
        "b2": jax.random.uniform(keys[4], (1, hidden), jnp.float32, -0.05, 0.05),
        "w3": lin(keys[5], hidden, hidden),
        "b3": jax.random.uniform(keys[6], (1, hidden), jnp.float32, -0.05, 0.05),
        "w4": lin(keys[7], hidden, out_dim),
        "b4": jax.random.uniform(keys[8], (1, out_dim), jnp.float32, -0.05, 0.05),
    }


if __name__ == "__main__":
    # Module-consistent shapes:
    #   n_categories=32 -> embed_dim=min(100, 32)=32
    #   n_features=17 (1 item_id column + 16 continuous)
    #   hidden n=500 (module default; padded to 512 inside the wrapper)
    #   multi=True -> output=19 (padded to 128 inside the wrapper)
    #   batch=512 with tile_b=256 -> grid of 2 (splittable across v7x megacore)
    B = 512
    N_CATEGORIES = 32
    EMBED_DIM = min(100, N_CATEGORIES)
    N_FEATURES = 17
    HIDDEN = 500
    OUT_DIM = 19
    TILE_B = 256

    key = jax.random.PRNGKey(0)
    k_idx, k_feat, k_params = jax.random.split(key, 3)

    # Input: column 0 = item_id (integer-valued, stored as float like the
    # PyTorch module expects), columns 1: = continuous features.
    item_ids = jax.random.randint(k_idx, (B, 1), 0, N_CATEGORIES).astype(jnp.float32)
    cont = jax.random.normal(k_feat, (B, N_FEATURES - 1), jnp.float32)
    x = jnp.concatenate([item_ids, cont], axis=1)          # (B, N_FEATURES)

    params = make_params(k_params, N_CATEGORIES, EMBED_DIM, N_FEATURES,
                         HIDDEN, OUT_DIM)

    out = quantile_regression_forward(x, params, tile_b=TILE_B)
    out = jax.block_until_ready(out)

    # Reference check in plain JAX (same math, unpadded).
    def ref_forward(x, p):
        hp = jax.lax.Precision.HIGHEST
        idx = x[:, 0].astype(jnp.int32)
        h = jnp.concatenate([jnp.take(p["embedding"], idx, axis=0), x[:, 1:]],
                            axis=1)
        h = jnp.maximum(jnp.dot(h, p["w1"], precision=hp) + p["b1"], 0.0)
        h = jnp.maximum(jnp.dot(h, p["w2"], precision=hp) + p["b2"], 0.0)
        h = jnp.maximum(jnp.dot(h, p["w3"], precision=hp) + p["b3"], 0.0)
        return jnp.dot(h, p["w4"], precision=hp) + p["b4"]

    ref = ref_forward(x, params)
    assert out.shape == (B, OUT_DIM), out.shape
    assert jnp.allclose(out, ref, atol=1e-3, rtol=1e-3), "mismatch vs reference"

    print("KERNEL_OK")
</pallas_src>

<mosaic_0001>
module attributes {stable_mosaic.version = 11 : i64} {
  func.func @_fused_mlp_kernel(%arg0: i32, %arg1: memref<256x17xf32, #tpu.memory_space<vmem>>, %arg2: memref<32x32xf32, #tpu.memory_space<vmem>>, %arg3: memref<32x512xf32, #tpu.memory_space<vmem>>, %arg4: memref<16x512xf32, #tpu.memory_space<vmem>>, %arg5: memref<1x512xf32, #tpu.memory_space<vmem>>, %arg6: memref<512x512xf32, #tpu.memory_space<vmem>>, %arg7: memref<1x512xf32, #tpu.memory_space<vmem>>, %arg8: memref<512x512xf32, #tpu.memory_space<vmem>>, %arg9: memref<1x512xf32, #tpu.memory_space<vmem>>, %arg10: memref<512x128xf32, #tpu.memory_space<vmem>>, %arg11: memref<1x128xf32, #tpu.memory_space<vmem>>, %arg12: memref<256x128xf32, #tpu.memory_space<vmem>>) attributes {dimension_semantics = [#tpu.dimension_semantics<parallel>], iteration_bounds = array<i64: 2>, scalar_prefetch = 0 : i64, scratch_operands = 0 : i64, tpu.core_type = #tpu.core_type<tc>, window_params = [{transform_indices = @transform_0, window_bounds = array<i64: 256, 17>}, {pipeline_mode = #tpu.pipeline_mode<synchronous>, transform_indices = @transform_1, window_bounds = array<i64: 32, 32>}, {pipeline_mode = #tpu.pipeline_mode<synchronous>, transform_indices = @transform_2, window_bounds = array<i64: 32, 512>}, {pipeline_mode = #tpu.pipeline_mode<synchronous>, transform_indices = @transform_3, window_bounds = array<i64: 16, 512>}, {pipeline_mode = #tpu.pipeline_mode<synchronous>, transform_indices = @transform_4, window_bounds = array<i64: 1, 512>}, {pipeline_mode = #tpu.pipeline_mode<synchronous>, transform_indices = @transform_5, window_bounds = array<i64: 512, 512>}, {pipeline_mode = #tpu.pipeline_mode<synchronous>, transform_indices = @transform_6, window_bounds = array<i64: 1, 512>}, {pipeline_mode = #tpu.pipeline_mode<synchronous>, transform_indices = @transform_7, window_bounds = array<i64: 512, 512>}, {pipeline_mode = #tpu.pipeline_mode<synchronous>, transform_indices = @transform_8, window_bounds = array<i64: 1, 512>}, {pipeline_mode = #tpu.pipeline_mode<synchronous>, transform_indices = @transform_9, window_bounds = array<i64: 512, 128>}, {pipeline_mode = #tpu.pipeline_mode<synchronous>, transform_indices = @transform_10, window_bounds = array<i64: 1, 128>}, {transform_indices = @transform_11, window_bounds = array<i64: 256, 128>}]} {
    %c0 = arith.constant 0 : index
    %c0_0 = arith.constant 0 : index
    %0 = vector.load %arg1[%c0, %c0_0] : memref<256x17xf32, #tpu.memory_space<vmem>>, vector<256x1xf32>
    %1 = arith.fptosi %0 : vector<256x1xf32> to vector<256x1xi32>
    %2 = tpu.iota {dimensions = array<i32: 1>} : vector<256x32xi32>
    %3 = vector.broadcast %1 : vector<256x1xi32> to vector<256x32xi32>
    %4 = arith.cmpi eq, %3, %2 : vector<256x32xi32>
    %5 = arith.extui %4 : vector<256x32xi1> to vector<256x32xi32>
    %6 = arith.sitofp %5 : vector<256x32xi32> to vector<256x32xf32>
    %c0_1 = arith.constant 0 : index
    %c0_2 = arith.constant 0 : index
    %7 = vector.load %arg2[%c0_1, %c0_2] : memref<32x32xf32, #tpu.memory_space<vmem>>, vector<32x32xf32>
    %cst = arith.constant dense<0.000000e+00> : vector<256x32xf32>
    %8 = tpu.matmul %6, %7, %cst {dimension_numbers = #tpu.dot_dimension_numbers<[1], [0], [0], [1], [0, 0, 1, 1], [], []>} : vector<256x32xf32>, vector<32x32xf32>, vector<256x32xf32> -> vector<256x32xf32>
    %c0_3 = arith.constant 0 : index
    %c1 = arith.constant 1 : index
    %9 = vector.load %arg1[%c0_3, %c1] : memref<256x17xf32, #tpu.memory_space<vmem>>, vector<256x16xf32>
    %c0_4 = arith.constant 0 : index
    %c0_5 = arith.constant 0 : index
    %10 = vector.load %arg3[%c0_4, %c0_5] : memref<32x512xf32, #tpu.memory_space<vmem>>, vector<32x512xf32>
    %cst_6 = arith.constant dense<0.000000e+00> : vector<256x512xf32>
    %11 = tpu.matmul %8, %10, %cst_6 {dimension_numbers = #tpu.dot_dimension_numbers<[1], [0], [0], [1], [0, 0, 1, 1], [], []>} : vector<256x32xf32>, vector<32x512xf32>, vector<256x512xf32> -> vector<256x512xf32>
    %c0_7 = arith.constant 0 : index
    %c0_8 = arith.constant 0 : index
    %12 = vector.load %arg4[%c0_7, %c0_8] : memref<16x512xf32, #tpu.memory_space<vmem>>, vector<16x512xf32>
    %cst_9 = arith.constant dense<0.000000e+00> : vector<256x512xf32>
    %13 = tpu.matmul %9, %12, %cst_9 {dimension_numbers = #tpu.dot_dimension_numbers<[1], [0], [0], [1], [0, 0, 1, 1], [], []>} : vector<256x16xf32>, vector<16x512xf32>, vector<256x512xf32> -> vector<256x512xf32>
    %14 = arith.addf %11, %13 : vector<256x512xf32>
    %c0_10 = arith.constant 0 : index
    %c0_11 = arith.constant 0 : index
    %15 = vector.load %arg5[%c0_10, %c0_11] : memref<1x512xf32, #tpu.memory_space<vmem>>, vector<1x512xf32>
    %16 = vector.broadcast %15 : vector<1x512xf32> to vector<256x512xf32>
    %17 = arith.addf %14, %16 : vector<256x512xf32>
    %cst_12 = arith.constant 0.000000e+00 : f32
    %18 = vector.broadcast %cst_12 : f32 to vector<256x512xf32>
    %19 = arith.maximumf %17, %18 : vector<256x512xf32>
    %c0_13 = arith.constant 0 : index
    %c0_14 = arith.constant 0 : index
    %20 = vector.load %arg6[%c0_13, %c0_14] : memref<512x512xf32, #tpu.memory_space<vmem>>, vector<512x512xf32>
    %cst_15 = arith.constant dense<0.000000e+00> : vector<256x512xf32>
    %21 = tpu.matmul %19, %20, %cst_15 {dimension_numbers = #tpu.dot_dimension_numbers<[1], [0], [0], [1], [0, 0, 1, 1], [], []>} : vector<256x512xf32>, vector<512x512xf32>, vector<256x512xf32> -> vector<256x512xf32>
    %c0_16 = arith.constant 0 : index
    %c0_17 = arith.constant 0 : index
    %22 = vector.load %arg7[%c0_16, %c0_17] : memref<1x512xf32, #tpu.memory_space<vmem>>, vector<1x512xf32>
    %23 = vector.broadcast %22 : vector<1x512xf32> to vector<256x512xf32>
    %24 = arith.addf %21, %23 : vector<256x512xf32>
    %cst_18 = arith.constant 0.000000e+00 : f32
    %25 = vector.broadcast %cst_18 : f32 to vector<256x512xf32>
    %26 = arith.maximumf %24, %25 : vector<256x512xf32>
    %c0_19 = arith.constant 0 : index
    %c0_20 = arith.constant 0 : index
    %27 = vector.load %arg8[%c0_19, %c0_20] : memref<512x512xf32, #tpu.memory_space<vmem>>, vector<512x512xf32>
    %cst_21 = arith.constant dense<0.000000e+00> : vector<256x512xf32>
    %28 = tpu.matmul %26, %27, %cst_21 {dimension_numbers = #tpu.dot_dimension_numbers<[1], [0], [0], [1], [0, 0, 1, 1], [], []>} : vector<256x512xf32>, vector<512x512xf32>, vector<256x512xf32> -> vector<256x512xf32>
    %c0_22 = arith.constant 0 : index
    %c0_23 = arith.constant 0 : index
    %29 = vector.load %arg9[%c0_22, %c0_23] : memref<1x512xf32, #tpu.memory_space<vmem>>, vector<1x512xf32>
    %30 = vector.broadcast %29 : vector<1x512xf32> to vector<256x512xf32>
    %31 = arith.addf %28, %30 : vector<256x512xf32>
    %cst_24 = arith.constant 0.000000e+00 : f32
    %32 = vector.broadcast %cst_24 : f32 to vector<256x512xf32>
    %33 = arith.maximumf %31, %32 : vector<256x512xf32>
    %c0_25 = arith.constant 0 : index
    %c0_26 = arith.constant 0 : index
    %34 = vector.load %arg10[%c0_25, %c0_26] : memref<512x128xf32, #tpu.memory_space<vmem>>, vector<512x128xf32>
    %cst_27 = arith.constant dense<0.000000e+00> : vector<256x128xf32>
    %35 = tpu.matmul %33, %34, %cst_27 {dimension_numbers = #tpu.dot_dimension_numbers<[1], [0], [0], [1], [0, 0, 1, 1], [], []>} : vector<256x512xf32>, vector<512x128xf32>, vector<256x128xf32> -> vector<256x128xf32>
    %c0_28 = arith.constant 0 : index
    %c0_29 = arith.constant 0 : index
    %36 = vector.load %arg11[%c0_28, %c0_29] : memref<1x128xf32, #tpu.memory_space<vmem>>, vector<1x128xf32>
    %37 = vector.broadcast %36 : vector<1x128xf32> to vector<256x128xf32>
    %38 = arith.addf %35, %37 : vector<256x128xf32>
    %c0_30 = arith.constant 0 : index
    %c0_31 = arith.constant 0 : index
    %39 = vector.load %arg12[%c0_30, %c0_31] : memref<256x128xf32, #tpu.memory_space<vmem>>, vector<256x128xf32>
    tpu.vector_store %arg12[%c0_30, %c0_31], %38 {strides = array<i32>} : memref<256x128xf32, #tpu.memory_space<vmem>>, vector<256x128xf32>,
    return
  }
  func.func @transform_0(%arg0: i32) -> (i32, i32) {
    %c0_i32 = arith.constant 0 : i32
    %c0_i32_0 = arith.constant 0 : i32
    return %arg0, %c0_i32 : i32, i32
  }
  func.func @transform_1(%arg0: i32) -> (i32, i32) {
    %c0_i32 = arith.constant 0 : i32
    %c0_i32_0 = arith.constant 0 : i32
    %c0_i32_1 = arith.constant 0 : i32
    return %c0_i32, %c0_i32_0 : i32, i32
  }
  func.func @transform_2(%arg0: i32) -> (i32, i32) {
    %c0_i32 = arith.constant 0 : i32
    %c0_i32_0 = arith.constant 0 : i32
    %c0_i32_1 = arith.constant 0 : i32
    return %c0_i32, %c0_i32_0 : i32, i32
  }
  func.func @transform_3(%arg0: i32) -> (i32, i32) {
    %c0_i32 = arith.constant 0 : i32
    %c0_i32_0 = arith.constant 0 : i32
    %c0_i32_1 = arith.constant 0 : i32
    return %c0_i32, %c0_i32_0 : i32, i32
  }
  func.func @transform_4(%arg0: i32) -> (i32, i32) {
    %c0_i32 = arith.constant 0 : i32
    %c0_i32_0 = arith.constant 0 : i32
    %c0_i32_1 = arith.constant 0 : i32
    return %c0_i32, %c0_i32_0 : i32, i32
  }
  func.func @transform_5(%arg0: i32) -> (i32, i32) {
    %c0_i32 = arith.constant 0 : i32
    %c0_i32_0 = arith.constant 0 : i32
    %c0_i32_1 = arith.constant 0 : i32
    return %c0_i32, %c0_i32_0 : i32, i32
  }
  func.func @transform_6(%arg0: i32) -> (i32, i32) {
    %c0_i32 = arith.constant 0 : i32
    %c0_i32_0 = arith.constant 0 : i32
    %c0_i32_1 = arith.constant 0 : i32
    return %c0_i32, %c0_i32_0 : i32, i32
  }
  func.func @transform_7(%arg0: i32) -> (i32, i32) {
    %c0_i32 = arith.constant 0 : i32
    %c0_i32_0 = arith.constant 0 : i32
    %c0_i32_1 = arith.constant 0 : i32
    return %c0_i32, %c0_i32_0 : i32, i32
  }
  func.func @transform_8(%arg0: i32) -> (i32, i32) {
    %c0_i32 = arith.constant 0 : i32
    %c0_i32_0 = arith.constant 0 : i32
    %c0_i32_1 = arith.constant 0 : i32
    return %c0_i32, %c0_i32_0 : i32, i32
  }
  func.func @transform_9(%arg0: i32) -> (i32, i32) {
    %c0_i32 = arith.constant 0 : i32
    %c0_i32_0 = arith.constant 0 : i32
    %c0_i32_1 = arith.constant 0 : i32
    return %c0_i32, %c0_i32_0 : i32, i32
  }
  func.func @transform_10(%arg0: i32) -> (i32, i32) {
    %c0_i32 = arith.constant 0 : i32
    %c0_i32_0 = arith.constant 0 : i32
    %c0_i32_1 = arith.constant 0 : i32
    return %c0_i32, %c0_i32_0 : i32, i32
  }
  func.func @transform_11(%arg0: i32) -> (i32, i32) {
    %c0_i32 = arith.constant 0 : i32
    %c0_i32_0 = arith.constant 0 : i32
    return %arg0, %c0_i32 : i32, i32
  }
}

</mosaic_0001>

<bundles_post_ra>
// kernel: quantile_regression_forward.1
= control target key start
LH: loop header
LB: loop body
LE: loop exit
PB: predicated region body
PF: predicated region fallthrough
CT: control target
= control target key end

     0   :  { %s7864_s17 = smov 0   ;;  %s11754_s0 = inlined_call_operand.vmem [shape: f32[512,17], index: 0, kind: input, shape index: {}]   ;;  %s11755_s1 = inlined_call_operand.vmem [shape: f32[32,32], index: 1, kind: input, shape index: {}]   ;;  %s11756_s2 = inlined_call_operand.vmem [shape: f32[32,512], index: 2, kind: input, shape index: {}]   ;;  %s11757_s3 = inlined_call_operand.vmem [shape: f32[16,512], index: 3, kind: input, shape index: {}]   ;;  %s11758_s4 = inlined_call_operand.vmem [shape: f32[1,512], index: 4, kind: input, shape index: {}]   ;;  %s11759_s5 = inlined_call_operand.vmem [shape: f32[512,512], index: 5, kind: input, shape index: {}]   ;;  %s11760_s6 = inlined_call_operand.vmem [shape: f32[1,512], index: 6, kind: input, shape index: {}]   ;;  %s11761_s7 = inlined_call_operand.vmem [shape: f32[512,512], index: 7, kind: input, shape index: {}]   ;;  %s11762_s8 = inlined_call_operand.vmem [shape: f32[1,512], index: 8, kind: input, shape index: {}]   ;;  %s11763_s9 = inlined_call_operand.vmem [shape: f32[512,128], index: 9, kind: input, shape index: {}]   ;;  %s11764_s10 = inlined_call_operand.vmem [shape: f32[1,128], index: 10, kind: input, shape index: {}]   ;;  %s11765_s11 = inlined_call_operand.vmem [shape: f32[512,128], index: 11, kind: output, shape index: {}]  }
   0x1 LB: > { %s6038_s18 = sadd.s32 4294967295, %s7798_s17   ;;  %p6042_p0 = scmp.ge.s32.totalorder %s7798_s17, 1  ;;  %s7798_s17 = sphi %s7864_s17, %s21_s17  }
   0x2   : > { %p338_p1 = scmp.lt.s32.totalorder %s7798_s17, 3 }
   0x4   : > { %p339_p2 = pnand %p6042_p0, %p338_p1 }
   0x6   : > { %342 = sbr.rel (%p339_p2) target bundleno = 1750 (0x6d6), region = 64 }
   0xd   : > { %s6043_s19 = sshll.u32 %s6038_s18, 5  ;;  %v648_v0 = vld [vmem:[%s11755_s1] sm:$0xff]  ;;  %v649_v1 = vld [vmem:[%s11755_s1 + $0x8] sm:$0xff]  ;;  %v7800_v2 = vmov 0   ;;  %v7801_v4 = vmov 0.0   ;;  %v650_v35 = vld [vmem:[%s11755_s1 + $0x10] sm:$0xff] }
   0xe   : > { %7789 = vset.pattern.permute.xlu1 %v7800_v2  ;;  %7788 = vset.pattern.permute.xlu0 %v7800_v2  ;;  %p379_p3 = scmp.lt.s32.totalorder %s6043_s19, 63  ;;  %v6334_v3 = vpack.c.bf16 %v649_v1, %v648_v0  ;;  %v651_v36 = vld [vmem:[%s11755_s1 + $0x18] sm:$0xff]  ;;  %s7802_s21 = smov 127   ;;  %vm652_vm0 = vcmask 261120  }
   0xf   : > { %1361 = vmatprep.mubr.f32.mxu1 %v7801_v4  ;;  %v6338_v41 = vpack.c.bf16 %v651_v36, %v650_v35 }
  0x10   : > { %s11862_s19 = smov (!%p379_p3, %s6043_s19), 63  ;;  %6335 = vmatprep.subr.bf16.mxu0 %v6334_v3 }
  0x11   : > { %6337 = vmatpush3.bf16.msra.mxu0 %v6334_v3  ;;  %s6044_s24 = sshll.u32 %s11862_s19, 3 }
  0x12   : > { %s7887_s27 = scalar_lea.vmem %s11754_s0, %s6044_s24  ;;  %6339 = vmatprep.subr.bf16.mxu0 %v6338_v41  ;;  %s11685_s12 = scalar_lea.vmem %s11765_s11, %s6044_s24 }
  0x13   : > { %v7890_v5 = vld [vmem:[%s7887_s27 + $0x10] sm:$0xff]  ;;  %v7893_v6 = vld [vmem:[%s7887_s27] sm:$0xff]  ;;  %v7896_v7 = vld [vmem:[%s7887_s27 + $0x18] sm:$0xff] }
  0x14   : > { %v7716_v8 = vtrunc.f32 %v7890_v5  ;;  %v7712_v9 = vtrunc.f32 %v7893_v6  ;;  %v7718_v10 = vtrunc.f32 %v7896_v7  ;;  %v7902_v11 = vld [vmem:[%s7887_s27 + $0x8] sm:$0xff]  ;;  %v7909_v14 = vld [vmem:[%s7887_s27 + $0x20] sm:$0xff]  ;;  %v7914_v21 = vld [vmem:[%s7887_s27 + $0x38] sm:$0xff] }
  0x15   : > { %v7714_v12 = vtrunc.f32 %v7902_v11  ;;  %v7906_v13 = vld [vmem:[%s7887_s27 + $0x28] sm:$0xff]  ;;  %v7720_v20 = vtrunc.f32 %v7909_v14  ;;  %v7917_v22 = vld [vmem:[%s7887_s27 + $0x30] sm:$0xff]  ;;  %v7726_v25 = vtrunc.f32 %v7914_v21  ;;  %v7925_v28 = vld [vmem:[%s7887_s27 + $0x40] sm:$0xff]  ;;  %6341 = vmatpush3.bf16.msra.mxu0 %v6338_v41 }
  0x16   : > { %v7717_v15 = vcvt.f32.s32 %v7716_v8  ;;  %v7713_v16 = vcvt.f32.s32 %v7712_v9  ;;  %v7719_v17 = vcvt.f32.s32 %v7718_v10  ;;  %v7722_v19 = vtrunc.f32 %v7906_v13  ;;  %v7922_v27 = vld [vmem:[%s7887_s27 + $0x48] sm:$0xff]  ;;  %v7930_v33 = vld [vmem:[%s7887_s27 + $0x58] sm:$0xff]  ;;  %v7933_v34 = vld [vmem:[%s7887_s27 + $0x50] sm:$0xff] }
  0x17   : > { %v7715_v18 = vcvt.f32.s32 %v7714_v12  ;;  %v7721_v24 = vcvt.f32.s32 %v7720_v20  ;;  %v7724_v26 = vtrunc.f32 %v7917_v22  ;;  %v7727_v29 = vcvt.f32.s32 %v7726_v25  ;;  %v7944_v42 = vld [vmem:[%s7887_s27 + $0x68] sm:$0xff]  ;;  %v7947_v43 = vld [vmem:[%s7887_s27 + $0x60] sm:$0xff]  ;;  %v7952_v48 = vld [vmem:[%s7887_s27 + $0x78] sm:$0xff] }
  0x18   : > { %463 = vperm.xlu1 %7789, %v7717_v15   ;;  %457 = vperm.xlu0 %7788, %v7713_v16   ;;  %v7723_v23 = vcvt.f32.s32 %v7722_v19  ;;  %v7730_v31 = vtrunc.f32 %v7922_v27  ;;  %v7728_v32 = vtrunc.f32 %v7925_v28  ;;  %v7734_v37 = vtrunc.f32 %v7930_v33  ;;  %v7955_v49 = vld [vmem:[%s7887_s27 + $0x70] sm:$0xff]  ;;  %v7960_v54 = vld [vmem:[%s7887_s27 + $0x88] sm:$0xff]  ;;  %v7963_v55 = vld [vmem:[%s7887_s27 + $0x80] sm:$0xff] }
  0x19   : > { %v7725_v30 = vcvt.f32.s32 %v7724_v26  ;;  %v7732_v40 = vtrunc.f32 %v7933_v34  ;;  %v7738_v46 = vtrunc.f32 %v7944_v42  ;;  %v7736_v47 = vtrunc.f32 %v7947_v43  ;;  %v7968_v60 = vld [vmem:[%s7887_s27 + $0x98] sm:$0xff]  ;;  %v7971_v61 = vld [vmem:[%s7887_s27 + $0x90] sm:$0xff]  ;;  %v7976_v2 = vld [vmem:[%s7887_s27 + $0xa8] sm:$0xff] }
  0x1a   : > { %v7731_v38 = vcvt.f32.s32 %v7730_v31  ;;  %v7729_v39 = vcvt.f32.s32 %v7728_v32  ;;  %v7735_v44 = vcvt.f32.s32 %v7734_v37  ;;  %v7742_v52 = vtrunc.f32 %v7952_v48  ;;  %v7979_v3 = vld [vmem:[%s7887_s27 + $0xa0] sm:$0xff]  ;;  %v7984_v15 = vld [vmem:[%s7887_s27 + $0xb8] sm:$0xff]  ;;  %v7987_v16 = vld [vmem:[%s7887_s27 + $0xb0] sm:$0xff] }
  0x1b   : > { %v7733_v45 = vcvt.f32.s32 %v7732_v40  ;;  %v7739_v50 = vcvt.f32.s32 %v7738_v46  ;;  %v7737_v51 = vcvt.f32.s32 %v7736_v47  ;;  %v7740_v53 = vtrunc.f32 %v7955_v49  ;;  %v417_v31 = vld [vmem:[%s7887_s27 + $0xd8] sm:$0xff]  ;;  %v416_v32 = vld [vmem:[%s7887_s27 + $0xd0] sm:$0xff]  ;;  %v418_v40 = vld [vmem:[%s7887_s27 + $0xe0] sm:$0xff] }
  0x1c   : > { %466 = vperm.xlu1 %7789, %v7719_v17   ;;  %460 = vperm.xlu0 %7788, %v7715_v18   ;;  %v7743_v56 = vcvt.f32.s32 %v7742_v52  ;;  %v7746_v58 = vtrunc.f32 %v7960_v54  ;;  %v7744_v59 = vtrunc.f32 %v7963_v55  ;;  %v7750_v0 = vtrunc.f32 %v7968_v60  ;;  %v421_v47 = vld [vmem:[%s7887_s27 + $0xf8] sm:$0xff] }
  0x1d   : > { %v7741_v57 = vcvt.f32.s32 %v7740_v53  ;;  %v7748_v1 = vtrunc.f32 %v7971_v61  ;;  %v7754_v10 = vtrunc.f32 %v7976_v2  ;;  %v7752_v12 = vtrunc.f32 %v7979_v3 }
  0x1e   : > { %v7747_v62 = vcvt.f32.s32 %v7746_v58  ;;  %v7745_v63 = vcvt.f32.s32 %v7744_v59  ;;  %v7751_v8 = vcvt.f32.s32 %v7750_v0  ;;  %v7758_v19 = vtrunc.f32 %v7984_v15  ;;  %v991_v59 = vld [vmem:[%s11757_s3 + $0x8] sm:$0xff] }
  0x1f   : > { %v7749_v9 = vcvt.f32.s32 %v7748_v1  ;;  %v7755_v17 = vcvt.f32.s32 %v7754_v10  ;;  %v7753_v18 = vcvt.f32.s32 %v7752_v12  ;;  %v7756_v20 = vtrunc.f32 %v7987_v16  ;;  %v994_v1 = vld [vmem:[%s11757_s3 + $0x20] sm:$0xff] }
  0x20   : > { %472 = vperm.xlu1 %7789, %v7723_v23   ;;  %469 = vperm.xlu0 %7788, %v7721_v24   ;;  %v7992_v23 = vld [vmem:[%s7887_s27 + $0xc8] sm:$0xff]  ;;  %v7995_v24 = vld [vmem:[%s7887_s27 + $0xc0] sm:$0xff]  ;;  %v7759_v25 = vcvt.f32.s32 %v7758_v19  ;;  %v7766_v37 = vtrunc.f32 %v417_v31  ;;  %v7768_v46 = vtrunc.f32 %v418_v40  ;;  %v7774_v53 = vtrunc.f32 %v421_v47 }
  0x21   : > { %v7757_v26 = vcvt.f32.s32 %v7756_v20 }
  0x22   : > { %v7767_v41 = vcvt.f32.s32 %v7766_v37  ;;  %v7769_v52 = vcvt.f32.s32 %v7768_v46 }
  0x24   : > { %478 = vperm.xlu1 %7789, %v7727_v29   ;;  %475 = vperm.xlu0 %7788, %v7725_v30   ;;  %v7762_v29 = vtrunc.f32 %v7992_v23  ;;  %v7760_v30 = vtrunc.f32 %v7995_v24 }
  0x26   : > { %v7763_v35 = vcvt.f32.s32 %v7762_v29  ;;  %v7761_v36 = vcvt.f32.s32 %v7760_v30 }
  0x28   : > { %484 = vperm.xlu1 %7789, %v7731_v38   ;;  %481 = vperm.xlu0 %7788, %v7729_v39   ;;  %v7764_v38 = vtrunc.f32 %v416_v32  ;;  %v419_v39 = vld [vmem:[%s7887_s27 + $0xe8] sm:$0xff] }
  0x2c   : > { %490 = vperm.xlu1 %7789, %v7735_v44   ;;  %487 = vperm.xlu0 %7788, %v7733_v45   ;;  %v7765_v44 = vcvt.f32.s32 %v7764_v38  ;;  %v7770_v45 = vtrunc.f32 %v419_v39 }
  0x30   : > { %496 = vperm.xlu1 %7789, %v7739_v50   ;;  %493 = vperm.xlu0 %7788, %v7737_v51   ;;  %v420_v50 = vld [vmem:[%s7887_s27 + $0xf0] sm:$0xff]  ;;  %v7771_v51 = vcvt.f32.s32 %v7770_v45 }
  0x34   : > { %502 = vperm.xlu1 %7789, %v7743_v56   ;;  %499 = vperm.xlu0 %7788, %v7741_v57   ;;  %v7772_v56 = vtrunc.f32 %v420_v50  ;;  %v7775_v57 = vcvt.f32.s32 %v7774_v53 }
  0x36   : > { %v7773_v58 = vcvt.f32.s32 %v7772_v56 }
  0x38   : > { %508 = vperm.xlu1 %7789, %v7747_v62   ;;  %505 = vperm.xlu0 %7788, %v7745_v63   ;;  %v995_v62 = vld [vmem:[%s11757_s3 + $0x28] sm:$0xff]  ;;  %v990_v63 = vld [vmem:[%s11757_s3] sm:$0xff] }
  0x39   : > { %v6342_v0 = vpack.c.bf16 %v995_v62, %v991_v59 }
  0x3b   : > { %6343 = vmatprep.subr.bf16.mxu0 %v6342_v0  ;;  %6974 = vmatprep.subr.bf16.mxu1 %v6342_v0  ;;  %v975_v0 = vld [vmem:[%s11756_s2 + $0x8] sm:$0xff] }
  0x3c   : > { %514 = vperm.xlu1 %7789, %v7751_v8   ;;  %511 = vperm.xlu0 %7788, %v7749_v9   ;;  %v6344_v8 = vpack.c.bf16 %v994_v1, %v990_v63  ;;  %v979_v1 = vld [vmem:[%s11756_s2 + $0x28] sm:$0xff] }
  0x3e   : > { %6975 = vmatpush1.bf16.msra.mxu1 %v6344_v8 }
  0x40   : > { %520 = vperm.xlu1 %7789, %v7755_v17   ;;  %517 = vperm.xlu0 %7788, %v7753_v18  }
  0x44   : > { %526 = vperm.xlu1 %7789, %v7759_v25   ;;  %523 = vperm.xlu0 %7788, %v7757_v26  }
  0x48   : > { %532 = vperm.xlu1 %7789, %v7763_v35   ;;  %529 = vperm.xlu0 %7788, %v7761_v36  }
  0x4c   : > { %538 = vperm.xlu1 %7789, %v7767_v41   ;;  %535 = vperm.xlu0 %7788, %v7765_v44  }
  0x50   : > { %544 = vperm.xlu1 %7789, %v7771_v51   ;;  %541 = vperm.xlu0 %7788, %v7769_v52  }
  0x54   : > { %550 = vperm.xlu1 %7789, %v7775_v57   ;;  %547 = vperm.xlu0 %7788, %v7773_v58  }
  0x58   : > { %1030 = vrot.lane.b32.xlu0 %v7893_v6, %s7802_s21  ;;  %1032 = vrot.lane.b32.xlu1 %v7902_v11, %s7802_s21 }
  0x5c   : > { %1034 = vrot.lane.b32.xlu0 %v7890_v5, %s7802_s21  ;;  %1036 = vrot.lane.b32.xlu1 %v7896_v7, %s7802_s21  ;;  %v454_v5 = vlaneseq }
  0x5e   : > { %v8073_v6 = vand.u32 127, %v454_v5 }
  0x60   : > { %1038 = vrot.lane.b32.xlu0 %v7909_v14, %s7802_s21  ;;  %1040 = vrot.lane.b32.xlu1 %v7906_v13, %s7802_s21  ;;  %v993_v14 = vld [vmem:[%s11757_s3 + $0x18] sm:$0xff] }
  0x64   : > { %1042 = vrot.lane.b32.xlu0 %v7917_v22, %s7802_s21  ;;  %1044 = vrot.lane.b32.xlu1 %v7914_v21, %s7802_s21  ;;  %v997_v21 = vld [vmem:[%s11757_s3 + $0x38] sm:$0xff] }
  0x68   : > { %1046 = vrot.lane.b32.xlu0 %v7925_v28, %s7802_s21  ;;  %1048 = vrot.lane.b32.xlu1 %v7922_v27, %s7802_s21 }
  0x6c   : > { %1050 = vrot.lane.b32.xlu0 %v7933_v34, %s7802_s21  ;;  %1052 = vrot.lane.b32.xlu1 %v7930_v33, %s7802_s21  ;;  %v6346_v33 = vpack.c.bf16 %v997_v21, %v993_v14 }
  0x70   : > { %1054 = vrot.lane.b32.xlu0 %v7947_v43, %s7802_s21  ;;  %1056 = vrot.lane.b32.xlu1 %v7944_v42, %s7802_s21 }
  0x74   : > { %1058 = vrot.lane.b32.xlu1 %v7955_v49, %s7802_s21  ;;  %1076 = vrot.lane.b32.xlu0 %v7984_v15, %s7802_s21 }
  0x78   : > { %1060 = vrot.lane.b32.xlu1 %v7952_v48, %s7802_s21  ;;  %1078 = vrot.lane.b32.xlu0 %v7995_v24, %s7802_s21 }
  0x7c   : > { %1062 = vrot.lane.b32.xlu1 %v7963_v55, %s7802_s21  ;;  %1080 = vrot.lane.b32.xlu0 %v7992_v23, %s7802_s21 }
  0x80   : > { %1064 = vrot.lane.b32.xlu1 %v7960_v54, %s7802_s21  ;;  %1082 = vrot.lane.b32.xlu0 %v416_v32, %s7802_s21 }
  0x84   : > { %1066 = vrot.lane.b32.xlu1 %v7971_v61, %s7802_s21  ;;  %1084 = vrot.lane.b32.xlu0 %v417_v31, %s7802_s21 }
  0x88   : > { %1068 = vrot.lane.b32.xlu1 %v7968_v60, %s7802_s21  ;;  %1086 = vrot.lane.b32.xlu0 %v418_v40, %s7802_s21 }
  0x8c   : > { %1070 = vrot.lane.b32.xlu1 %v7979_v3, %s7802_s21  ;;  %1088 = vrot.lane.b32.xlu0 %v419_v39, %s7802_s21 }
  0x90   : > { %1072 = vrot.lane.b32.xlu1 %v7976_v2, %s7802_s21  ;;  %1090 = vrot.lane.b32.xlu0 %v420_v50, %s7802_s21 }
  0x94   : > { %1074 = vrot.lane.b32.xlu1 %v7987_v16, %s7802_s21  ;;  %1092 = vrot.lane.b32.xlu0 %v421_v47, %s7802_s21 }
  0x97   : > { %v464_v7 = vpop.permute.xlu1 %463  ;;  %v458_v11 = vpop.permute.xlu0 %457 }
  0x98   : > { %vm552_vm1 = vcmp.eq.s32.totalorder %v458_v11, %v8073_v6  ;;  %vm554_vm2 = vcmp.eq.s32.totalorder %v464_v7, %v8073_v6  ;;  %v6350_v11 = vpack.c.bf16 %v979_v1, %v975_v0  ;;  %v989_v0 = vld [vmem:[%s11756_s2 + $0x78] sm:$0xff] }
  0x99   : > { %v6047_v13 = vsel %vm552_vm1, 1.0, %v7801_v4  ;;  %v6049_v28 = vsel %vm554_vm2, 1.0, %v7801_v4 }
  0x9a   : > { %6286 = vmatprep.mubr.msk.f32.mxu0 %vm652_vm0, %v6047_v13  ;;  %6351 = vmatprep.subr.bf16.mxu1 %v6350_v11  ;;  %v988_v11 = vld [vmem:[%s11756_s2 + $0x70] sm:$0xff] }
  0x9b   : > { %v467_v22 = vpop.permute.xlu1 %466  ;;  %v461_v27 = vpop.permute.xlu0 %460 }
  0x9c   : > { %vm555_vm3 = vcmp.eq.s32.totalorder %v467_v22, %v8073_v6  ;;  %vm553_vm4 = vcmp.eq.s32.totalorder %v461_v27, %v8073_v6 }
  0x9d   : > { %v6048_v34 = vsel %vm553_vm4, 1.0, %v7801_v4  ;;  %v6050_v42 = vsel %vm555_vm3, 1.0, %v7801_v4 }
  0x9e   : > { %6287 = vmatmul.mubr.msk.f32.vlgmr.msra.gmra.mrb[0].mxu0 %vm652_vm0, %v6048_v34  ;;  %v992_v34 = vld [vmem:[%s11757_s3 + $0x10] sm:$0xff] }
  0x9f   : > { %v473_v43 = vpop.permute.xlu1 %472  ;;  %v470_v48 = vpop.permute.xlu0 %469  ;;  %6289 = vmatprep.mubr.msk.f32.mxu0 %vm652_vm0, %v6049_v28  ;;  %6345 = vmatpush1.bf16.msra.mxu0 %v6344_v8 }
  0xa0   : > { %vm556_vm5 = vcmp.eq.s32.totalorder %v470_v48, %v8073_v6  ;;  %6347 = vmatprep.subr.bf16.mxu0 %v6346_v33  ;;  %vm557_vm6 = vcmp.eq.s32.totalorder %v473_v43, %v8073_v6 }
  0xa1   : > { %v6051_v49 = vsel %vm556_vm5, 1.0, %v7801_v4  ;;  %v6052_v60 = vsel %vm557_vm6, 1.0, %v7801_v4 }
  0xa2   : > { %6290 = vmatmul.mubr.msk.f32.gmra.mrb[2].mxu0 %vm652_vm0, %v6050_v42  ;;  %v996_v42 = vld [vmem:[%s11757_s3 + $0x30] sm:$0xff] }
  0xa3   : > { %v479_v54 = vpop.permute.xlu1 %478  ;;  %6292 = vmatprep.mubr.msk.f32.mxu0 %vm652_vm0, %v6051_v49  ;;  %v476_v55 = vpop.permute.xlu0 %475  ;;  %v6348_v48 = vpack.c.bf16 %v996_v42, %v992_v34  ;;  %v2574_v34 = vld [vmem:[%s11759_s5 + $0x68] sm:$0xff] }
  0xa4   : > { %vm558_vm7 = vcmp.eq.s32.totalorder %v476_v55, %v8073_v6  ;;  %vm559_vm8 = vcmp.eq.s32.totalorder %v479_v54, %v8073_v6 }
  0xa5   : > { %v6053_v61 = vsel %vm558_vm7, 1.0, %v7801_v4  ;;  %v6054_v9 = vsel %vm559_vm8, 1.0, %v7801_v4 }
  0xa6   : > { %6293 = vmatmul.mubr.msk.f32.gmra.mrb[4].mxu0 %vm652_vm0, %v6052_v60 }
  0xa7   : > { %v485_v2 = vpop.permute.xlu1 %484  ;;  %6295 = vmatprep.mubr.msk.f32.mxu0 %vm652_vm0, %v6053_v61  ;;  %v482_v3 = vpop.permute.xlu0 %481 }
  0xa8   : > { %vm560_vm9 = vcmp.eq.s32.totalorder %v482_v3, %v8073_v6  ;;  %vm561_vm10 = vcmp.eq.s32.totalorder %v485_v2, %v8073_v6 }
  0xa9   : > { %v6055_v10 = vsel %vm560_vm9, 1.0, %v7801_v4  ;;  %v6056_v16 = vsel %vm561_vm10, 1.0, %v7801_v4 }
  0xaa   : > { %6296 = vmatmul.mubr.msk.f32.gmra.mrb[6].mxu0 %vm652_vm0, %v6054_v9  ;;  %v974_v9 = vld [vmem:[%s11756_s2] sm:$0xff] }
  0xab   : > { %v491_v12 = vpop.permute.xlu1 %490  ;;  %6298 = vmatprep.mubr.msk.f32.mxu0 %vm652_vm0, %v6055_v10  ;;  %v488_v15 = vpop.permute.xlu0 %487  ;;  %v978_v10 = vld [vmem:[%s11756_s2 + $0x20] sm:$0xff] }
  0xac   : > { %vm562_vm11 = vcmp.eq.s32.totalorder %v488_v15, %v8073_v6  ;;  %vm563_vm12 = vcmp.eq.s32.totalorder %v491_v12, %v8073_v6  ;;  %v983_v15 = vld [vmem:[%s11756_s2 + $0x48] sm:$0xff] }
  0xad   : > { %v6057_v17 = vsel %vm562_vm11, 1.0, %v7801_v4  ;;  %v6058_v20 = vsel %vm563_vm12, 1.0, %v7801_v4 }
  0xae   : > { %6299 = vmatmul.mubr.msk.f32.gmra.mrb[8].mxu0 %vm652_vm0, %v6056_v16  ;;  %v987_v16 = vld [vmem:[%s11756_s2 + $0x68] sm:$0xff] }
  0xaf   : > { %v497_v18 = vpop.permute.xlu1 %496  ;;  %6301 = vmatprep.mubr.msk.f32.mxu0 %vm652_vm0, %v6057_v17  ;;  %v494_v19 = vpop.permute.xlu0 %493 }
  0xb0   : > { %vm564_vm13 = vcmp.eq.s32.totalorder %v494_v19, %v8073_v6  ;;  %vm565_vm14 = vcmp.eq.s32.totalorder %v497_v18, %v8073_v6  ;;  %v6352_v18 = vpack.c.bf16 %v978_v10, %v974_v9  ;;  %v6354_v19 = vpack.c.bf16 %v987_v16, %v983_v15  ;;  %v2577_v9 = vld [vmem:[%s11759_s5 + $0x80] sm:$0xff]  ;;  %v2586_v15 = vld [vmem:[%s11759_s5 + $0xc8] sm:$0xff] }
  0xb1   : > { %v6059_v23 = vsel %vm564_vm13, 1.0, %v7801_v4  ;;  %v6060_v26 = vsel %vm565_vm14, 1.0, %v7801_v4  ;;  %v2581_v10 = vld [vmem:[%s11759_s5 + $0xa0] sm:$0xff]  ;;  %v2590_v16 = vld [vmem:[%s11759_s5 + $0xe8] sm:$0xff] }
  0xb2   : > { %6302 = vmatmul.mubr.msk.f32.gmra.mrb[10].mxu0 %vm652_vm0, %v6058_v20  ;;  %v982_v20 = vld [vmem:[%s11756_s2 + $0x40] sm:$0xff] }
  0xb3   : > { %v503_v24 = vpop.permute.xlu1 %502  ;;  %6304 = vmatprep.mubr.msk.f32.mxu0 %vm652_vm0, %v6059_v23  ;;  %v500_v25 = vpop.permute.xlu0 %499  ;;  %v986_v23 = vld [vmem:[%s11756_s2 + $0x60] sm:$0xff] }
  0xb4   : > { %vm566_vm15 = vcmp.eq.s32.totalorder %v500_v25, %v8073_v6  ;;  %vm567_vm1 = vcmp.eq.s32.totalorder %v503_v24, %v8073_v6  ;;  %v977_v25 = vld [vmem:[%s11756_s2 + $0x18] sm:$0xff] }
  0xb5   : > { %v6061_v29 = vsel %vm566_vm15, 1.0, %v7801_v4  ;;  %v6062_v32 = vsel %vm567_vm1, 1.0, %v7801_v4 }
  0xb6   : > { %6305 = vmatmul.mubr.msk.f32.gmra.mrb[12].mxu0 %vm652_vm0, %v6060_v26  ;;  %v981_v26 = vld [vmem:[%s11756_s2 + $0x38] sm:$0xff] }
  0xb7   : > { %v509_v30 = vpop.permute.xlu1 %508  ;;  %6307 = vmatprep.mubr.msk.f32.mxu0 %vm652_vm0, %v6061_v29  ;;  %v506_v31 = vpop.permute.xlu0 %505  ;;  %v6358_v29 = vpack.c.bf16 %v981_v26, %v977_v25  ;;  %v2594_v26 = vld [vmem:[%s11759_s5 + $0x108] sm:$0xff] }
  0xb8   : > { %vm568_vm2 = vcmp.eq.s32.totalorder %v506_v31, %v8073_v6  ;;  %vm569_vm3 = vcmp.eq.s32.totalorder %v509_v30, %v8073_v6  ;;  %v6356_v31 = vpack.c.bf16 %v986_v23, %v982_v20  ;;  %v2585_v20 = vld [vmem:[%s11759_s5 + $0xc0] sm:$0xff] }
  0xb9   : > { %v6063_v35 = vsel %vm568_vm2, 1.0, %v7801_v4  ;;  %v6064_v38 = vsel %vm569_vm3, 1.0, %v7801_v4  ;;  %vm1094_vm3 = vcmask 130048   ;;  %v2589_v23 = vld [vmem:[%s11759_s5 + $0xe0] sm:$0xff] }
  0xba   : > { %6308 = vmatmul.mubr.msk.f32.gmra.mrb[14].mxu0 %vm652_vm0, %v6062_v32 }
  0xbb   : > { %v515_v36 = vpop.permute.xlu1 %514  ;;  %6310 = vmatprep.mubr.msk.f32.mxu0 %vm652_vm0, %v6063_v35  ;;  %v512_v37 = vpop.permute.xlu0 %511 }
  0xbc   : > { %vm570_vm4 = vcmp.eq.s32.totalorder %v512_v37, %v8073_v6  ;;  %vm571_vm5 = vcmp.eq.s32.totalorder %v515_v36, %v8073_v6 }
  0xbd   : > { %v6065_v39 = vsel %vm570_vm4, 1.0, %v7801_v4  ;;  %v6066_v44 = vsel %vm571_vm5, 1.0, %v7801_v4 }
  0xbe   : > { %6311 = vmatmul.mubr.msk.f32.gmra.mrb[16].mxu0 %vm652_vm0, %v6064_v38 }
  0xbf   : > { %v521_v40 = vpop.permute.xlu1 %520  ;;  %6313 = vmatprep.mubr.msk.f32.mxu0 %vm652_vm0, %v6065_v39  ;;  %v518_v41 = vpop.permute.xlu0 %517 }
  0xc0   : > { %vm572_vm6 = vcmp.eq.s32.totalorder %v518_v41, %v8073_v6  ;;  %vm573_vm7 = vcmp.eq.s32.totalorder %v521_v40, %v8073_v6 }
  0xc1   : > { %v6067_v45 = vsel %vm572_vm6, 1.0, %v7801_v4  ;;  %v6068_v50 = vsel %vm573_vm7, 1.0, %v7801_v4 }
  0xc2   : > { %6314 = vmatmul.mubr.msk.f32.gmra.mrb[18].mxu0 %vm652_vm0, %v6066_v44 }
  0xc3   : > { %v527_v46 = vpop.permute.xlu1 %526  ;;  %6316 = vmatprep.mubr.msk.f32.mxu0 %vm652_vm0, %v6067_v45  ;;  %v524_v47 = vpop.permute.xlu0 %523 }
  0xc4   : > { %vm574_vm8 = vcmp.eq.s32.totalorder %v524_v47, %v8073_v6  ;;  %vm575_vm9 = vcmp.eq.s32.totalorder %v527_v46, %v8073_v6 }
  0xc5   : > { %v6069_v51 = vsel %vm574_vm8, 1.0, %v7801_v4  ;;  %v6070_v56 = vsel %vm575_vm9, 1.0, %v7801_v4 }
  0xc6   : > { %6317 = vmatmul.mubr.msk.f32.gmra.mrb[20].mxu0 %vm652_vm0, %v6068_v50 }
  0xc7   : > { %v533_v52 = vpop.permute.xlu1 %532  ;;  %6319 = vmatprep.mubr.msk.f32.mxu0 %vm652_vm0, %v6069_v51  ;;  %v530_v53 = vpop.permute.xlu0 %529 }
  0xc8   : > { %vm576_vm10 = vcmp.eq.s32.totalorder %v530_v53, %v8073_v6  ;;  %vm577_vm11 = vcmp.eq.s32.totalorder %v533_v52, %v8073_v6 }
  0xc9   : > { %v6071_v57 = vsel %vm576_vm10, 1.0, %v7801_v4  ;;  %v6072_v62 = vsel %vm577_vm11, 1.0, %v7801_v4 }
  0xca   : > { %6320 = vmatmul.mubr.msk.f32.gmra.mrb[22].mxu0 %vm652_vm0, %v6070_v56 }
  0xcb   : > { %v539_v58 = vpop.permute.xlu1 %538  ;;  %6322 = vmatprep.mubr.msk.f32.mxu0 %vm652_vm0, %v6071_v57  ;;  %v536_v59 = vpop.permute.xlu0 %535 }
  0xcc   : > { %vm578_vm12 = vcmp.eq.s32.totalorder %v536_v59, %v8073_v6  ;;  %vm579_vm13 = vcmp.eq.s32.totalorder %v539_v58, %v8073_v6  ;;  %v976_v59 = vld [vmem:[%s11756_s2 + $0x10] sm:$0xff] }
  0xcd   : > { %v6073_v63 = vsel %vm578_vm12, 1.0, %v7801_v4  ;;  %v6074_v13 = vsel %vm579_vm13, 1.0, %v7801_v4 }
  0xce   : > { %6323 = vmatmul.mubr.msk.f32.gmra.mrb[24].mxu0 %vm652_vm0, %v6072_v62  ;;  %v980_v62 = vld [vmem:[%s11756_s2 + $0x30] sm:$0xff] }
  0xcf   : > { %v545_v8 = vpop.permute.xlu1 %544  ;;  %6325 = vmatprep.mubr.msk.f32.mxu0 %vm652_vm0, %v6073_v63  ;;  %v542_v7 = vpop.permute.xlu0 %541  ;;  %v985_v63 = vld [vmem:[%s11756_s2 + $0x58] sm:$0xff]  ;;  %v6360_v1 = vpack.c.bf16 %v980_v62, %v976_v59  ;;  %v2606_v59 = vld [vmem:[%s11759_s5 + $0x168] sm:$0xff] }
  0xd0   : > { %vm580_vm14 = vcmp.eq.s32.totalorder %v542_v7, %v8073_v6  ;;  %vm581_vm15 = vcmp.eq.s32.totalorder %v545_v8, %v8073_v6  ;;  %v6362_v8 = vpack.c.bf16 %v989_v0, %v985_v63  ;;  %v984_v7 = vld [vmem:[%s11756_s2 + $0x50] sm:$0xff]  ;;  %v2601_v0 = vld [vmem:[%s11759_s5 + $0x140] sm:$0xff] }
  0xd1   : > { %v6075_v14 = vsel %vm580_vm14, 1.0, %v7801_v4  ;;  %v6076_v27 = vsel %vm581_vm15, 1.0, %v7801_v4 }
  0xd2   : > { %6326 = vmatmul.mubr.msk.f32.gmra.mrb[26].mxu0 %vm652_vm0, %v6074_v13  ;;  %v6364_v13 = vpack.c.bf16 %v988_v11, %v984_v7  ;;  %v2610_v7 = vld [vmem:[%s11759_s5 + $0x188] sm:$0xff] }
  0xd3   : > { %v551_v21 = vpop.permute.xlu1 %550  ;;  %6328 = vmatprep.mubr.msk.f32.mxu0 %vm652_vm0, %v6075_v14  ;;  %v548_v22 = vpop.permute.xlu0 %547  ;;  %v2562_v14 = vld [vmem:[%s11759_s5 + $0x8] sm:$0xff] }
  0xd4   : > { %vm582_vm1 = vcmp.eq.s32.totalorder %v548_v22, %v8073_v6  ;;  %vm583_vm2 = vcmp.eq.s32.totalorder %v551_v21, %v8073_v6  ;;  %v2566_v21 = vld [vmem:[%s11759_s5 + $0x28] sm:$0xff] }
  0xd5   : > { %v6077_v28 = vsel %vm582_vm1, 1.0, %v7801_v4  ;;  %v6078_v43 = vsel %vm583_vm2, 1.0, %v7801_v4  ;;  %v6366_v22 = vpack.c.bf16 %v2566_v21, %v2562_v14  ;;  %v2614_v11 = vld [vmem:[%s11759_s5 + $0x1a8] sm:$0xff]  ;;  %v2609_v21 = vld [vmem:[%s11759_s5 + $0x180] sm:$0xff] }
  0xd6   : > { %6329 = vmatmul.mubr.msk.f32.gmra.mrb[28].mxu0 %vm652_vm0, %v6076_v27  ;;  %v2561_v27 = vld [vmem:[%s11759_s5] sm:$0xff] }
  0xd7   : > { %6331 = vmatprep.mubr.msk.f32.mxu0 %vm652_vm0, %v6077_v28  ;;  %v8184_v33 = vpop.permute.xlu0 %1030  ;;  %v8199_v49 = vpop.permute.xlu1 %1032  ;;  %v2565_v28 = vld [vmem:[%s11759_s5 + $0x20] sm:$0xff] }
  0xd8   : > { %v6368_v42 = vpack.c.bf16 %v2565_v28, %v2561_v27  ;;  %v2618_v28 = vld [vmem:[%s11759_s5 + $0x1c8] sm:$0xff] }
  0xda   : > { %6332 = vmatmul.mubr.msk.f32.gmra.mrb[30].mxu0 %vm652_vm0, %v6078_v43 }
  0xdb   : > { %1223 = vmatprep.mubr.f32.mxu0 %v7801_v4  ;;  %v8195_v6 = vpop.permute.xlu0 %1034  ;;  %v8211_v60 = vpop.permute.xlu1 %1036 }
  0xde   : > { %6111 = vmatmul.mubr.msk.f32.vlgmr.msra.gmra.mrb[32].mxu0 %vm1094_vm3, %v8184_v33 }
  0xdf   : > { %1229 = vmatprep.mubr.f32.mxu0 %v7801_v4  ;;  %v8202_v54 = vpop.permute.xlu0 %1038  ;;  %6349 = vmatpush1.bf16.msra.mxu0 %v6348_v48  ;;  %v8221_v3 = vpop.permute.xlu1 %1040  ;;  %v2569_v48 = vld [vmem:[%s11759_s5 + $0x40] sm:$0xff] }
  0xe0   : > { %6359 = vmatprep.subr.bf16.mxu0 %v6358_v29  ;;  %v2598_v29 = vld [vmem:[%s11759_s5 + $0x128] sm:$0xff] }
  0xe2   : > { %6112 = vmatmul.mubr.msk.f32.gmra.mrb[34].mxu0 %vm1094_vm3, %v8199_v49 }
  0xe3   : > { %1235 = vmatprep.mubr.f32.mxu0 %v7801_v4  ;;  %v8207_v55 = vpop.permute.xlu0 %1042  ;;  %v8240_v17 = vpop.permute.xlu1 %1044 }
  0xe6   : > { %6113 = vmatmul.mubr.msk.f32.gmra.mrb[36].mxu0 %vm1094_vm3, %v8195_v6 }
  0xe7   : > { %1241 = vmatprep.mubr.f32.mxu0 %v7801_v4  ;;  %v8214_v61 = vpop.permute.xlu0 %1046  ;;  %v8261_v30 = vpop.permute.xlu1 %1048 }
  0xea   : > { %6114 = vmatmul.mubr.msk.f32.gmra.mrb[38].mxu0 %vm1094_vm3, %v8211_v60 }
  0xeb   : > { %1247 = vmatprep.mubr.f32.mxu0 %v7801_v4  ;;  %v8219_v2 = vpop.permute.xlu0 %1050  ;;  %v8271_v35 = vpop.permute.xlu1 %1052 }
  0xee   : > { %6115 = vmatmul.mubr.msk.f32.gmra.mrb[40].mxu0 %vm1094_vm3, %v8202_v54 }
  0xef   : > { %1253 = vmatprep.mubr.f32.mxu0 %v7801_v4  ;;  %v8232_v12 = vpop.permute.xlu0 %1054  ;;  %v8281_v37 = vpop.permute.xlu1 %1056 }
  0xf2   : > { %6116 = vmatmul.mubr.msk.f32.gmra.mrb[42].mxu0 %vm1094_vm3, %v8221_v3 }
  0xf3   : > { %1259 = vmatprep.mubr.f32.mxu0 %v7801_v4  ;;  %v8251_v24 = vpop.permute.xlu0 %1076  ;;  %v8295_v39 = vpop.permute.xlu1 %1058 }
  0xf4   : > { %6134 = vmatmul.mubr.msk.f32.vlgmr.msra.gmra.mrb[0].mxu1 %vm1094_vm3, %v8251_v24 }
  0xf5   : > { %6353 = vmatpush1.bf16.msra.mxu1 %v6352_v18  ;;  %1367 = vmatprep.mubr.f32.mxu1 %v7801_v4 }
  0xf6   : > { %6117 = vmatmul.mubr.msk.f32.gmra.mrb[44].mxu0 %vm1094_vm3, %v8207_v55  ;;  %6355 = vmatprep.subr.bf16.mxu1 %v6354_v19  ;;  %v6378_v19 = vpack.c.bf16 %v2590_v16, %v2586_v15  ;;  %v2630_v15 = vld [vmem:[%s11759_s5 + $0x228] sm:$0xff]  ;;  %v2625_v16 = vld [vmem:[%s11759_s5 + $0x200] sm:$0xff] }
  0xf7   : > { %1265 = vmatprep.mubr.f32.mxu0 %v7801_v4  ;;  %v8267_v32 = vpop.permute.xlu0 %1078  ;;  %v8309_v44 = vpop.permute.xlu1 %1060 }
  0xf8   : > { %6135 = vmatmul.mubr.msk.f32.gmra.mrb[2].mxu1 %vm1094_vm3, %v8267_v32 }
  0xf9   : > { %1373 = vmatprep.mubr.f32.mxu1 %v7801_v4  ;;  %6357 = vmatpush1.bf16.msra.mxu1 %v6356_v31 }
  0xfa   : > { %6118 = vmatmul.mubr.msk.f32.gmra.mrb[46].mxu0 %vm1094_vm3, %v8240_v17  ;;  %6367 = vmatprep.subr.bf16.mxu1 %v6366_v22  ;;  %v2613_v22 = vld [vmem:[%s11759_s5 + $0x1a0] sm:$0xff] }
  0xfb   : > { %1271 = vmatprep.mubr.f32.mxu0 %v7801_v4  ;;  %v8277_v36 = vpop.permute.xlu0 %1080  ;;  %v8323_v46 = vpop.permute.xlu1 %1062 }
  0xfc   : > { %6136 = vmatmul.mubr.msk.f32.gmra.mrb[4].mxu1 %vm1094_vm3, %v8277_v36 }
  0xfd   : > { %1379 = vmatprep.mubr.f32.mxu1 %v7801_v4 }
  0xfe   : > { %6119 = vmatmul.mubr.msk.f32.gmra.mrb[48].mxu0 %vm1094_vm3, %v8214_v61 }
  0xff   : > { %1277 = vmatprep.mubr.f32.mxu0 %v7801_v4  ;;  %v8287_v38 = vpop.permute.xlu0 %1082  ;;  %v8337_v51 = vpop.permute.xlu1 %1064 }
 0x100   : > { %6137 = vmatmul.mubr.msk.f32.gmra.mrb[6].mxu1 %vm1094_vm3, %v8287_v38 }
 0x101   : > { %1385 = vmatprep.mubr.f32.mxu1 %v7801_v4 }
 0x102   : > { %6120 = vmatmul.mubr.msk.f32.gmra.mrb[50].mxu0 %vm1094_vm3, %v8261_v30 }
 0x103   : > { %1283 = vmatprep.mubr.f32.mxu0 %v7801_v4  ;;  %v8297_v40 = vpop.permute.xlu0 %1084  ;;  %v8346_v52 = vpop.permute.xlu1 %1066 }
 0x104   : > { %6138 = vmatmul.mubr.msk.f32.gmra.mrb[8].mxu1 %vm1094_vm3, %v8297_v40 }
 0x105   : > { %1391 = vmatprep.mubr.f32.mxu1 %v7801_v4 }
 0x106   : > { %6121 = vmatmul.mubr.msk.f32.gmra.mrb[52].mxu0 %vm1094_vm3, %v8219_v2 }
 0x107   : > { %1289 = vmatprep.mubr.f32.mxu0 %v7801_v4  ;;  %v8305_v41 = vpop.permute.xlu0 %1086  ;;  %v8351_v53 = vpop.permute.xlu1 %1068 }
 0x108   : > { %6139 = vmatmul.mubr.msk.f32.gmra.mrb[10].mxu1 %vm1094_vm3, %v8305_v41 }
 0x109   : > { %1397 = vmatprep.mubr.f32.mxu1 %v7801_v4 }
 0x10a   : > { %6122 = vmatmul.mubr.msk.f32.gmra.mrb[54].mxu0 %vm1094_vm3, %v8271_v35 }
 0x10b   : > { %1295 = vmatprep.mubr.f32.mxu0 %v7801_v4  ;;  %v8315_v45 = vpop.permute.xlu0 %1088  ;;  %v8359_v56 = vpop.permute.xlu1 %1070 }
 0x10c   : > { %6140 = vmatmul.mubr.msk.f32.gmra.mrb[12].mxu1 %vm1094_vm3, %v8315_v45 }
 0x10d   : > { %1403 = vmatprep.mubr.f32.mxu1 %v7801_v4 }
 0x10e   : > { %6123 = vmatmul.mubr.msk.f32.gmra.mrb[56].mxu0 %vm1094_vm3, %v8232_v12 }
 0x10f   : > { %1301 = vmatprep.mubr.f32.mxu0 %v7801_v4  ;;  %v8325_v47 = vpop.permute.xlu0 %1090  ;;  %v8364_v57 = vpop.permute.xlu1 %1072 }
 0x110   : > { %6141 = vmatmul.mubr.msk.f32.gmra.mrb[14].mxu1 %vm1094_vm3, %v8325_v47 }
 0x111   : > { %1409 = vmatprep.mubr.f32.mxu1 %v7801_v4 }
 0x112   : > { %6124 = vmatmul.mubr.msk.f32.gmra.mrb[58].mxu0 %vm1094_vm3, %v8281_v37 }
 0x113   : > { %1307 = vmatprep.mubr.f32.mxu0 %v7801_v4  ;;  %v8333_v50 = vpop.permute.xlu0 %1092  ;;  %v8371_v58 = vpop.permute.xlu1 %1074 }
 0x114   : > { %6142 = vmatmul.mubr.msk.f32.gmra.mrb[16].mxu1 %vm1094_vm3, %v8333_v50 }
 0x115   : > { %1833 = vmatprep.mubr.f32.mxu1 %v7801_v4 }
 0x116   : > { %6125 = vmatmul.mubr.msk.f32.gmra.mrb[60].mxu0 %vm1094_vm3, %v8295_v39 }
 0x117   : > { %1313 = vmatprep.mubr.f32.mxu0 %v7801_v4 }
 0x11a   : > { %6126 = vmatmul.mubr.msk.f32.gmra.mrb[62].mxu0 %vm1094_vm3, %v8309_v44 }
 0x11b   : > { %1319 = vmatprep.mubr.f32.mxu0 %v7801_v4 }
 0x11e   : > { %6127 = vmatmul.mubr.msk.f32.gmra.mrb[64].mxu0 %vm1094_vm3, %v8323_v46 }
 0x11f   : > { %1325 = vmatprep.mubr.f32.mxu0 %v7801_v4 }
 0x122   : > { %6128 = vmatmul.mubr.msk.f32.gmra.mrb[66].mxu0 %vm1094_vm3, %v8337_v51 }
 0x123   : > { %1331 = vmatprep.mubr.f32.mxu0 %v7801_v4 }
 0x126   : > { %6129 = vmatmul.mubr.msk.f32.gmra.mrb[68].mxu0 %vm1094_vm3, %v8346_v52 }
 0x127   : > { %1337 = vmatprep.mubr.f32.mxu0 %v7801_v4 }
 0x12a   : > { %6130 = vmatmul.mubr.msk.f32.gmra.mrb[70].mxu0 %vm1094_vm3, %v8351_v53 }
 0x12b   : > { %1343 = vmatprep.mubr.f32.mxu0 %v7801_v4 }
 0x12e   : > { %6131 = vmatmul.mubr.msk.f32.gmra.mrb[72].mxu0 %vm1094_vm3, %v8359_v56 }
 0x12f   : > { %1349 = vmatprep.mubr.f32.mxu0 %v7801_v4 }
 0x132   : > { %6132 = vmatmul.mubr.msk.f32.gmra.mrb[74].mxu0 %vm1094_vm3, %v8364_v57 }
 0x133   : > { %1355 = vmatprep.mubr.f32.mxu0 %v7801_v4 }
 0x136   : > { %6133 = vmatmul.mubr.msk.f32.gmra.mrb[76].mxu0 %vm1094_vm3, %v8371_v58 }
 0x137   : > { %1480 = vmatprep.mubr.f32.mxu0 %v7801_v4 }
 0x13a   : > { %6143 = vmatmul.mubr.msk.f32.vlgmr.msra.gmra.mrb[78].mxu0 %vm1094_vm3, %v8184_v33  ;;  %v2570_v33 = vld [vmem:[%s11759_s5 + $0x48] sm:$0xff] }
 0x13b   : > { %1486 = vmatprep.mubr.f32.mxu0 %v7801_v4  ;;  %6361 = vmatpush1.bf16.msra.mxu0 %v6360_v1  ;;  %v2605_v1 = vld [vmem:[%s11759_s5 + $0x160] sm:$0xff] }
 0x13c   : > { %6363 = vmatprep.subr.bf16.mxu0 %v6362_v8 }
 0x13e   : > { %6144 = vmatmul.mubr.msk.f32.gmra.mrb[80].mxu0 %vm1094_vm3, %v8199_v49  ;;  %v2573_v49 = vld [vmem:[%s11759_s5 + $0x60] sm:$0xff] }
 0x13f   : > { %1492 = vmatprep.mubr.f32.mxu0 %v7801_v4  ;;  %6365 = vmatpush1.bf16.msra.mxu0 %v6364_v13  ;;  %v6388_v13 = vpack.c.bf16 %v2605_v1, %v2601_v0  ;;  %v2642_v0 = vld [vmem:[%s11759_s5 + $0x288] sm:$0xff]  ;;  %v2641_v1 = vld [vmem:[%s11759_s5 + $0x280] sm:$0xff] }
 0x142   : > { %6145 = vmatmul.mubr.msk.f32.gmra.mrb[82].mxu0 %vm1094_vm3, %v8195_v6  ;;  %v6370_v6 = vpack.c.bf16 %v2574_v34, %v2570_v33  ;;  %v2622_v33 = vld [vmem:[%s11759_s5 + $0x1e8] sm:$0xff]  ;;  %v6392_v34 = vpack.c.bf16 %v2613_v22, %v2609_v21 }
 0x143   : > { %1498 = vmatprep.mubr.f32.mxu0 %v7801_v4 }
 0x146   : > { %6146 = vmatmul.mubr.msk.f32.gmra.mrb[84].mxu0 %vm1094_vm3, %v8211_v60  ;;  %v2582_v60 = vld [vmem:[%s11759_s5 + $0xa8] sm:$0xff] }
 0x147   : > { %1504 = vmatprep.mubr.f32.mxu0 %v7801_v4 }
 0x14a   : > { %6147 = vmatmul.mubr.msk.f32.gmra.mrb[86].mxu0 %vm1094_vm3, %v8202_v54 }
 0x14b   : > { %1510 = vmatprep.mubr.f32.mxu0 %v7801_v4 }
 0x14e   : > { %6148 = vmatmul.mubr.msk.f32.gmra.mrb[88].mxu0 %vm1094_vm3, %v8221_v3 }
 0x14f   : > { %1516 = vmatprep.mubr.f32.mxu0 %v7801_v4 }
 0x152   : > { %6149 = vmatmul.mubr.msk.f32.gmra.mrb[90].mxu0 %vm1094_vm3, %v8207_v55  ;;  %v2578_v55 = vld [vmem:[%s11759_s5 + $0x88] sm:$0xff] }
 0x153   : > { %1522 = vmatprep.mubr.f32.mxu0 %v7801_v4  ;;  %v6374_v3 = vpack.c.bf16 %v2582_v60, %v2578_v55  ;;  %v2564_v60 = vld [vmem:[%s11759_s5 + $0x18] sm:$0xff] }
 0x156   : > { %6150 = vmatmul.mubr.msk.f32.gmra.mrb[92].mxu0 %vm1094_vm3, %v8240_v17  ;;  %v6376_v17 = vpack.c.bf16 %v2581_v10, %v2577_v9  ;;  %v2626_v10 = vld [vmem:[%s11759_s5 + $0x208] sm:$0xff] }
 0x157   : > { %1528 = vmatprep.mubr.f32.mxu0 %v7801_v4 }
 0x15a   : > { %6151 = vmatmul.mubr.msk.f32.gmra.mrb[94].mxu0 %vm1094_vm3, %v8214_v61  ;;  %v6372_v61 = vpack.c.bf16 %v2573_v49, %v2569_v48  ;;  %v2621_v48 = vld [vmem:[%s11759_s5 + $0x1e0] sm:$0xff] }
 0x15b   : > { %1534 = vmatprep.mubr.f32.mxu0 %v7801_v4 }
 0x15e   : > { %6152 = vmatmul.mubr.msk.f32.gmra.mrb[96].mxu0 %vm1094_vm3, %v8261_v30  ;;  %v6380_v30 = vpack.c.bf16 %v2589_v23, %v2585_v20 }
 0x15f   : > { %1540 = vmatprep.mubr.f32.mxu0 %v7801_v4 }
 0x162   : > { %6153 = vmatmul.mubr.msk.f32.gmra.mrb[98].mxu0 %vm1094_vm3, %v8219_v2 }
 0x163   : > { %1546 = vmatprep.mubr.f32.mxu0 %v7801_v4 }
 0x166   : > { %6154 = vmatmul.mubr.msk.f32.gmra.mrb[100].mxu0 %vm1094_vm3, %v8271_v35  ;;  %v6382_v35 = vpack.c.bf16 %v2598_v29, %v2594_v26 }
 0x167   : > { %1552 = vmatprep.mubr.f32.mxu0 %v7801_v4 }
 0x16a   : > { %6155 = vmatmul.mubr.msk.f32.gmra.mrb[102].mxu0 %vm1094_vm3, %v8232_v12 }
 0x16b   : > { %1558 = vmatprep.mubr.f32.mxu0 %v7801_v4 }
 0x16e   : > { %6156 = vmatmul.mubr.msk.f32.gmra.mrb[104].mxu0 %vm1094_vm3, %v8281_v37  ;;  %v2593_v37 = vld [vmem:[%s11759_s5 + $0x100] sm:$0xff] }
 0x16f   : > { %1564 = vmatprep.mubr.f32.mxu0 %v7801_v4 }
 0x171   : > { %v8455_v43 = vpop.f32.mrb[0].mxu0 }
 0x172   : > { %v8463_v54 = vpop.f32.mrb[1].mxu0  ;;  %6157 = vmatmul.mubr.msk.f32.gmra.mrb[106].mxu0 %vm1094_vm3, %v8295_v39  ;;  %v2597_v39 = vld [vmem:[%s11759_s5 + $0x120] sm:$0xff] }
 0x173   : > { %6175 = vmatmul.mubr.msk.f32.vlgmr.msra.gmra.mrb[18].mxu1 %vm652_vm0, %v8463_v54  ;;  %1570 = vmatprep.mubr.f32.mxu0 %v7801_v4  ;;  %v6384_v62 = vpack.c.bf16 %v2597_v39, %v2593_v37 }
 0x174   : > { %1839 = vmatprep.mubr.f32.mxu1 %v7801_v4  ;;  %6369 = vmatpush1.bf16.msra.mxu1 %v6368_v42 }
 0x175   : > { %v8477_v2 = vpop.f32.mrb[2].mxu0  ;;  %6371 = vmatprep.subr.bf16.mxu1 %v6370_v6  ;;  %v2617_v6 = vld [vmem:[%s11759_s5 + $0x1c0] sm:$0xff] }
 0x176   : > { %v8485_v12 = vpop.f32.mrb[3].mxu0  ;;  %6158 = vmatmul.mubr.msk.f32.gmra.mrb[108].mxu0 %vm1094_vm3, %v8309_v44  ;;  %v6396_v55 = vpack.c.bf16 %v2621_v48, %v2617_v6 }
 0x177   : > { %6176 = vmatmul.mubr.msk.f32.gmra.mrb[20].mxu1 %vm652_vm0, %v8455_v43  ;;  %1576 = vmatprep.mubr.f32.mxu0 %v7801_v4 }
 0x178   : > { %1845 = vmatprep.mubr.f32.mxu1 %v7801_v4  ;;  %6373 = vmatpush1.bf16.msra.mxu1 %v6372_v61  ;;  %v2568_v61 = vld [vmem:[%s11759_s5 + $0x38] sm:$0xff] }
 0x179   : > { %v8499_v18 = vpop.f32.mrb[4].mxu0  ;;  %6375 = vmatprep.subr.bf16.mxu1 %v6374_v3 }
 0x17a   : > { %v8507_v25 = vpop.f32.mrb[5].mxu0  ;;  %6159 = vmatmul.mubr.msk.f32.gmra.mrb[110].mxu0 %vm1094_vm3, %v8323_v46  ;;  %v2602_v46 = vld [vmem:[%s11759_s5 + $0x148] sm:$0xff] }
 0x17b   : > { %6177 = vmatmul.mubr.msk.f32.gmra.mrb[22].mxu1 %vm652_vm0, %v8485_v12  ;;  %1582 = vmatprep.mubr.f32.mxu0 %v7801_v4 }
 0x17c   : > { %1851 = vmatprep.mubr.f32.mxu1 %v7801_v4  ;;  %6377 = vmatpush1.bf16.msra.mxu1 %v6376_v17  ;;  %v6398_v17 = vpack.c.bf16 %v2630_v15, %v2626_v10 }
 0x17d   : > { %v8521_v31 = vpop.f32.mrb[6].mxu0  ;;  %6379 = vmatprep.subr.bf16.mxu1 %v6378_v19 }
 0x17e   : > { %v8529_v44 = vpop.f32.mrb[7].mxu0  ;;  %6160 = vmatmul.mubr.msk.f32.gmra.mrb[112].mxu0 %vm1094_vm3, %v8337_v51  ;;  %v6386_v51 = vpack.c.bf16 %v2606_v59, %v2602_v46 }
 0x17f   : > { %6178 = vmatmul.mubr.msk.f32.gmra.mrb[24].mxu1 %vm652_vm0, %v8477_v2  ;;  %1588 = vmatprep.mubr.f32.mxu0 %v7801_v4 }
 0x180   : > { %1857 = vmatprep.mubr.f32.mxu1 %v7801_v4  ;;  %6381 = vmatpush1.bf16.msra.mxu1 %v6380_v30  ;;  %v2634_v30 = vld [vmem:[%s11759_s5 + $0x248] sm:$0xff] }
 0x181   : > { %v8543_v63 = vpop.f32.mrb[8].mxu0  ;;  %6383 = vmatprep.subr.bf16.mxu1 %v6382_v35  ;;  %v2633_v35 = vld [vmem:[%s11759_s5 + $0x240] sm:$0xff] }
 0x182   : > { %v8551_v8 = vpop.f32.mrb[9].mxu0  ;;  %6161 = vmatmul.mubr.msk.f32.gmra.mrb[114].mxu0 %vm1094_vm3, %v8346_v52  ;;  %v6390_v52 = vpack.c.bf16 %v2614_v11, %v2610_v7 }
 0x183   : > { %6179 = vmatmul.mubr.msk.f32.gmra.mrb[26].mxu1 %vm652_vm0, %v8507_v25  ;;  %1594 = vmatprep.mubr.f32.mxu0 %v7801_v4 }
 0x184   : > { %1863 = vmatprep.mubr.f32.mxu1 %v7801_v4  ;;  %6385 = vmatpush1.bf16.msra.mxu1 %v6384_v62 }
 0x185   : > { %v8565_v14 = vpop.f32.mrb[10].mxu0  ;;  %6387 = vmatprep.subr.bf16.mxu1 %v6386_v51 }
 0x186   : > { %v8573_v27 = vpop.f32.mrb[11].mxu0  ;;  %6162 = vmatmul.mubr.msk.f32.gmra.mrb[116].mxu0 %vm1094_vm3, %v8351_v53  ;;  %v6394_v53 = vpack.c.bf16 %v2622_v33, %v2618_v28  ;;  %v2650_v28 = vld [vmem:[%s11759_s5 + $0x2c8] sm:$0xff]  ;;  %v2649_v33 = vld [vmem:[%s11759_s5 + $0x2c0] sm:$0xff] }
 0x187   : > { %6180 = vmatmul.mubr.msk.f32.gmra.mrb[28].mxu1 %vm652_vm0, %v8499_v18  ;;  %1600 = vmatprep.mubr.f32.mxu0 %v7801_v4 }
 0x188   : > { %1869 = vmatprep.mubr.f32.mxu1 %v7801_v4  ;;  %6389 = vmatpush1.bf16.msra.mxu1 %v6388_v13 }
 0x189   : > { %v8587_v42 = vpop.f32.mrb[12].mxu0  ;;  %6391 = vmatprep.subr.bf16.mxu1 %v6390_v52 }
 0x18a   : > { %v8595_v49 = vpop.f32.mrb[13].mxu0  ;;  %6163 = vmatmul.mubr.msk.f32.gmra.mrb[118].mxu0 %vm1094_vm3, %v8359_v56  ;;  %v6494_v56 = vpack.c.bf16 %v2568_v61, %v2564_v60  ;;  %v2658_v61 = vld [vmem:[%s11759_s5 + $0x308] sm:$0xff] }
 0x18b   : > { %6181 = vmatmul.mubr.msk.f32.gmra.mrb[30].mxu1 %vm652_vm0, %v8529_v44  ;;  %1606 = vmatprep.mubr.f32.mxu0 %v7801_v4 }
 0x18c   : > { %1875 = vmatprep.mubr.f32.mxu1 %v7801_v4  ;;  %6393 = vmatpush1.bf16.msra.mxu1 %v6392_v34 }
 0x18d   : > { %v8609_v3 = vpop.f32.mrb[14].mxu0  ;;  %6395 = vmatprep.subr.bf16.mxu1 %v6394_v53  ;;  %6495 = vmatprep.subr.bf16.mxu0 %v6494_v56  ;;  %v2657_v56 = vld [vmem:[%s11759_s5 + $0x300] sm:$0xff] }
 0x18e   : > { %v8611_v9 = vpop.f32.mrb[15].mxu0  ;;  %6164 = vmatmul.mubr.msk.f32.gmra.mrb[120].mxu0 %vm1094_vm3, %v8364_v57  ;;  %v2629_v57 = vld [vmem:[%s11759_s5 + $0x220] sm:$0xff] }
 0x18f   : > { %6182 = vmatmul.mubr.msk.f32.gmra.mrb[32].mxu1 %vm652_vm0, %v8521_v31  ;;  %1612 = vmatprep.mubr.f32.mxu0 %v7801_v4  ;;  %v6400_v19 = vpack.c.bf16 %v2629_v57, %v2625_v16  ;;  %v2563_v57 = vld [vmem:[%s11759_s5 + $0x10] sm:$0xff] }
 0x190   : > { %1881 = vmatprep.mubr.f32.mxu1 %v7801_v4  ;;  %6397 = vmatpush1.bf16.msra.mxu1 %v6396_v55 }
 0x191   : > { %v8631_v20 = vpop.f32.mrb[16].mxu0  ;;  %6399 = vmatprep.subr.bf16.mxu1 %v6398_v17 }
 0x192   : > { %v8633_v23 = vpop.f32.mrb[17].mxu0  ;;  %6165 = vmatmul.mubr.msk.f32.gmra.mrb[122].mxu0 %vm1094_vm3, %v8371_v58  ;;  %v2638_v58 = vld [vmem:[%s11759_s5 + $0x268] sm:$0xff] }
 0x193   : > { %6183 = vmatmul.mubr.msk.f32.gmra.mrb[34].mxu1 %vm652_vm0, %v8551_v8  ;;  %1618 = vmatprep.mubr.f32.mxu0 %v7801_v4  ;;  %v6402_v37 = vpack.c.bf16 %v2638_v58, %v2634_v30  ;;  %v2572_v30 = vld [vmem:[%s11759_s5 + $0x58] sm:$0xff] }
 0x194   : > { %1887 = vmatprep.mubr.f32.mxu1 %v7801_v4  ;;  %6401 = vmatpush1.bf16.msra.mxu1 %v6400_v19  ;;  %v2576_v58 = vld [vmem:[%s11759_s5 + $0x78] sm:$0xff] }
 0x195   : > { %v8641_v26 = vpop.f32.mrb[18].mxu0  ;;  %6403 = vmatprep.subr.bf16.mxu1 %v6402_v37  ;;  %v2666_v37 = vld [vmem:[%s11759_s5 + $0x348] sm:$0xff] }
 0x196   : > { %v8643_v29 = vpop.f32.mrb[19].mxu0  ;;  %6166 = vmatmul.mubr.msk.f32.gmra.mrb[124].mxu0 %vm1094_vm3, %v8251_v24  ;;  %v2637_v24 = vld [vmem:[%s11759_s5 + $0x260] sm:$0xff] }
 0x197   : > { %6184 = vmatmul.mubr.msk.f32.gmra.mrb[36].mxu1 %vm652_vm0, %v8543_v63  ;;  %1624 = vmatprep.mubr.f32.mxu0 %v7801_v4  ;;  %v6404_v39 = vpack.c.bf16 %v2637_v24, %v2633_v35  ;;  %v2670_v24 = vld [vmem:[%s11759_s5 + $0x368] sm:$0xff] }
 0x198   : > { %1893 = vmatprep.mubr.f32.mxu1 %v7801_v4 }
 0x199   : > { %v8663_v46 = vpop.f32.mrb[20].mxu0  ;;  %6405 = vmatpush1.bf16.msra.mxu1 %v6404_v39  ;;  %v2665_v39 = vld [vmem:[%s11759_s5 + $0x340] sm:$0xff] }
 0x19a   : > { %v8665_v59 = vpop.f32.mrb[21].mxu0  ;;  %6167 = vmatmul.mubr.msk.f32.gmra.mrb[126].mxu0 %vm1094_vm3, %v8267_v32  ;;  %v2646_v32 = vld [vmem:[%s11759_s5 + $0x2a8] sm:$0xff] }
 0x19b   : > { %6185 = vmatmul.mubr.msk.f32.gmra.mrb[38].mxu1 %vm652_vm0, %v8573_v27  ;;  %1630 = vmatprep.mubr.f32.mxu0 %v7801_v4  ;;  %v6406_v7 = vpack.c.bf16 %v2646_v32, %v2642_v0  ;;  %v2669_v0 = vld [vmem:[%s11759_s5 + $0x360] sm:$0xff] }
 0x19c   : > { %1899 = vmatprep.mubr.f32.mxu1 %v7801_v4 }
 0x19d   : > { %v8673_v62 = vpop.f32.mrb[22].mxu0  ;;  %6407 = vmatprep.subr.bf16.mxu1 %v6406_v7  ;;  %v2575_v7 = vld [vmem:[%s11759_s5 + $0x70] sm:$0xff] }
 0x19e   : > { %v8675_v51 = vpop.f32.mrb[23].mxu0  ;;  %6168 = vmatmul.mubr.msk.f32.gmra.mrb[128].mxu0 %vm1094_vm3, %v8277_v36  ;;  %v2645_v36 = vld [vmem:[%s11759_s5 + $0x2a0] sm:$0xff] }
 0x19f   : > { %6186 = vmatmul.mubr.msk.f32.gmra.mrb[40].mxu1 %vm652_vm0, %v8565_v14  ;;  %1636 = vmatprep.mubr.f32.mxu0 %v7801_v4  ;;  %v6408_v11 = vpack.c.bf16 %v2645_v36, %v2641_v1  ;;  %v2571_v1 = vld [vmem:[%s11759_s5 + $0x50] sm:$0xff]  ;;  %v6420_v36 = vpack.c.bf16 %v2669_v0, %v2665_v39 }
 0x1a0   : > { %1905 = vmatprep.mubr.f32.mxu1 %v7801_v4  ;;  %v2591_v0 = vld [vmem:[%s11759_s5 + $0xf0] sm:$0xff] }
 0x1a1   : > { %v8695_v13 = vpop.f32.mrb[24].mxu0  ;;  %6409 = vmatpush1.bf16.msra.mxu1 %v6408_v11  ;;  %v2674_v11 = vld [vmem:[%s11759_s5 + $0x388] sm:$0xff] }
 0x1a2   : > { %v8697_v52 = vpop.f32.mrb[25].mxu0  ;;  %6169 = vmatmul.mubr.msk.f32.gmra.mrb[130].mxu0 %vm1094_vm3, %v8287_v38  ;;  %v2654_v38 = vld [vmem:[%s11759_s5 + $0x2e8] sm:$0xff] }
 0x1a3   : > { %6187 = vmatmul.mubr.msk.f32.gmra.mrb[42].mxu1 %vm652_vm0, %v8595_v49  ;;  %1642 = vmatprep.mubr.f32.mxu0 %v7801_v4  ;;  %v6410_v34 = vpack.c.bf16 %v2654_v38, %v2650_v28  ;;  %v6498_v38 = vpack.c.bf16 %v2576_v58, %v2572_v30  ;;  %v2588_v58 = vld [vmem:[%s11759_s5 + $0xd8] sm:$0xff] }
 0x1a4   : > { %1911 = vmatprep.mubr.f32.mxu1 %v7801_v4 }
 0x1a5   : > { %v8705_v21 = vpop.f32.mrb[26].mxu0  ;;  %6411 = vmatprep.subr.bf16.mxu1 %v6410_v34  ;;  %v2673_v34 = vld [vmem:[%s11759_s5 + $0x380] sm:$0xff] }
 0x1a6   : > { %v8707_v22 = vpop.f32.mrb[27].mxu0  ;;  %6170 = vmatmul.mubr.msk.f32.gmra.mrb[132].mxu0 %vm1094_vm3, %v8297_v40  ;;  %v2653_v40 = vld [vmem:[%s11759_s5 + $0x2e0] sm:$0xff] }
 0x1a7   : > { %6188 = vmatmul.mubr.msk.f32.gmra.mrb[44].mxu1 %vm652_vm0, %v8587_v42  ;;  %1648 = vmatprep.mubr.f32.mxu0 %v7801_v4  ;;  %v6412_v53 = vpack.c.bf16 %v2653_v40, %v2649_v33  ;;  %v2678_v33 = vld [vmem:[%s11759_s5 + $0x3a8] sm:$0xff]  ;;  %v2677_v40 = vld [vmem:[%s11759_s5 + $0x3a0] sm:$0xff] }
 0x1a8   : > { %1917 = vmatprep.mubr.f32.mxu1 %v7801_v4 }
 0x1a9   : > { %v8727_v6 = vpop.f32.mrb[28].mxu0  ;;  %6413 = vmatpush1.bf16.msra.mxu1 %v6412_v53 }
 0x1aa   : > { %v8729_v48 = vpop.f32.mrb[29].mxu0  ;;  %6171 = vmatmul.mubr.msk.f32.gmra.mrb[134].mxu0 %vm1094_vm3, %v8305_v41  ;;  %v2662_v41 = vld [vmem:[%s11759_s5 + $0x328] sm:$0xff] }
 0x1ab   : > { %6189 = vmatmul.mubr.msk.f32.gmra.mrb[46].mxu1 %vm652_vm0, %v8611_v9  ;;  %1654 = vmatprep.mubr.f32.mxu0 %v7801_v4  ;;  %v6414_v10 = vpack.c.bf16 %v2662_v41, %v2658_v61  ;;  %v2580_v61 = vld [vmem:[%s11759_s5 + $0x98] sm:$0xff] }
 0x1ac   : > { %1923 = vmatprep.mubr.f32.mxu1 %v7801_v4  ;;  %v2584_v41 = vld [vmem:[%s11759_s5 + $0xb8] sm:$0xff] }
 0x1ad   : > { %v8737_v55 = vpop.f32.mrb[30].mxu0  ;;  %6415 = vmatprep.subr.bf16.mxu1 %v6414_v10  ;;  %v6424_v10 = vpack.c.bf16 %v2677_v40, %v2673_v34  ;;  %v2604_v40 = vld [vmem:[%s11759_s5 + $0x158] sm:$0xff] }
 0x1ae   : > { %v8739_v60 = vpop.f32.mrb[31].mxu0  ;;  %6172 = vmatmul.mubr.msk.f32.gmra.mrb[136].mxu0 %vm1094_vm3, %v8315_v45  ;;  %v2661_v45 = vld [vmem:[%s11759_s5 + $0x320] sm:$0xff] }
 0x1af   : > { %6190 = vmatmul.mubr.msk.f32.gmra.mrb[48].mxu1 %vm652_vm0, %v8609_v3  ;;  %1660 = vmatprep.mubr.f32.mxu0 %v7801_v4  ;;  %v6416_v15 = vpack.c.bf16 %v2661_v45, %v2657_v56  ;;  %v6422_v56 = vpack.c.bf16 %v2678_v33, %v2674_v11  ;;  %v2599_v33 = vld [vmem:[%s11759_s5 + $0x130] sm:$0xff] }
 0x1b0   : > { %1929 = vmatprep.mubr.f32.mxu1 %v7801_v4 }
 0x1b1   : > { %v8759_v16 = vpop.f32.mrb[32].mxu0  ;;  %6417 = vmatpush1.bf16.msra.mxu1 %v6416_v15  ;;  %v6502_v15 = vpack.c.bf16 %v2584_v41, %v2580_v61  ;;  %v2608_v61 = vld [vmem:[%s11759_s5 + $0x178] sm:$0xff] }
 0x1b2   : > { %6173 = vmatmul.mubr.msk.f32.gmra.mrb[138].mxu0 %vm1094_vm3, %v8325_v47  ;;  %v8763_v17 = vpop.f32.mrb[33].mxu0  ;;  %v2567_v47 = vld [vmem:[%s11759_s5 + $0x30] sm:$0xff] }
 0x1b3   : > { %6191 = vmatmul.mubr.msk.f32.gmra.mrb[50].mxu1 %vm652_vm0, %v8633_v23  ;;  %1666 = vmatprep.mubr.f32.mxu0 %v7801_v4  ;;  %v6496_v32 = vpack.c.bf16 %v2567_v47, %v2563_v57  ;;  %v2579_v57 = vld [vmem:[%s11759_s5 + $0x90] sm:$0xff] }
 0x1b4   : > { %1935 = vmatprep.mubr.f32.mxu1 %v7801_v4  ;;  %v2583_v47 = vld [vmem:[%s11759_s5 + $0xb0] sm:$0xff] }
 0x1b5   : > { %v8772_v19 = vpop.f32.mrb[34].mxu0 }
 0x1b6   : > { %6174 = vmatmul.mubr.msk.f32.gmra.mrb[140].mxu0 %vm1094_vm3, %v8333_v50  ;;  %v8785_v35 = vpop.f32.mrb[35].mxu0  ;;  %v6418_v50 = vpack.c.bf16 %v2670_v24, %v2666_v37  ;;  %v2592_v37 = vld [vmem:[%s11759_s5 + $0xf8] sm:$0xff] }
 0x1b7   : > { %6192 = vmatmul.mubr.msk.f32.gmra.mrb[52].mxu1 %vm652_vm0, %v8631_v20  ;;  %2090 = vmatprep.mubr.f32.mxu0 %v7801_v4  ;;  %v6506_v39 = vpack.c.bf16 %v2592_v37, %v2588_v58  ;;  %v2681_v58 = vld [vmem:[%s11759_s5 + $0x3c0] sm:$0xff] }
 0x1b8   : > { %1941 = vmatprep.mubr.f32.mxu1 %v7801_v4  ;;  %6419 = vmatprep.subr.bf16.mxu1 %v6418_v50  ;;  %v2587_v50 = vld [vmem:[%s11759_s5 + $0xd0] sm:$0xff]  ;;  %v2685_v37 = vld [vmem:[%s11759_s5 + $0x3e0] sm:$0xff] }
 0x1b9   : > { %v8812_v28 = vpop.f32.mrb[36].mxu0  ;;  %6421 = vmatpush1.bf16.msra.mxu1 %v6420_v36  ;;  %v6508_v36 = vpack.c.bf16 %v2591_v0, %v2587_v50  ;;  %v2616_v50 = vld [vmem:[%s11759_s5 + $0x1b8] sm:$0xff]  ;;  %v6428_v0 = vpack.c.bf16 %v2685_v37, %v2681_v58 }
 0x1ba   : > { %6207 = vmatmul.mubr.msk.f32.vlgmr.msra.gmra.mrb[78].mxu0 %vm652_vm0, %v8463_v54  ;;  %v8825_v53 = vpop.f32.mrb[37].mxu0  ;;  %v6500_v54 = vpack.c.bf16 %v2575_v7, %v2571_v1  ;;  %6423 = vmatprep.subr.bf16.mxu1 %v6422_v56  ;;  %v2596_v1 = vld [vmem:[%s11759_s5 + $0x118] sm:$0xff]  ;;  %v2682_v56 = vld [vmem:[%s11759_s5 + $0x3c8] sm:$0xff] }
 0x1bb   : > { %6193 = vmatmul.mubr.msk.f32.gmra.mrb[54].mxu1 %vm652_vm0, %v8643_v29  ;;  %2096 = vmatprep.mubr.f32.mxu0 %v7801_v4  ;;  %v2600_v7 = vld [vmem:[%s11759_s5 + $0x138] sm:$0xff] }
 0x1bc   : > { %1947 = vmatprep.mubr.f32.mxu1 %v7801_v4  ;;  %6497 = vmatpush1.bf16.msra.mxu0 %v6496_v32  ;;  %v6510_v11 = vpack.c.bf16 %v2600_v7, %v2596_v1 }
 0x1bd   : > { %v8837_v45 = vpop.f32.mrb[38].mxu0  ;;  %6499 = vmatprep.subr.bf16.mxu0 %v6498_v38  ;;  %6425 = vmatpush1.bf16.msra.mxu1 %v6424_v10  ;;  %v2595_v38 = vld [vmem:[%s11759_s5 + $0x110] sm:$0xff]  ;;  %v2686_v10 = vld [vmem:[%s11759_s5 + $0x3e8] sm:$0xff] }
 0x1be   : > { %6208 = vmatmul.mubr.msk.f32.gmra.mrb[80].mxu0 %vm652_vm0, %v8455_v43  ;;  %v8847_v30 = vpop.f32.mrb[39].mxu0  ;;  %v6504_v43 = vpack.c.bf16 %v2583_v47, %v2579_v57  ;;  %v6512_v41 = vpack.c.bf16 %v2599_v33, %v2595_v38  ;;  %v2607_v57 = vld [vmem:[%s11759_s5 + $0x170] sm:$0xff]  ;;  %v6426_v47 = vpack.c.bf16 %v2686_v10, %v2682_v56  ;;  %v2620_v33 = vld [vmem:[%s11759_s5 + $0x1d8] sm:$0xff] }
 0x1bf   : > { %6194 = vmatmul.mubr.msk.f32.gmra.mrb[56].mxu1 %vm652_vm0, %v8641_v26  ;;  %2102 = vmatprep.mubr.f32.mxu0 %v7801_v4  ;;  %v2623_v56 = vld [vmem:[%s11759_s5 + $0x1f0] sm:$0xff] }
 0x1c0   : > { %1953 = vmatprep.mubr.f32.mxu1 %v7801_v4  ;;  %6501 = vmatpush1.bf16.msra.mxu0 %v6500_v54 }
 0x1c1   : > { %v8859_v24 = vpop.f32.mrb[40].mxu0  ;;  %6503 = vmatprep.subr.bf16.mxu0 %v6502_v15  ;;  %v6514_v15 = vpack.c.bf16 %v2608_v61, %v2604_v40  ;;  %6427 = vmatprep.subr.bf16.mxu1 %v6426_v47  ;;  %v2624_v40 = vld [vmem:[%s11759_s5 + $0x1f8] sm:$0xff]  ;;  %v2690_v47 = vld [vmem:[%s11759_s5 + $0x408] sm:$0xff] }
 0x1c2   : > { %6209 = vmatmul.mubr.msk.f32.gmra.mrb[82].mxu0 %vm652_vm0, %v8485_v12  ;;  %v8869_v32 = vpop.f32.mrb[41].mxu0  ;;  %6429 = vmatpush1.bf16.msra.mxu1 %v6428_v0  ;;  %v2627_v0 = vld [vmem:[%s11759_s5 + $0x210] sm:$0xff] }
 0x1c3   : > { %6195 = vmatmul.mubr.msk.f32.gmra.mrb[58].mxu1 %vm652_vm0, %v8665_v59  ;;  %2108 = vmatprep.mubr.f32.mxu0 %v7801_v4 }
 0x1c4   : > { %1959 = vmatprep.mubr.f32.mxu1 %v7801_v4  ;;  %6505 = vmatpush1.bf16.msra.mxu0 %v6504_v43 }
 0x1c5   : > { %v8881_v12 = vpop.f32.mrb[42].mxu0  ;;  %6507 = vmatprep.subr.bf16.mxu0 %v6506_v39  ;;  %v2612_v39 = vld [vmem:[%s11759_s5 + $0x198] sm:$0xff] }
 0x1c6   : > { %6210 = vmatmul.mubr.msk.f32.gmra.mrb[84].mxu0 %vm652_vm0, %v8477_v2  ;;  %v8891_v34 = vpop.f32.mrb[43].mxu0  ;;  %v2603_v2 = vld [vmem:[%s11759_s5 + $0x150] sm:$0xff]  ;;  %v6518_v7 = vpack.c.bf16 %v2616_v50, %v2612_v39 }
 0x1c7   : > { %6196 = vmatmul.mubr.msk.f32.gmra.mrb[60].mxu1 %vm652_vm0, %v8663_v46  ;;  %2114 = vmatprep.mubr.f32.mxu0 %v7801_v4 }
 0x1c8   : > { %1965 = vmatprep.mubr.f32.mxu1 %v7801_v4  ;;  %6509 = vmatpush1.bf16.msra.mxu0 %v6508_v36  ;;  %v2611_v36 = vld [vmem:[%s11759_s5 + $0x190] sm:$0xff] }
 0x1c9   : > { %v8912_v54 = vpop.f32.mrb[44].mxu0  ;;  %6511 = vmatprep.subr.bf16.mxu0 %v6510_v11  ;;  %v2615_v11 = vld [vmem:[%s11759_s5 + $0x1b0] sm:$0xff] }
 0x1ca   : > { %6211 = vmatmul.mubr.msk.f32.gmra.mrb[86].mxu0 %vm652_vm0, %v8507_v25  ;;  %v8925_v43 = vpop.f32.mrb[45].mxu0  ;;  %v6516_v25 = vpack.c.bf16 %v2607_v57, %v2603_v2  ;;  %v2619_v2 = vld [vmem:[%s11759_s5 + $0x1d0] sm:$0xff]  ;;  %v2632_v57 = vld [vmem:[%s11759_s5 + $0x238] sm:$0xff] }
 0x1cb   : > { %6197 = vmatmul.mubr.msk.f32.gmra.mrb[62].mxu1 %vm652_vm0, %v8675_v51  ;;  %2120 = vmatprep.mubr.f32.mxu0 %v7801_v4  ;;  %v6524_v58 = vpack.c.bf16 %v2623_v56, %v2619_v2  ;;  %v2644_v56 = vld [vmem:[%s11759_s5 + $0x298] sm:$0xff] }
 0x1cc   : > { %1971 = vmatprep.mubr.f32.mxu1 %v7801_v4  ;;  %6513 = vmatpush1.bf16.msra.mxu0 %v6512_v41  ;;  %v6522_v41 = vpack.c.bf16 %v2624_v40, %v2620_v33 }
 0x1cd   : > { %v8937_v1 = vpop.f32.mrb[46].mxu0  ;;  %6515 = vmatprep.subr.bf16.mxu0 %v6514_v15  ;;  %v2628_v15 = vld [vmem:[%s11759_s5 + $0x218] sm:$0xff] }
 0x1ce   : > { %6212 = vmatmul.mubr.msk.f32.gmra.mrb[88].mxu0 %vm652_vm0, %v8499_v18  ;;  %v8947_v38 = vpop.f32.mrb[47].mxu0  ;;  %v6520_v18 = vpack.c.bf16 %v2615_v11, %v2611_v36  ;;  %v6526_v50 = vpack.c.bf16 %v2632_v57, %v2628_v15  ;;  %v2636_v36 = vld [vmem:[%s11759_s5 + $0x258] sm:$0xff] }
 0x1cf   : > { %6198 = vmatmul.mubr.msk.f32.gmra.mrb[0].mxu1 %vm652_vm0, %v8673_v62  ;;  %2126 = vmatprep.mubr.f32.mxu0 %v7801_v4  ;;  %v2640_v11 = vld [vmem:[%s11759_s5 + $0x278] sm:$0xff] }
 0x1d0   : > { %1977 = vmatprep.mubr.f32.mxu1 %v7801_v4  ;;  %6517 = vmatpush1.bf16.msra.mxu0 %v6516_v25  ;;  %v2631_v25 = vld [vmem:[%s11759_s5 + $0x230] sm:$0xff]  ;;  %v6530_v40 = vpack.c.bf16 %v2640_v11, %v2636_v36  ;;  %v2648_v15 = vld [vmem:[%s11759_s5 + $0x2b8] sm:$0xff] }
 0x1d1   : > { %v8959_v61 = vpop.f32.mrb[48].mxu0  ;;  %6519 = vmatprep.subr.bf16.mxu0 %v6518_v7  ;;  %v2651_v11 = vld [vmem:[%s11759_s5 + $0x2d0] sm:$0xff] }
 0x1d2   : > { %6213 = vmatmul.mubr.msk.f32.gmra.mrb[90].mxu0 %vm652_vm0, %v8529_v44  ;;  %v8969_v10 = vpop.f32.mrb[49].mxu0  ;;  %v2694_v44 = vld [vmem:[%s11759_s5 + $0x428] sm:$0xff] }
 0x1d3   : > { %6199 = vmatmul.mubr.msk.f32.gmra.mrb[2].mxu1 %vm652_vm0, %v8697_v52  ;;  %2132 = vmatprep.mubr.f32.mxu0 %v7801_v4  ;;  %v6430_v37 = vpack.c.bf16 %v2694_v44, %v2690_v47  ;;  %v6534_v47 = vpack.c.bf16 %v2648_v15, %v2644_v56  ;;  %v2643_v44 = vld [vmem:[%s11759_s5 + $0x290] sm:$0xff] }
 0x1d4   : > { %1983 = vmatprep.mubr.f32.mxu1 %v7801_v4  ;;  %6521 = vmatpush1.bf16.msra.mxu0 %v6520_v18  ;;  %v2635_v18 = vld [vmem:[%s11759_s5 + $0x250] sm:$0xff] }
 0x1d5   : > { %v8987_v39 = vpop.f32.mrb[50].mxu0  ;;  %6523 = vmatprep.subr.bf16.mxu0 %v6522_v41  ;;  %6431 = vmatprep.subr.bf16.mxu1 %v6430_v37  ;;  %v2639_v41 = vld [vmem:[%s11759_s5 + $0x270] sm:$0xff] }
 0x1d6   : > { %6214 = vmatmul.mubr.msk.f32.gmra.mrb[92].mxu0 %vm652_vm0, %v8521_v31  ;;  %v8997_v7 = vpop.f32.mrb[51].mxu0  ;;  %v6528_v31 = vpack.c.bf16 %v2631_v25, %v2627_v0  ;;  %v6532_v57 = vpack.c.bf16 %v2639_v41, %v2635_v18  ;;  %v2656_v0 = vld [vmem:[%s11759_s5 + $0x2f8] sm:$0xff] }
 0x1d7   : > { %6200 = vmatmul.mubr.msk.f32.gmra.mrb[4].mxu1 %vm652_vm0, %v8695_v13  ;;  %2138 = vmatprep.mubr.f32.mxu0 %v7801_v4  ;;  %v2660_v18 = vld [vmem:[%s11759_s5 + $0x318] sm:$0xff] }
 0x1d8   : > { %1989 = vmatprep.mubr.f32.mxu1 %v7801_v4  ;;  %6525 = vmatpush1.bf16.msra.mxu0 %v6524_v58  ;;  %v2647_v58 = vld [vmem:[%s11759_s5 + $0x2b0] sm:$0xff]  ;;  %v2664_v41 = vld [vmem:[%s11759_s5 + $0x338] sm:$0xff] }
 0x1d9   : > { %v9009_v33 = vpop.f32.mrb[52].mxu0  ;;  %6527 = vmatprep.subr.bf16.mxu0 %v6526_v50  ;;  %v2652_v50 = vld [vmem:[%s11759_s5 + $0x2d8] sm:$0xff]  ;;  %v6536_v25 = vpack.c.bf16 %v2647_v58, %v2643_v44  ;;  %v6542_v15 = vpack.c.bf16 %v2664_v41, %v2660_v18 }
 0x1da   : > { %6215 = vmatmul.mubr.msk.f32.gmra.mrb[94].mxu0 %vm652_vm0, %v8551_v8  ;;  %v9019_v2 = vpop.f32.mrb[53].mxu0  ;;  %v6538_v36 = vpack.c.bf16 %v2656_v0, %v2652_v50  ;;  %v2668_v58 = vld [vmem:[%s11759_s5 + $0x358] sm:$0xff] }
 0x1db   : > { %6201 = vmatmul.mubr.msk.f32.gmra.mrb[6].mxu1 %vm652_vm0, %v8707_v22  ;;  %2144 = vmatprep.mubr.f32.mxu0 %v7801_v4  ;;  %v2672_v50 = vld [vmem:[%s11759_s5 + $0x378] sm:$0xff] }
 0x1dc   : > { %1995 = vmatprep.mubr.f32.mxu1 %v7801_v4  ;;  %6529 = vmatpush1.bf16.msra.mxu0 %v6528_v31  ;;  %v2655_v31 = vld [vmem:[%s11759_s5 + $0x2f0] sm:$0xff]  ;;  %v2676_v18 = vld [vmem:[%s11759_s5 + $0x398] sm:$0xff] }
 0x1dd   : > { %v9031_v8 = vpop.f32.mrb[54].mxu0  ;;  %6531 = vmatprep.subr.bf16.mxu0 %v6530_v40  ;;  %v6540_v56 = vpack.c.bf16 %v2655_v31, %v2651_v11  ;;  %v2671_v11 = vld [vmem:[%s11759_s5 + $0x370] sm:$0xff]  ;;  %v2680_v41 = vld [vmem:[%s11759_s5 + $0x3b8] sm:$0xff] }
 0x1de   : > { %6216 = vmatmul.mubr.msk.f32.gmra.mrb[96].mxu0 %vm652_vm0, %v8543_v63  ;;  %v9041_v37 = vpop.f32.mrb[55].mxu0 }
 0x1df   : > { %6202 = vmatmul.mubr.msk.f32.gmra.mrb[8].mxu1 %vm652_vm0, %v8705_v21  ;;  %2150 = vmatprep.mubr.f32.mxu0 %v7801_v4 }
 0x1e0   : > { %2001 = vmatprep.mubr.f32.mxu1 %v7801_v4  ;;  %6533 = vmatpush1.bf16.msra.mxu0 %v6532_v57  ;;  %v2659_v57 = vld [vmem:[%s11759_s5 + $0x310] sm:$0xff] }
 0x1e1   : > { %v9053_v63 = vpop.f32.mrb[56].mxu0  ;;  %6535 = vmatprep.subr.bf16.mxu0 %v6534_v47  ;;  %v2663_v47 = vld [vmem:[%s11759_s5 + $0x330] sm:$0xff] }
 0x1e2   : > { %6217 = vmatmul.mubr.msk.f32.gmra.mrb[98].mxu0 %vm652_vm0, %v8573_v27  ;;  %v9063_v40 = vpop.f32.mrb[57].mxu0  ;;  %v6544_v0 = vpack.c.bf16 %v2663_v47, %v2659_v57  ;;  %v2675_v57 = vld [vmem:[%s11759_s5 + $0x390] sm:$0xff] }
 0x1e3   : > { %6203 = vmatmul.mubr.msk.f32.gmra.mrb[10].mxu1 %vm652_vm0, %v8729_v48  ;;  %2156 = vmatprep.mubr.f32.mxu0 %v7801_v4  ;;  %v2679_v47 = vld [vmem:[%s11759_s5 + $0x3b0] sm:$0xff] }
 0x1e4   : > { %2007 = vmatprep.mubr.f32.mxu1 %v7801_v4  ;;  %6537 = vmatpush1.bf16.msra.mxu0 %v6536_v25  ;;  %v6546_v25 = vpack.c.bf16 %v2672_v50, %v2668_v58  ;;  %v2684_v50 = vld [vmem:[%s11759_s5 + $0x3d8] sm:$0xff] }
 0x1e5   : > { %v9075_v27 = vpop.f32.mrb[58].mxu0  ;;  %6539 = vmatprep.subr.bf16.mxu0 %v6538_v36  ;;  %v2667_v36 = vld [vmem:[%s11759_s5 + $0x350] sm:$0xff] }
 0x1e6   : > { %6218 = vmatmul.mubr.msk.f32.gmra.mrb[100].mxu0 %vm652_vm0, %v8565_v14  ;;  %v9085_v44 = vpop.f32.mrb[59].mxu0 }
 0x1e7   : > { %6204 = vmatmul.mubr.msk.f32.gmra.mrb[12].mxu1 %vm652_vm0, %v8727_v6  ;;  %2162 = vmatprep.mubr.f32.mxu0 %v7801_v4 }
 0x1e8   : > { %2013 = vmatprep.mubr.f32.mxu1 %v7801_v4  ;;  %6541 = vmatpush1.bf16.msra.mxu0 %v6540_v56  ;;  %v6548_v56 = vpack.c.bf16 %v2671_v11, %v2667_v36  ;;  %v2683_v11 = vld [vmem:[%s11759_s5 + $0x3d0] sm:$0xff] }
 0x1e9   : > { %v9097_v14 = vpop.f32.mrb[60].mxu0  ;;  %6543 = vmatprep.subr.bf16.mxu0 %v6542_v15  ;;  %v6550_v15 = vpack.c.bf16 %v2680_v41, %v2676_v18  ;;  %v2687_v18 = vld [vmem:[%s11759_s5 + $0x3f0] sm:$0xff] }
 0x1ea   : > { %6219 = vmatmul.mubr.msk.f32.gmra.mrb[102].mxu0 %vm652_vm0, %v8595_v49  ;;  %v9107_v31 = vpop.f32.mrb[61].mxu0 }
 0x1eb   : > { %6205 = vmatmul.mubr.msk.f32.gmra.mrb[14].mxu1 %vm652_vm0, %v8739_v60  ;;  %2168 = vmatprep.mubr.f32.mxu0 %v7801_v4 }
 0x1ec   : > { %2019 = vmatprep.mubr.f32.mxu1 %v7801_v4  ;;  %6545 = vmatpush1.bf16.msra.mxu0 %v6544_v0  ;;  %v2688_v0 = vld [vmem:[%s11759_s5 + $0x3f8] sm:$0xff] }
 0x1ed   : > { %v9119_v49 = vpop.f32.mrb[62].mxu0  ;;  %6547 = vmatprep.subr.bf16.mxu0 %v6546_v25  ;;  %v6552_v25 = vpack.c.bf16 %v2679_v47, %v2675_v57 }
 0x1ee   : > { %6220 = vmatmul.mubr.msk.f32.gmra.mrb[104].mxu0 %vm652_vm0, %v8587_v42  ;;  %v9129_v58 = vpop.f32.mrb[63].mxu0  ;;  %v6554_v42 = vpack.c.bf16 %v2688_v0, %v2684_v50 }
 0x1ef   : > { %6206 = vmatmul.mubr.msk.f32.gmra.mrb[16].mxu1 %vm652_vm0, %v8737_v55  ;;  %2174 = vmatprep.mubr.f32.mxu0 %v7801_v4 }
 0x1f0   : > { %6549 = vmatpush1.bf16.msra.mxu0 %v6548_v56  ;;  %v6556_v56 = vpack.c.bf16 %v2687_v18, %v2683_v11 }
 0x1f1   : > { %v9140_v36 = vpop.f32.mrb[64].mxu0  ;;  %6551 = vmatprep.subr.bf16.mxu0 %v6550_v15 }
 0x1f2   : > { %6221 = vmatmul.mubr.msk.f32.gmra.mrb[106].mxu0 %vm652_vm0, %v8611_v9  ;;  %v9150_v41 = vpop.f32.mrb[65].mxu0 }
 0x1f3   : > { %2180 = vmatprep.mubr.f32.mxu0 %v7801_v4 }
 0x1f4   : > { %6553 = vmatpush1.bf16.msra.mxu0 %v6552_v25 }
 0x1f5   : > { %v9153_v57 = vpop.f32.mrb[66].mxu0  ;;  %6555 = vmatprep.subr.bf16.mxu0 %v6554_v42 }
 0x1f6   : > { %6222 = vmatmul.mubr.msk.f32.gmra.mrb[108].mxu0 %vm652_vm0, %v8609_v3  ;;  %v9157_v15 = vpop.f32.mrb[67].mxu0 }
 0x1f7   : > { %2186 = vmatprep.mubr.f32.mxu0 %v7801_v4 }
 0x1f8   : > { %6557 = vmatpush1.bf16.msra.mxu0 %v6556_v56 }
 0x1f9   : > { %v9160_v47 = vpop.f32.mrb[68].mxu0 }
 0x1fa   : > { %6223 = vmatmul.mubr.msk.f32.gmra.mrb[110].mxu0 %vm652_vm0, %v8633_v23  ;;  %v9164_v9 = vpop.f32.mrb[69].mxu0 }
 0x1fb   : > { %2192 = vmatprep.mubr.f32.mxu0 %v7801_v4 }
 0x1fd   : > { %v9167_v50 = vpop.f32.mrb[70].mxu0 }
 0x1fe   : > { %6224 = vmatmul.mubr.msk.f32.gmra.mrb[112].mxu0 %vm652_vm0, %v8631_v20  ;;  %v9171_v3 = vpop.f32.mrb[71].mxu0 }
 0x1ff   : > { %2198 = vmatprep.mubr.f32.mxu0 %v7801_v4 }
 0x201   : > { %v9174_v0 = vpop.f32.mrb[72].mxu0 }
 0x202   : > { %6225 = vmatmul.mubr.msk.f32.gmra.mrb[114].mxu0 %vm652_vm0, %v8643_v29  ;;  %v9178_v25 = vpop.f32.mrb[73].mxu0  ;;  %v2692_v29 = vld [vmem:[%s11759_s5 + $0x418] sm:$0xff] }
 0x203   : > { %11774 = vst [vmem:[#allocation2_spill] sm:$0xff] %v9178_v25  ;;  %2204 = vmatprep.mubr.f32.mxu0 %v7801_v4 }
 0x205   : > { %v9181_v23 = vpop.f32.mrb[74].mxu0 }
 0x206   : > { %11775 = vst [vmem:[#allocation3_spill] sm:$0xff] %v9181_v23  ;;  %6226 = vmatmul.mubr.msk.f32.gmra.mrb[116].mxu0 %vm652_vm0, %v8641_v26  ;;  %v9185_v42 = vpop.f32.mrb[75].mxu0  ;;  %v2696_v26 = vld [vmem:[%s11759_s5 + $0x438] sm:$0xff] }
 0x207   : > { %11776 = vst [vmem:[#allocation4_spill] sm:$0xff] %v9185_v42  ;;  %2210 = vmatprep.mubr.f32.mxu0 %v7801_v4  ;;  %v6558_v18 = vpack.c.bf16 %v2696_v26, %v2692_v29  ;;  %v2702_v26 = vld [vmem:[%s11759_s5 + $0x468] sm:$0xff] }
 0x209   : > { %v9188_v20 = vpop.f32.mrb[76].mxu0  ;;  %6559 = vmatprep.subr.bf16.mxu0 %v6558_v18  ;;  %v2700_v18 = vld [vmem:[%s11759_s5 + $0x458] sm:$0xff] }
 0x20a   : > { %11777 = vst [vmem:[#allocation5_spill] sm:$0xff] %v9188_v20  ;;  %6227 = vmatmul.mubr.msk.f32.gmra.mrb[118].mxu0 %vm652_vm0, %v8665_v59  ;;  %v9192_v11 = vpop.f32.mrb[77].mxu0 }
 0x20b   : > { %11778 = vst [vmem:[#allocation6_spill] sm:$0xff] %v9192_v11  ;;  %2216 = vmatprep.mubr.f32.mxu0 %v7801_v4 }
 0x20e   : > { %6228 = vmatmul.mubr.msk.f32.gmra.mrb[120].mxu0 %vm652_vm0, %v8663_v46  ;;  %v9234_v46 = vshrl.u32 %v454_v5, 7 }
 0x20f   : > { %2222 = vmatprep.mubr.f32.mxu0 %v7801_v4 }
 0x210   : > { %11779 = vst [vmem:[#allocation7_spill] sm:$0xff] %v9234_v46  ;;  %v9237_v59 = vsub.s32 0, %v9234_v46 }
 0x212   : > { %6229 = vmatmul.mubr.msk.f32.gmra.mrb[122].mxu0 %vm652_vm0, %v8675_v51  ;;  %11780 = vst [vmem:[#allocation8_spill] sm:$0xff] %v9237_v59  ;;  %v9243_v51 = vsub.s32 1, %v9234_v46  ;;  %v2701_v46 = vld [vmem:[%s11759_s5 + $0x460] sm:$0xff] }
 0x213   : > { %2228 = vmatprep.mubr.f32.mxu0 %v7801_v4 }
 0x214   : > { %11781 = vst [vmem:[#allocation9_spill] sm:$0xff] %v9243_v51 }
 0x216   : > { %6230 = vmatmul.mubr.msk.f32.gmra.mrb[124].mxu0 %vm652_vm0, %v8673_v62  ;;  %v2283_v62 = vld [vmem:[%s11758_s4] sm:$0xf] }
 0x217   : > { %2234 = vmatprep.mubr.f32.mxu0 %v7801_v4 }
 0x21a   : > { %6231 = vmatmul.mubr.msk.f32.gmra.mrb[126].mxu0 %vm652_vm0, %v8697_v52  ;;  %v9249_v52 = vrot.slane %v2283_v62, %v9243_v51 }
 0x21b   : > { %2240 = vmatprep.mubr.f32.mxu0 %v7801_v4 }
 0x21e   : > { %6232 = vmatmul.mubr.msk.f32.gmra.mrb[128].mxu0 %vm652_vm0, %v8695_v13  ;;  %v9246_v13 = vrot.slane %v2283_v62, %v9237_v59  ;;  %v2704_v62 = vld [vmem:[%s11759_s5 + $0x478] sm:$0xff]  ;;  %v2697_v59 = vld [vmem:[%s11759_s5 + $0x440] sm:$0xff] }
 0x21f   : > { %2246 = vmatprep.mubr.f32.mxu0 %v7801_v4 }
 0x222   : > { %6233 = vmatmul.mubr.msk.f32.gmra.mrb[130].mxu0 %vm652_vm0, %v8707_v22 }
 0x223   : > { %2252 = vmatprep.mubr.f32.mxu0 %v7801_v4 }
 0x226   : > { %6234 = vmatmul.mubr.msk.f32.gmra.mrb[132].mxu0 %vm652_vm0, %v8705_v21 }
 0x227   : > { %2258 = vmatprep.mubr.f32.mxu0 %v7801_v4 }
 0x22a   : > { %6235 = vmatmul.mubr.msk.f32.gmra.mrb[134].mxu0 %vm652_vm0, %v8729_v48  ;;  %v2693_v48 = vld [vmem:[%s11759_s5 + $0x420] sm:$0xff] }
 0x22b   : > { %2264 = vmatprep.mubr.f32.mxu0 %v7801_v4 }
 0x22e   : > { %6236 = vmatmul.mubr.msk.f32.gmra.mrb[136].mxu0 %vm652_vm0, %v8727_v6  ;;  %v2689_v6 = vld [vmem:[%s11759_s5 + $0x400] sm:$0xff] }
 0x22f   : > { %2270 = vmatprep.mubr.f32.mxu0 %v7801_v4 }
 0x232   : > { %6237 = vmatmul.mubr.msk.f32.gmra.mrb[138].mxu0 %vm652_vm0, %v8739_v60  ;;  %v2698_v60 = vld [vmem:[%s11759_s5 + $0x448] sm:$0xff] }
 0x233   : > { %2276 = vmatprep.mubr.f32.mxu0 %v7801_v4  ;;  %v6434_v23 = vpack.c.bf16 %v2702_v26, %v2698_v60  ;;  %v2708_v60 = vld [vmem:[%s11759_s5 + $0x498] sm:$0xff] }
 0x236   : > { %6238 = vmatmul.mubr.msk.f32.gmra.mrb[140].mxu0 %vm652_vm0, %v8737_v55 }
 0x246   : > { %v1835_v4 = vpop.f32.mrb[18].mxu1 }
 0x247   : > { %v1836_v5 = vadd.f32 %v1835_v4, %v8759_v16  ;;  %v1837_v21 = vpop.f32.mrb[19].mxu1  ;;  %v2691_v16 = vld [vmem:[%s11759_s5 + $0x410] sm:$0xff] }
 0x248   : > { %v1838_v22 = vadd.f32 %v1837_v21, %v8763_v17  ;;  %v2695_v17 = vld [vmem:[%s11759_s5 + $0x430] sm:$0xff] }
 0x249   : > { %v2305_v55 = vadd.f32 %v9246_v13, %v1836_v5  ;;  %v6560_v11 = vpack.c.bf16 %v2695_v17, %v2691_v16  ;;  %v2712_v17 = vld [vmem:[%s11759_s5 + $0x4b8] sm:$0xff] }
 0x24a   : > { %v2306_v56 = vadd.f32 %v9249_v52, %v1838_v22  ;;  %v1841_v29 = vpop.f32.mrb[20].mxu1  ;;  %v6432_v22 = vpack.c.bf16 %v2693_v48, %v2689_v6  ;;  %v2703_v6 = vld [vmem:[%s11759_s5 + $0x470] sm:$0xff] }
 0x24b   : > { %v1842_v4 = vadd.f32 %v1841_v29, %v8772_v19  ;;  %v1843_v5 = vpop.f32.mrb[21].mxu1  ;;  %v2433_v20 = vmax.f32 %v2305_v55, 0.0  ;;  %v2706_v19 = vld [vmem:[%s11759_s5 + $0x488] sm:$0xff] }
 0x24c   : > { %v2434_v21 = vmax.f32 %v2306_v56, 0.0  ;;  %v1844_v51 = vadd.f32 %v1843_v5, %v8785_v35  ;;  %v6562_v56 = vpack.c.bf16 %v2704_v62, %v2700_v18  ;;  %v2699_v35 = vld [vmem:[%s11759_s5 + $0x450] sm:$0xff]  ;;  %v2710_v55 = vld [vmem:[%s11759_s5 + $0x4a8] sm:$0xff]  ;;  %v6436_v62 = vpack.c.bf16 %v2701_v46, %v2697_v59  ;;  %v2709_v5 = vld [vmem:[%s11759_s5 + $0x4a0] sm:$0xff] }
 0x24d   : > { %v2309_v42 = vadd.f32 %v9246_v13, %v1842_v4  ;;  %v2705_v4 = vld [vmem:[%s11759_s5 + $0x480] sm:$0xff]  ;;  %v6566_v46 = vpack.c.bf16 %v2712_v17, %v2708_v60  ;;  %v2707_v59 = vld [vmem:[%s11759_s5 + $0x490] sm:$0xff] }
 0x24e   : > { %v2310_v48 = vadd.f32 %v9249_v52, %v1844_v51  ;;  %v1847_v16 = vpop.f32.mrb[22].mxu1  ;;  %2903 = vmatprep.mubr.f32.mxu1 %v2434_v21  ;;  %3417 = vmatprep.mubr.f32.mxu0 %v2434_v21  ;;  %v6564_v21 = vpack.c.bf16 %v2703_v6, %v2699_v35  ;;  %v2713_v60 = vld [vmem:[%s11759_s5 + $0x4c0] sm:$0xff] }
 0x24f   : > { %v1848_v29 = vadd.f32 %v1847_v16, %v8812_v28  ;;  %v1849_v26 = vpop.f32.mrb[23].mxu1  ;;  %2904 = vmatmul.mubr.f32.vlgmr.msra.gmra.mrb[64].mxu1 %v2433_v20  ;;  %3418 = vmatmul.mubr.f32.vlgmr.msra.gmra.mrb[142].mxu0 %v2433_v20  ;;  %v2437_v25 = vmax.f32 %v2309_v42, 0.0  ;;  %v6438_v20 = vpack.c.bf16 %v2710_v55, %v2706_v19  ;;  %v2716_v19 = vld [vmem:[%s11759_s5 + $0x4d8] sm:$0xff]  ;;  %v6440_v55 = vpack.c.bf16 %v2709_v5, %v2705_v4  ;;  %v2717_v17 = vld [vmem:[%s11759_s5 + $0x4e0] sm:$0xff] }
 0x250   : > { %v2438_v51 = vmax.f32 %v2310_v48, 0.0  ;;  %v1850_v18 = vadd.f32 %v1849_v26, %v8825_v53  ;;  %6433 = vmatpush1.bf16.msra.mxu1 %v6432_v22  ;;  %6561 = vmatpush1.bf16.msra.mxu0 %v6560_v11  ;;  %v2714_v53 = vld [vmem:[%s11759_s5 + $0x4c8] sm:$0xff]  ;;  %v2711_v11 = vld [vmem:[%s11759_s5 + $0x4b0] sm:$0xff] }
 0x251   : > { %v2313_v28 = vadd.f32 %v9246_v13, %v1848_v29  ;;  %6435 = vmatprep.subr.bf16.mxu1 %v6434_v23  ;;  %6563 = vmatprep.subr.bf16.mxu0 %v6562_v56  ;;  %v2718_v23 = vld [vmem:[%s11759_s5 + $0x4e8] sm:$0xff]  ;;  %v2720_v56 = vld [vmem:[%s11759_s5 + $0x4f8] sm:$0xff]  ;;  %v6568_v29 = vpack.c.bf16 %v2711_v11, %v2707_v59 }
 0x252   : > { %v2314_v42 = vadd.f32 %v9249_v52, %v1850_v18  ;;  %v1853_v22 = vpop.f32.mrb[24].mxu1  ;;  %2909 = vmatprep.mubr.f32.mxu1 %v2438_v51  ;;  %3423 = vmatprep.mubr.f32.mxu0 %v2438_v51  ;;  %v6570_v51 = vpack.c.bf16 %v2720_v56, %v2716_v19  ;;  %v2715_v18 = vld [vmem:[%s11759_s5 + $0x4d0] sm:$0xff] }
 0x253   : > { %v1854_v35 = vadd.f32 %v1853_v22, %v8837_v45  ;;  %v1855_v6 = vpop.f32.mrb[25].mxu1  ;;  %2910 = vmatmul.mubr.f32.gmra.mrb[66].mxu1 %v2437_v25  ;;  %3424 = vmatmul.mubr.f32.gmra.mrb[144].mxu0 %v2437_v25  ;;  %v2441_v26 = vmax.f32 %v2313_v28, 0.0  ;;  %v6442_v25 = vpack.c.bf16 %v2718_v23, %v2714_v53  ;;  %v2724_v28 = vld [vmem:[%s11759_s5 + $0x518] sm:$0xff]  ;;  %v2721_v22 = vld [vmem:[%s11759_s5 + $0x500] sm:$0xff] }
 0x254   : > { %v2442_v48 = vmax.f32 %v2314_v42, 0.0  ;;  %v1856_v16 = vadd.f32 %v1855_v6, %v8847_v30  ;;  %6437 = vmatpush1.bf16.msra.mxu1 %v6436_v62  ;;  %6565 = vmatpush1.bf16.msra.mxu0 %v6564_v21  ;;  %v2722_v30 = vld [vmem:[%s11759_s5 + $0x508] sm:$0xff]  ;;  %v2719_v62 = vld [vmem:[%s11759_s5 + $0x4f0] sm:$0xff]  ;;  %v6444_v42 = vpack.c.bf16 %v2717_v17, %v2713_v60  ;;  %v2725_v23 = vld [vmem:[%s11759_s5 + $0x520] sm:$0xff] }
 0x255   : > { %v2317_v45 = vadd.f32 %v9246_v13, %v1854_v35  ;;  %6439 = vmatprep.subr.bf16.mxu1 %v6438_v20  ;;  %6567 = vmatprep.subr.bf16.mxu0 %v6566_v46  ;;  %v2726_v21 = vld [vmem:[%s11759_s5 + $0x528] sm:$0xff]  ;;  %v2728_v20 = vld [vmem:[%s11759_s5 + $0x538] sm:$0xff]  ;;  %v6572_v19 = vpack.c.bf16 %v2719_v62, %v2715_v18  ;;  %v6448_v18 = vpack.c.bf16 %v2725_v23, %v2721_v22  ;;  %v2729_v62 = vld [vmem:[%s11759_s5 + $0x540] sm:$0xff] }
 0x256   : > { %v2318_v4 = vadd.f32 %v9249_v52, %v1856_v16  ;;  %v1859_v5 = vpop.f32.mrb[26].mxu1  ;;  %2915 = vmatprep.mubr.f32.mxu1 %v2442_v48  ;;  %3429 = vmatprep.mubr.f32.mxu0 %v2442_v48  ;;  %v6446_v35 = vpack.c.bf16 %v2726_v21, %v2722_v30  ;;  %v6574_v6 = vpack.c.bf16 %v2728_v20, %v2724_v28  ;;  %v2723_v48 = vld [vmem:[%s11759_s5 + $0x510] sm:$0xff]  ;;  %v2734_v17 = vld [vmem:[%s11759_s5 + $0x568] sm:$0xff]  ;;  %v2740_v22 = vld [vmem:[%s11759_s5 + $0x598] sm:$0xff] }
 0x257   : > { %v1860_v53 = vadd.f32 %v1859_v5, %v8859_v24  ;;  %v1861_v46 = vpop.f32.mrb[27].mxu1  ;;  %2916 = vmatmul.mubr.f32.gmra.mrb[68].mxu1 %v2441_v26  ;;  %3430 = vmatmul.mubr.f32.gmra.mrb[146].mxu0 %v2441_v26  ;;  %v2445_v56 = vmax.f32 %v2317_v45, 0.0  ;;  %v2727_v16 = vld [vmem:[%s11759_s5 + $0x530] sm:$0xff]  ;;  %v2736_v26 = vld [vmem:[%s11759_s5 + $0x578] sm:$0xff] }
 0x258   : > { %v2446_v59 = vmax.f32 %v2318_v4, 0.0  ;;  %v1862_v11 = vadd.f32 %v1861_v46, %v8869_v32  ;;  %6441 = vmatpush1.bf16.msra.mxu1 %v6440_v55  ;;  %6569 = vmatpush1.bf16.msra.mxu0 %v6568_v29  ;;  %v2730_v32 = vld [vmem:[%s11759_s5 + $0x548] sm:$0xff]  ;;  %v2732_v29 = vld [vmem:[%s11759_s5 + $0x558] sm:$0xff]  ;;  %v2733_v4 = vld [vmem:[%s11759_s5 + $0x560] sm:$0xff]  ;;  %v6576_v5 = vpack.c.bf16 %v2727_v16, %v2723_v48 }
 0x259   : > { %v2321_v24 = vadd.f32 %v9246_v13, %v1860_v53  ;;  %6443 = vmatprep.subr.bf16.mxu1 %v6442_v25  ;;  %6571 = vmatprep.subr.bf16.mxu0 %v6570_v51  ;;  %v6450_v28 = vpack.c.bf16 %v2734_v17, %v2730_v32  ;;  %v6578_v20 = vpack.c.bf16 %v2736_v26, %v2732_v29  ;;  %v2731_v53 = vld [vmem:[%s11759_s5 + $0x550] sm:$0xff]  ;;  %v2744_v23 = vld [vmem:[%s11759_s5 + $0x5b8] sm:$0xff]  ;;  %v2741_v48 = vld [vmem:[%s11759_s5 + $0x5a0] sm:$0xff] }
 0x25a   : > { %v2322_v55 = vadd.f32 %v9249_v52, %v1862_v11  ;;  %v1865_v60 = vpop.f32.mrb[28].mxu1  ;;  %2921 = vmatprep.mubr.f32.mxu1 %v2446_v59  ;;  %3435 = vmatprep.mubr.f32.mxu0 %v2446_v59  ;;  %v2735_v46 = vld [vmem:[%s11759_s5 + $0x570] sm:$0xff]  ;;  %v6452_v32 = vpack.c.bf16 %v2733_v4, %v2729_v62  ;;  %v6582_v17 = vpack.c.bf16 %v2744_v23, %v2740_v22 }
 0x25b   : > { %v1866_v45 = vadd.f32 %v1865_v60, %v8881_v12  ;;  %v1867_v25 = vpop.f32.mrb[29].mxu1  ;;  %2922 = vmatmul.mubr.f32.gmra.mrb[70].mxu1 %v2445_v56  ;;  %3436 = vmatmul.mubr.f32.gmra.mrb[148].mxu0 %v2445_v56  ;;  %v2449_v21 = vmax.f32 %v2321_v24, 0.0  ;;  %v6580_v16 = vpack.c.bf16 %v2735_v46, %v2731_v53  ;;  %v2739_v29 = vld [vmem:[%s11759_s5 + $0x590] sm:$0xff] }
 0x25c   : > { %v2450_v30 = vmax.f32 %v2322_v55, 0.0  ;;  %v1868_v51 = vadd.f32 %v1867_v25, %v8891_v34  ;;  %6445 = vmatpush1.bf16.msra.mxu1 %v6444_v42  ;;  %6573 = vmatpush1.bf16.msra.mxu0 %v6572_v19  ;;  %v2738_v34 = vld [vmem:[%s11759_s5 + $0x588] sm:$0xff]  ;;  %v2743_v26 = vld [vmem:[%s11759_s5 + $0x5b0] sm:$0xff] }
 0x25d   : > { %v2325_v12 = vadd.f32 %v9246_v13, %v1866_v45  ;;  %6447 = vmatprep.subr.bf16.mxu1 %v6446_v35  ;;  %6575 = vmatprep.subr.bf16.mxu0 %v6574_v6  ;;  %v2742_v42 = vld [vmem:[%s11759_s5 + $0x5a8] sm:$0xff]  ;;  %v2737_v6 = vld [vmem:[%s11759_s5 + $0x580] sm:$0xff] }
 0x25e   : > { %v2326_v59 = vadd.f32 %v9249_v52, %v1868_v51  ;;  %v1871_v11 = vpop.f32.mrb[30].mxu1  ;;  %2927 = vmatprep.mubr.f32.mxu1 %v2450_v30  ;;  %3441 = vmatprep.mubr.f32.mxu0 %v2450_v30  ;;  %v6454_v60 = vpack.c.bf16 %v2742_v42, %v2738_v34  ;;  %v2750_v30 = vld [vmem:[%s11759_s5 + $0x5e8] sm:$0xff]  ;;  %v2748_v51 = vld [vmem:[%s11759_s5 + $0x5d8] sm:$0xff]  ;;  %v2749_v34 = vld [vmem:[%s11759_s5 + $0x5e0] sm:$0xff] }
 0x25f   : > { %v1872_v19 = vadd.f32 %v1871_v11, %v8912_v54  ;;  %v1873_v56 = vpop.f32.mrb[31].mxu1  ;;  %2928 = vmatmul.mubr.f32.gmra.mrb[72].mxu1 %v2449_v21  ;;  %3442 = vmatmul.mubr.f32.gmra.mrb[150].mxu0 %v2449_v21  ;;  %v2453_v55 = vmax.f32 %v2325_v12, 0.0  ;;  %v6456_v12 = vpack.c.bf16 %v2741_v48, %v2737_v6  ;;  %v2747_v11 = vld [vmem:[%s11759_s5 + $0x5d0] sm:$0xff] }
 0x260   : > { %v2454_v24 = vmax.f32 %v2326_v59, 0.0  ;;  %v1874_v35 = vadd.f32 %v1873_v56, %v8925_v43  ;;  %6449 = vmatpush1.bf16.msra.mxu1 %v6448_v18  ;;  %6577 = vmatpush1.bf16.msra.mxu0 %v6576_v5  ;;  %v2746_v43 = vld [vmem:[%s11759_s5 + $0x5c8] sm:$0xff]  ;;  %v2752_v18 = vld [vmem:[%s11759_s5 + $0x5f8] sm:$0xff]  ;;  %v2751_v42 = vld [vmem:[%s11759_s5 + $0x5f0] sm:$0xff] }
 0x261   : > { %v2329_v54 = vadd.f32 %v9246_v13, %v1872_v19  ;;  %6451 = vmatprep.subr.bf16.mxu1 %v6450_v28  ;;  %6579 = vmatprep.subr.bf16.mxu0 %v6578_v20  ;;  %v2745_v28 = vld [vmem:[%s11759_s5 + $0x5c0] sm:$0xff]  ;;  %v6584_v20 = vpack.c.bf16 %v2743_v26, %v2739_v29  ;;  %v6458_v46 = vpack.c.bf16 %v2750_v30, %v2746_v43  ;;  %v2758_v19 = vld [vmem:[%s11759_s5 + $0x628] sm:$0xff]  ;;  %v2756_v56 = vld [vmem:[%s11759_s5 + $0x618] sm:$0xff] }
 0x262   : > { %v2330_v45 = vadd.f32 %v9249_v52, %v1874_v35  ;;  %v1877_v25 = vpop.f32.mrb[32].mxu1  ;;  %2933 = vmatprep.mubr.f32.mxu1 %v2454_v24  ;;  %3447 = vmatprep.mubr.f32.mxu0 %v2454_v24  ;;  %v6586_v59 = vpack.c.bf16 %v2752_v18, %v2748_v51  ;;  %v2760_v24 = vld [vmem:[%s11759_s5 + $0x638] sm:$0xff]  ;;  %v2755_v26 = vld [vmem:[%s11759_s5 + $0x610] sm:$0xff]  ;;  %v2766_v51 = vld [vmem:[%s11759_s5 + $0x668] sm:$0xff] }
 0x263   : > { %v1878_v62 = vadd.f32 %v1877_v25, %v8937_v1  ;;  %v1879_v4 = vpop.f32.mrb[33].mxu1  ;;  %2934 = vmatmul.mubr.f32.gmra.mrb[74].mxu1 %v2453_v55  ;;  %3448 = vmatmul.mubr.f32.gmra.mrb[152].mxu0 %v2453_v55  ;;  %v2457_v53 = vmax.f32 %v2329_v54, 0.0  ;;  %v2753_v55 = vld [vmem:[%s11759_s5 + $0x600] sm:$0xff]  ;;  %v6590_v29 = vpack.c.bf16 %v2760_v24, %v2756_v56  ;;  %v2764_v18 = vld [vmem:[%s11759_s5 + $0x658] sm:$0xff] }
 0x264   : > { %v2458_v5 = vmax.f32 %v2330_v45, 0.0  ;;  %v1880_v21 = vadd.f32 %v1879_v4, %v8947_v38  ;;  %6453 = vmatpush1.bf16.msra.mxu1 %v6452_v32  ;;  %6581 = vmatpush1.bf16.msra.mxu0 %v6580_v16  ;;  %v2754_v38 = vld [vmem:[%s11759_s5 + $0x608] sm:$0xff]  ;;  %v6460_v16 = vpack.c.bf16 %v2749_v34, %v2745_v28  ;;  %v2757_v54 = vld [vmem:[%s11759_s5 + $0x620] sm:$0xff]  ;;  %v2759_v45 = vld [vmem:[%s11759_s5 + $0x630] sm:$0xff] }
 0x265   : > { %v2333_v1 = vadd.f32 %v9246_v13, %v1878_v62  ;;  %6455 = vmatprep.subr.bf16.mxu1 %v6454_v60  ;;  %6583 = vmatprep.subr.bf16.mxu0 %v6582_v17  ;;  %v6588_v60 = vpack.c.bf16 %v2751_v42, %v2747_v11  ;;  %v6462_v17 = vpack.c.bf16 %v2758_v19, %v2754_v38  ;;  %v2768_v62 = vld [vmem:[%s11759_s5 + $0x678] sm:$0xff]  ;;  %v2761_v34 = vld [vmem:[%s11759_s5 + $0x640] sm:$0xff]  ;;  %v2767_v11 = vld [vmem:[%s11759_s5 + $0x670] sm:$0xff] }
 0x266   : > { %v2334_v22 = vadd.f32 %v9249_v52, %v1880_v21  ;;  %v1883_v23 = vpop.f32.mrb[34].mxu1  ;;  %2939 = vmatprep.mubr.f32.mxu1 %v2458_v5  ;;  %3453 = vmatprep.mubr.f32.mxu0 %v2458_v5  ;;  %v6464_v28 = vpack.c.bf16 %v2757_v54, %v2753_v55  ;;  %v6594_v38 = vpack.c.bf16 %v2768_v62, %v2764_v18  ;;  %v2772_v19 = vld [vmem:[%s11759_s5 + $0x698] sm:$0xff]  ;;  %v2773_v55 = vld [vmem:[%s11759_s5 + $0x6a0] sm:$0xff] }
 0x267   : > { %v1884_v35 = vadd.f32 %v1883_v23, %v8959_v61  ;;  %v1885_v32 = vpop.f32.mrb[35].mxu1  ;;  %2940 = vmatmul.mubr.f32.gmra.mrb[76].mxu1 %v2457_v53  ;;  %3454 = vmatmul.mubr.f32.gmra.mrb[154].mxu0 %v2457_v53  ;;  %v2461_v43 = vmax.f32 %v2333_v1, 0.0  ;;  %v6592_v53 = vpack.c.bf16 %v2759_v45, %v2755_v26  ;;  %v2774_v23 = vld [vmem:[%s11759_s5 + $0x6a8] sm:$0xff]  ;;  %v2776_v56 = vld [vmem:[%s11759_s5 + $0x6b8] sm:$0xff] }
 0x268   : > { %v2462_v6 = vmax.f32 %v2334_v22, 0.0  ;;  %v1886_v48 = vadd.f32 %v1885_v32, %v8969_v10  ;;  %6457 = vmatpush1.bf16.msra.mxu1 %v6456_v12  ;;  %6585 = vmatpush1.bf16.msra.mxu0 %v6584_v20  ;;  %v2762_v10 = vld [vmem:[%s11759_s5 + $0x648] sm:$0xff]  ;;  %v2765_v20 = vld [vmem:[%s11759_s5 + $0x660] sm:$0xff] }
 0x269   : > { %v2337_v61 = vadd.f32 %v9246_v13, %v1884_v35  ;;  %6459 = vmatprep.subr.bf16.mxu1 %v6458_v46  ;;  %6587 = vmatprep.subr.bf16.mxu0 %v6586_v59  ;;  %v6466_v46 = vpack.c.bf16 %v2766_v51, %v2762_v10  ;;  %v2763_v59 = vld [vmem:[%s11759_s5 + $0x650] sm:$0xff]  ;;  %v2782_v45 = vld [vmem:[%s11759_s5 + $0x6e8] sm:$0xff] }
 0x26a   : > { %v2338_v25 = vadd.f32 %v9249_v52, %v1886_v48  ;;  %v1889_v30 = vpop.f32.mrb[36].mxu1  ;;  %2945 = vmatprep.mubr.f32.mxu1 %v2462_v6  ;;  %3459 = vmatprep.mubr.f32.mxu0 %v2462_v6  ;;  %v6468_v48 = vpack.c.bf16 %v2765_v20, %v2761_v34  ;;  %v6596_v54 = vpack.c.bf16 %v2767_v11, %v2763_v59  ;;  %v2775_v10 = vld [vmem:[%s11759_s5 + $0x6b0] sm:$0xff]  ;;  %v2788_v59 = vld [vmem:[%s11759_s5 + $0x718] sm:$0xff] }
 0x26b   : > { %v1890_v4 = vadd.f32 %v1889_v30, %v8987_v39  ;;  %v1891_v5 = vpop.f32.mrb[37].mxu1  ;;  %2946 = vmatmul.mubr.f32.gmra.mrb[78].mxu1 %v2461_v43  ;;  %3460 = vmatmul.mubr.f32.gmra.mrb[156].mxu0 %v2461_v43  ;;  %v2465_v1 = vmax.f32 %v2337_v61, 0.0  ;;  %v6598_v61 = vpack.c.bf16 %v2776_v56, %v2772_v19  ;;  %v2784_v30 = vld [vmem:[%s11759_s5 + $0x6f8] sm:$0xff] }
 0x26c   : > { %v2466_v21 = vmax.f32 %v2338_v25, 0.0  ;;  %v1892_v12 = vadd.f32 %v1891_v5, %v8997_v7  ;;  %6461 = vmatpush1.bf16.msra.mxu1 %v6460_v16  ;;  %6589 = vmatpush1.bf16.msra.mxu0 %v6588_v60  ;;  %v2770_v7 = vld [vmem:[%s11759_s5 + $0x688] sm:$0xff]  ;;  %v2769_v16 = vld [vmem:[%s11759_s5 + $0x680] sm:$0xff]  ;;  %v2780_v25 = vld [vmem:[%s11759_s5 + $0x6d8] sm:$0xff] }
 0x26d   : > { %v2341_v39 = vadd.f32 %v9246_v13, %v1890_v4  ;;  %6463 = vmatprep.subr.bf16.mxu1 %v6462_v17  ;;  %6591 = vmatprep.subr.bf16.mxu0 %v6590_v29  ;;  %v6470_v43 = vpack.c.bf16 %v2774_v23, %v2770_v7  ;;  %v2771_v17 = vld [vmem:[%s11759_s5 + $0x690] sm:$0xff]  ;;  %v6472_v5 = vpack.c.bf16 %v2773_v55, %v2769_v16  ;;  %v2792_v11 = vld [vmem:[%s11759_s5 + $0x738] sm:$0xff] }
 0x26e   : > { %v2342_v42 = vadd.f32 %v9249_v52, %v1892_v12  ;;  %v1895_v22 = vpop.f32.mrb[38].mxu1  ;;  %2951 = vmatprep.mubr.f32.mxu1 %v2466_v21  ;;  %3465 = vmatprep.mubr.f32.mxu0 %v2466_v21  ;;  %v2777_v21 = vld [vmem:[%s11759_s5 + $0x6c0] sm:$0xff]  ;;  %v6606_v16 = vpack.c.bf16 %v2792_v11, %v2788_v59  ;;  %v2787_v55 = vld [vmem:[%s11759_s5 + $0x710] sm:$0xff] }
 0x26f   : > { %v1896_v24 = vadd.f32 %v1895_v22, %v9009_v33  ;;  %v1897_v35 = vpop.f32.mrb[39].mxu1  ;;  %2952 = vmatmul.mubr.f32.gmra.mrb[80].mxu1 %v2465_v1  ;;  %3466 = vmatmul.mubr.f32.gmra.mrb[158].mxu0 %v2465_v1  ;;  %v2469_v60 = vmax.f32 %v2341_v39, 0.0  ;;  %v2781_v12 = vld [vmem:[%s11759_s5 + $0x6e0] sm:$0xff]  ;;  %v2779_v1 = vld [vmem:[%s11759_s5 + $0x6d0] sm:$0xff] }
 0x270   : > { %v2470_v32 = vmax.f32 %v2342_v42, 0.0  ;;  %v1898_v6 = vadd.f32 %v1897_v35, %v9019_v2  ;;  %6465 = vmatpush1.bf16.msra.mxu1 %v6464_v28  ;;  %6593 = vmatpush1.bf16.msra.mxu0 %v6592_v53  ;;  %v2778_v2 = vld [vmem:[%s11759_s5 + $0x6c8] sm:$0xff]  ;;  %v6600_v28 = vpack.c.bf16 %v2775_v10, %v2771_v17  ;;  %v6602_v53 = vpack.c.bf16 %v2784_v30, %v2780_v25  ;;  %v2783_v39 = vld [vmem:[%s11759_s5 + $0x6f0] sm:$0xff]  ;;  %v2789_v35 = vld [vmem:[%s11759_s5 + $0x720] sm:$0xff] }
 0x271   : > { %v2345_v33 = vadd.f32 %v9246_v13, %v1896_v24  ;;  %6467 = vmatprep.subr.bf16.mxu1 %v6466_v46  ;;  %6595 = vmatprep.subr.bf16.mxu0 %v6594_v38  ;;  %v6474_v20 = vpack.c.bf16 %v2782_v45, %v2778_v2  ;;  %v2790_v38 = vld [vmem:[%s11759_s5 + $0x728] sm:$0xff]  ;;  %v6476_v56 = vpack.c.bf16 %v2781_v12, %v2777_v21  ;;  %v2785_v24 = vld [vmem:[%s11759_s5 + $0x700] sm:$0xff]  ;;  %v2796_v2 = vld [vmem:[%s11759_s5 + $0x758] sm:$0xff] }
 0x272   : > { %v2346_v29 = vadd.f32 %v9249_v52, %v1898_v6  ;;  %v1901_v26 = vpop.f32.mrb[40].mxu1  ;;  %2957 = vmatprep.mubr.f32.mxu1 %v2470_v32  ;;  %3471 = vmatprep.mubr.f32.mxu0 %v2470_v32  ;;  %v6604_v32 = vpack.c.bf16 %v2783_v39, %v2779_v1  ;;  %v6480_v45 = vpack.c.bf16 %v2789_v35, %v2785_v24  ;;  %v2793_v25 = vld [vmem:[%s11759_s5 + $0x740] sm:$0xff]  ;;  %v2799_v21 = vld [vmem:[%s11759_s5 + $0x770] sm:$0xff]  ;;  %v2814_v35 = vld [vmem:[%s11759_s5 + $0x7e8] sm:$0xff] }
 0x273   : > { %v1902_v51 = vadd.f32 %v1901_v26, %v9031_v8  ;;  %v1903_v18 = vpop.f32.mrb[41].mxu1  ;;  %2958 = vmatmul.mubr.f32.gmra.mrb[82].mxu1 %v2469_v60  ;;  %3472 = vmatmul.mubr.f32.gmra.mrb[160].mxu0 %v2469_v60  ;;  %v2473_v34 = vmax.f32 %v2345_v33, 0.0  ;;  %v2797_v30 = vld [vmem:[%s11759_s5 + $0x760] sm:$0xff] }
 0x274   : > { %v2474_v62 = vmax.f32 %v2346_v29, 0.0  ;;  %v1904_v4 = vadd.f32 %v1903_v18, %v9041_v37  ;;  %6469 = vmatpush1.bf16.msra.mxu1 %v6468_v48  ;;  %6597 = vmatpush1.bf16.msra.mxu0 %v6596_v54  ;;  %v2786_v37 = vld [vmem:[%s11759_s5 + $0x708] sm:$0xff]  ;;  %v2791_v54 = vld [vmem:[%s11759_s5 + $0x730] sm:$0xff] }
 0x275   : > { %v2349_v8 = vadd.f32 %v9246_v13, %v1902_v51  ;;  %6471 = vmatprep.subr.bf16.mxu1 %v6470_v43  ;;  %6599 = vmatprep.subr.bf16.mxu0 %v6598_v61  ;;  %v6478_v48 = vpack.c.bf16 %v2790_v38, %v2786_v37  ;;  %v2798_v43 = vld [vmem:[%s11759_s5 + $0x768] sm:$0xff]  ;;  %v2800_v61 = vld [vmem:[%s11759_s5 + $0x778] sm:$0xff]  ;;  %v6608_v51 = vpack.c.bf16 %v2791_v54, %v2787_v55  ;;  %v2805_v38 = vld [vmem:[%s11759_s5 + $0x7a0] sm:$0xff] }
 0x276   : > { %v2350_v46 = vadd.f32 %v9249_v52, %v1904_v4  ;;  %v1907_v7 = vpop.f32.mrb[42].mxu1  ;;  %2963 = vmatprep.mubr.f32.mxu1 %v2474_v62  ;;  %3477 = vmatprep.mubr.f32.mxu0 %v2474_v62  ;;  %v6610_v4 = vpack.c.bf16 %v2800_v61, %v2796_v2  ;;  %v2809_v54 = vld [vmem:[%s11759_s5 + $0x7c0] sm:$0xff] }
 0x277   : > { %v1908_v42 = vadd.f32 %v1907_v7, %v9053_v63  ;;  %v1909_v22 = vpop.f32.mrb[43].mxu1  ;;  %2964 = vmatmul.mubr.f32.gmra.mrb[84].mxu1 %v2473_v34  ;;  %3478 = vmatmul.mubr.f32.gmra.mrb[162].mxu0 %v2473_v34  ;;  %v2477_v6 = vmax.f32 %v2349_v8, 0.0  ;;  %v2806_v34 = vld [vmem:[%s11759_s5 + $0x7a8] sm:$0xff]  ;;  %v2804_v8 = vld [vmem:[%s11759_s5 + $0x798] sm:$0xff]  ;;  %v2801_v7 = vld [vmem:[%s11759_s5 + $0x780] sm:$0xff] }
 0x278   : > { %v2478_v23 = vmax.f32 %v2350_v46, 0.0  ;;  %v1910_v19 = vadd.f32 %v1909_v22, %v9063_v40  ;;  %6473 = vmatpush1.bf16.msra.mxu1 %v6472_v5  ;;  %6601 = vmatpush1.bf16.msra.mxu0 %v6600_v28  ;;  %v2794_v40 = vld [vmem:[%s11759_s5 + $0x748] sm:$0xff]  ;;  %v2795_v5 = vld [vmem:[%s11759_s5 + $0x750] sm:$0xff]  ;;  %v6484_v46 = vpack.c.bf16 %v2797_v30, %v2793_v25  ;;  %v6488_v55 = vpack.c.bf16 %v2805_v38, %v2801_v7 }
 0x279   : > { %v2353_v63 = vadd.f32 %v9246_v13, %v1908_v42  ;;  %6475 = vmatprep.subr.bf16.mxu1 %v6474_v20  ;;  %6603 = vmatprep.subr.bf16.mxu0 %v6602_v53  ;;  %v6482_v62 = vpack.c.bf16 %v2798_v43, %v2794_v40  ;;  %v2808_v20 = vld [vmem:[%s11759_s5 + $0x7b8] sm:$0xff]  ;;  %v6612_v59 = vpack.c.bf16 %v2799_v21, %v2795_v5 }
 0x27a   : > { %v2354_v60 = vadd.f32 %v9249_v52, %v1910_v19  ;;  %v1913_v33 = vpop.f32.mrb[44].mxu1  ;;  %2969 = vmatprep.mubr.f32.mxu1 %v2478_v23  ;;  %3483 = vmatprep.mubr.f32.mxu0 %v2478_v23  ;;  %v6614_v22 = vpack.c.bf16 %v2808_v20, %v2804_v8  ;;  %v2803_v23 = vld [vmem:[%s11759_s5 + $0x790] sm:$0xff] }
 0x27b   : > { %v1914_v17 = vadd.f32 %v1913_v33, %v9075_v27  ;;  %v1915_v10 = vpop.f32.mrb[45].mxu1  ;;  %2970 = vmatmul.mubr.f32.gmra.mrb[86].mxu1 %v2477_v6  ;;  %3484 = vmatmul.mubr.f32.gmra.mrb[164].mxu0 %v2477_v6  ;;  %v2481_v18 = vmax.f32 %v2353_v63, 0.0  ;;  %v2807_v19 = vld [vmem:[%s11759_s5 + $0x7b0] sm:$0xff]  ;;  %v2816_v6 = vld [vmem:[%s11759_s5 + $0x7f8] sm:$0xff] }
 0x27c   : > { %v2482_v29 = vmax.f32 %v2354_v60, 0.0  ;;  %v1916_v26 = vadd.f32 %v1915_v10, %v9085_v44  ;;  %6477 = vmatpush1.bf16.msra.mxu1 %v6476_v56  ;;  %6605 = vmatpush1.bf16.msra.mxu0 %v6604_v32  ;;  %v2802_v44 = vld [vmem:[%s11759_s5 + $0x788] sm:$0xff]  ;;  %v2812_v32 = vld [vmem:[%s11759_s5 + $0x7d8] sm:$0xff]  ;;  %v6616_v60 = vpack.c.bf16 %v2807_v19, %v2803_v23 }
 0x27d   : > { %v2357_v27 = vadd.f32 %v9246_v13, %v1914_v17  ;;  %6479 = vmatprep.subr.bf16.mxu1 %v6478_v48  ;;  %6607 = vmatprep.subr.bf16.mxu0 %v6606_v16  ;;  %v6486_v42 = vpack.c.bf16 %v2806_v34, %v2802_v44  ;;  %v6618_v61 = vpack.c.bf16 %v2816_v6, %v2812_v32  ;;  %v2815_v17 = vld [vmem:[%s11759_s5 + $0x7f0] sm:$0xff]  ;;  %v11782_v6 = vld [vmem:[#allocation2_spill] sm:$0xff] }
 0x27e   : > { %v2358_v12 = vadd.f32 %v9249_v52, %v1916_v26  ;;  %v1919_v28 = vpop.f32.mrb[46].mxu1  ;;  %2975 = vmatprep.mubr.f32.mxu1 %v2482_v29  ;;  %3489 = vmatprep.mubr.f32.mxu0 %v2482_v29 }
 0x27f   : > { %v1920_v37 = vadd.f32 %v1919_v28, %v9097_v14  ;;  %v1921_v53 = vpop.f32.mrb[47].mxu1  ;;  %2976 = vmatmul.mubr.f32.gmra.mrb[88].mxu1 %v2481_v18  ;;  %3490 = vmatmul.mubr.f32.gmra.mrb[166].mxu0 %v2481_v18  ;;  %v2485_v11 = vmax.f32 %v2357_v27, 0.0 }
 0x280   : > { %v2486_v1 = vmax.f32 %v2358_v12, 0.0  ;;  %v1922_v39 = vadd.f32 %v1921_v53, %v9107_v31  ;;  %6481 = vmatpush1.bf16.msra.mxu1 %v6480_v45  ;;  %6609 = vmatpush1.bf16.msra.mxu0 %v6608_v51  ;;  %v2810_v31 = vld [vmem:[%s11759_s5 + $0x7c8] sm:$0xff] }
 0x281   : > { %v2361_v14 = vadd.f32 %v9246_v13, %v1920_v37  ;;  %6483 = vmatprep.subr.bf16.mxu1 %v6482_v62  ;;  %6611 = vmatprep.subr.bf16.mxu0 %v6610_v4  ;;  %v6490_v2 = vpack.c.bf16 %v2814_v35, %v2810_v31 }
 0x282   : > { %v2362_v56 = vadd.f32 %v9249_v52, %v1922_v39  ;;  %v1925_v24 = vpop.f32.mrb[48].mxu1  ;;  %2981 = vmatprep.mubr.f32.mxu1 %v2486_v1  ;;  %3495 = vmatprep.mubr.f32.mxu0 %v2486_v1 }
 0x283   : > { %v1926_v63 = vadd.f32 %v1925_v24, %v9119_v49  ;;  %v1927_v48 = vpop.f32.mrb[49].mxu1  ;;  %2982 = vmatmul.mubr.f32.gmra.mrb[90].mxu1 %v2485_v11  ;;  %3496 = vmatmul.mubr.f32.gmra.mrb[168].mxu0 %v2485_v11  ;;  %v2489_v33 = vmax.f32 %v2361_v14, 0.0  ;;  %v2813_v49 = vld [vmem:[%s11759_s5 + $0x7e0] sm:$0xff] }
 0x284   : > { %v2490_v40 = vmax.f32 %v2362_v56, 0.0  ;;  %v1928_v16 = vadd.f32 %v1927_v48, %v9129_v58  ;;  %6485 = vmatpush1.bf16.msra.mxu1 %v6484_v46  ;;  %6613 = vmatpush1.bf16.msra.mxu0 %v6612_v59  ;;  %v2811_v58 = vld [vmem:[%s11759_s5 + $0x7d0] sm:$0xff]  ;;  %v6492_v51 = vpack.c.bf16 %v2813_v49, %v2809_v54 }
 0x285   : > { %v2365_v43 = vadd.f32 %v9246_v13, %v1926_v63  ;;  %6487 = vmatprep.subr.bf16.mxu1 %v6486_v42  ;;  %6615 = vmatprep.subr.bf16.mxu0 %v6614_v22  ;;  %v6620_v18 = vpack.c.bf16 %v2815_v17, %v2811_v58 }
 0x286   : > { %v2366_v10 = vadd.f32 %v9249_v52, %v1928_v16  ;;  %v1931_v29 = vpop.f32.mrb[50].mxu1  ;;  %2987 = vmatprep.mubr.f32.mxu1 %v2490_v40  ;;  %3501 = vmatprep.mubr.f32.mxu0 %v2490_v40 }
 0x287   : > { %v1932_v26 = vadd.f32 %v1931_v29, %v9140_v36  ;;  %v1933_v45 = vpop.f32.mrb[51].mxu1  ;;  %2988 = vmatmul.mubr.f32.gmra.mrb[92].mxu1 %v2489_v33  ;;  %3502 = vmatmul.mubr.f32.gmra.mrb[170].mxu0 %v2489_v33  ;;  %v2493_v27 = vmax.f32 %v2365_v43, 0.0 }
 0x288   : > { %v2494_v25 = vmax.f32 %v2366_v10, 0.0  ;;  %v1934_v30 = vadd.f32 %v1933_v45, %v9150_v41  ;;  %6489 = vmatpush1.bf16.msra.mxu1 %v6488_v55  ;;  %6617 = vmatpush1.bf16.msra.mxu0 %v6616_v60  ;;  %v11783_v60 = vld [vmem:[#allocation3_spill] sm:$0xff]  ;;  %v11785_v45 = vld [vmem:[#allocation5_spill] sm:$0xff] }
 0x289   : > { %v2369_v62 = vadd.f32 %v9246_v13, %v1932_v26  ;;  %6491 = vmatprep.subr.bf16.mxu1 %v6490_v2  ;;  %6619 = vmatprep.subr.bf16.mxu0 %v6618_v61  ;;  %v11784_v2 = vld [vmem:[#allocation4_spill] sm:$0xff] }
 0x28a   : > { %v2370_v44 = vadd.f32 %v9249_v52, %v1934_v30  ;;  %v1937_v4 = vpop.f32.mrb[52].mxu1  ;;  %2993 = vmatprep.mubr.f32.mxu1 %v2494_v25  ;;  %3507 = vmatprep.mubr.f32.mxu0 %v2494_v25 }
 0x28b   : > { %v1938_v36 = vadd.f32 %v1937_v4, %v9153_v57  ;;  %v1939_v5 = vpop.f32.mrb[53].mxu1  ;;  %2994 = vmatmul.mubr.f32.gmra.mrb[94].mxu1 %v2493_v27  ;;  %3508 = vmatmul.mubr.f32.gmra.mrb[172].mxu0 %v2493_v27  ;;  %v2497_v12 = vmax.f32 %v2369_v62, 0.0 }
 0x28c   : > { %v2498_v41 = vmax.f32 %v2370_v44, 0.0  ;;  %v1940_v21 = vadd.f32 %v1939_v5, %v9157_v15  ;;  %6493 = vmatpush1.bf16.msra.mxu1 %v6492_v51  ;;  %6621 = vmatpush1.bf16.msra.mxu0 %v6620_v18  ;;  %v11786_v18 = vld [vmem:[#allocation6_spill] sm:$0xff] }
 0x28d   : > { %v2373_v28 = vadd.f32 %v9246_v13, %v1938_v36  ;;  %v9694_v34 = vpop.f32.mrb[78].mxu0 }
 0x28e   : > { %v2374_v8 = vadd.f32 %v9249_v52, %v1940_v21  ;;  %v1943_v20 = vpop.f32.mrb[54].mxu1  ;;  %v9697_v37 = vpop.f32.mrb[79].mxu0  ;;  %2999 = vmatprep.mubr.f32.mxu1 %v2498_v41  ;;  %3513 = vmatprep.mubr.f32.mxu0 %v2498_v41 }
 0x28f   : > { %v1944_v57 = vadd.f32 %v1943_v20, %v9160_v47  ;;  %v1945_v53 = vpop.f32.mrb[55].mxu1  ;;  %3000 = vmatmul.mubr.f32.gmra.mrb[96].mxu1 %v2497_v12  ;;  %3514 = vmatmul.mubr.f32.gmra.mrb[174].mxu0 %v2497_v12  ;;  %v2501_v39 = vmax.f32 %v2373_v28, 0.0 }
 0x290   : > { %v2502_v15 = vmax.f32 %v2374_v8, 0.0  ;;  %v1946_v1 = vadd.f32 %v1945_v53, %v9164_v9 }
 0x291   : > { %v2377_v46 = vadd.f32 %v9246_v13, %v1944_v57  ;;  %v9702_v7 = vpop.f32.mrb[80].mxu0 }
 0x292   : > { %v2378_v38 = vadd.f32 %v9249_v52, %v1946_v1  ;;  %v1949_v59 = vpop.f32.mrb[56].mxu1  ;;  %v9705_v11 = vpop.f32.mrb[81].mxu0  ;;  %3005 = vmatprep.mubr.f32.mxu1 %v2502_v15  ;;  %3519 = vmatprep.mubr.f32.mxu0 %v2502_v15 }
 0x293   : > { %v1950_v47 = vadd.f32 %v1949_v59, %v9167_v50  ;;  %v1951_v14 = vpop.f32.mrb[57].mxu1  ;;  %3006 = vmatmul.mubr.f32.gmra.mrb[98].mxu1 %v2501_v39  ;;  %3520 = vmatmul.mubr.f32.gmra.mrb[176].mxu0 %v2501_v39  ;;  %v2505_v31 = vmax.f32 %v2377_v46, 0.0  ;;  %v4000_v59 = vld [vmem:[%s11761_s7 + $0x28] sm:$0xff] }
 0x294   : > { %v2506_v42 = vmax.f32 %v2378_v38, 0.0  ;;  %v1952_v9 = vadd.f32 %v1951_v14, %v9171_v3  ;;  %v3996_v38 = vld [vmem:[%s11761_s7 + $0x8] sm:$0xff] }
 0x295   : > { %v2381_v22 = vadd.f32 %v9246_v13, %v1950_v47  ;;  %v9710_v23 = vpop.f32.mrb[82].mxu0 }
 0x296   : > { %v2382_v19 = vadd.f32 %v9249_v52, %v1952_v9  ;;  %v1955_v56 = vpop.f32.mrb[58].mxu1  ;;  %v9713_v24 = vpop.f32.mrb[83].mxu0  ;;  %3011 = vmatprep.mubr.f32.mxu1 %v2506_v42  ;;  %3525 = vmatprep.mubr.f32.mxu0 %v2506_v42  ;;  %v6622_v9 = vpack.c.bf16 %v4000_v59, %v3996_v38 }
 0x297   : > { %v1956_v50 = vadd.f32 %v1955_v56, %v9174_v0  ;;  %v1957_v35 = vpop.f32.mrb[59].mxu1  ;;  %3012 = vmatmul.mubr.f32.gmra.mrb[100].mxu1 %v2505_v31  ;;  %3526 = vmatmul.mubr.f32.gmra.mrb[178].mxu0 %v2505_v31  ;;  %v2509_v63 = vmax.f32 %v2381_v22, 0.0 }
 0x298   : > { %v2510_v32 = vmax.f32 %v2382_v19, 0.0  ;;  %v1958_v3 = vadd.f32 %v1957_v35, %v11782_v6  ;;  %6623 = vmatprep.subr.bf16.mxu1 %v6622_v9 }
 0x299   : > { %v2385_v48 = vadd.f32 %v9246_v13, %v1956_v50  ;;  %v9718_v40 = vpop.f32.mrb[84].mxu0 }
 0x29a   : > { %v2386_v16 = vadd.f32 %v9249_v52, %v1958_v3  ;;  %v1961_v55 = vpop.f32.mrb[60].mxu1  ;;  %v9721_v54 = vpop.f32.mrb[85].mxu0  ;;  %3017 = vmatprep.mubr.f32.mxu1 %v2510_v32  ;;  %3531 = vmatprep.mubr.f32.mxu0 %v2510_v32 }
 0x29b   : > { %v1962_v0 = vadd.f32 %v1961_v55, %v11783_v60  ;;  %v1963_v33 = vpop.f32.mrb[61].mxu1  ;;  %3018 = vmatmul.mubr.f32.gmra.mrb[102].mxu1 %v2509_v63  ;;  %3532 = vmatmul.mubr.f32.gmra.mrb[180].mxu0 %v2509_v63  ;;  %v2513_v61 = vmax.f32 %v2385_v48, 0.0 }
 0x29c   : > { %v2514_v43 = vmax.f32 %v2386_v16, 0.0  ;;  %v1964_v49 = vadd.f32 %v1963_v33, %v11784_v2 }
 0x29d   : > { %v2389_v58 = vadd.f32 %v9246_v13, %v1962_v0  ;;  %v9726_v17 = vpop.f32.mrb[86].mxu0 }
 0x29e   : > { %v2390_v10 = vadd.f32 %v9249_v52, %v1964_v49  ;;  %v1967_v29 = vpop.f32.mrb[62].mxu1  ;;  %v9729_v26 = vpop.f32.mrb[87].mxu0  ;;  %3023 = vmatprep.mubr.f32.mxu1 %v2514_v43  ;;  %3537 = vmatprep.mubr.f32.mxu0 %v2514_v43 }
 0x29f   : > { %v1968_v25 = vadd.f32 %v1967_v29, %v11785_v45  ;;  %v1969_v30 = vpop.f32.mrb[63].mxu1  ;;  %3024 = vmatmul.mubr.f32.gmra.mrb[104].mxu1 %v2513_v61  ;;  %3538 = vmatmul.mubr.f32.gmra.mrb[182].mxu0 %v2513_v61  ;;  %v2517_v62 = vmax.f32 %v2389_v58, 0.0 }
 0x2a0   : > { %v2518_v51 = vmax.f32 %v2390_v10, 0.0  ;;  %v1970_v27 = vadd.f32 %v1969_v30, %v11786_v18 }
 0x2a1   : > { %v2393_v44 = vadd.f32 %v9246_v13, %v1968_v25  ;;  %v9734_v4 = vpop.f32.mrb[88].mxu0 }
 0x2a2   : > { %v2394_v36 = vadd.f32 %v9249_v52, %v1970_v27  ;;  %v1973_v5 = vpop.f32.mrb[0].mxu1  ;;  %v9737_v41 = vpop.f32.mrb[89].mxu0  ;;  %3029 = vmatprep.mubr.f32.mxu1 %v2518_v51  ;;  %3543 = vmatprep.mubr.f32.mxu0 %v2518_v51 }
 0x2a3   : > { %v1975_v21 = vpop.f32.mrb[1].mxu1  ;;  %3030 = vmatmul.mubr.f32.gmra.mrb[106].mxu1 %v2517_v62  ;;  %3544 = vmatmul.mubr.f32.gmra.mrb[184].mxu0 %v2517_v62  ;;  %v2521_v8 = vmax.f32 %v2393_v44, 0.0  ;;  %v2397_v20 = vadd.f32 %v9246_v13, %v1973_v5 }
 0x2a4   : > { %v2522_v12 = vmax.f32 %v2394_v36, 0.0  ;;  %v2398_v28 = vadd.f32 %v9249_v52, %v1975_v21 }
 0x2a5   : > { %v9741_v57 = vpop.f32.mrb[90].mxu0  ;;  %v2525_v47 = vmax.f32 %v2397_v20, 0.0 }
 0x2a6   : > { %v2526_v53 = vmax.f32 %v2398_v28, 0.0  ;;  %v1979_v15 = vpop.f32.mrb[2].mxu1  ;;  %v9743_v1 = vpop.f32.mrb[91].mxu0  ;;  %3035 = vmatprep.mubr.f32.mxu1 %v2522_v12  ;;  %3549 = vmatprep.mubr.f32.mxu0 %v2522_v12 }
 0x2a7   : > { %v1981_v39 = vpop.f32.mrb[3].mxu1  ;;  %3036 = vmatmul.mubr.f32.gmra.mrb[108].mxu1 %v2521_v8  ;;  %3550 = vmatmul.mubr.f32.gmra.mrb[186].mxu0 %v2521_v8  ;;  %v2401_v14 = vadd.f32 %v9246_v13, %v1979_v15 }
 0x2a8   : > { %v2402_v46 = vadd.f32 %v9249_v52, %v1981_v39  ;;  %3041 = vmatprep.mubr.f32.mxu1 %v2526_v53  ;;  %3555 = vmatprep.mubr.f32.mxu0 %v2526_v53  ;;  %v11787_v39 = vld [vmem:[#allocation7_spill] sm:$0xff] }
 0x2a9   : > { %v9753_v42 = vpop.f32.mrb[92].mxu0  ;;  %v2529_v35 = vmax.f32 %v2401_v14, 0.0 }
 0x2aa   : > { %v2530_v31 = vmax.f32 %v2402_v46, 0.0  ;;  %v1985_v22 = vpop.f32.mrb[4].mxu1  ;;  %v9755_v19 = vpop.f32.mrb[93].mxu0  ;;  %v9786_v46 = vsub.s32 3, %v11787_v39 }
 0x2ab   : > { %v1987_v56 = vpop.f32.mrb[5].mxu1  ;;  %3042 = vmatmul.mubr.f32.gmra.mrb[110].mxu1 %v2525_v47  ;;  %3556 = vmatmul.mubr.f32.gmra.mrb[188].mxu0 %v2525_v47  ;;  %v2405_v32 = vadd.f32 %v9246_v13, %v1985_v22 }
 0x2ac   : > { %v2406_v50 = vadd.f32 %v9249_v52, %v1987_v56  ;;  %3047 = vmatprep.mubr.f32.mxu1 %v2530_v31  ;;  %3561 = vmatprep.mubr.f32.mxu0 %v2530_v31  ;;  %v9792_v31 = vsub.s32 2, %v11787_v39 }
 0x2ad   : > { %v9759_v6 = vpop.f32.mrb[94].mxu0  ;;  %v2533_v60 = vmax.f32 %v2405_v32, 0.0 }
 0x2ae   : > { %v2534_v3 = vmax.f32 %v2406_v50, 0.0  ;;  %v1991_v63 = vpop.f32.mrb[6].mxu1  ;;  %v9761_v48 = vpop.f32.mrb[95].mxu0 }
 0x2af   : > { %v1993_v16 = vpop.f32.mrb[7].mxu1  ;;  %3048 = vmatmul.mubr.f32.gmra.mrb[112].mxu1 %v2529_v35  ;;  %3562 = vmatmul.mubr.f32.gmra.mrb[190].mxu0 %v2529_v35  ;;  %v2409_v0 = vadd.f32 %v9246_v13, %v1991_v63  ;;  %v7790_v35 = vld [vmem:[%s11758_s4] sm:$0xf] }
 0x2b0   : > { %v2410_v55 = vadd.f32 %v9249_v52, %v1993_v16  ;;  %3053 = vmatprep.mubr.f32.mxu1 %v2534_v3  ;;  %3567 = vmatprep.mubr.f32.mxu0 %v2534_v3  ;;  %v9801_v32 = vrot.slane %v7790_v35, %v9786_v46 }
 0x2b1   : > { %v9765_v33 = vpop.f32.mrb[96].mxu0  ;;  %v2537_v10 = vmax.f32 %v2409_v0, 0.0  ;;  %v9807_v0 = vrot.slane %v7790_v35, %v9792_v31 }
 0x2b2   : > { %v2538_v43 = vmax.f32 %v2410_v55, 0.0  ;;  %v1997_v2 = vpop.f32.mrb[8].mxu1  ;;  %v9767_v49 = vpop.f32.mrb[97].mxu0 }
 0x2b3   : > { %v1999_v61 = vpop.f32.mrb[9].mxu1  ;;  %3054 = vmatmul.mubr.f32.gmra.mrb[114].mxu1 %v2533_v60  ;;  %3568 = vmatmul.mubr.f32.gmra.mrb[192].mxu0 %v2533_v60  ;;  %v2413_v29 = vadd.f32 %v9246_v13, %v1997_v2  ;;  %v2315_v35 = vadd.f32 %v9807_v0, %v9710_v23  ;;  %v2320_v23 = vadd.f32 %v9801_v32, %v9721_v54  ;;  %v4024_v54 = vld [vmem:[%s11761_s7 + $0xe8] sm:$0xff] }
 0x2b4   : > { %v2414_v58 = vadd.f32 %v9249_v52, %v1999_v61  ;;  %3059 = vmatprep.mubr.f32.mxu1 %v2538_v43  ;;  %3573 = vmatprep.mubr.f32.mxu0 %v2538_v43 }
 0x2b5   : > { %v9771_v45 = vpop.f32.mrb[98].mxu0  ;;  %v2541_v62 = vmax.f32 %v2413_v29, 0.0 }
 0x2b6   : > { %v2542_v25 = vmax.f32 %v2414_v58, 0.0  ;;  %v2003_v30 = vpop.f32.mrb[10].mxu1  ;;  %v9773_v51 = vpop.f32.mrb[99].mxu0  ;;  %v2308_v58 = vadd.f32 %v9801_v32, %v9697_v37  ;;  %v3995_v37 = vld [vmem:[%s11761_s7] sm:$0xff] }
 0x2b7   : > { %v2005_v18 = vpop.f32.mrb[11].mxu1  ;;  %3060 = vmatmul.mubr.f32.gmra.mrb[116].mxu1 %v2537_v10  ;;  %3574 = vmatmul.mubr.f32.gmra.mrb[194].mxu0 %v2537_v10  ;;  %v2417_v44 = vadd.f32 %v9246_v13, %v2003_v30 }
 0x2b8   : > { %v2418_v27 = vadd.f32 %v9249_v52, %v2005_v18  ;;  %3065 = vmatprep.mubr.f32.mxu1 %v2542_v25  ;;  %3579 = vmatprep.mubr.f32.mxu0 %v2542_v25  ;;  %v2436_v18 = vmax.f32 %v2308_v58, 0.0 }
 0x2b9   : > { %v9777_v36 = vpop.f32.mrb[100].mxu0  ;;  %v2545_v20 = vmax.f32 %v2417_v44, 0.0 }
 0x2ba   : > { %v2546_v5 = vmax.f32 %v2418_v27, 0.0  ;;  %v2009_v21 = vpop.f32.mrb[12].mxu1  ;;  %v9779_v12 = vpop.f32.mrb[101].mxu0 }
 0x2bb   : > { %v2011_v28 = vpop.f32.mrb[13].mxu1  ;;  %3066 = vmatmul.mubr.f32.gmra.mrb[118].mxu1 %v2541_v62  ;;  %3580 = vmatmul.mubr.f32.gmra.mrb[196].mxu0 %v2541_v62  ;;  %v2421_v53 = vadd.f32 %v9246_v13, %v2009_v21  ;;  %v3999_v62 = vld [vmem:[%s11761_s7 + $0x20] sm:$0xff] }
 0x2bc   : > { %v2422_v8 = vadd.f32 %v9249_v52, %v2011_v28  ;;  %3071 = vmatprep.mubr.f32.mxu1 %v2546_v5  ;;  %3585 = vmatprep.mubr.f32.mxu0 %v2546_v5  ;;  %v2311_v5 = vadd.f32 %v9807_v0, %v9702_v7  ;;  %v6624_v28 = vpack.c.bf16 %v3999_v62, %v3995_v37  ;;  %v4012_v7 = vld [vmem:[%s11761_s7 + $0x88] sm:$0xff]  ;;  %v4010_v37 = vld [vmem:[%s11761_s7 + $0x78] sm:$0xff]  ;;  %v4005_v62 = vld [vmem:[%s11761_s7 + $0x50] sm:$0xff] }
 0x2bd   : > { %v9783_v15 = vpop.f32.mrb[102].mxu0  ;;  %v2549_v22 = vmax.f32 %v2421_v53, 0.0 }
 0x2be   : > { %v2550_v38 = vmax.f32 %v2422_v8, 0.0  ;;  %v2015_v59 = vpop.f32.mrb[14].mxu1  ;;  %v9788_v47 = vpop.f32.mrb[103].mxu0 }
 0x2bf   : > { %v2017_v14 = vpop.f32.mrb[15].mxu1  ;;  %3072 = vmatmul.mubr.f32.gmra.mrb[120].mxu1 %v2545_v20  ;;  %3586 = vmatmul.mubr.f32.gmra.mrb[198].mxu0 %v2545_v20  ;;  %v2425_v56 = vadd.f32 %v9246_v13, %v2015_v59  ;;  %v2316_v20 = vadd.f32 %v9801_v32, %v9713_v24  ;;  %v4007_v59 = vld [vmem:[%s11761_s7 + $0x60] sm:$0xff]  ;;  %v4016_v24 = vld [vmem:[%s11761_s7 + $0xa8] sm:$0xff] }
 0x2c0   : > { %v2426_v9 = vadd.f32 %v9249_v52, %v2017_v14  ;;  %3077 = vmatprep.mubr.f32.mxu1 %v2550_v38  ;;  %3591 = vmatprep.mubr.f32.mxu0 %v2550_v38  ;;  %v4003_v38 = vld [vmem:[%s11761_s7 + $0x40] sm:$0xff] }
 0x2c1   : > { %v9795_v50 = vpop.f32.mrb[104].mxu0  ;;  %v2553_v43 = vmax.f32 %v2425_v56, 0.0  ;;  %v4011_v14 = vld [vmem:[%s11761_s7 + $0x80] sm:$0xff]  ;;  %v2439_v56 = vmax.f32 %v2311_v5, 0.0  ;;  %v2444_v58 = vmax.f32 %v2316_v20, 0.0 }
 0x2c2   : > { %v2554_v3 = vmax.f32 %v2426_v9, 0.0  ;;  %v2021_v63 = vpop.f32.mrb[16].mxu1  ;;  %v9803_v16 = vpop.f32.mrb[105].mxu0  ;;  %v3998_v9 = vld [vmem:[%s11761_s7 + $0x18] sm:$0xff]  ;;  %v4023_v20 = vld [vmem:[%s11761_s7 + $0xe0] sm:$0xff] }
 0x2c3   : > { %v2023_v55 = vpop.f32.mrb[17].mxu1  ;;  %3078 = vmatmul.mubr.f32.gmra.mrb[122].mxu1 %v2549_v22  ;;  %3592 = vmatmul.mubr.f32.gmra.mrb[200].mxu0 %v2549_v22  ;;  %v2429_v2 = vadd.f32 %v9246_v13, %v2021_v63  ;;  %v2312_v13 = vadd.f32 %v9801_v32, %v9705_v11  ;;  %v4008_v11 = vld [vmem:[%s11761_s7 + $0x68] sm:$0xff]  ;;  %v4002_v22 = vld [vmem:[%s11761_s7 + $0x38] sm:$0xff]  ;;  %v6628_v63 = vpack.c.bf16 %v4007_v59, %v4003_v38  ;;  %v2448_v38 = vmax.f32 %v2320_v23, 0.0 }
 0x2c4   : > { %v2430_v60 = vadd.f32 %v9249_v52, %v2023_v55  ;;  %3083 = vmatprep.mubr.f32.mxu1 %v2554_v3  ;;  %3597 = vmatprep.mubr.f32.mxu0 %v2554_v3  ;;  %v2307_v52 = vadd.f32 %v9807_v0, %v9694_v34  ;;  %v4004_v34 = vld [vmem:[%s11761_s7 + $0x48] sm:$0xff]  ;;  %v4015_v55 = vld [vmem:[%s11761_s7 + $0xa0] sm:$0xff]  ;;  %v2324_v59 = vadd.f32 %v9801_v32, %v9729_v26 }
 0x2c5   : > { %v9810_v61 = vpop.f32.mrb[106].mxu0  ;;  %v2557_v25 = vmax.f32 %v2429_v2, 0.0  ;;  %v2440_v8 = vmax.f32 %v2312_v13, 0.0  ;;  %v6626_v39 = vpack.c.bf16 %v4008_v11, %v4004_v34  ;;  %v4001_v2 = vld [vmem:[%s11761_s7 + $0x30] sm:$0xff]  ;;  %v4006_v13 = vld [vmem:[%s11761_s7 + $0x58] sm:$0xff]  ;;  %v2443_v11 = vmax.f32 %v2315_v35, 0.0 }
 0x2c6   : > { %v2558_v10 = vmax.f32 %v2430_v60, 0.0  ;;  %v9814_v29 = vpop.f32.mrb[107].mxu0  ;;  %v2435_v44 = vmax.f32 %v2307_v52, 0.0  ;;  %v6750_v60 = vpack.c.bf16 %v4002_v22, %v3998_v9  ;;  %v6630_v52 = vpack.c.bf16 %v4016_v24, %v4012_v7  ;;  %v4009_v34 = vld [vmem:[%s11761_s7 + $0x70] sm:$0xff]  ;;  %v4028_v24 = vld [vmem:[%s11761_s7 + $0x108] sm:$0xff]  ;;  %v4014_v9 = vld [vmem:[%s11761_s7 + $0x98] sm:$0xff] }
 0x2c7   : > { %3084 = vmatmul.mubr.f32.gmra.mrb[124].mxu1 %v2553_v43  ;;  %3598 = vmatmul.mubr.f32.gmra.mrb[202].mxu0 %v2553_v43  ;;  %v3997_v43 = vld [vmem:[%s11761_s7 + $0x10] sm:$0xff]  ;;  %v4018_v22 = vld [vmem:[%s11761_s7 + $0xb8] sm:$0xff]  ;;  %v4032_v26 = vld [vmem:[%s11761_s7 + $0x128] sm:$0xff] }
 0x2c8   : > { %3089 = vmatprep.mubr.f32.mxu1 %v2558_v10  ;;  %3603 = vmatprep.mubr.f32.mxu0 %v2558_v10  ;;  %v4017_v35 = vld [vmem:[%s11761_s7 + $0xb0] sm:$0xff]  ;;  %v6758_v23 = vpack.c.bf16 %v4018_v22, %v4014_v9  ;;  %v4044_v9 = vld [vmem:[%s11761_s7 + $0x188] sm:$0xff] }
 0x2c9   : > { %v9818_v30 = vpop.f32.mrb[108].mxu0  ;;  %6751 = vmatprep.subr.bf16.mxu0 %v6750_v60 }
 0x2ca   : > { %v9822_v27 = vpop.f32.mrb[109].mxu0 }
 0x2cb   : > { %3090 = vmatmul.mubr.f32.gmra.mrb[126].mxu1 %v2557_v25  ;;  %3604 = vmatmul.mubr.f32.gmra.mrb[204].mxu0 %v2557_v25  ;;  %v4020_v25 = vld [vmem:[%s11761_s7 + $0xc8] sm:$0xff] }
 0x2cc   : > { %3160 = vmatprep.mubr.f32.mxu1 %v2436_v18  ;;  %3674 = vmatprep.mubr.f32.mxu0 %v2436_v18  ;;  %v6752_v18 = vpack.c.bf16 %v4001_v2, %v3997_v43  ;;  %v4027_v2 = vld [vmem:[%s11761_s7 + $0x100] sm:$0xff] }
 0x2cd   : > { %v9838_v21 = vpop.f32.mrb[110].mxu0 }
 0x2ce   : > { %v9842_v53 = vpop.f32.mrb[111].mxu0 }
 0x2cf   : > { %3161 = vmatmul.mubr.f32.vlgmr.msra.gmra.mrb[64].mxu1 %v2435_v44  ;;  %3675 = vmatmul.mubr.f32.vlgmr.msra.gmra.mrb[142].mxu0 %v2435_v44  ;;  %v2319_v44 = vadd.f32 %v9807_v0, %v9718_v40  ;;  %v6634_v40 = vpack.c.bf16 %v4024_v54, %v4020_v25  ;;  %v2328_v25 = vadd.f32 %v9801_v32, %v9737_v41  ;;  %v4022_v54 = vld [vmem:[%s11761_s7 + $0xd8] sm:$0xff]  ;;  %v4040_v41 = vld [vmem:[%s11761_s7 + $0x168] sm:$0xff] }
 0x2d0   : > { %3166 = vmatprep.mubr.f32.mxu1 %v2440_v8  ;;  %3680 = vmatprep.mubr.f32.mxu0 %v2440_v8  ;;  %v4019_v8 = vld [vmem:[%s11761_s7 + $0xc0] sm:$0xff] }
 0x2d1   : > { %v9867_v3 = vpop.f32.mrb[112].mxu0  ;;  %6625 = vmatpush1.bf16.msra.mxu1 %v6624_v28  ;;  %v6632_v28 = vpack.c.bf16 %v4015_v55, %v4011_v14  ;;  %6753 = vmatpush1.bf16.msra.mxu0 %v6752_v18  ;;  %v6756_v14 = vpack.c.bf16 %v4009_v34, %v4005_v62  ;;  %v2323_v55 = vadd.f32 %v9807_v0, %v9726_v17  ;;  %v4026_v62 = vld [vmem:[%s11761_s7 + $0xf8] sm:$0xff]  ;;  %v4021_v34 = vld [vmem:[%s11761_s7 + $0xd0] sm:$0xff] }
 0x2d2   : > { %v9880_v10 = vpop.f32.mrb[113].mxu0  ;;  %6627 = vmatprep.subr.bf16.mxu1 %v6626_v39  ;;  %v6754_v39 = vpack.c.bf16 %v4010_v37, %v4006_v13  ;;  %v6636_v43 = vpack.c.bf16 %v4023_v20, %v4019_v8  ;;  %v6638_v17 = vpack.c.bf16 %v4032_v26, %v4028_v24  ;;  %v4036_v13 = vld [vmem:[%s11761_s7 + $0x148] sm:$0xff]  ;;  %v2332_v24 = vadd.f32 %v9801_v32, %v9743_v1  ;;  %v4030_v26 = vld [vmem:[%s11761_s7 + $0x118] sm:$0xff] }
 0x2d3   : > { %3167 = vmatmul.mubr.f32.gmra.mrb[66].mxu1 %v2439_v56  ;;  %3681 = vmatmul.mubr.f32.gmra.mrb[144].mxu0 %v2439_v56  ;;  %v4013_v56 = vld [vmem:[%s11761_s7 + $0x90] sm:$0xff]  ;;  %v4048_v1 = vld [vmem:[%s11761_s7 + $0x1a8] sm:$0xff] }
 0x2d4   : > { %3172 = vmatprep.mubr.f32.mxu1 %v2444_v58  ;;  %3686 = vmatprep.mubr.f32.mxu0 %v2444_v58  ;;  %v4031_v58 = vld [vmem:[%s11761_s7 + $0x120] sm:$0xff]  ;;  %v6760_v37 = vpack.c.bf16 %v4017_v35, %v4013_v56  ;;  %v4034_v56 = vld [vmem:[%s11761_s7 + $0x138] sm:$0xff]  ;;  %v4029_v35 = vld [vmem:[%s11761_s7 + $0x110] sm:$0xff] }
 0x2d5   : > { %v9902_v5 = vpop.f32.mrb[114].mxu0  ;;  %6629 = vmatpush1.bf16.msra.mxu1 %v6628_v63  ;;  %v2447_v63 = vmax.f32 %v2319_v44, 0.0  ;;  %6755 = vmatprep.subr.bf16.mxu0 %v6754_v39  ;;  %v2451_v44 = vmax.f32 %v2323_v55, 0.0  ;;  %v6640_v20 = vpack.c.bf16 %v4031_v58, %v4027_v2  ;;  %v4035_v39 = vld [vmem:[%s11761_s7 + $0x140] sm:$0xff] }
 0x2d6   : > { %v9912_v7 = vpop.f32.mrb[115].mxu0  ;;  %6631 = vmatprep.subr.bf16.mxu1 %v6630_v52  ;;  %v2452_v52 = vmax.f32 %v2324_v59, 0.0  ;;  %6757 = vmatpush1.bf16.msra.mxu0 %v6756_v14  ;;  %v6762_v59 = vpack.c.bf16 %v4026_v62, %v4022_v54  ;;  %v4052_v54 = vld [vmem:[%s11761_s7 + $0x1c8] sm:$0xff] }
 0x2d7   : > { %3173 = vmatmul.mubr.f32.gmra.mrb[68].mxu1 %v2443_v11  ;;  %3687 = vmatmul.mubr.f32.gmra.mrb[146].mxu0 %v2443_v11  ;;  %v4025_v11 = vld [vmem:[%s11761_s7 + $0xf0] sm:$0xff] }
 0x2d8   : > { %3178 = vmatprep.mubr.f32.mxu1 %v2448_v38  ;;  %3692 = vmatprep.mubr.f32.mxu0 %v2448_v38  ;;  %v4039_v38 = vld [vmem:[%s11761_s7 + $0x160] sm:$0xff]  ;;  %v6764_v22 = vpack.c.bf16 %v4025_v11, %v4021_v34  ;;  %v4042_v34 = vld [vmem:[%s11761_s7 + $0x178] sm:$0xff]  ;;  %v4037_v11 = vld [vmem:[%s11761_s7 + $0x150] sm:$0xff] }
 0x2d9   : > { %v9934_v60 = vpop.f32.mrb[116].mxu0  ;;  %6633 = vmatpush1.bf16.msra.mxu1 %v6632_v28  ;;  %v2327_v28 = vadd.f32 %v9807_v0, %v9734_v4  ;;  %6759 = vmatprep.subr.bf16.mxu0 %v6758_v23  ;;  %v6642_v4 = vpack.c.bf16 %v4040_v41, %v4036_v13  ;;  %v6644_v58 = vpack.c.bf16 %v4039_v38, %v4035_v39  ;;  %v4043_v23 = vld [vmem:[%s11761_s7 + $0x180] sm:$0xff]  ;;  %v4038_v41 = vld [vmem:[%s11761_s7 + $0x158] sm:$0xff] }
 0x2da   : > { %v9944_v18 = vpop.f32.mrb[117].mxu0  ;;  %6635 = vmatprep.subr.bf16.mxu1 %v6634_v40  ;;  %v2456_v40 = vmax.f32 %v2328_v25, 0.0  ;;  %6761 = vmatpush1.bf16.msra.mxu0 %v6760_v37  ;;  %v6766_v25 = vpack.c.bf16 %v4034_v56, %v4030_v26  ;;  %v2336_v13 = vadd.f32 %v9801_v32, %v9755_v19  ;;  %v4056_v19 = vld [vmem:[%s11761_s7 + $0x1e8] sm:$0xff] }
 0x2db   : > { %3179 = vmatmul.mubr.f32.gmra.mrb[70].mxu1 %v2447_v63  ;;  %3693 = vmatmul.mubr.f32.gmra.mrb[148].mxu0 %v2447_v63  ;;  %v4033_v63 = vld [vmem:[%s11761_s7 + $0x130] sm:$0xff]  ;;  %v2455_v55 = vmax.f32 %v2327_v28, 0.0  ;;  %v4060_v26 = vld [vmem:[%s11761_s7 + $0x208] sm:$0xff] }
 0x2dc   : > { %3184 = vmatprep.mubr.f32.mxu1 %v2452_v52  ;;  %3698 = vmatprep.mubr.f32.mxu0 %v2452_v52  ;;  %v4047_v52 = vld [vmem:[%s11761_s7 + $0x1a0] sm:$0xff]  ;;  %v6768_v62 = vpack.c.bf16 %v4033_v63, %v4029_v35  ;;  %v4050_v35 = vld [vmem:[%s11761_s7 + $0x1b8] sm:$0xff]  ;;  %v4045_v63 = vld [vmem:[%s11761_s7 + $0x190] sm:$0xff] }
 0x2dd   : > { %v9966_v8 = vpop.f32.mrb[118].mxu0  ;;  %6637 = vmatpush1.bf16.msra.mxu1 %v6636_v43  ;;  %v2331_v43 = vadd.f32 %v9807_v0, %v9741_v57  ;;  %6763 = vmatprep.subr.bf16.mxu0 %v6762_v59  ;;  %v6646_v57 = vpack.c.bf16 %v4048_v1, %v4044_v9  ;;  %v6648_v38 = vpack.c.bf16 %v4047_v52, %v4043_v23  ;;  %v4051_v59 = vld [vmem:[%s11761_s7 + $0x1c0] sm:$0xff]  ;;  %v4046_v1 = vld [vmem:[%s11761_s7 + $0x198] sm:$0xff] }
 0x2de   : > { %v9976_v14 = vpop.f32.mrb[119].mxu0  ;;  %6639 = vmatprep.subr.bf16.mxu1 %v6638_v17  ;;  %v2460_v17 = vmax.f32 %v2332_v24, 0.0  ;;  %6765 = vmatpush1.bf16.msra.mxu0 %v6764_v22  ;;  %v6770_v24 = vpack.c.bf16 %v4042_v34, %v4038_v41  ;;  %v2340_v9 = vadd.f32 %v9801_v32, %v9761_v48  ;;  %v4064_v48 = vld [vmem:[%s11761_s7 + $0x228] sm:$0xff] }
 0x2df   : > { %3185 = vmatmul.mubr.f32.gmra.mrb[72].mxu1 %v2451_v44  ;;  %3699 = vmatmul.mubr.f32.gmra.mrb[150].mxu0 %v2451_v44  ;;  %v4041_v44 = vld [vmem:[%s11761_s7 + $0x170] sm:$0xff]  ;;  %v2459_v28 = vmax.f32 %v2331_v43, 0.0  ;;  %v4068_v41 = vld [vmem:[%s11761_s7 + $0x248] sm:$0xff] }
 0x2e0   : > { %3190 = vmatprep.mubr.f32.mxu1 %v2456_v40  ;;  %3704 = vmatprep.mubr.f32.mxu0 %v2456_v40  ;;  %v4055_v40 = vld [vmem:[%s11761_s7 + $0x1e0] sm:$0xff]  ;;  %v6772_v56 = vpack.c.bf16 %v4041_v44, %v4037_v11  ;;  %v4058_v11 = vld [vmem:[%s11761_s7 + $0x1f8] sm:$0xff]  ;;  %v4053_v44 = vld [vmem:[%s11761_s7 + $0x1d0] sm:$0xff] }
 0x2e1   : > { %v9998_v2 = vpop.f32.mrb[120].mxu0  ;;  %6641 = vmatpush1.bf16.msra.mxu1 %v6640_v20  ;;  %v2335_v20 = vadd.f32 %v9807_v0, %v9753_v42  ;;  %6767 = vmatprep.subr.bf16.mxu0 %v6766_v25  ;;  %v6650_v42 = vpack.c.bf16 %v4056_v19, %v4052_v54  ;;  %v6652_v52 = vpack.c.bf16 %v4055_v40, %v4051_v59  ;;  %v4059_v25 = vld [vmem:[%s11761_s7 + $0x200] sm:$0xff]  ;;  %v4054_v19 = vld [vmem:[%s11761_s7 + $0x1d8] sm:$0xff] }
 0x2e2   : > { %v10008_v37 = vpop.f32.mrb[121].mxu0  ;;  %6643 = vmatprep.subr.bf16.mxu1 %v6642_v4  ;;  %v2464_v4 = vmax.f32 %v2336_v13, 0.0  ;;  %6769 = vmatpush1.bf16.msra.mxu0 %v6768_v62  ;;  %v6774_v13 = vpack.c.bf16 %v4050_v35, %v4046_v1  ;;  %v2344_v54 = vadd.f32 %v9801_v32, %v9767_v49  ;;  %v4072_v49 = vld [vmem:[%s11761_s7 + $0x268] sm:$0xff] }
 0x2e3   : > { %3191 = vmatmul.mubr.f32.gmra.mrb[74].mxu1 %v2455_v55  ;;  %3705 = vmatmul.mubr.f32.gmra.mrb[152].mxu0 %v2455_v55  ;;  %v4049_v55 = vld [vmem:[%s11761_s7 + $0x1b0] sm:$0xff]  ;;  %v2463_v43 = vmax.f32 %v2335_v20, 0.0  ;;  %v4076_v1 = vld [vmem:[%s11761_s7 + $0x288] sm:$0xff] }
 0x2e4   : > { %3196 = vmatprep.mubr.f32.mxu1 %v2460_v17  ;;  %3710 = vmatprep.mubr.f32.mxu0 %v2460_v17  ;;  %v4063_v17 = vld [vmem:[%s11761_s7 + $0x220] sm:$0xff]  ;;  %v6776_v34 = vpack.c.bf16 %v4049_v55, %v4045_v63  ;;  %v4066_v63 = vld [vmem:[%s11761_s7 + $0x238] sm:$0xff]  ;;  %v4061_v55 = vld [vmem:[%s11761_s7 + $0x210] sm:$0xff] }
 0x2e5   : > { %v10030_v39 = vpop.f32.mrb[122].mxu0  ;;  %6645 = vmatpush1.bf16.msra.mxu1 %v6644_v58  ;;  %v2339_v58 = vadd.f32 %v9807_v0, %v9759_v6  ;;  %6771 = vmatprep.subr.bf16.mxu0 %v6770_v24  ;;  %v6654_v6 = vpack.c.bf16 %v4064_v48, %v4060_v26  ;;  %v6656_v40 = vpack.c.bf16 %v4063_v17, %v4059_v25  ;;  %v4067_v24 = vld [vmem:[%s11761_s7 + $0x240] sm:$0xff]  ;;  %v4062_v48 = vld [vmem:[%s11761_s7 + $0x218] sm:$0xff] }
 0x2e6   : > { %v10040_v22 = vpop.f32.mrb[123].mxu0  ;;  %6647 = vmatprep.subr.bf16.mxu1 %v6646_v57  ;;  %v2468_v57 = vmax.f32 %v2340_v9, 0.0  ;;  %6773 = vmatpush1.bf16.msra.mxu0 %v6772_v56  ;;  %v6778_v9 = vpack.c.bf16 %v4058_v11, %v4054_v19  ;;  %v2348_v26 = vadd.f32 %v9801_v32, %v9773_v51  ;;  %v4080_v51 = vld [vmem:[%s11761_s7 + $0x2a8] sm:$0xff] }
 0x2e7   : > { %3197 = vmatmul.mubr.f32.gmra.mrb[76].mxu1 %v2459_v28  ;;  %3711 = vmatmul.mubr.f32.gmra.mrb[154].mxu0 %v2459_v28  ;;  %v4057_v28 = vld [vmem:[%s11761_s7 + $0x1f0] sm:$0xff]  ;;  %v2467_v20 = vmax.f32 %v2339_v58, 0.0  ;;  %v4084_v19 = vld [vmem:[%s11761_s7 + $0x2c8] sm:$0xff] }
 0x2e8   : > { %3202 = vmatprep.mubr.f32.mxu1 %v2464_v4  ;;  %3716 = vmatprep.mubr.f32.mxu0 %v2464_v4  ;;  %v4071_v4 = vld [vmem:[%s11761_s7 + $0x260] sm:$0xff]  ;;  %v6780_v35 = vpack.c.bf16 %v4057_v28, %v4053_v44  ;;  %v4074_v44 = vld [vmem:[%s11761_s7 + $0x278] sm:$0xff]  ;;  %v4069_v28 = vld [vmem:[%s11761_s7 + $0x250] sm:$0xff] }
 0x2e9   : > { %v10062_v23 = vpop.f32.mrb[124].mxu0  ;;  %6649 = vmatpush1.bf16.msra.mxu1 %v6648_v38  ;;  %v2343_v38 = vadd.f32 %v9807_v0, %v9765_v33  ;;  %6775 = vmatprep.subr.bf16.mxu0 %v6774_v13  ;;  %v6658_v33 = vpack.c.bf16 %v4072_v49, %v4068_v41  ;;  %v6660_v17 = vpack.c.bf16 %v4071_v4, %v4067_v24  ;;  %v4075_v13 = vld [vmem:[%s11761_s7 + $0x280] sm:$0xff]  ;;  %v4070_v49 = vld [vmem:[%s11761_s7 + $0x258] sm:$0xff] }
 0x2ea   : > { %v10072_v62 = vpop.f32.mrb[125].mxu0  ;;  %6651 = vmatprep.subr.bf16.mxu1 %v6650_v42  ;;  %v2472_v42 = vmax.f32 %v2344_v54, 0.0  ;;  %6777 = vmatpush1.bf16.msra.mxu0 %v6776_v34  ;;  %v6782_v54 = vpack.c.bf16 %v4066_v63, %v4062_v48  ;;  %v2352_v41 = vadd.f32 %v9801_v32, %v9779_v12  ;;  %v4088_v12 = vld [vmem:[%s11761_s7 + $0x2e8] sm:$0xff] }
 0x2eb   : > { %3203 = vmatmul.mubr.f32.gmra.mrb[78].mxu1 %v2463_v43  ;;  %3717 = vmatmul.mubr.f32.gmra.mrb[156].mxu0 %v2463_v43  ;;  %v4065_v43 = vld [vmem:[%s11761_s7 + $0x230] sm:$0xff]  ;;  %v2471_v58 = vmax.f32 %v2343_v38, 0.0  ;;  %v4092_v48 = vld [vmem:[%s11761_s7 + $0x308] sm:$0xff] }
 0x2ec   : > { %3208 = vmatprep.mubr.f32.mxu1 %v2468_v57  ;;  %3722 = vmatprep.mubr.f32.mxu0 %v2468_v57  ;;  %v4079_v57 = vld [vmem:[%s11761_s7 + $0x2a0] sm:$0xff]  ;;  %v6784_v11 = vpack.c.bf16 %v4065_v43, %v4061_v55  ;;  %v4082_v55 = vld [vmem:[%s11761_s7 + $0x2b8] sm:$0xff]  ;;  %v4077_v43 = vld [vmem:[%s11761_s7 + $0x290] sm:$0xff] }
 0x2ed   : > { %v10094_v59 = vpop.f32.mrb[126].mxu0  ;;  %6653 = vmatpush1.bf16.msra.mxu1 %v6652_v52  ;;  %v2347_v52 = vadd.f32 %v9807_v0, %v9771_v45  ;;  %6779 = vmatprep.subr.bf16.mxu0 %v6778_v9  ;;  %v6662_v45 = vpack.c.bf16 %v4080_v51, %v4076_v1  ;;  %v6664_v4 = vpack.c.bf16 %v4079_v57, %v4075_v13  ;;  %v4083_v9 = vld [vmem:[%s11761_s7 + $0x2c0] sm:$0xff]  ;;  %v4078_v51 = vld [vmem:[%s11761_s7 + $0x298] sm:$0xff] }
 0x2ee   : > { %v10104_v56 = vpop.f32.mrb[127].mxu0  ;;  %6655 = vmatprep.subr.bf16.mxu1 %v6654_v6  ;;  %v2476_v6 = vmax.f32 %v2348_v26, 0.0  ;;  %6781 = vmatpush1.bf16.msra.mxu0 %v6780_v35  ;;  %v6786_v26 = vpack.c.bf16 %v4074_v44, %v4070_v49  ;;  %v2356_v1 = vadd.f32 %v9801_v32, %v9788_v47  ;;  %v4096_v47 = vld [vmem:[%s11761_s7 + $0x328] sm:$0xff] }
 0x2ef   : > { %3209 = vmatmul.mubr.f32.gmra.mrb[80].mxu1 %v2467_v20  ;;  %3723 = vmatmul.mubr.f32.gmra.mrb[158].mxu0 %v2467_v20  ;;  %v4073_v20 = vld [vmem:[%s11761_s7 + $0x270] sm:$0xff]  ;;  %v2475_v38 = vmax.f32 %v2347_v52, 0.0  ;;  %v4100_v49 = vld [vmem:[%s11761_s7 + $0x348] sm:$0xff] }
 0x2f0   : > { %3214 = vmatprep.mubr.f32.mxu1 %v2472_v42  ;;  %3728 = vmatprep.mubr.f32.mxu0 %v2472_v42  ;;  %v4087_v42 = vld [vmem:[%s11761_s7 + $0x2e0] sm:$0xff]  ;;  %v6788_v63 = vpack.c.bf16 %v4073_v20, %v4069_v28  ;;  %v4090_v28 = vld [vmem:[%s11761_s7 + $0x2f8] sm:$0xff]  ;;  %v4085_v20 = vld [vmem:[%s11761_s7 + $0x2d0] sm:$0xff] }
 0x2f1   : > { %v10126_v25 = vpop.f32.mrb[128].mxu0  ;;  %6657 = vmatpush1.bf16.msra.mxu1 %v6656_v40  ;;  %v2351_v40 = vadd.f32 %v9807_v0, %v9777_v36  ;;  %6783 = vmatprep.subr.bf16.mxu0 %v6782_v54  ;;  %v6666_v36 = vpack.c.bf16 %v4088_v12, %v4084_v19  ;;  %v6668_v57 = vpack.c.bf16 %v4087_v42, %v4083_v9  ;;  %v4091_v54 = vld [vmem:[%s11761_s7 + $0x300] sm:$0xff]  ;;  %v4086_v12 = vld [vmem:[%s11761_s7 + $0x2d8] sm:$0xff] }
 0x2f2   : > { %v10136_v34 = vpop.f32.mrb[129].mxu0  ;;  %6659 = vmatprep.subr.bf16.mxu1 %v6658_v33  ;;  %v2480_v33 = vmax.f32 %v2352_v41, 0.0  ;;  %6785 = vmatpush1.bf16.msra.mxu0 %v6784_v11  ;;  %v6790_v41 = vpack.c.bf16 %v4082_v55, %v4078_v51  ;;  %v2360_v19 = vadd.f32 %v9801_v32, %v9803_v16  ;;  %v4104_v16 = vld [vmem:[%s11761_s7 + $0x368] sm:$0xff] }
 0x2f3   : > { %3215 = vmatmul.mubr.f32.gmra.mrb[82].mxu1 %v2471_v58  ;;  %3729 = vmatmul.mubr.f32.gmra.mrb[160].mxu0 %v2471_v58  ;;  %v4081_v58 = vld [vmem:[%s11761_s7 + $0x2b0] sm:$0xff]  ;;  %v2479_v52 = vmax.f32 %v2351_v40, 0.0  ;;  %v4108_v55 = vld [vmem:[%s11761_s7 + $0x388] sm:$0xff] }
 0x2f4   : > { %3220 = vmatprep.mubr.f32.mxu1 %v2476_v6  ;;  %3734 = vmatprep.mubr.f32.mxu0 %v2476_v6  ;;  %v4095_v6 = vld [vmem:[%s11761_s7 + $0x320] sm:$0xff]  ;;  %v6792_v44 = vpack.c.bf16 %v4081_v58, %v4077_v43  ;;  %v4098_v43 = vld [vmem:[%s11761_s7 + $0x338] sm:$0xff]  ;;  %v4093_v58 = vld [vmem:[%s11761_s7 + $0x310] sm:$0xff] }
 0x2f5   : > { %v10158_v24 = vpop.f32.mrb[130].mxu0  ;;  %6661 = vmatpush1.bf16.msra.mxu1 %v6660_v17  ;;  %v2355_v17 = vadd.f32 %v9807_v0, %v9783_v15  ;;  %6787 = vmatprep.subr.bf16.mxu0 %v6786_v26  ;;  %v6670_v15 = vpack.c.bf16 %v4096_v47, %v4092_v48  ;;  %v6672_v42 = vpack.c.bf16 %v4095_v6, %v4091_v54  ;;  %v4099_v26 = vld [vmem:[%s11761_s7 + $0x340] sm:$0xff]  ;;  %v4094_v47 = vld [vmem:[%s11761_s7 + $0x318] sm:$0xff] }
 0x2f6   : > { %v10168_v35 = vpop.f32.mrb[131].mxu0  ;;  %6663 = vmatprep.subr.bf16.mxu1 %v6662_v45  ;;  %v2484_v45 = vmax.f32 %v2356_v1, 0.0  ;;  %6789 = vmatpush1.bf16.msra.mxu0 %v6788_v63  ;;  %v6794_v1 = vpack.c.bf16 %v4090_v28, %v4086_v12  ;;  %v2364_v48 = vadd.f32 %v9801_v32, %v9814_v29  ;;  %v4112_v29 = vld [vmem:[%s11761_s7 + $0x3a8] sm:$0xff]  ;;  %v4102_v28 = vld [vmem:[%s11761_s7 + $0x358] sm:$0xff] }
 0x2f7   : > { %3221 = vmatmul.mubr.f32.gmra.mrb[84].mxu1 %v2475_v38  ;;  %3735 = vmatmul.mubr.f32.gmra.mrb[162].mxu0 %v2475_v38  ;;  %v4089_v38 = vld [vmem:[%s11761_s7 + $0x2f0] sm:$0xff]  ;;  %v2483_v40 = vmax.f32 %v2355_v17, 0.0 }
 0x2f8   : > { %3226 = vmatprep.mubr.f32.mxu1 %v2480_v33  ;;  %3740 = vmatprep.mubr.f32.mxu0 %v2480_v33  ;;  %v4103_v33 = vld [vmem:[%s11761_s7 + $0x360] sm:$0xff]  ;;  %v6796_v51 = vpack.c.bf16 %v4089_v38, %v4085_v20  ;;  %v4101_v20 = vld [vmem:[%s11761_s7 + $0x350] sm:$0xff]  ;;  %v4116_v38 = vld [vmem:[%s11761_s7 + $0x3c8] sm:$0xff] }
 0x2f9   : > { %v10190_v13 = vpop.f32.mrb[132].mxu0  ;;  %6665 = vmatpush1.bf16.msra.mxu1 %v6664_v4  ;;  %v2359_v4 = vadd.f32 %v9807_v0, %v9795_v50  ;;  %6791 = vmatprep.subr.bf16.mxu0 %v6790_v41  ;;  %v6674_v50 = vpack.c.bf16 %v4104_v16, %v4100_v49  ;;  %v6676_v6 = vpack.c.bf16 %v4103_v33, %v4099_v26  ;;  %v4107_v41 = vld [vmem:[%s11761_s7 + $0x380] sm:$0xff]  ;;  %v4106_v16 = vld [vmem:[%s11761_s7 + $0x378] sm:$0xff] }
 0x2fa   : > { %v10200_v11 = vpop.f32.mrb[133].mxu0  ;;  %6667 = vmatprep.subr.bf16.mxu1 %v6666_v36  ;;  %v2488_v36 = vmax.f32 %v2360_v19, 0.0  ;;  %6793 = vmatpush1.bf16.msra.mxu0 %v6792_v44  ;;  %v6798_v19 = vpack.c.bf16 %v4098_v43, %v4094_v47  ;;  %v2368_v49 = vadd.f32 %v9801_v32, %v9822_v27  ;;  %v4105_v27 = vld [vmem:[%s11761_s7 + $0x370] sm:$0xff]  ;;  %v4119_v47 = vld [vmem:[%s11761_s7 + $0x3e0] sm:$0xff]  ;;  %v4110_v43 = vld [vmem:[%s11761_s7 + $0x398] sm:$0xff] }
 0x2fb   : > { %3227 = vmatmul.mubr.f32.gmra.mrb[86].mxu1 %v2479_v52  ;;  %3741 = vmatmul.mubr.f32.gmra.mrb[164].mxu0 %v2479_v52  ;;  %v4097_v52 = vld [vmem:[%s11761_s7 + $0x330] sm:$0xff]  ;;  %v2487_v17 = vmax.f32 %v2359_v4, 0.0 }
 0x2fc   : > { %3232 = vmatprep.mubr.f32.mxu1 %v2484_v45  ;;  %3746 = vmatprep.mubr.f32.mxu0 %v2484_v45  ;;  %v4111_v45 = vld [vmem:[%s11761_s7 + $0x3a0] sm:$0xff]  ;;  %v6800_v12 = vpack.c.bf16 %v4097_v52, %v4093_v58  ;;  %v2371_v58 = vadd.f32 %v9807_v0, %v9838_v21  ;;  %v2375_v21 = vadd.f32 %v9807_v0, %v9867_v3 }
 0x2fd   : > { %v10222_v9 = vpop.f32.mrb[134].mxu0  ;;  %6669 = vmatpush1.bf16.msra.mxu1 %v6668_v57  ;;  %v2363_v57 = vadd.f32 %v9807_v0, %v9810_v61  ;;  %6795 = vmatprep.subr.bf16.mxu0 %v6794_v1  ;;  %v6678_v61 = vpack.c.bf16 %v4112_v29, %v4108_v55  ;;  %v6680_v33 = vpack.c.bf16 %v4111_v45, %v4107_v41  ;;  %v4114_v29 = vld [vmem:[%s11761_s7 + $0x3b8] sm:$0xff] }
 0x2fe   : > { %v10232_v63 = vpop.f32.mrb[135].mxu0  ;;  %6671 = vmatprep.subr.bf16.mxu1 %v6670_v15  ;;  %v2492_v15 = vmax.f32 %v2364_v48, 0.0  ;;  %6797 = vmatpush1.bf16.msra.mxu0 %v6796_v51  ;;  %v6802_v1 = vpack.c.bf16 %v4106_v16, %v4102_v28  ;;  %v2496_v48 = vmax.f32 %v2368_v49, 0.0  ;;  %v6804_v55 = vpack.c.bf16 %v4105_v27, %v4101_v20 }
 0x2ff   : > { %3233 = vmatmul.mubr.f32.gmra.mrb[88].mxu1 %v2483_v40  ;;  %3747 = vmatmul.mubr.f32.gmra.mrb[166].mxu0 %v2483_v40  ;;  %v4120_v40 = vld [vmem:[%s11761_s7 + $0x3e8] sm:$0xff]  ;;  %v2491_v4 = vmax.f32 %v2363_v57, 0.0  ;;  %v6806_v57 = vpack.c.bf16 %v4114_v29, %v4110_v43  ;;  %v2376_v41 = vadd.f32 %v9801_v32, %v9880_v10  ;;  %v2380_v49 = vadd.f32 %v9801_v32, %v9912_v7 }
 0x300   : > { %3238 = vmatprep.mubr.f32.mxu1 %v2488_v36  ;;  %3752 = vmatprep.mubr.f32.mxu0 %v2488_v36  ;;  %v4115_v36 = vld [vmem:[%s11761_s7 + $0x3c0] sm:$0xff]  ;;  %v2503_v10 = vmax.f32 %v2375_v21, 0.0  ;;  %v2384_v28 = vadd.f32 %v9801_v32, %v9944_v18  ;;  %v2383_v7 = vadd.f32 %v9807_v0, %v9934_v60  ;;  %v2388_v20 = vadd.f32 %v9801_v32, %v9976_v14 }
 0x301   : > { %v10254_v54 = vpop.f32.mrb[136].mxu0  ;;  %6673 = vmatpush1.bf16.msra.mxu1 %v6672_v42  ;;  %v2367_v42 = vadd.f32 %v9807_v0, %v9818_v30  ;;  %6799 = vmatprep.subr.bf16.mxu0 %v6798_v19  ;;  %v6682_v30 = vpack.c.bf16 %v4120_v40, %v4116_v38  ;;  %v2499_v19 = vmax.f32 %v2371_v58, 0.0  ;;  %v2387_v18 = vadd.f32 %v9807_v0, %v9966_v8  ;;  %v4109_v8 = vld [vmem:[%s11761_s7 + $0x390] sm:$0xff] }
 0x302   : > { %v10264_v44 = vpop.f32.mrb[137].mxu0  ;;  %6675 = vmatprep.subr.bf16.mxu1 %v6674_v50  ;;  %v2372_v50 = vadd.f32 %v9801_v32, %v9842_v53  ;;  %6801 = vmatpush1.bf16.msra.mxu0 %v6800_v12  ;;  %v2508_v12 = vmax.f32 %v2380_v49, 0.0  ;;  %v2512_v16 = vmax.f32 %v2384_v28, 0.0  ;;  %v2516_v27 = vmax.f32 %v2388_v20, 0.0 }
 0x303   : > { %3239 = vmatmul.mubr.f32.gmra.mrb[90].mxu1 %v2487_v17  ;;  %3753 = vmatmul.mubr.f32.gmra.mrb[168].mxu0 %v2487_v17  ;;  %v2495_v53 = vmax.f32 %v2367_v42, 0.0  ;;  %v6684_v17 = vpack.c.bf16 %v4119_v47, %v4115_v36  ;;  %v2392_v38 = vadd.f32 %v9801_v32, %v10008_v37  ;;  %v2515_v60 = vmax.f32 %v2387_v18, 0.0  ;;  %v4113_v37 = vld [vmem:[%s11761_s7 + $0x3b0] sm:$0xff]  ;;  %v4118_v36 = vld [vmem:[%s11761_s7 + $0x3d8] sm:$0xff] }
 0x304   : > { %3244 = vmatprep.mubr.f32.mxu1 %v2492_v15  ;;  %3758 = vmatprep.mubr.f32.mxu0 %v2492_v15  ;;  %v2504_v15 = vmax.f32 %v2376_v41, 0.0  ;;  %v2391_v14 = vadd.f32 %v9807_v0, %v9998_v2  ;;  %v6808_v42 = vpack.c.bf16 %v4113_v37, %v4109_v8  ;;  %v2395_v2 = vadd.f32 %v9807_v0, %v10030_v39  ;;  %v4117_v39 = vld [vmem:[%s11761_s7 + $0x3d0] sm:$0xff]  ;;  %v4123_v8 = vld [vmem:[%s11761_s7 + $0x400] sm:$0xff] }
 0x305   : > { %v10286_v26 = vpop.f32.mrb[138].mxu0  ;;  %6677 = vmatpush1.bf16.msra.mxu1 %v6676_v6  ;;  %6803 = vmatprep.subr.bf16.mxu0 %v6802_v1  ;;  %v2500_v6 = vmax.f32 %v2372_v50, 0.0  ;;  %v2520_v40 = vmax.f32 %v2392_v38, 0.0  ;;  %v2399_v47 = vadd.f32 %v9807_v0, %v10062_v23  ;;  %v2404_v29 = vadd.f32 %v9801_v32, %v10104_v56  ;;  %v4124_v23 = vld [vmem:[%s11761_s7 + $0x408] sm:$0xff]  ;;  %v4127_v37 = vld [vmem:[%s11761_s7 + $0x420] sm:$0xff] }
 0x306   : > { %v10293_v51 = vpop.f32.mrb[139].mxu0  ;;  %6679 = vmatprep.subr.bf16.mxu1 %v6678_v61  ;;  %6805 = vmatpush1.bf16.msra.mxu0 %v6804_v55  ;;  %v2379_v61 = vadd.f32 %v9807_v0, %v9902_v5  ;;  %v2511_v5 = vmax.f32 %v2383_v7, 0.0  ;;  %v2403_v58 = vadd.f32 %v9807_v0, %v10094_v59  ;;  %v4128_v56 = vld [vmem:[%s11761_s7 + $0x428] sm:$0xff]  ;;  %v2407_v59 = vadd.f32 %v9807_v0, %v10126_v25 }
 0x307   : > { %3245 = vmatmul.mubr.f32.gmra.mrb[92].mxu1 %v2491_v4  ;;  %3759 = vmatmul.mubr.f32.gmra.mrb[170].mxu0 %v2491_v4  ;;  %v2396_v4 = vadd.f32 %v9801_v32, %v10040_v22  ;;  %v2400_v22 = vadd.f32 %v9801_v32, %v10072_v62  ;;  %v4121_v62 = vld [vmem:[%s11761_s7 + $0x3f0] sm:$0xff] }
 0x308   : > { %3250 = vmatprep.mubr.f32.mxu1 %v2496_v48  ;;  %3764 = vmatprep.mubr.f32.mxu0 %v2496_v48  ;;  %v2507_v3 = vmax.f32 %v2379_v61, 0.0  ;;  %v4122_v48 = vld [vmem:[%s11761_s7 + $0x3f8] sm:$0xff]  ;;  %v6812_v55 = vpack.c.bf16 %v4121_v62, %v4117_v39  ;;  %v2531_v41 = vmax.f32 %v2403_v58, 0.0  ;;  %v2535_v21 = vmax.f32 %v2407_v59, 0.0 }
 0x309   : > { %v10306_v52 = vpop.f32.mrb[140].mxu0  ;;  %6681 = vmatpush1.bf16.msra.mxu1 %v6680_v33  ;;  %6807 = vmatprep.subr.bf16.mxu0 %v6806_v57  ;;  %v2519_v33 = vmax.f32 %v2391_v14, 0.0  ;;  %v2524_v1 = vmax.f32 %v2396_v4, 0.0  ;;  %v6810_v50 = vpack.c.bf16 %v4122_v48, %v4118_v36  ;;  %v2528_v43 = vmax.f32 %v2400_v22, 0.0  ;;  %v4125_v22 = vld [vmem:[%s11761_s7 + $0x410] sm:$0xff]  ;;  %v4134_v39 = vld [vmem:[%s11761_s7 + $0x458] sm:$0xff] }
 0x30a   : > { %v10310_v45 = vpop.f32.mrb[141].mxu0  ;;  %6683 = vmatprep.subr.bf16.mxu1 %v6682_v30  ;;  %6809 = vmatpush1.bf16.msra.mxu0 %v6808_v42  ;;  %v2523_v30 = vmax.f32 %v2395_v2, 0.0  ;;  %v2408_v57 = vadd.f32 %v9801_v32, %v10136_v34  ;;  %v2412_v34 = vadd.f32 %v9801_v32, %v10168_v35  ;;  %v2415_v35 = vadd.f32 %v9807_v0, %v10190_v13  ;;  %v4129_v36 = vld [vmem:[%s11761_s7 + $0x430] sm:$0xff]  ;;  %v4138_v62 = vld [vmem:[%s11761_s7 + $0x478] sm:$0xff] }
 0x30b   : > { %3251 = vmatmul.mubr.f32.gmra.mrb[94].mxu1 %v2495_v53  ;;  %3765 = vmatmul.mubr.f32.gmra.mrb[172].mxu0 %v2495_v53  ;;  %v2527_v53 = vmax.f32 %v2399_v47, 0.0  ;;  %v6816_v58 = vpack.c.bf16 %v4129_v36, %v4125_v22  ;;  %v6818_v59 = vpack.c.bf16 %v4138_v62, %v4134_v39  ;;  %v4149_v39 = vld [vmem:[%s11761_s7 + $0x4d0] sm:$0xff] }
 0x30c   : > { %3256 = vmatprep.mubr.f32.mxu1 %v2500_v6  ;;  %3770 = vmatprep.mubr.f32.mxu0 %v2500_v6  ;;  %v6686_v6 = vpack.c.bf16 %v4128_v56, %v4124_v23  ;;  %v2540_v49 = vmax.f32 %v2412_v34, 0.0  ;;  %v4137_v34 = vld [vmem:[%s11761_s7 + $0x470] sm:$0xff] }
 0x30d   : > { %6685 = vmatpush1.bf16.msra.mxu1 %v6684_v17  ;;  %6811 = vmatprep.subr.bf16.mxu0 %v6810_v50  ;;  %v2532_v17 = vmax.f32 %v2404_v29, 0.0  ;;  %v4136_v50 = vld [vmem:[%s11761_s7 + $0x468] sm:$0xff]  ;;  %v4131_v29 = vld [vmem:[%s11761_s7 + $0x440] sm:$0xff]  ;;  %v4153_v62 = vld [vmem:[%s11761_s7 + $0x4f0] sm:$0xff] }
 0x30e   : > { %6813 = vmatpush1.bf16.msra.mxu0 %v6812_v55  ;;  %6687 = vmatprep.subr.bf16.mxu1 %v6686_v6 }
 0x30f   : > { %3257 = vmatmul.mubr.f32.gmra.mrb[96].mxu1 %v2499_v19  ;;  %3771 = vmatmul.mubr.f32.gmra.mrb[174].mxu0 %v2499_v19  ;;  %v2536_v19 = vmax.f32 %v2408_v57, 0.0 }
 0x310   : > { %3262 = vmatprep.mubr.f32.mxu1 %v2504_v15  ;;  %3776 = vmatprep.mubr.f32.mxu0 %v2504_v15  ;;  %v2411_v15 = vadd.f32 %v9807_v0, %v10158_v24  ;;  %v2543_v24 = vmax.f32 %v2415_v35, 0.0 }
 0x312   : > { %v2539_v25 = vmax.f32 %v2411_v15, 0.0  ;;  %v4144_v15 = vld [vmem:[%s11761_s7 + $0x4a8] sm:$0xff] }
 0x313   : > { %3263 = vmatmul.mubr.f32.gmra.mrb[98].mxu1 %v2503_v10  ;;  %3777 = vmatmul.mubr.f32.gmra.mrb[176].mxu0 %v2503_v10  ;;  %v2416_v10 = vadd.f32 %v9801_v32, %v10200_v11  ;;  %v2419_v11 = vadd.f32 %v9807_v0, %v10222_v9 }
 0x314   : > { %3268 = vmatprep.mubr.f32.mxu1 %v2508_v12  ;;  %3782 = vmatprep.mubr.f32.mxu0 %v2508_v12  ;;  %v2420_v12 = vadd.f32 %v9801_v32, %v10232_v63  ;;  %v2423_v63 = vadd.f32 %v9807_v0, %v10254_v54 }
 0x315   : > { %v2544_v61 = vmax.f32 %v2416_v10, 0.0  ;;  %v2547_v13 = vmax.f32 %v2419_v11, 0.0  ;;  %v4146_v10 = vld [vmem:[%s11761_s7 + $0x4b8] sm:$0xff]  ;;  %v4143_v11 = vld [vmem:[%s11761_s7 + $0x4a0] sm:$0xff] }
 0x316   : > { %v2548_v28 = vmax.f32 %v2420_v12, 0.0  ;;  %v2551_v9 = vmax.f32 %v2423_v63, 0.0 }
 0x317   : > { %3269 = vmatmul.mubr.f32.gmra.mrb[100].mxu1 %v2507_v3  ;;  %3783 = vmatmul.mubr.f32.gmra.mrb[178].mxu0 %v2507_v3  ;;  %v2424_v3 = vadd.f32 %v9801_v32, %v10264_v44  ;;  %v2427_v44 = vadd.f32 %v9807_v0, %v10286_v26  ;;  %v4130_v26 = vld [vmem:[%s11761_s7 + $0x438] sm:$0xff] }
 0x318   : > { %3274 = vmatprep.mubr.f32.mxu1 %v2512_v16  ;;  %3788 = vmatprep.mubr.f32.mxu0 %v2512_v16  ;;  %v2428_v16 = vadd.f32 %v9801_v32, %v10293_v51  ;;  %v2431_v51 = vadd.f32 %v9807_v0, %v10306_v52  ;;  %v2817_v0 = vld [vmem:[%s11760_s6] sm:$0xf]  ;;  %v11788_v52 = vld [vmem:[#allocation8_spill] sm:$0xff] }
 0x319   : > { %v2552_v7 = vmax.f32 %v2424_v3, 0.0  ;;  %v2555_v54 = vmax.f32 %v2427_v44, 0.0  ;;  %v10404_v38 = vrot.slane %v2817_v0, %v11788_v52 }
 0x31a   : > { %v2556_v20 = vmax.f32 %v2428_v16, 0.0 }
 0x31b   : > { %3275 = vmatmul.mubr.f32.gmra.mrb[102].mxu1 %v2511_v5  ;;  %3789 = vmatmul.mubr.f32.gmra.mrb[180].mxu0 %v2511_v5  ;;  %v2432_v5 = vadd.f32 %v9801_v32, %v10310_v45  ;;  %v4126_v32 = vld [vmem:[%s11761_s7 + $0x418] sm:$0xff] }
 0x31c   : > { %3280 = vmatprep.mubr.f32.mxu1 %v2516_v27  ;;  %3794 = vmatprep.mubr.f32.mxu0 %v2516_v27  ;;  %v2559_v27 = vmax.f32 %v2431_v51, 0.0  ;;  %v6814_v45 = vpack.c.bf16 %v4130_v26, %v4126_v32  ;;  %v4152_v51 = vld [vmem:[%s11761_s7 + $0x4e8] sm:$0xff] }
 0x31d   : > { %v2560_v18 = vmax.f32 %v2432_v5, 0.0  ;;  %v4145_v5 = vld [vmem:[%s11761_s7 + $0x4b0] sm:$0xff] }
 0x31e   : > { %6815 = vmatprep.subr.bf16.mxu0 %v6814_v45 }
 0x31f   : > { %3281 = vmatmul.mubr.f32.gmra.mrb[104].mxu1 %v2515_v60  ;;  %3795 = vmatmul.mubr.f32.gmra.mrb[182].mxu0 %v2515_v60  ;;  %v11789_v60 = vld [vmem:[#allocation9_spill] sm:$0xff] }
 0x320   : > { %3286 = vmatprep.mubr.f32.mxu1 %v2520_v40  ;;  %3800 = vmatprep.mubr.f32.mxu0 %v2520_v40  ;;  %v10407_v14 = vrot.slane %v2817_v0, %v11789_v60 }
 0x323   : > { %3287 = vmatmul.mubr.f32.gmra.mrb[106].mxu1 %v2519_v33  ;;  %3801 = vmatmul.mubr.f32.gmra.mrb[184].mxu0 %v2519_v33 }
 0x324   : > { %3292 = vmatprep.mubr.f32.mxu1 %v2524_v1  ;;  %3806 = vmatprep.mubr.f32.mxu0 %v2524_v1  ;;  %v4132_v1 = vld [vmem:[%s11761_s7 + $0x448] sm:$0xff] }
 0x325   : > { %v6690_v6 = vpack.c.bf16 %v4136_v50, %v4132_v1 }
 0x327   : > { %3293 = vmatmul.mubr.f32.gmra.mrb[108].mxu1 %v2523_v30  ;;  %3807 = vmatmul.mubr.f32.gmra.mrb[186].mxu0 %v2523_v30 }
 0x328   : > { %3298 = vmatprep.mubr.f32.mxu1 %v2528_v43  ;;  %3812 = vmatprep.mubr.f32.mxu0 %v2528_v43  ;;  %v6688_v43 = vpack.c.bf16 %v4127_v37, %v4123_v8  ;;  %v4151_v8 = vld [vmem:[%s11761_s7 + $0x4e0] sm:$0xff] }
 0x32b   : > { %3299 = vmatmul.mubr.f32.gmra.mrb[110].mxu1 %v2527_v53  ;;  %3813 = vmatmul.mubr.f32.gmra.mrb[188].mxu0 %v2527_v53  ;;  %v4135_v53 = vld [vmem:[%s11761_s7 + $0x460] sm:$0xff] }
 0x32c   : > { %3304 = vmatprep.mubr.f32.mxu1 %v2532_v17  ;;  %3818 = vmatprep.mubr.f32.mxu0 %v2532_v17  ;;  %v6692_v12 = vpack.c.bf16 %v4135_v53, %v4131_v29  ;;  %v4162_v29 = vld [vmem:[%s11761_s7 + $0x538] sm:$0xff] }
 0x32f   : > { %3305 = vmatmul.mubr.f32.gmra.mrb[112].mxu1 %v2531_v41  ;;  %3819 = vmatmul.mubr.f32.gmra.mrb[190].mxu0 %v2531_v41  ;;  %v4140_v41 = vld [vmem:[%s11761_s7 + $0x488] sm:$0xff] }
 0x330   : > { %3310 = vmatprep.mubr.f32.mxu1 %v2536_v19  ;;  %3824 = vmatprep.mubr.f32.mxu0 %v2536_v19  ;;  %v4133_v19 = vld [vmem:[%s11761_s7 + $0x450] sm:$0xff]  ;;  %v6694_v16 = vpack.c.bf16 %v4144_v15, %v4140_v41  ;;  %v6828_v41 = vpack.c.bf16 %v4153_v62, %v4149_v39  ;;  %v4171_v39 = vld [vmem:[%s11761_s7 + $0x580] sm:$0xff] }
 0x331   : > { %v4175_v62 = vld [vmem:[%s11761_s7 + $0x5a0] sm:$0xff] }
 0x333   : > { %3311 = vmatmul.mubr.f32.gmra.mrb[114].mxu1 %v2535_v21  ;;  %3825 = vmatmul.mubr.f32.gmra.mrb[192].mxu0 %v2535_v21 }
 0x334   : > { %3316 = vmatprep.mubr.f32.mxu1 %v2540_v49  ;;  %3830 = vmatprep.mubr.f32.mxu0 %v2540_v49  ;;  %v4142_v49 = vld [vmem:[%s11761_s7 + $0x498] sm:$0xff] }
 0x335   : > { %v6822_v44 = vpack.c.bf16 %v4146_v10, %v4142_v49  ;;  %v4164_v49 = vld [vmem:[%s11761_s7 + $0x548] sm:$0xff] }
 0x337   : > { %3317 = vmatmul.mubr.f32.gmra.mrb[116].mxu1 %v2539_v25  ;;  %3831 = vmatmul.mubr.f32.gmra.mrb[194].mxu0 %v2539_v25 }
 0x338   : > { %3322 = vmatprep.mubr.f32.mxu1 %v2544_v61  ;;  %3836 = vmatprep.mubr.f32.mxu0 %v2544_v61 }
 0x33b   : > { %3323 = vmatmul.mubr.f32.gmra.mrb[118].mxu1 %v2543_v24  ;;  %3837 = vmatmul.mubr.f32.gmra.mrb[196].mxu0 %v2543_v24  ;;  %v4139_v24 = vld [vmem:[%s11761_s7 + $0x480] sm:$0xff] }
 0x33c   : > { %3328 = vmatprep.mubr.f32.mxu1 %v2548_v28  ;;  %3842 = vmatprep.mubr.f32.mxu0 %v2548_v28  ;;  %v6820_v28 = vpack.c.bf16 %v4137_v34, %v4133_v19  ;;  %v6696_v0 = vpack.c.bf16 %v4143_v11, %v4139_v24  ;;  %v4168_v24 = vld [vmem:[%s11761_s7 + $0x568] sm:$0xff]  ;;  %v4166_v11 = vld [vmem:[%s11761_s7 + $0x558] sm:$0xff] }
 0x33f   : > { %3329 = vmatmul.mubr.f32.gmra.mrb[120].mxu1 %v2547_v13  ;;  %3843 = vmatmul.mubr.f32.gmra.mrb[198].mxu0 %v2547_v13 }
 0x340   : > { %3334 = vmatprep.mubr.f32.mxu1 %v2552_v7  ;;  %3848 = vmatprep.mubr.f32.mxu0 %v2552_v7 }
 0x343   : > { %3335 = vmatmul.mubr.f32.gmra.mrb[122].mxu1 %v2551_v9  ;;  %3849 = vmatmul.mubr.f32.gmra.mrb[200].mxu0 %v2551_v9  ;;  %v4148_v9 = vld [vmem:[%s11761_s7 + $0x4c8] sm:$0xff] }
 0x344   : > { %3340 = vmatprep.mubr.f32.mxu1 %v2556_v20  ;;  %3854 = vmatprep.mubr.f32.mxu0 %v2556_v20  ;;  %v4141_v20 = vld [vmem:[%s11761_s7 + $0x490] sm:$0xff]  ;;  %v6698_v36 = vpack.c.bf16 %v4152_v51, %v4148_v9  ;;  %v4163_v9 = vld [vmem:[%s11761_s7 + $0x540] sm:$0xff] }
 0x345   : > { %v6824_v37 = vpack.c.bf16 %v4145_v5, %v4141_v20 }
 0x347   : > { %3341 = vmatmul.mubr.f32.gmra.mrb[124].mxu1 %v2555_v54  ;;  %3855 = vmatmul.mubr.f32.gmra.mrb[202].mxu0 %v2555_v54 }
 0x348   : > { %3346 = vmatprep.mubr.f32.mxu1 %v2560_v18  ;;  %3860 = vmatprep.mubr.f32.mxu0 %v2560_v18  ;;  %v4150_v18 = vld [vmem:[%s11761_s7 + $0x4d8] sm:$0xff] }
 0x34b   : > { %3347 = vmatmul.mubr.f32.gmra.mrb[126].mxu1 %v2559_v27  ;;  %3861 = vmatmul.mubr.f32.gmra.mrb[204].mxu0 %v2559_v27  ;;  %v4154_v27 = vld [vmem:[%s11761_s7 + $0x4f8] sm:$0xff] }
 0x34c   : > { %v6826_v50 = vpack.c.bf16 %v4154_v27, %v4150_v18  ;;  %v6706_v27 = vpack.c.bf16 %v4168_v24, %v4164_v49  ;;  %v4183_v24 = vld [vmem:[%s11761_s7 + $0x5e0] sm:$0xff] }
 0x3a2   : > { %v3162_v40 = vpop.f32.mrb[64].mxu1  ;;  %v10409_v4 = vpop.f32.mrb[142].mxu0 }
 0x3a3   : > { %v7022_v42 = vadd.f32 %v3162_v40, %v10404_v38  ;;  %v3164_v33 = vpop.f32.mrb[65].mxu1  ;;  %v10418_v2 = vpop.f32.mrb[143].mxu0  ;;  %v4147_v40 = vld [vmem:[%s11761_s7 + $0x4c0] sm:$0xff] }
 0x3a4   : > { %v7023_v48 = vadd.f32 %v3164_v33, %v10407_v14 }
 0x3a5   : > { %v3867_v17 = vmax.f32 %v7022_v42, 0.0 }
 0x3a6   : > { %v3868_v55 = vmax.f32 %v7023_v48, 0.0  ;;  %v3168_v30 = vpop.f32.mrb[66].mxu1  ;;  %v10439_v47 = vpop.f32.mrb[144].mxu0  ;;  %v4156_v48 = vld [vmem:[%s11761_s7 + $0x508] sm:$0xff] }
 0x3a7   : > { %v7024_v57 = vadd.f32 %v3168_v30, %v10404_v38  ;;  %v3170_v23 = vpop.f32.mrb[67].mxu1  ;;  %v10448_v56 = vpop.f32.mrb[145].mxu0  ;;  %v4160_v30 = vld [vmem:[%s11761_s7 + $0x528] sm:$0xff] }
 0x3a8   : > { %v7025_v21 = vadd.f32 %v3170_v23, %v10407_v14  ;;  %4337 = vmatprep.mubr.f32.mxu1 %v3868_v55  ;;  %4851 = vmatprep.mubr.f32.mxu0 %v3868_v55  ;;  %v4155_v23 = vld [vmem:[%s11761_s7 + $0x500] sm:$0xff]  ;;  %v6702_v15 = vpack.c.bf16 %v4160_v30, %v4156_v48 }
 0x3a9   : > { %4338 = vmatmul.mubr.f32.vlgmr.msra.gmra.mrb[128].mxu1 %v3867_v17  ;;  %4852 = vmatmul.mubr.f32.vlgmr.msra.gmra.mrb[206].mxu0 %v3867_v17  ;;  %v3871_v3 = vmax.f32 %v7024_v57, 0.0  ;;  %v6700_v57 = vpack.c.bf16 %v4151_v8, %v4147_v40  ;;  %v4169_v40 = vld [vmem:[%s11761_s7 + $0x570] sm:$0xff] }
 0x3aa   : > { %v3872_v25 = vmax.f32 %v7025_v21, 0.0  ;;  %6689 = vmatpush1.bf16.msra.mxu1 %v6688_v43  ;;  %v3174_v35 = vpop.f32.mrb[68].mxu1  ;;  %v10469_v61 = vpop.f32.mrb[146].mxu0  ;;  %6817 = vmatpush1.bf16.msra.mxu0 %v6816_v58  ;;  %v4158_v43 = vld [vmem:[%s11761_s7 + $0x518] sm:$0xff] }
 0x3ab   : > { %v7026_v13 = vadd.f32 %v3174_v35, %v10404_v38  ;;  %v3176_v63 = vpop.f32.mrb[69].mxu1  ;;  %v10478_v7 = vpop.f32.mrb[147].mxu0  ;;  %6691 = vmatprep.subr.bf16.mxu1 %v6690_v6  ;;  %6819 = vmatprep.subr.bf16.mxu0 %v6818_v59  ;;  %v4159_v6 = vld [vmem:[%s11761_s7 + $0x520] sm:$0xff]  ;;  %v6830_v10 = vpack.c.bf16 %v4162_v29, %v4158_v43  ;;  %v4161_v35 = vld [vmem:[%s11761_s7 + $0x530] sm:$0xff] }
 0x3ac   : > { %v7027_v54 = vadd.f32 %v3176_v63, %v10407_v14  ;;  %4343 = vmatprep.mubr.f32.mxu1 %v3872_v25  ;;  %4857 = vmatprep.mubr.f32.mxu0 %v3872_v25  ;;  %v4157_v25 = vld [vmem:[%s11761_s7 + $0x510] sm:$0xff] }
 0x3ad   : > { %4344 = vmatmul.mubr.f32.gmra.mrb[130].mxu1 %v3871_v3  ;;  %4858 = vmatmul.mubr.f32.gmra.mrb[208].mxu0 %v3871_v3  ;;  %v3875_v42 = vmax.f32 %v7026_v13, 0.0  ;;  %v6832_v20 = vpack.c.bf16 %v4161_v35, %v4157_v25  ;;  %v6712_v35 = vpack.c.bf16 %v4175_v62, %v4171_v39 }
 0x3ae   : > { %v3876_v32 = vmax.f32 %v7027_v54, 0.0  ;;  %v3180_v26 = vpop.f32.mrb[70].mxu1  ;;  %v10499_v45 = vpop.f32.mrb[148].mxu0  ;;  %6693 = vmatpush1.bf16.msra.mxu1 %v6692_v12  ;;  %6821 = vmatpush1.bf16.msra.mxu0 %v6820_v28  ;;  %v4170_v28 = vld [vmem:[%s11761_s7 + $0x578] sm:$0xff] }
 0x3af   : > { %v7028_v33 = vadd.f32 %v3180_v26, %v10404_v38  ;;  %v3182_v1 = vpop.f32.mrb[71].mxu1  ;;  %v10508_v22 = vpop.f32.mrb[149].mxu0  ;;  %6695 = vmatprep.subr.bf16.mxu1 %v6694_v16  ;;  %6823 = vmatprep.subr.bf16.mxu0 %v6822_v44  ;;  %v6704_v16 = vpack.c.bf16 %v4159_v6, %v4155_v23  ;;  %v4167_v44 = vld [vmem:[%s11761_s7 + $0x560] sm:$0xff]  ;;  %v6834_v26 = vpack.c.bf16 %v4170_v28, %v4166_v11  ;;  %v4173_v6 = vld [vmem:[%s11761_s7 + $0x590] sm:$0xff] }
 0x3b0   : > { %v7029_v55 = vadd.f32 %v3182_v1, %v10407_v14  ;;  %4349 = vmatprep.mubr.f32.mxu1 %v3876_v32  ;;  %4863 = vmatprep.mubr.f32.mxu0 %v3876_v32  ;;  %v4172_v32 = vld [vmem:[%s11761_s7 + $0x588] sm:$0xff] }
 0x3b1   : > { %4350 = vmatmul.mubr.f32.gmra.mrb[132].mxu1 %v3875_v42  ;;  %4864 = vmatmul.mubr.f32.gmra.mrb[210].mxu0 %v3875_v42  ;;  %v3879_v59 = vmax.f32 %v7028_v33, 0.0  ;;  %v4174_v42 = vld [vmem:[%s11761_s7 + $0x598] sm:$0xff] }
 0x3b2   : > { %v3880_v53 = vmax.f32 %v7029_v55, 0.0  ;;  %v3186_v58 = vpop.f32.mrb[72].mxu1  ;;  %v10529_v17 = vpop.f32.mrb[150].mxu0  ;;  %6697 = vmatpush1.bf16.msra.mxu1 %v6696_v0  ;;  %6825 = vmatpush1.bf16.msra.mxu0 %v6824_v37  ;;  %v4165_v0 = vld [vmem:[%s11761_s7 + $0x550] sm:$0xff]  ;;  %v4176_v37 = vld [vmem:[%s11761_s7 + $0x5a8] sm:$0xff]  ;;  %v4178_v33 = vld [vmem:[%s11761_s7 + $0x5b8] sm:$0xff] }
 0x3b3   : > { %v7030_v19 = vadd.f32 %v3186_v58, %v10404_v38  ;;  %v3188_v34 = vpop.f32.mrb[73].mxu1  ;;  %v10538_v21 = vpop.f32.mrb[151].mxu0  ;;  %6699 = vmatprep.subr.bf16.mxu1 %v6698_v36  ;;  %6827 = vmatprep.subr.bf16.mxu0 %v6826_v50  ;;  %v6708_v50 = vpack.c.bf16 %v4167_v44, %v4163_v9  ;;  %v6836_v55 = vpack.c.bf16 %v4169_v40, %v4165_v0  ;;  %v4188_v44 = vld [vmem:[%s11761_s7 + $0x608] sm:$0xff] }
 0x3b4   : > { %v7031_v12 = vadd.f32 %v3188_v34, %v10407_v14  ;;  %4355 = vmatprep.mubr.f32.mxu1 %v3880_v53  ;;  %4869 = vmatprep.mubr.f32.mxu0 %v3880_v53  ;;  %v6710_v58 = vpack.c.bf16 %v4176_v37, %v4172_v32  ;;  %v6838_v23 = vpack.c.bf16 %v4178_v33, %v4174_v42  ;;  %v4182_v34 = vld [vmem:[%s11761_s7 + $0x5d8] sm:$0xff]  ;;  %v4187_v42 = vld [vmem:[%s11761_s7 + $0x600] sm:$0xff] }
 0x3b5   : > { %4356 = vmatmul.mubr.f32.gmra.mrb[134].mxu1 %v3879_v59  ;;  %4870 = vmatmul.mubr.f32.gmra.mrb[212].mxu0 %v3879_v59  ;;  %v3883_v5 = vmax.f32 %v7030_v19, 0.0  ;;  %v4184_v19 = vld [vmem:[%s11761_s7 + $0x5e8] sm:$0xff]  ;;  %v4190_v32 = vld [vmem:[%s11761_s7 + $0x618] sm:$0xff]  ;;  %v4191_v33 = vld [vmem:[%s11761_s7 + $0x620] sm:$0xff] }
 0x3b6   : > { %v3884_v3 = vmax.f32 %v7031_v12, 0.0  ;;  %v3192_v13 = vpop.f32.mrb[74].mxu1  ;;  %v10559_v63 = vpop.f32.mrb[152].mxu0  ;;  %6701 = vmatpush1.bf16.msra.mxu1 %v6700_v57  ;;  %6829 = vmatpush1.bf16.msra.mxu0 %v6828_v41  ;;  %v4180_v57 = vld [vmem:[%s11761_s7 + $0x5c8] sm:$0xff]  ;;  %v4177_v41 = vld [vmem:[%s11761_s7 + $0x5b0] sm:$0xff]  ;;  %v4179_v12 = vld [vmem:[%s11761_s7 + $0x5c0] sm:$0xff] }
 0x3b7   : > { %v7032_v54 = vadd.f32 %v3192_v13, %v10404_v38  ;;  %v3194_v51 = vpop.f32.mrb[75].mxu1  ;;  %v10568_v18 = vpop.f32.mrb[153].mxu0  ;;  %6703 = vmatprep.subr.bf16.mxu1 %v6702_v15  ;;  %6831 = vmatprep.subr.bf16.mxu0 %v6830_v10  ;;  %v4186_v15 = vld [vmem:[%s11761_s7 + $0x5f8] sm:$0xff]  ;;  %v6840_v11 = vpack.c.bf16 %v4177_v41, %v4173_v6  ;;  %v6714_v9 = vpack.c.bf16 %v4184_v19, %v4180_v57 }
 0x3b8   : > { %v7033_v8 = vadd.f32 %v3194_v51, %v10407_v14  ;;  %4361 = vmatprep.mubr.f32.mxu1 %v3884_v3  ;;  %4875 = vmatprep.mubr.f32.mxu0 %v3884_v3  ;;  %v6716_v37 = vpack.c.bf16 %v4183_v24, %v4179_v12  ;;  %v4198_v6 = vld [vmem:[%s11761_s7 + $0x658] sm:$0xff] }
 0x3b9   : > { %4362 = vmatmul.mubr.f32.gmra.mrb[136].mxu1 %v3883_v5  ;;  %4876 = vmatmul.mubr.f32.gmra.mrb[214].mxu0 %v3883_v5  ;;  %v3887_v30 = vmax.f32 %v7032_v54, 0.0  ;;  %v4181_v5 = vld [vmem:[%s11761_s7 + $0x5d0] sm:$0xff]  ;;  %v4202_v41 = vld [vmem:[%s11761_s7 + $0x678] sm:$0xff] }
 0x3ba   : > { %v3888_v1 = vmax.f32 %v7033_v8, 0.0  ;;  %v3198_v36 = vpop.f32.mrb[76].mxu1  ;;  %v10589_v48 = vpop.f32.mrb[154].mxu0  ;;  %6705 = vmatpush1.bf16.msra.mxu1 %v6704_v16  ;;  %6833 = vmatpush1.bf16.msra.mxu0 %v6832_v20  ;;  %v6842_v20 = vpack.c.bf16 %v4186_v15, %v4182_v34  ;;  %v4185_v54 = vld [vmem:[%s11761_s7 + $0x5f0] sm:$0xff]  ;;  %v6720_v15 = vpack.c.bf16 %v4191_v33, %v4187_v42  ;;  %v4207_v42 = vld [vmem:[%s11761_s7 + $0x6a0] sm:$0xff] }
 0x3bb   : > { %v7034_v43 = vadd.f32 %v3198_v36, %v10404_v38  ;;  %v3200_v29 = vpop.f32.mrb[77].mxu1  ;;  %v10598_v53 = vpop.f32.mrb[155].mxu0  ;;  %6707 = vmatprep.subr.bf16.mxu1 %v6706_v27  ;;  %6835 = vmatprep.subr.bf16.mxu0 %v6834_v26  ;;  %v4192_v27 = vld [vmem:[%s11761_s7 + $0x628] sm:$0xff]  ;;  %v4194_v26 = vld [vmem:[%s11761_s7 + $0x638] sm:$0xff] }
 0x3bc   : > { %v7035_v59 = vadd.f32 %v3200_v29, %v10407_v14  ;;  %4367 = vmatprep.mubr.f32.mxu1 %v3888_v1  ;;  %4881 = vmatprep.mubr.f32.mxu0 %v3888_v1  ;;  %v6844_v1 = vpack.c.bf16 %v4185_v54, %v4181_v5  ;;  %v4189_v29 = vld [vmem:[%s11761_s7 + $0x610] sm:$0xff]  ;;  %v4208_v54 = vld [vmem:[%s11761_s7 + $0x6a8] sm:$0xff] }
 0x3bd   : > { %4368 = vmatmul.mubr.f32.gmra.mrb[138].mxu1 %v3887_v30  ;;  %4882 = vmatmul.mubr.f32.gmra.mrb[216].mxu0 %v3887_v30  ;;  %v3891_v28 = vmax.f32 %v7034_v43, 0.0  ;;  %v4196_v30 = vld [vmem:[%s11761_s7 + $0x648] sm:$0xff]  ;;  %v6846_v43 = vpack.c.bf16 %v4194_v26, %v4190_v32 }
 0x3be   : > { %v3892_v49 = vmax.f32 %v7035_v59, 0.0  ;;  %v3204_v10 = vpop.f32.mrb[78].mxu1  ;;  %v10619_v25 = vpop.f32.mrb[156].mxu0  ;;  %6709 = vmatpush1.bf16.msra.mxu1 %v6708_v50  ;;  %6837 = vmatpush1.bf16.msra.mxu0 %v6836_v55  ;;  %v6718_v55 = vpack.c.bf16 %v4192_v27, %v4188_v44  ;;  %v4197_v44 = vld [vmem:[%s11761_s7 + $0x650] sm:$0xff]  ;;  %v4210_v27 = vld [vmem:[%s11761_s7 + $0x6b8] sm:$0xff] }
 0x3bf   : > { %v7036_v3 = vadd.f32 %v3204_v10, %v10404_v38  ;;  %v3206_v13 = vpop.f32.mrb[79].mxu1  ;;  %v10628_v16 = vpop.f32.mrb[157].mxu0  ;;  %6711 = vmatprep.subr.bf16.mxu1 %v6710_v58  ;;  %6839 = vmatprep.subr.bf16.mxu0 %v6838_v23  ;;  %v4193_v58 = vld [vmem:[%s11761_s7 + $0x630] sm:$0xff]  ;;  %v4200_v23 = vld [vmem:[%s11761_s7 + $0x668] sm:$0xff]  ;;  %v4199_v10 = vld [vmem:[%s11761_s7 + $0x660] sm:$0xff] }
 0x3c0   : > { %v7037_v51 = vadd.f32 %v3206_v13, %v10407_v14  ;;  %4373 = vmatprep.mubr.f32.mxu1 %v3892_v49  ;;  %4887 = vmatprep.mubr.f32.mxu0 %v3892_v49  ;;  %v4195_v49 = vld [vmem:[%s11761_s7 + $0x640] sm:$0xff]  ;;  %v4204_v13 = vld [vmem:[%s11761_s7 + $0x688] sm:$0xff] }
 0x3c1   : > { %4374 = vmatmul.mubr.f32.gmra.mrb[140].mxu1 %v3891_v28  ;;  %4888 = vmatmul.mubr.f32.gmra.mrb[218].mxu0 %v3891_v28  ;;  %v3895_v36 = vmax.f32 %v7036_v3, 0.0  ;;  %v6722_v3 = vpack.c.bf16 %v4200_v23, %v4196_v30  ;;  %v4212_v30 = vld [vmem:[%s11761_s7 + $0x6c8] sm:$0xff] }
 0x3c2   : > { %v3896_v0 = vmax.f32 %v7037_v51, 0.0  ;;  %v3210_v40 = vpop.f32.mrb[80].mxu1  ;;  %v10649_v8 = vpop.f32.mrb[158].mxu0  ;;  %6713 = vmatpush1.bf16.msra.mxu1 %v6712_v35  ;;  %6841 = vmatpush1.bf16.msra.mxu0 %v6840_v11  ;;  %v6848_v35 = vpack.c.bf16 %v4193_v58, %v4189_v29  ;;  %v4206_v51 = vld [vmem:[%s11761_s7 + $0x698] sm:$0xff]  ;;  %v4205_v29 = vld [vmem:[%s11761_s7 + $0x690] sm:$0xff]  ;;  %v4216_v23 = vld [vmem:[%s11761_s7 + $0x6e8] sm:$0xff] }
 0x3c3   : > { %v7038_v50 = vadd.f32 %v3210_v40, %v10404_v38  ;;  %v3212_v39 = vpop.f32.mrb[81].mxu1  ;;  %v10658_v62 = vpop.f32.mrb[159].mxu0  ;;  %6715 = vmatprep.subr.bf16.mxu1 %v6714_v9  ;;  %6843 = vmatprep.subr.bf16.mxu0 %v6842_v20  ;;  %v6850_v9 = vpack.c.bf16 %v4202_v41, %v4198_v6  ;;  %v4201_v20 = vld [vmem:[%s11761_s7 + $0x670] sm:$0xff]  ;;  %v6724_v40 = vpack.c.bf16 %v4199_v10, %v4195_v49  ;;  %v4214_v6 = vld [vmem:[%s11761_s7 + $0x6d8] sm:$0xff]  ;;  %v4211_v10 = vld [vmem:[%s11761_s7 + $0x6c0] sm:$0xff] }
 0x3c4   : > { %v7039_v57 = vadd.f32 %v3212_v39, %v10407_v14  ;;  %4379 = vmatprep.mubr.f32.mxu1 %v3896_v0  ;;  %4893 = vmatprep.mubr.f32.mxu0 %v3896_v0  ;;  %v6852_v33 = vpack.c.bf16 %v4201_v20, %v4197_v44  ;;  %v4209_v58 = vld [vmem:[%s11761_s7 + $0x6b0] sm:$0xff]  ;;  %v4218_v41 = vld [vmem:[%s11761_s7 + $0x6f8] sm:$0xff]  ;;  %v4220_v44 = vld [vmem:[%s11761_s7 + $0x708] sm:$0xff] }
 0x3c5   : > { %4380 = vmatmul.mubr.f32.gmra.mrb[142].mxu1 %v3895_v36  ;;  %4894 = vmatmul.mubr.f32.gmra.mrb[220].mxu0 %v3895_v36  ;;  %v3899_v12 = vmax.f32 %v7038_v50, 0.0  ;;  %v6858_v20 = vpack.c.bf16 %v4218_v41, %v4214_v6  ;;  %v4221_v6 = vld [vmem:[%s11761_s7 + $0x710] sm:$0xff] }
 0x3c6   : > { %v3900_v59 = vmax.f32 %v7039_v57, 0.0  ;;  %v3216_v19 = vpop.f32.mrb[82].mxu1  ;;  %v10679_v34 = vpop.f32.mrb[160].mxu0  ;;  %6717 = vmatpush1.bf16.msra.mxu1 %v6716_v37  ;;  %6845 = vmatpush1.bf16.msra.mxu0 %v6844_v1  ;;  %v4203_v37 = vld [vmem:[%s11761_s7 + $0x680] sm:$0xff]  ;;  %v4225_v41 = vld [vmem:[%s11761_s7 + $0x730] sm:$0xff] }
 0x3c7   : > { %v7040_v24 = vadd.f32 %v3216_v19, %v10404_v38  ;;  %v3218_v11 = vpop.f32.mrb[83].mxu1  ;;  %v10688_v28 = vpop.f32.mrb[161].mxu0  ;;  %6719 = vmatprep.subr.bf16.mxu1 %v6718_v55  ;;  %6847 = vmatprep.subr.bf16.mxu0 %v6846_v43  ;;  %v6726_v55 = vpack.c.bf16 %v4208_v54, %v4204_v13  ;;  %v6854_v43 = vpack.c.bf16 %v4210_v27, %v4206_v51  ;;  %v4217_v54 = vld [vmem:[%s11761_s7 + $0x6f0] sm:$0xff]  ;;  %v4224_v27 = vld [vmem:[%s11761_s7 + $0x728] sm:$0xff] }
 0x3c8   : > { %v7041_v5 = vadd.f32 %v3218_v11, %v10407_v14  ;;  %4385 = vmatprep.mubr.f32.mxu1 %v3900_v59  ;;  %4899 = vmatprep.mubr.f32.mxu0 %v3900_v59  ;;  %v6728_v49 = vpack.c.bf16 %v4207_v42, %v4203_v37 }
 0x3c9   : > { %4386 = vmatmul.mubr.f32.gmra.mrb[144].mxu1 %v3899_v12  ;;  %4900 = vmatmul.mubr.f32.gmra.mrb[222].mxu0 %v3899_v12  ;;  %v3903_v1 = vmax.f32 %v7040_v24, 0.0  ;;  %v6856_v12 = vpack.c.bf16 %v4209_v58, %v4205_v29  ;;  %v6734_v58 = vpack.c.bf16 %v4224_v27, %v4220_v44  ;;  %v6864_v44 = vpack.c.bf16 %v4225_v41, %v4221_v6 }
 0x3ca   : > { %v3904_v32 = vmax.f32 %v7041_v5, 0.0  ;;  %v3222_v26 = vpop.f32.mrb[84].mxu1  ;;  %v10709_v0 = vpop.f32.mrb[162].mxu0  ;;  %6721 = vmatpush1.bf16.msra.mxu1 %v6720_v15  ;;  %6849 = vmatpush1.bf16.msra.mxu0 %v6848_v35  ;;  %v4215_v35 = vld [vmem:[%s11761_s7 + $0x6e0] sm:$0xff]  ;;  %v4213_v5 = vld [vmem:[%s11761_s7 + $0x6d0] sm:$0xff] }
 0x3cb   : > { %v7042_v36 = vadd.f32 %v3222_v26, %v10404_v38  ;;  %v3224_v50 = vpop.f32.mrb[85].mxu1  ;;  %v10718_v39 = vpop.f32.mrb[163].mxu0  ;;  %6723 = vmatprep.subr.bf16.mxu1 %v6722_v3  ;;  %6851 = vmatprep.subr.bf16.mxu0 %v6850_v9  ;;  %v6730_v9 = vpack.c.bf16 %v4216_v23, %v4212_v30  ;;  %v4226_v26 = vld [vmem:[%s11761_s7 + $0x738] sm:$0xff] }
 0x3cc   : > { %v7043_v57 = vadd.f32 %v3224_v50, %v10407_v14  ;;  %4391 = vmatprep.mubr.f32.mxu1 %v3904_v32  ;;  %4905 = vmatprep.mubr.f32.mxu0 %v3904_v32  ;;  %v4222_v32 = vld [vmem:[%s11761_s7 + $0x718] sm:$0xff]  ;;  %v6860_v50 = vpack.c.bf16 %v4217_v54, %v4213_v5 }
 0x3cd   : > { %4392 = vmatmul.mubr.f32.gmra.mrb[146].mxu1 %v3903_v1  ;;  %4906 = vmatmul.mubr.f32.gmra.mrb[224].mxu0 %v3903_v1  ;;  %v3907_v24 = vmax.f32 %v7042_v36, 0.0  ;;  %v4219_v1 = vld [vmem:[%s11761_s7 + $0x700] sm:$0xff]  ;;  %v6862_v23 = vpack.c.bf16 %v4226_v26, %v4222_v32  ;;  %v4236_v32 = vld [vmem:[%s11761_s7 + $0x788] sm:$0xff] }
 0x3ce   : > { %v3908_v59 = vmax.f32 %v7043_v57, 0.0  ;;  %v3228_v19 = vpop.f32.mrb[86].mxu1  ;;  %v10739_v15 = vpop.f32.mrb[164].mxu0  ;;  %6725 = vmatpush1.bf16.msra.mxu1 %v6724_v40  ;;  %6853 = vmatpush1.bf16.msra.mxu0 %v6852_v33  ;;  %v6732_v33 = vpack.c.bf16 %v4215_v35, %v4211_v10  ;;  %v4223_v36 = vld [vmem:[%s11761_s7 + $0x720] sm:$0xff]  ;;  %v4228_v57 = vld [vmem:[%s11761_s7 + $0x748] sm:$0xff]  ;;  %v4234_v10 = vld [vmem:[%s11761_s7 + $0x778] sm:$0xff] }
 0x3cf   : > { %v7044_v11 = vadd.f32 %v3228_v19, %v10404_v38  ;;  %v3230_v3 = vpop.f32.mrb[87].mxu1  ;;  %v10748_v13 = vpop.f32.mrb[165].mxu0  ;;  %6727 = vmatprep.subr.bf16.mxu1 %v6726_v55  ;;  %6855 = vmatprep.subr.bf16.mxu0 %v6854_v43  ;;  %v4232_v19 = vld [vmem:[%s11761_s7 + $0x768] sm:$0xff] }
 0x3d0   : > { %v7045_v51 = vadd.f32 %v3230_v3, %v10407_v14  ;;  %4397 = vmatprep.mubr.f32.mxu1 %v3908_v59  ;;  %4911 = vmatprep.mubr.f32.mxu0 %v3908_v59  ;;  %v4227_v3 = vld [vmem:[%s11761_s7 + $0x740] sm:$0xff]  ;;  %v6738_v27 = vpack.c.bf16 %v4232_v19, %v4228_v57 }
 0x3d1   : > { %4398 = vmatmul.mubr.f32.gmra.mrb[148].mxu1 %v3907_v24  ;;  %4912 = vmatmul.mubr.f32.gmra.mrb[226].mxu0 %v3907_v24  ;;  %v3911_v55 = vmax.f32 %v7044_v11, 0.0  ;;  %v6736_v11 = vpack.c.bf16 %v4223_v36, %v4219_v1  ;;  %v4240_v1 = vld [vmem:[%s11761_s7 + $0x7a8] sm:$0xff]  ;;  %v4238_v36 = vld [vmem:[%s11761_s7 + $0x798] sm:$0xff]  ;;  %v4235_v57 = vld [vmem:[%s11761_s7 + $0x780] sm:$0xff] }
 0x3d2   : > { %v3912_v40 = vmax.f32 %v7045_v51, 0.0  ;;  %v3234_v37 = vpop.f32.mrb[88].mxu1  ;;  %v10769_v42 = vpop.f32.mrb[166].mxu0  ;;  %6729 = vmatpush1.bf16.msra.mxu1 %v6728_v49  ;;  %6857 = vmatpush1.bf16.msra.mxu0 %v6856_v12  ;;  %v4230_v49 = vld [vmem:[%s11761_s7 + $0x758] sm:$0xff] }
 0x3d3   : > { %v7046_v30 = vadd.f32 %v3234_v37, %v10404_v38  ;;  %v3236_v43 = vpop.f32.mrb[89].mxu1  ;;  %v10778_v29 = vpop.f32.mrb[167].mxu0  ;;  %6731 = vmatprep.subr.bf16.mxu1 %v6730_v9  ;;  %6859 = vmatprep.subr.bf16.mxu0 %v6858_v20  ;;  %v4231_v9 = vld [vmem:[%s11761_s7 + $0x760] sm:$0xff]  ;;  %v6866_v26 = vpack.c.bf16 %v4234_v10, %v4230_v49  ;;  %v4233_v37 = vld [vmem:[%s11761_s7 + $0x770] sm:$0xff]  ;;  %v6742_v10 = vpack.c.bf16 %v4240_v1, %v4236_v32 }
 0x3d4   : > { %v7047_v59 = vadd.f32 %v3236_v43, %v10407_v14  ;;  %4403 = vmatprep.mubr.f32.mxu1 %v3912_v40  ;;  %4917 = vmatprep.mubr.f32.mxu0 %v3912_v40  ;;  %v4229_v40 = vld [vmem:[%s11761_s7 + $0x750] sm:$0xff] }
 0x3d5   : > { %4404 = vmatmul.mubr.f32.gmra.mrb[150].mxu1 %v3911_v55  ;;  %4918 = vmatmul.mubr.f32.gmra.mrb[228].mxu0 %v3911_v55  ;;  %v3915_v20 = vmax.f32 %v7046_v30, 0.0  ;;  %v6868_v6 = vpack.c.bf16 %v4233_v37, %v4229_v40  ;;  %v4243_v40 = vld [vmem:[%s11761_s7 + $0x7c0] sm:$0xff] }
 0x3d6   : > { %v3916_v35 = vmax.f32 %v7047_v59, 0.0  ;;  %v3240_v12 = vpop.f32.mrb[90].mxu1  ;;  %v10799_v24 = vpop.f32.mrb[168].mxu0  ;;  %6733 = vmatpush1.bf16.msra.mxu1 %v6732_v33  ;;  %6861 = vmatpush1.bf16.msra.mxu0 %v6860_v50  ;;  %v4242_v50 = vld [vmem:[%s11761_s7 + $0x7b8] sm:$0xff] }
 0x3d7   : > { %v7048_v5 = vadd.f32 %v3240_v12, %v10404_v38  ;;  %v3242_v54 = vpop.f32.mrb[91].mxu1  ;;  %v10808_v51 = vpop.f32.mrb[169].mxu0  ;;  %6735 = vmatprep.subr.bf16.mxu1 %v6734_v58  ;;  %6863 = vmatprep.subr.bf16.mxu0 %v6862_v23  ;;  %v6740_v58 = vpack.c.bf16 %v4231_v9, %v4227_v3  ;;  %v4239_v23 = vld [vmem:[%s11761_s7 + $0x7a0] sm:$0xff]  ;;  %v6870_v12 = vpack.c.bf16 %v4242_v50, %v4238_v36  ;;  %v4241_v3 = vld [vmem:[%s11761_s7 + $0x7b0] sm:$0xff] }
 0x3d8   : > { %v7049_v33 = vadd.f32 %v3242_v54, %v10407_v14  ;;  %4409 = vmatprep.mubr.f32.mxu1 %v3916_v35  ;;  %4923 = vmatprep.mubr.f32.mxu0 %v3916_v35  ;;  %v4244_v35 = vld [vmem:[%s11761_s7 + $0x7c8] sm:$0xff] }
 0x3d9   : > { %4410 = vmatmul.mubr.f32.gmra.mrb[152].mxu1 %v3915_v20  ;;  %4924 = vmatmul.mubr.f32.gmra.mrb[230].mxu0 %v3915_v20  ;;  %v3919_v41 = vmax.f32 %v7048_v5, 0.0  ;;  %v4246_v20 = vld [vmem:[%s11761_s7 + $0x7d8] sm:$0xff] }
 0x3da   : > { %v3920_v55 = vmax.f32 %v7049_v33, 0.0  ;;  %v3246_v30 = vpop.f32.mrb[92].mxu1  ;;  %v10829_v43 = vpop.f32.mrb[170].mxu0  ;;  %6737 = vmatpush1.bf16.msra.mxu1 %v6736_v11  ;;  %6865 = vmatpush1.bf16.msra.mxu0 %v6864_v44  ;;  %v4237_v11 = vld [vmem:[%s11761_s7 + $0x790] sm:$0xff]  ;;  %v4248_v44 = vld [vmem:[%s11761_s7 + $0x7e8] sm:$0xff]  ;;  %v4250_v5 = vld [vmem:[%s11761_s7 + $0x7f8] sm:$0xff] }
 0x3db   : > { %v7050_v59 = vadd.f32 %v3246_v30, %v10404_v38  ;;  %v3248_v19 = vpop.f32.mrb[93].mxu1  ;;  %v10838_v49 = vpop.f32.mrb[171].mxu0  ;;  %6739 = vmatprep.subr.bf16.mxu1 %v6738_v27  ;;  %6867 = vmatprep.subr.bf16.mxu0 %v6866_v26  ;;  %v6744_v26 = vpack.c.bf16 %v4239_v23, %v4235_v57  ;;  %v6872_v37 = vpack.c.bf16 %v4241_v3, %v4237_v11  ;;  %v4247_v30 = vld [vmem:[%s11761_s7 + $0x7e0] sm:$0xff]  ;;  %v4245_v57 = vld [vmem:[%s11761_s7 + $0x7d0] sm:$0xff] }
 0x3dc   : > { %v7051_v9 = vadd.f32 %v3248_v19, %v10407_v14  ;;  %4415 = vmatprep.mubr.f32.mxu1 %v3920_v55  ;;  %4929 = vmatprep.mubr.f32.mxu0 %v3920_v55  ;;  %v6746_v55 = vpack.c.bf16 %v4248_v44, %v4244_v35  ;;  %v4249_v23 = vld [vmem:[%s11761_s7 + $0x7f0] sm:$0xff] }
 0x3dd   : > { %4416 = vmatmul.mubr.f32.gmra.mrb[154].mxu1 %v3919_v41  ;;  %4930 = vmatmul.mubr.f32.gmra.mrb[232].mxu0 %v3919_v41  ;;  %v3923_v33 = vmax.f32 %v7050_v59, 0.0  ;;  %v6876_v35 = vpack.c.bf16 %v4249_v23, %v4245_v57 }
 0x3de   : > { %v3924_v54 = vmax.f32 %v7051_v9, 0.0  ;;  %v3252_v27 = vpop.f32.mrb[94].mxu1  ;;  %v10859_v32 = vpop.f32.mrb[172].mxu0  ;;  %6741 = vmatpush1.bf16.msra.mxu1 %v6740_v58  ;;  %6869 = vmatpush1.bf16.msra.mxu0 %v6868_v6  ;;  %v6874_v58 = vpack.c.bf16 %v4250_v5, %v4246_v20 }
 0x3df   : > { %v7052_v1 = vadd.f32 %v3252_v27, %v10404_v38  ;;  %v3254_v36 = vpop.f32.mrb[95].mxu1  ;;  %v10865_v50 = vpop.f32.mrb[173].mxu0  ;;  %6743 = vmatprep.subr.bf16.mxu1 %v6742_v10  ;;  %6871 = vmatprep.subr.bf16.mxu0 %v6870_v12  ;;  %v6748_v10 = vpack.c.bf16 %v4247_v30, %v4243_v40 }
 0x3e0   : > { %v7053_v6 = vadd.f32 %v3254_v36, %v10407_v14  ;;  %4421 = vmatprep.mubr.f32.mxu1 %v3924_v54  ;;  %4935 = vmatprep.mubr.f32.mxu0 %v3924_v54 }
 0x3e1   : > { %4422 = vmatmul.mubr.f32.gmra.mrb[156].mxu1 %v3923_v33  ;;  %4936 = vmatmul.mubr.f32.gmra.mrb[234].mxu0 %v3923_v33  ;;  %v3927_v12 = vmax.f32 %v7052_v1, 0.0 }
 0x3e2   : > { %v3928_v41 = vmax.f32 %v7053_v6, 0.0  ;;  %v3258_v59 = vpop.f32.mrb[96].mxu1  ;;  %v10877_v19 = vpop.f32.mrb[174].mxu0  ;;  %6745 = vmatpush1.bf16.msra.mxu1 %v6744_v26  ;;  %6873 = vmatpush1.bf16.msra.mxu0 %v6872_v37 }
 0x3e3   : > { %v7054_v11 = vadd.f32 %v3258_v59, %v10404_v38  ;;  %v3260_v3 = vpop.f32.mrb[97].mxu1  ;;  %v10880_v9 = vpop.f32.mrb[175].mxu0  ;;  %6747 = vmatprep.subr.bf16.mxu1 %v6746_v55  ;;  %6875 = vmatprep.subr.bf16.mxu0 %v6874_v58 }
 0x3e4   : > { %v7055_v44 = vadd.f32 %v3260_v3, %v10407_v14  ;;  %4427 = vmatprep.mubr.f32.mxu1 %v3928_v41  ;;  %4941 = vmatprep.mubr.f32.mxu0 %v3928_v41 }
 0x3e5   : > { %4428 = vmatmul.mubr.f32.gmra.mrb[158].mxu1 %v3927_v12  ;;  %4942 = vmatmul.mubr.f32.gmra.mrb[236].mxu0 %v3927_v12  ;;  %v3931_v27 = vmax.f32 %v7054_v11, 0.0 }
 0x3e6   : > { %v3932_v20 = vmax.f32 %v7055_v44, 0.0  ;;  %v3264_v5 = vpop.f32.mrb[98].mxu1  ;;  %v10883_v54 = vpop.f32.mrb[176].mxu0  ;;  %6749 = vmatpush1.bf16.msra.mxu1 %v6748_v10  ;;  %6877 = vmatpush1.bf16.msra.mxu0 %v6876_v35 }
 0x3e7   : > { %v7056_v26 = vadd.f32 %v3264_v5, %v10404_v38  ;;  %v3266_v40 = vpop.f32.mrb[99].mxu1  ;;  %v10886_v37 = vpop.f32.mrb[177].mxu0 }
 0x3e8   : > { %v7057_v33 = vadd.f32 %v3266_v40, %v10407_v14  ;;  %4433 = vmatprep.mubr.f32.mxu1 %v3932_v20  ;;  %4947 = vmatprep.mubr.f32.mxu0 %v3932_v20 }
 0x3e9   : > { %4434 = vmatmul.mubr.f32.gmra.mrb[160].mxu1 %v3931_v27  ;;  %4948 = vmatmul.mubr.f32.gmra.mrb[238].mxu0 %v3931_v27  ;;  %v3935_v30 = vmax.f32 %v7056_v26, 0.0 }
 0x3ea   : > { %v3936_v1 = vmax.f32 %v7057_v33, 0.0  ;;  %v3270_v36 = vpop.f32.mrb[100].mxu1  ;;  %v10889_v55 = vpop.f32.mrb[178].mxu0 }
 0x3eb   : > { %v7058_v58 = vadd.f32 %v3270_v36, %v10404_v38  ;;  %v3272_v57 = vpop.f32.mrb[101].mxu1  ;;  %v10892_v23 = vpop.f32.mrb[179].mxu0 }
 0x3ec   : > { %v7059_v6 = vadd.f32 %v3272_v57, %v10407_v14  ;;  %4439 = vmatprep.mubr.f32.mxu1 %v3936_v1  ;;  %4953 = vmatprep.mubr.f32.mxu0 %v3936_v1 }
 0x3ed   : > { %4440 = vmatmul.mubr.f32.gmra.mrb[162].mxu1 %v3935_v30  ;;  %4954 = vmatmul.mubr.f32.gmra.mrb[240].mxu0 %v3935_v30  ;;  %v3939_v35 = vmax.f32 %v7058_v58, 0.0 }
 0x3ee   : > { %v3940_v41 = vmax.f32 %v7059_v6, 0.0  ;;  %v3276_v59 = vpop.f32.mrb[102].mxu1  ;;  %v10895_v10 = vpop.f32.mrb[180].mxu0 }
 0x3ef   : > { %v7060_v12 = vadd.f32 %v3276_v59, %v10404_v38  ;;  %v3278_v11 = vpop.f32.mrb[103].mxu1  ;;  %v10898_v3 = vpop.f32.mrb[181].mxu0 }
 0x3f0   : > { %v7061_v44 = vadd.f32 %v3278_v11, %v10407_v14  ;;  %4445 = vmatprep.mubr.f32.mxu1 %v3940_v41  ;;  %4959 = vmatprep.mubr.f32.mxu0 %v3940_v41 }
 0x3f1   : > { %4446 = vmatmul.mubr.f32.gmra.mrb[164].mxu1 %v3939_v35  ;;  %4960 = vmatmul.mubr.f32.gmra.mrb[242].mxu0 %v3939_v35  ;;  %v3943_v26 = vmax.f32 %v7060_v12, 0.0 }
 0x3f2   : > { %v3944_v20 = vmax.f32 %v7061_v44, 0.0  ;;  %v3282_v5 = vpop.f32.mrb[104].mxu1  ;;  %v10901_v27 = vpop.f32.mrb[182].mxu0 }
 0x3f3   : > { %v7062_v40 = vadd.f32 %v3282_v5, %v10404_v38  ;;  %v3284_v33 = vpop.f32.mrb[105].mxu1  ;;  %v10904_v1 = vpop.f32.mrb[183].mxu0 }
 0x3f4   : > { %v7063_v36 = vadd.f32 %v3284_v33, %v10407_v14  ;;  %4451 = vmatprep.mubr.f32.mxu1 %v3944_v20  ;;  %4965 = vmatprep.mubr.f32.mxu0 %v3944_v20 }
 0x3f5   : > { %4452 = vmatmul.mubr.f32.gmra.mrb[166].mxu1 %v3943_v26  ;;  %4966 = vmatmul.mubr.f32.gmra.mrb[244].mxu0 %v3943_v26  ;;  %v3947_v6 = vmax.f32 %v7062_v40, 0.0 }
 0x3f6   : > { %v3948_v30 = vmax.f32 %v7063_v36, 0.0  ;;  %v3288_v58 = vpop.f32.mrb[106].mxu1  ;;  %v10907_v57 = vpop.f32.mrb[184].mxu0 }
 0x3f7   : > { %v7064_v41 = vadd.f32 %v3288_v58, %v10404_v38  ;;  %v3290_v59 = vpop.f32.mrb[107].mxu1  ;;  %v10910_v35 = vpop.f32.mrb[185].mxu0 }
 0x3f8   : > { %v7065_v12 = vadd.f32 %v3290_v59, %v10407_v14  ;;  %4457 = vmatprep.mubr.f32.mxu1 %v3948_v30  ;;  %4971 = vmatprep.mubr.f32.mxu0 %v3948_v30 }
 0x3f9   : > { %4458 = vmatmul.mubr.f32.gmra.mrb[168].mxu1 %v3947_v6  ;;  %4972 = vmatmul.mubr.f32.gmra.mrb[246].mxu0 %v3947_v6  ;;  %v3951_v5 = vmax.f32 %v7064_v41, 0.0 }
 0x3fa   : > { %v3952_v11 = vmax.f32 %v7065_v12, 0.0  ;;  %v3294_v44 = vpop.f32.mrb[108].mxu1  ;;  %v10913_v20 = vpop.f32.mrb[186].mxu0 }
 0x3fb   : > { %11790 = vst [vmem:[#allocation2_spill] sm:$0xff] %v10913_v20  ;;  %v7066_v26 = vadd.f32 %v3294_v44, %v10404_v38  ;;  %v3296_v33 = vpop.f32.mrb[109].mxu1  ;;  %v10916_v40 = vpop.f32.mrb[187].mxu0 }
 0x3fc   : > { %v7067_v36 = vadd.f32 %v3296_v33, %v10407_v14  ;;  %4463 = vmatprep.mubr.f32.mxu1 %v3952_v11  ;;  %4977 = vmatprep.mubr.f32.mxu0 %v3952_v11 }
 0x3fd   : > { %4464 = vmatmul.mubr.f32.gmra.mrb[170].mxu1 %v3951_v5  ;;  %4978 = vmatmul.mubr.f32.gmra.mrb[248].mxu0 %v3951_v5  ;;  %v3955_v6 = vmax.f32 %v7066_v26, 0.0 }
 0x3fe   : > { %v3956_v58 = vmax.f32 %v7067_v36, 0.0  ;;  %v3300_v30 = vpop.f32.mrb[110].mxu1  ;;  %v10919_v59 = vpop.f32.mrb[188].mxu0 }
 0x3ff   : > { %11791 = vst [vmem:[#allocation3_spill] sm:$0xff] %v10919_v59  ;;  %v7068_v12 = vadd.f32 %v3300_v30, %v10404_v38  ;;  %v3302_v60 = vpop.f32.mrb[111].mxu1  ;;  %v10922_v41 = vpop.f32.mrb[189].mxu0  ;;  %v11772_v30 = vmov 0.0|0.0  }
 0x400   : > { %11792 = vst [vmem:[#allocation4_spill] sm:$0xff] %v10922_v41  ;;  %v7069_v44 = vadd.f32 %v3302_v60, %v10407_v14  ;;  %4469 = vmatprep.mubr.f32.mxu1 %v3956_v58  ;;  %4983 = vmatprep.mubr.f32.mxu0 %v3956_v58 }
 0x401   : > { %4470 = vmatmul.mubr.f32.gmra.mrb[172].mxu1 %v3955_v6  ;;  %4984 = vmatmul.mubr.f32.gmra.mrb[250].mxu0 %v3955_v6  ;;  %v3959_v5 = vmax.f32 %v7068_v12, 0.0 }
 0x402   : > { %v3960_v33 = vmax.f32 %v7069_v44, 0.0  ;;  %v3306_v11 = vpop.f32.mrb[112].mxu1  ;;  %v10925_v52 = vpop.f32.mrb[190].mxu0  ;;  %6878 = vmatprep.subr.bf16.mxu1 %v11772_v30 }
 0x403   : > { %11793 = vst [vmem:[#allocation5_spill] sm:$0xff] %v10925_v52  ;;  %v7070_v36 = vadd.f32 %v3306_v11, %v10404_v38  ;;  %v3308_v59 = vpop.f32.mrb[113].mxu1  ;;  %v10928_v26 = vpop.f32.mrb[191].mxu0 }
 0x404   : > { %11794 = vst [vmem:[#allocation6_spill] sm:$0xff] %v10928_v26  ;;  %v7071_v41 = vadd.f32 %v3308_v59, %v10407_v14  ;;  %4475 = vmatprep.mubr.f32.mxu1 %v3960_v33  ;;  %4989 = vmatprep.mubr.f32.mxu0 %v3960_v33 }
 0x405   : > { %4476 = vmatmul.mubr.f32.gmra.mrb[174].mxu1 %v3959_v5  ;;  %4990 = vmatmul.mubr.f32.gmra.mrb[252].mxu0 %v3959_v5  ;;  %v3963_v44 = vmax.f32 %v7070_v36, 0.0 }
 0x406   : > { %v3964_v60 = vmax.f32 %v7071_v41, 0.0  ;;  %v3312_v58 = vpop.f32.mrb[114].mxu1  ;;  %v10932_v6 = vpop.f32.mrb[192].mxu0 }
 0x407   : > { %11795 = vst [vmem:[#allocation7_spill] sm:$0xff] %v10932_v6  ;;  %v7072_v12 = vadd.f32 %v3312_v58, %v10404_v38  ;;  %v3314_v11 = vpop.f32.mrb[115].mxu1  ;;  %v10935_v52 = vpop.f32.mrb[193].mxu0 }
 0x408   : > { %11796 = vst [vmem:[#allocation10_spill] sm:$0xff] %v10935_v52  ;;  %v7073_v26 = vadd.f32 %v3314_v11, %v10407_v14  ;;  %4481 = vmatprep.mubr.f32.mxu1 %v3964_v60  ;;  %4995 = vmatprep.mubr.f32.mxu0 %v3964_v60 }
 0x409   : > { %4482 = vmatmul.mubr.f32.gmra.mrb[176].mxu1 %v3963_v44  ;;  %4996 = vmatmul.mubr.f32.gmra.mrb[254].mxu0 %v3963_v44  ;;  %v3967_v41 = vmax.f32 %v7072_v12, 0.0 }
 0x40a   : > { %v3968_v59 = vmax.f32 %v7073_v26, 0.0  ;;  %v3318_v33 = vpop.f32.mrb[116].mxu1  ;;  %v10938_v30 = vpop.f32.mrb[194].mxu0 }
 0x40b   : > { %11797 = vst [vmem:[#allocation11_spill] sm:$0xff] %v10938_v30  ;;  %v7074_v5 = vadd.f32 %v3318_v33, %v10404_v38  ;;  %v3320_v6 = vpop.f32.mrb[117].mxu1  ;;  %v10941_v36 = vpop.f32.mrb[195].mxu0 }
 0x40c   : > { %11798 = vst [vmem:[#allocation12_spill] sm:$0xff] %v10941_v36  ;;  %v7075_v58 = vadd.f32 %v3320_v6, %v10407_v14  ;;  %4487 = vmatprep.mubr.f32.mxu1 %v3968_v59  ;;  %5001 = vmatprep.mubr.f32.mxu0 %v3968_v59 }
 0x40d   : > { %4488 = vmatmul.mubr.f32.gmra.mrb[178].mxu1 %v3967_v41  ;;  %5002 = vmatmul.mubr.f32.gmra.mrb[0].mxu0 %v3967_v41  ;;  %v3971_v26 = vmax.f32 %v7074_v5, 0.0 }
 0x40e   : > { %v3972_v11 = vmax.f32 %v7075_v58, 0.0  ;;  %v3324_v60 = vpop.f32.mrb[118].mxu1  ;;  %v10944_v52 = vpop.f32.mrb[196].mxu0 }
 0x40f   : > { %11799 = vst [vmem:[#allocation13_spill] sm:$0xff] %v10944_v52  ;;  %v7076_v44 = vadd.f32 %v3324_v60, %v10404_v38  ;;  %v3326_v30 = vpop.f32.mrb[119].mxu1  ;;  %v10947_v12 = vpop.f32.mrb[197].mxu0 }
 0x410   : > { %11800 = vst [vmem:[#allocation14_spill] sm:$0xff] %v10947_v12  ;;  %v7077_v33 = vadd.f32 %v3326_v30, %v10407_v14  ;;  %4493 = vmatprep.mubr.f32.mxu1 %v3972_v11  ;;  %5007 = vmatprep.mubr.f32.mxu0 %v3972_v11 }
 0x411   : > { %4494 = vmatmul.mubr.f32.gmra.mrb[180].mxu1 %v3971_v26  ;;  %5008 = vmatmul.mubr.f32.gmra.mrb[2].mxu0 %v3971_v26  ;;  %v3975_v41 = vmax.f32 %v7076_v44, 0.0 }
 0x412   : > { %v3976_v6 = vmax.f32 %v7077_v33, 0.0  ;;  %v3330_v59 = vpop.f32.mrb[120].mxu1  ;;  %v10950_v36 = vpop.f32.mrb[198].mxu0 }
 0x413   : > { %11801 = vst [vmem:[#allocation15_spill] sm:$0xff] %v10950_v36  ;;  %v7078_v58 = vadd.f32 %v3330_v59, %v10404_v38  ;;  %v3332_v52 = vpop.f32.mrb[121].mxu1  ;;  %v10953_v5 = vpop.f32.mrb[199].mxu0 }
 0x414   : > { %11802 = vst [vmem:[#allocation16_spill] sm:$0xff] %v10953_v5  ;;  %v7079_v60 = vadd.f32 %v3332_v52, %v10407_v14  ;;  %4499 = vmatprep.mubr.f32.mxu1 %v3976_v6  ;;  %5013 = vmatprep.mubr.f32.mxu0 %v3976_v6 }
 0x415   : > { %4500 = vmatmul.mubr.f32.gmra.mrb[182].mxu1 %v3975_v41  ;;  %5014 = vmatmul.mubr.f32.gmra.mrb[4].mxu0 %v3975_v41  ;;  %v3979_v26 = vmax.f32 %v7078_v58, 0.0 }
 0x416   : > { %v3980_v30 = vmax.f32 %v7079_v60, 0.0  ;;  %v3336_v11 = vpop.f32.mrb[122].mxu1  ;;  %v10956_v12 = vpop.f32.mrb[200].mxu0 }
 0x417   : > { %11803 = vst [vmem:[#allocation17_spill] sm:$0xff] %v10956_v12  ;;  %v7080_v33 = vadd.f32 %v3336_v11, %v10404_v38  ;;  %v3338_v36 = vpop.f32.mrb[123].mxu1  ;;  %v10959_v44 = vpop.f32.mrb[201].mxu0  ;;  %v7791_v11 = vld [vmem:[%s11760_s6] sm:$0xf] }
 0x418   : > { %11804 = vst [vmem:[#allocation18_spill] sm:$0xff] %v10959_v44  ;;  %v7081_v59 = vadd.f32 %v3338_v36, %v10407_v14  ;;  %4505 = vmatprep.mubr.f32.mxu1 %v3980_v30  ;;  %5019 = vmatprep.mubr.f32.mxu0 %v3980_v30  ;;  %v10971_v36 = vrot.slane %v7791_v11, %v9786_v46 }
 0x419   : > { %4506 = vmatmul.mubr.f32.gmra.mrb[184].mxu1 %v3979_v26  ;;  %5020 = vmatmul.mubr.f32.gmra.mrb[6].mxu0 %v3979_v26  ;;  %v3983_v41 = vmax.f32 %v7080_v33, 0.0 }
 0x41a   : > { %v3984_v52 = vmax.f32 %v7081_v59, 0.0  ;;  %v3342_v6 = vpop.f32.mrb[124].mxu1  ;;  %v10962_v5 = vpop.f32.mrb[202].mxu0 }
 0x41b   : > { %11805 = vst [vmem:[#allocation19_spill] sm:$0xff] %v10962_v5  ;;  %v7082_v60 = vadd.f32 %v3342_v6, %v10404_v38  ;;  %v3344_v12 = vpop.f32.mrb[125].mxu1  ;;  %v10965_v58 = vpop.f32.mrb[203].mxu0  ;;  %v10977_v6 = vrot.slane %v7791_v11, %v9792_v31 }
 0x41c   : > { %11806 = vst [vmem:[#allocation20_spill] sm:$0xff] %v10965_v58  ;;  %v7083_v30 = vadd.f32 %v3344_v12, %v10407_v14  ;;  %4511 = vmatprep.mubr.f32.mxu1 %v3984_v52  ;;  %5025 = vmatprep.mubr.f32.mxu0 %v3984_v52  ;;  %v7087_v12 = vadd.f32 %v10418_v2, %v10971_v36  ;;  %v5429_v2 = vld [vmem:[%s11763_s9] sm:$0xff] }
 0x41d   : > { %4512 = vmatmul.mubr.f32.gmra.mrb[186].mxu1 %v3983_v41  ;;  %5026 = vmatmul.mubr.f32.gmra.mrb[8].mxu0 %v3983_v41  ;;  %v3987_v5 = vmax.f32 %v7082_v60, 0.0  ;;  %v7086_v11 = vadd.f32 %v10409_v4, %v10977_v6 }
 0x41e   : > { %v3988_v26 = vmax.f32 %v7083_v30, 0.0  ;;  %v3348_v33 = vpop.f32.mrb[126].mxu1  ;;  %v10974_v59 = vpop.f32.mrb[204].mxu0  ;;  %v3870_v60 = vmax.f32 %v7087_v12, 0.0 }
 0x41f   : > { %v7084_v58 = vadd.f32 %v3348_v33, %v10404_v38  ;;  %v3350_v44 = vpop.f32.mrb[127].mxu1  ;;  %v10980_v20 = vpop.f32.mrb[205].mxu0  ;;  %v7089_v38 = vadd.f32 %v10448_v56, %v10971_v36  ;;  %v3869_v4 = vmax.f32 %v7086_v11, 0.0  ;;  %v5432_v33 = vld [vmem:[%s11763_s9 + $0x18] sm:$0xff]  ;;  %v11807_v11 = vmov 0.0|0.0  }
 0x420   : > { %v7085_v52 = vadd.f32 %v3350_v44, %v10407_v14  ;;  %4517 = vmatprep.mubr.f32.mxu1 %v3988_v26  ;;  %5031 = vmatprep.mubr.f32.mxu0 %v3988_v26  ;;  %v5430_v14 = vld [vmem:[%s11763_s9 + $0x8] sm:$0xff]  ;;  %v5431_v26 = vld [vmem:[%s11763_s9 + $0x10] sm:$0xff] }
 0x421   : > { %4518 = vmatmul.mubr.f32.gmra.mrb[188].mxu1 %v3987_v5  ;;  %5032 = vmatmul.mubr.f32.gmra.mrb[10].mxu0 %v3987_v5  ;;  %v3991_v30 = vmax.f32 %v7084_v58, 0.0  ;;  %v7088_v5 = vadd.f32 %v10439_v47, %v10977_v6  ;;  %v6879_v44 = vpack.c.bf16 %v5430_v14, %v5429_v2  ;;  %v3874_v56 = vmax.f32 %v7089_v38, 0.0 }
 0x422   : > { %v3992_v41 = vmax.f32 %v7085_v52, 0.0  ;;  %v7091_v58 = vadd.f32 %v10478_v7, %v10971_v36  ;;  %v7090_v47 = vadd.f32 %v10469_v61, %v10977_v6  ;;  %v6882_v52 = vpack.c.bf16 %v5432_v33, %v5431_v26  ;;  %v5437_v26 = vld [vmem:[%s11763_s9 + $0x40] sm:$0xff]  ;;  %v5438_v33 = vld [vmem:[%s11763_s9 + $0x48] sm:$0xff] }
 0x423   : > { %v3873_v12 = vmax.f32 %v7088_v5, 0.0  ;;  %v7093_v7 = vadd.f32 %v10508_v22, %v10971_v36  ;;  %v7092_v38 = vadd.f32 %v10499_v45, %v10977_v6  ;;  %v7095_v14 = vadd.f32 %v10538_v21, %v10971_v36  ;;  %v5436_v5 = vld [vmem:[%s11763_s9 + $0x38] sm:$0xff] }
 0x424   : > { %4523 = vmatprep.mubr.f32.mxu1 %v3992_v41  ;;  %5037 = vmatprep.mubr.f32.mxu0 %v3992_v41  ;;  %v3878_v41 = vmax.f32 %v7091_v58, 0.0  ;;  %v3877_v61 = vmax.f32 %v7090_v47, 0.0  ;;  %v7097_v58 = vadd.f32 %v10568_v18, %v10971_v36  ;;  %v6891_v18 = vpack.c.bf16 %v5438_v33, %v5437_v26  ;;  %v5446_v26 = vld [vmem:[%s11763_s9 + $0x88] sm:$0xff] }
 0x425   : > { %4524 = vmatmul.mubr.f32.gmra.mrb[190].mxu1 %v3991_v30  ;;  %5038 = vmatmul.mubr.f32.gmra.mrb[12].mxu0 %v3991_v30  ;;  %v5433_v30 = vld [vmem:[%s11763_s9 + $0x20] sm:$0xff]  ;;  %v3882_v2 = vmax.f32 %v7093_v7, 0.0  ;;  %v3881_v45 = vmax.f32 %v7092_v38, 0.0  ;;  %v5440_v7 = vld [vmem:[%s11763_s9 + $0x58] sm:$0xff]  ;;  %v7104_v33 = vadd.f32 %v10679_v34, %v10977_v6 }
 0x426   : > { %4594 = vmatprep.mubr.f32.mxu1 %v3870_v60  ;;  %5108 = vmatprep.mubr.f32.mxu0 %v3870_v60  ;;  %v5434_v60 = vld [vmem:[%s11763_s9 + $0x28] sm:$0xff]  ;;  %v3890_v47 = vmax.f32 %v7097_v58, 0.0  ;;  %v5441_v38 = vld [vmem:[%s11763_s9 + $0x60] sm:$0xff] }
 0x427   : > { %v6885_v22 = vpack.c.bf16 %v5434_v60, %v5433_v30  ;;  %v7098_v30 = vadd.f32 %v10589_v48, %v10977_v6  ;;  %v5445_v58 = vld [vmem:[%s11763_s9 + $0x80] sm:$0xff]  ;;  %v3905_v34 = vmax.f32 %v7104_v33, 0.0  ;;  %v7116_v33 = vadd.f32 %v10859_v32, %v10977_v6 }
 0x429   : > { %4595 = vmatmul.mubr.f32.vlgmr.msra.gmra.mrb[128].mxu1 %v3869_v4  ;;  %5109 = vmatmul.mubr.f32.vlgmr.msra.gmra.mrb[206].mxu0 %v3869_v4  ;;  %v5435_v4 = vld [vmem:[%s11763_s9 + $0x30] sm:$0xff]  ;;  %v3893_v48 = vmax.f32 %v7098_v30, 0.0  ;;  %v5450_v30 = vld [vmem:[%s11763_s9 + $0xa8] sm:$0xff]  ;;  %v3929_v32 = vmax.f32 %v7116_v33, 0.0 }
 0x42a   : > { %4600 = vmatprep.mubr.f32.mxu1 %v3874_v56  ;;  %5114 = vmatprep.mubr.f32.mxu0 %v3874_v56  ;;  %v6888_v21 = vpack.c.bf16 %v5436_v5, %v5435_v4  ;;  %v3886_v56 = vmax.f32 %v7095_v14, 0.0  ;;  %v7103_v4 = vadd.f32 %v10658_v62, %v10971_v36  ;;  %v5443_v5 = vld [vmem:[%s11763_s9 + $0x70] sm:$0xff] }
 0x42b   : > { %6880 = vmatpush1.bf16.msra.mxu1 %v6879_v44  ;;  %v7094_v44 = vadd.f32 %v10529_v17, %v10977_v6 }
 0x42c   : > { %6881 = vmatprep.subr.bf16.mxu1 %v11807_v11 }
 0x42d   : > { %4601 = vmatmul.mubr.f32.gmra.mrb[130].mxu1 %v3873_v12  ;;  %5115 = vmatmul.mubr.f32.gmra.mrb[208].mxu0 %v3873_v12  ;;  %v3885_v17 = vmax.f32 %v7094_v44, 0.0  ;;  %v7096_v12 = vadd.f32 %v10559_v63, %v10977_v6  ;;  %v7102_v44 = vadd.f32 %v10649_v8, %v10977_v6 }
 0x42e   : > { %4606 = vmatprep.mubr.f32.mxu1 %v3878_v41  ;;  %5120 = vmatprep.mubr.f32.mxu0 %v3878_v41  ;;  %v5439_v41 = vld [vmem:[%s11763_s9 + $0x50] sm:$0xff] }
 0x42f   : > { %6883 = vmatpush1.bf16.msra.mxu1 %v6882_v52  ;;  %v7099_v52 = vadd.f32 %v10598_v53, %v10971_v36  ;;  %v3889_v63 = vmax.f32 %v7096_v12, 0.0  ;;  %v6894_v53 = vpack.c.bf16 %v5440_v7, %v5439_v41  ;;  %v3901_v8 = vmax.f32 %v7102_v44, 0.0  ;;  %v5455_v44 = vld [vmem:[%s11763_s9 + $0xd0] sm:$0xff] }
 0x430   : > { %6884 = vmatprep.subr.bf16.mxu1 %v11807_v11  ;;  %v7107_v12 = vadd.f32 %v10718_v39, %v10971_v36  ;;  %v7109_v7 = vadd.f32 %v10748_v13, %v10971_v36 }
 0x431   : > { %4607 = vmatmul.mubr.f32.gmra.mrb[132].mxu1 %v3877_v61  ;;  %5121 = vmatmul.mubr.f32.gmra.mrb[210].mxu0 %v3877_v61  ;;  %v3894_v60 = vmax.f32 %v7099_v52, 0.0  ;;  %v7101_v61 = vadd.f32 %v10628_v16, %v10971_v36  ;;  %v7106_v52 = vadd.f32 %v10709_v0, %v10977_v6 }
 0x432   : > { %4612 = vmatprep.mubr.f32.mxu1 %v3882_v2  ;;  %5126 = vmatprep.mubr.f32.mxu0 %v3882_v2  ;;  %v7100_v2 = vadd.f32 %v10619_v25, %v10977_v6  ;;  %v3910_v41 = vmax.f32 %v7107_v12, 0.0  ;;  %v5459_v12 = vld [vmem:[%s11763_s9 + $0xf0] sm:$0xff] }
 0x433   : > { %6886 = vmatpush1.bf16.msra.mxu1 %v6885_v22  ;;  %v5442_v22 = vld [vmem:[%s11763_s9 + $0x68] sm:$0xff]  ;;  %v3898_v14 = vmax.f32 %v7101_v61, 0.0  ;;  %v3909_v0 = vmax.f32 %v7106_v52, 0.0  ;;  %v7111_v61 = vadd.f32 %v10778_v29, %v10971_v36  ;;  %v7121_v52 = vadd.f32 %v10886_v37, %v10971_v36 }
 0x434   : > { %6887 = vmatprep.subr.bf16.mxu1 %v11807_v11  ;;  %v6897_v16 = vpack.c.bf16 %v5442_v22, %v5441_v38  ;;  %v3897_v25 = vmax.f32 %v7100_v2, 0.0  ;;  %v5451_v38 = vld [vmem:[%s11763_s9 + $0xb0] sm:$0xff]  ;;  %v5452_v22 = vld [vmem:[%s11763_s9 + $0xb8] sm:$0xff] }
 0x435   : > { %4613 = vmatmul.mubr.f32.gmra.mrb[134].mxu1 %v3881_v45  ;;  %5127 = vmatmul.mubr.f32.gmra.mrb[212].mxu0 %v3881_v45  ;;  %v5444_v45 = vld [vmem:[%s11763_s9 + $0x78] sm:$0xff]  ;;  %v6912_v29 = vpack.c.bf16 %v5452_v22, %v5451_v38  ;;  %v3918_v2 = vmax.f32 %v7111_v61, 0.0  ;;  %v7129_v61 = vadd.f32 %v10910_v35, %v10971_v36  ;;  %v7131_v22 = vadd.f32 %v10916_v40, %v10971_v36 }
 0x436   : > { %4618 = vmatprep.mubr.f32.mxu1 %v3886_v56  ;;  %5132 = vmatprep.mubr.f32.mxu0 %v3886_v56  ;;  %v6900_v62 = vpack.c.bf16 %v5444_v45, %v5443_v5  ;;  %v7105_v56 = vadd.f32 %v10688_v28, %v10971_v36  ;;  %v6903_v28 = vpack.c.bf16 %v5446_v26, %v5445_v58  ;;  %v5457_v26 = vld [vmem:[%s11763_s9 + $0xe0] sm:$0xff] }
 0x437   : > { %6889 = vmatpush1.bf16.msra.mxu1 %v6888_v21  ;;  %v3902_v21 = vmax.f32 %v7103_v4, 0.0  ;;  %v5454_v4 = vld [vmem:[%s11763_s9 + $0xc8] sm:$0xff]  ;;  %v7112_v5 = vadd.f32 %v10799_v24, %v10977_v6  ;;  %v7117_v58 = vadd.f32 %v10865_v50, %v10971_v36  ;;  %v3954_v38 = vmax.f32 %v7129_v61, 0.0 }
 0x438   : > { %6890 = vmatprep.subr.bf16.mxu1 %v11807_v11  ;;  %v7149_v61 = vadd.f32 %v10980_v20, %v10971_v36  ;;  %v11226_v20 = vld [vmem:[%s11762_s8] sm:$0xf] }
 0x439   : > { %4619 = vmatmul.mubr.f32.gmra.mrb[136].mxu1 %v3885_v17  ;;  %5133 = vmatmul.mubr.f32.gmra.mrb[214].mxu0 %v3885_v17  ;;  %v3906_v17 = vmax.f32 %v7105_v56, 0.0  ;;  %v3921_v24 = vmax.f32 %v7112_v5, 0.0 }
 0x43a   : > { %4624 = vmatprep.mubr.f32.mxu1 %v3890_v47  ;;  %5138 = vmatprep.mubr.f32.mxu0 %v3890_v47  ;;  %v5448_v47 = vld [vmem:[%s11763_s9 + $0x98] sm:$0xff] }
 0x43b   : > { %6892 = vmatpush1.bf16.msra.mxu1 %v6891_v18  ;;  %v5447_v18 = vld [vmem:[%s11763_s9 + $0x90] sm:$0xff] }
 0x43c   : > { %6893 = vmatprep.subr.bf16.mxu1 %v11807_v11  ;;  %v6906_v39 = vpack.c.bf16 %v5448_v47, %v5447_v18  ;;  %v5460_v18 = vld [vmem:[%s11763_s9 + $0xf8] sm:$0xff]  ;;  %v7118_v47 = vadd.f32 %v10877_v19, %v10977_v6  ;;  %v7123_v19 = vadd.f32 %v10892_v23, %v10971_v36  ;;  %v7124_v23 = vadd.f32 %v10895_v10, %v10977_v6 }
 0x43d   : > { %4625 = vmatmul.mubr.f32.gmra.mrb[138].mxu1 %v3889_v63  ;;  %5139 = vmatmul.mubr.f32.gmra.mrb[216].mxu0 %v3889_v63  ;;  %v5449_v63 = vld [vmem:[%s11763_s9 + $0xa0] sm:$0xff] }
 0x43e   : > { %4630 = vmatprep.mubr.f32.mxu1 %v3894_v60  ;;  %5144 = vmatprep.mubr.f32.mxu0 %v3894_v60  ;;  %v6909_v13 = vpack.c.bf16 %v5450_v30, %v5449_v63  ;;  %v3914_v60 = vmax.f32 %v7109_v7, 0.0  ;;  %v3938_v7 = vmax.f32 %v7121_v52, 0.0  ;;  %v7122_v63 = vadd.f32 %v10889_v55, %v10977_v6 }
 0x43f   : > { %6895 = vmatpush1.bf16.msra.mxu1 %v6894_v53  ;;  %v7108_v53 = vadd.f32 %v10739_v15, %v10977_v6  ;;  %v3942_v30 = vmax.f32 %v7123_v19, 0.0  ;;  %v3945_v55 = vmax.f32 %v7124_v23, 0.0  ;;  %v11821_v19 = vld [vmem:[#allocation18_spill] sm:$0xff]  ;;  %v11823_v23 = vld [vmem:[#allocation20_spill] sm:$0xff] }
 0x440   : > { %6896 = vmatprep.subr.bf16.mxu1 %v11807_v11 }
 0x441   : > { %4631 = vmatmul.mubr.f32.gmra.mrb[140].mxu1 %v3893_v48  ;;  %5145 = vmatmul.mubr.f32.gmra.mrb[218].mxu0 %v3893_v48  ;;  %v3913_v15 = vmax.f32 %v7108_v53, 0.0  ;;  %v7110_v48 = vadd.f32 %v10769_v42, %v10977_v6 }
 0x442   : > { %4636 = vmatprep.mubr.f32.mxu1 %v3898_v14  ;;  %5150 = vmatprep.mubr.f32.mxu0 %v3898_v14  ;;  %v5453_v14 = vld [vmem:[%s11763_s9 + $0xc0] sm:$0xff] }
 0x443   : > { %6898 = vmatpush1.bf16.msra.mxu1 %v6897_v16  ;;  %v7113_v16 = vadd.f32 %v10808_v51, %v10971_v36  ;;  %v3917_v42 = vmax.f32 %v7110_v48, 0.0  ;;  %v6915_v51 = vpack.c.bf16 %v5454_v4, %v5453_v14  ;;  %v3958_v48 = vmax.f32 %v7131_v22, 0.0  ;;  %v11811_v4 = vld [vmem:[#allocation6_spill] sm:$0xff] }
 0x444   : > { %6899 = vmatprep.subr.bf16.mxu1 %v11807_v11 }
 0x445   : > { %4637 = vmatmul.mubr.f32.gmra.mrb[142].mxu1 %v3897_v25  ;;  %5151 = vmatmul.mubr.f32.gmra.mrb[220].mxu0 %v3897_v25  ;;  %v3922_v45 = vmax.f32 %v7113_v16, 0.0  ;;  %v7115_v25 = vadd.f32 %v10838_v49, %v10971_v36  ;;  %v11810_v16 = vld [vmem:[#allocation3_spill] sm:$0xff] }
 0x446   : > { %4642 = vmatprep.mubr.f32.mxu1 %v3902_v21  ;;  %5156 = vmatprep.mubr.f32.mxu0 %v3902_v21  ;;  %v7114_v21 = vadd.f32 %v10829_v43, %v10977_v6  ;;  %v7132_v40 = vadd.f32 %v11810_v16, %v10977_v6  ;;  %v5462_v16 = vld [vmem:[%s11763_s9 + $0x108] sm:$0xff] }
 0x447   : > { %6901 = vmatpush1.bf16.msra.mxu1 %v6900_v62  ;;  %v5456_v62 = vld [vmem:[%s11763_s9 + $0xd8] sm:$0xff]  ;;  %v3926_v56 = vmax.f32 %v7115_v25, 0.0 }
 0x448   : > { %6902 = vmatprep.subr.bf16.mxu1 %v11807_v11  ;;  %v6918_v49 = vpack.c.bf16 %v5456_v62, %v5455_v44  ;;  %v3925_v43 = vmax.f32 %v7114_v21, 0.0  ;;  %v3961_v5 = vmax.f32 %v7132_v40, 0.0  ;;  %v11813_v44 = vld [vmem:[#allocation10_spill] sm:$0xff]  ;;  %v11814_v21 = vld [vmem:[#allocation7_spill] sm:$0xff] }
 0x449   : > { %4643 = vmatmul.mubr.f32.gmra.mrb[144].mxu1 %v3901_v8  ;;  %5157 = vmatmul.mubr.f32.gmra.mrb[222].mxu0 %v3901_v8  ;;  %v5458_v8 = vld [vmem:[%s11763_s9 + $0xe8] sm:$0xff]  ;;  %v7137_v62 = vadd.f32 %v11813_v44, %v10971_v36 }
 0x44a   : > { %4648 = vmatprep.mubr.f32.mxu1 %v3906_v17  ;;  %5162 = vmatprep.mubr.f32.mxu0 %v3906_v17  ;;  %v6921_v50 = vpack.c.bf16 %v5458_v8, %v5457_v26  ;;  %v7119_v17 = vadd.f32 %v10880_v9, %v10971_v36  ;;  %v6924_v9 = vpack.c.bf16 %v5460_v18, %v5459_v12  ;;  %v11818_v18 = vld [vmem:[#allocation13_spill] sm:$0xff] }
 0x44b   : > { %6904 = vmatpush1.bf16.msra.mxu1 %v6903_v28  ;;  %v3930_v28 = vmax.f32 %v7117_v58, 0.0  ;;  %v11815_v58 = vld [vmem:[#allocation12_spill] sm:$0xff] }
 0x44c   : > { %6905 = vmatprep.subr.bf16.mxu1 %v11807_v11  ;;  %v7139_v26 = vadd.f32 %v11815_v58, %v10971_v36 }
 0x44d   : > { %4649 = vmatmul.mubr.f32.gmra.mrb[146].mxu1 %v3905_v34  ;;  %5163 = vmatmul.mubr.f32.gmra.mrb[224].mxu0 %v3905_v34  ;;  %v3934_v34 = vmax.f32 %v7119_v17, 0.0 }
 0x44e   : > { %4654 = vmatprep.mubr.f32.mxu1 %v3910_v41  ;;  %5168 = vmatprep.mubr.f32.mxu0 %v3910_v41  ;;  %v7120_v41 = vadd.f32 %v10883_v54, %v10977_v6  ;;  %v3941_v54 = vmax.f32 %v7122_v63, 0.0 }
 0x44f   : > { %6907 = vmatpush1.bf16.msra.mxu1 %v6906_v39  ;;  %v3933_v39 = vmax.f32 %v7118_v47, 0.0 }
 0x450   : > { %6908 = vmatprep.subr.bf16.mxu1 %v11807_v11  ;;  %v3937_v37 = vmax.f32 %v7120_v41, 0.0 }
 0x451   : > { %4655 = vmatmul.mubr.f32.gmra.mrb[148].mxu1 %v3909_v0  ;;  %5169 = vmatmul.mubr.f32.gmra.mrb[226].mxu0 %v3909_v0  ;;  %v7125_v0 = vadd.f32 %v10898_v3, %v10971_v36  ;;  %v7126_v3 = vadd.f32 %v10901_v27, %v10977_v6 }
 0x452   : > { %4660 = vmatprep.mubr.f32.mxu1 %v3914_v60  ;;  %5174 = vmatprep.mubr.f32.mxu0 %v3914_v60 }
 0x453   : > { %6910 = vmatpush1.bf16.msra.mxu1 %v6909_v13  ;;  %v3946_v53 = vmax.f32 %v7125_v0, 0.0  ;;  %v7127_v13 = vadd.f32 %v10904_v1, %v10971_v36  ;;  %v3949_v10 = vmax.f32 %v7126_v3, 0.0  ;;  %v7128_v1 = vadd.f32 %v10907_v57, %v10977_v6 }
 0x454   : > { %6911 = vmatprep.subr.bf16.mxu1 %v11807_v11 }
 0x455   : > { %4661 = vmatmul.mubr.f32.gmra.mrb[150].mxu1 %v3913_v15  ;;  %5175 = vmatmul.mubr.f32.gmra.mrb[228].mxu0 %v3913_v15  ;;  %v3950_v60 = vmax.f32 %v7127_v13, 0.0  ;;  %v3953_v27 = vmax.f32 %v7128_v1, 0.0  ;;  %v11808_v15 = vld [vmem:[#allocation2_spill] sm:$0xff]  ;;  %v7148_v1 = vadd.f32 %v10974_v59, %v10977_v6 }
 0x456   : > { %4666 = vmatprep.mubr.f32.mxu1 %v3918_v2  ;;  %5180 = vmatprep.mubr.f32.mxu0 %v3918_v2  ;;  %v7130_v35 = vadd.f32 %v11808_v15, %v10977_v6  ;;  %v11826_v15 = vld [vmem:[#allocation9_spill] sm:$0xff] }
 0x457   : > { %6913 = vmatpush1.bf16.msra.mxu1 %v6912_v29  ;;  %v11809_v29 = vld [vmem:[#allocation4_spill] sm:$0xff]  ;;  %v3993_v22 = vmax.f32 %v7148_v1, 0.0  ;;  %v11234_v59 = vrot.slane %v11226_v20, %v11826_v15 }
 0x458   : > { %6914 = vmatprep.subr.bf16.mxu1 %v11807_v11  ;;  %v7133_v2 = vadd.f32 %v11809_v29, %v10971_v36  ;;  %v3957_v57 = vmax.f32 %v7130_v35, 0.0 }
 0x459   : > { %4667 = vmatmul.mubr.f32.gmra.mrb[152].mxu1 %v3917_v42  ;;  %5181 = vmatmul.mubr.f32.gmra.mrb[230].mxu0 %v3917_v42  ;;  %v7135_v42 = vadd.f32 %v11811_v4, %v10971_v36 }
 0x45a   : > { %4672 = vmatprep.mubr.f32.mxu1 %v3922_v45  ;;  %5186 = vmatprep.mubr.f32.mxu0 %v3922_v45  ;;  %v3962_v14 = vmax.f32 %v7133_v2, 0.0 }
 0x45b   : > { %6916 = vmatpush1.bf16.msra.mxu1 %v6915_v51  ;;  %v11812_v51 = vld [vmem:[#allocation5_spill] sm:$0xff]  ;;  %v3966_v25 = vmax.f32 %v7135_v42, 0.0 }
 0x45c   : > { %6917 = vmatprep.subr.bf16.mxu1 %v11807_v11  ;;  %v7134_v45 = vadd.f32 %v11812_v51, %v10977_v6 }
 0x45d   : > { %4673 = vmatmul.mubr.f32.gmra.mrb[154].mxu1 %v3921_v24  ;;  %5187 = vmatmul.mubr.f32.gmra.mrb[232].mxu0 %v3921_v24 }
 0x45e   : > { %4678 = vmatprep.mubr.f32.mxu1 %v3926_v56  ;;  %5192 = vmatprep.mubr.f32.mxu0 %v3926_v56  ;;  %v3965_v24 = vmax.f32 %v7134_v45, 0.0  ;;  %v3970_v56 = vmax.f32 %v7137_v62, 0.0  ;;  %v5463_v62 = vld [vmem:[%s11763_s9 + $0x110] sm:$0xff] }
 0x45f   : > { %6919 = vmatpush1.bf16.msra.mxu1 %v6918_v49  ;;  %v7136_v49 = vadd.f32 %v11814_v21, %v10977_v6 }
 0x460   : > { %6920 = vmatprep.subr.bf16.mxu1 %v11807_v11 }
 0x461   : > { %4679 = vmatmul.mubr.f32.gmra.mrb[156].mxu1 %v3925_v43  ;;  %5193 = vmatmul.mubr.f32.gmra.mrb[234].mxu0 %v3925_v43  ;;  %v3969_v8 = vmax.f32 %v7136_v49, 0.0  ;;  %v11816_v43 = vld [vmem:[#allocation11_spill] sm:$0xff] }
 0x462   : > { %4684 = vmatprep.mubr.f32.mxu1 %v3930_v28  ;;  %5198 = vmatprep.mubr.f32.mxu0 %v3930_v28  ;;  %v7138_v33 = vadd.f32 %v11816_v43, %v10977_v6  ;;  %v11817_v28 = vld [vmem:[#allocation14_spill] sm:$0xff] }
 0x463   : > { %6922 = vmatpush1.bf16.msra.mxu1 %v6921_v50  ;;  %v3974_v50 = vmax.f32 %v7139_v26, 0.0  ;;  %v7141_v17 = vadd.f32 %v11817_v28, %v10971_v36  ;;  %v5465_v28 = vld [vmem:[%s11763_s9 + $0x120] sm:$0xff] }
 0x464   : > { %6923 = vmatprep.subr.bf16.mxu1 %v11807_v11  ;;  %v3973_v12 = vmax.f32 %v7138_v33, 0.0 }
 0x465   : > { %4685 = vmatmul.mubr.f32.gmra.mrb[158].mxu1 %v3929_v32  ;;  %5199 = vmatmul.mubr.f32.gmra.mrb[236].mxu0 %v3929_v32  ;;  %v7140_v32 = vadd.f32 %v11818_v18, %v10977_v6  ;;  %v3978_v47 = vmax.f32 %v7141_v17, 0.0  ;;  %v5466_v17 = vld [vmem:[%s11763_s9 + $0x128] sm:$0xff] }
 0x466   : > { %4690 = vmatprep.mubr.f32.mxu1 %v3934_v34  ;;  %5204 = vmatprep.mubr.f32.mxu0 %v3934_v34 }
 0x467   : > { %6925 = vmatpush1.bf16.msra.mxu1 %v6924_v9  ;;  %v11819_v9 = vld [vmem:[#allocation16_spill] sm:$0xff]  ;;  %v3977_v52 = vmax.f32 %v7140_v32, 0.0 }
 0x468   : > { %6926 = vmatprep.subr.bf16.mxu1 %v11807_v11  ;;  %v7143_v34 = vadd.f32 %v11819_v9, %v10971_v36  ;;  %v6933_v9 = vpack.c.bf16 %v5466_v17, %v5465_v28 }
 0x469   : > { %4691 = vmatmul.mubr.f32.gmra.mrb[160].mxu1 %v3933_v39  ;;  %5205 = vmatmul.mubr.f32.gmra.mrb[238].mxu0 %v3933_v39  ;;  %v11820_v39 = vld [vmem:[#allocation15_spill] sm:$0xff] }
 0x46a   : > { %4696 = vmatprep.mubr.f32.mxu1 %v3938_v7  ;;  %5210 = vmatprep.mubr.f32.mxu0 %v3938_v7  ;;  %v7142_v41 = vadd.f32 %v11820_v39, %v10977_v6  ;;  %v3982_v7 = vmax.f32 %v7143_v34, 0.0 }
 0x46c   : > { %v3981_v63 = vmax.f32 %v7142_v41, 0.0 }
 0x46d   : > { %4697 = vmatmul.mubr.f32.gmra.mrb[162].mxu1 %v3937_v37  ;;  %5211 = vmatmul.mubr.f32.gmra.mrb[240].mxu0 %v3937_v37  ;;  %v7145_v37 = vadd.f32 %v11821_v19, %v10971_v36  ;;  %v5468_v19 = vld [vmem:[%s11763_s9 + $0x138] sm:$0xff] }
 0x46e   : > { %4702 = vmatprep.mubr.f32.mxu1 %v3942_v30  ;;  %5216 = vmatprep.mubr.f32.mxu0 %v3942_v30  ;;  %v11822_v30 = vld [vmem:[#allocation17_spill] sm:$0xff] }
 0x46f   : > { %v7144_v0 = vadd.f32 %v11822_v30, %v10977_v6 }
 0x471   : > { %4703 = vmatmul.mubr.f32.gmra.mrb[164].mxu1 %v3941_v54  ;;  %5217 = vmatmul.mubr.f32.gmra.mrb[242].mxu0 %v3941_v54  ;;  %v3986_v54 = vmax.f32 %v7145_v37, 0.0  ;;  %v3985_v13 = vmax.f32 %v7144_v0, 0.0 }
 0x472   : > { %4708 = vmatprep.mubr.f32.mxu1 %v3946_v53  ;;  %5222 = vmatprep.mubr.f32.mxu0 %v3946_v53  ;;  %v7147_v53 = vadd.f32 %v11823_v23, %v10971_v36  ;;  %v11825_v36 = vld [vmem:[#allocation8_spill] sm:$0xff] }
 0x475   : > { %4709 = vmatmul.mubr.f32.gmra.mrb[166].mxu1 %v3945_v55  ;;  %5223 = vmatmul.mubr.f32.gmra.mrb[244].mxu0 %v3945_v55  ;;  %v11824_v55 = vld [vmem:[#allocation19_spill] sm:$0xff] }
 0x476   : > { %4714 = vmatprep.mubr.f32.mxu1 %v3950_v60  ;;  %5228 = vmatprep.mubr.f32.mxu0 %v3950_v60  ;;  %v7146_v3 = vadd.f32 %v11824_v55, %v10977_v6  ;;  %v3990_v60 = vmax.f32 %v7147_v53, 0.0 }
 0x479   : > { %4715 = vmatmul.mubr.f32.gmra.mrb[168].mxu1 %v3949_v10  ;;  %5229 = vmatmul.mubr.f32.gmra.mrb[246].mxu0 %v3949_v10  ;;  %v3989_v10 = vmax.f32 %v7146_v3, 0.0  ;;  %v5469_v3 = vld [vmem:[%s11763_s9 + $0x140] sm:$0xff] }
 0x47a   : > { %4720 = vmatprep.mubr.f32.mxu1 %v3954_v38  ;;  %5234 = vmatprep.mubr.f32.mxu0 %v3954_v38  ;;  %v3994_v38 = vmax.f32 %v7149_v61, 0.0 }
 0x47d   : > { %4721 = vmatmul.mubr.f32.gmra.mrb[170].mxu1 %v3953_v27  ;;  %5235 = vmatmul.mubr.f32.gmra.mrb[248].mxu0 %v3953_v27  ;;  %v11230_v27 = vrot.slane %v11226_v20, %v11825_v36 }
 0x47e   : > { %4726 = vmatprep.mubr.f32.mxu1 %v3958_v48  ;;  %5240 = vmatprep.mubr.f32.mxu0 %v3958_v48 }
 0x481   : > { %4727 = vmatmul.mubr.f32.gmra.mrb[172].mxu1 %v3957_v57  ;;  %5241 = vmatmul.mubr.f32.gmra.mrb[250].mxu0 %v3957_v57  ;;  %v5461_v57 = vld [vmem:[%s11763_s9 + $0x100] sm:$0xff] }
 0x482   : > { %4732 = vmatprep.mubr.f32.mxu1 %v3962_v14  ;;  %5246 = vmatprep.mubr.f32.mxu0 %v3962_v14 }
 0x485   : > { %4733 = vmatmul.mubr.f32.gmra.mrb[174].mxu1 %v3961_v5  ;;  %5247 = vmatmul.mubr.f32.gmra.mrb[252].mxu0 %v3961_v5  ;;  %v6927_v5 = vpack.c.bf16 %v5462_v16, %v5461_v57  ;;  %v5472_v57 = vld [vmem:[%s11763_s9 + $0x158] sm:$0xff] }
 0x486   : > { %4738 = vmatprep.mubr.f32.mxu1 %v3966_v25  ;;  %5252 = vmatprep.mubr.f32.mxu0 %v3966_v25 }
 0x489   : > { %4739 = vmatmul.mubr.f32.gmra.mrb[176].mxu1 %v3965_v24  ;;  %5253 = vmatmul.mubr.f32.gmra.mrb[254].mxu0 %v3965_v24  ;;  %v5464_v24 = vld [vmem:[%s11763_s9 + $0x118] sm:$0xff] }
 0x48a   : > { %4744 = vmatprep.mubr.f32.mxu1 %v3970_v56  ;;  %5258 = vmatprep.mubr.f32.mxu0 %v3970_v56  ;;  %v6930_v26 = vpack.c.bf16 %v5464_v24, %v5463_v62  ;;  %v5473_v24 = vld [vmem:[%s11763_s9 + $0x160] sm:$0xff] }
 0x48d   : > { %4745 = vmatmul.mubr.f32.gmra.mrb[178].mxu1 %v3969_v8  ;;  %5259 = vmatmul.mubr.f32.gmra.mrb[0].mxu0 %v3969_v8 }
 0x48e   : > { %4750 = vmatprep.mubr.f32.mxu1 %v3974_v50  ;;  %5264 = vmatprep.mubr.f32.mxu0 %v3974_v50 }
 0x491   : > { %4751 = vmatmul.mubr.f32.gmra.mrb[180].mxu1 %v3973_v12  ;;  %5265 = vmatmul.mubr.f32.gmra.mrb[2].mxu0 %v3973_v12 }
 0x492   : > { %4756 = vmatprep.mubr.f32.mxu1 %v3978_v47  ;;  %5270 = vmatprep.mubr.f32.mxu0 %v3978_v47 }
 0x495   : > { %4757 = vmatmul.mubr.f32.gmra.mrb[182].mxu1 %v3977_v52  ;;  %5271 = vmatmul.mubr.f32.gmra.mrb[4].mxu0 %v3977_v52 }
 0x496   : > { %4762 = vmatprep.mubr.f32.mxu1 %v3982_v7  ;;  %5276 = vmatprep.mubr.f32.mxu0 %v3982_v7  ;;  %v5467_v7 = vld [vmem:[%s11763_s9 + $0x130] sm:$0xff] }
 0x499   : > { %4763 = vmatmul.mubr.f32.gmra.mrb[184].mxu1 %v3981_v63  ;;  %5277 = vmatmul.mubr.f32.gmra.mrb[6].mxu0 %v3981_v63 }
 0x49a   : > { %4768 = vmatprep.mubr.f32.mxu1 %v3986_v54  ;;  %5282 = vmatprep.mubr.f32.mxu0 %v3986_v54  ;;  %v6936_v54 = vpack.c.bf16 %v5468_v19, %v5467_v7 }
 0x49d   : > { %4769 = vmatmul.mubr.f32.gmra.mrb[186].mxu1 %v3985_v13  ;;  %5283 = vmatmul.mubr.f32.gmra.mrb[8].mxu0 %v3985_v13 }
 0x49e   : > { %4774 = vmatprep.mubr.f32.mxu1 %v3990_v60  ;;  %5288 = vmatprep.mubr.f32.mxu0 %v3990_v60  ;;  %v5470_v60 = vld [vmem:[%s11763_s9 + $0x148] sm:$0xff] }
 0x4a1   : > { %4775 = vmatmul.mubr.f32.gmra.mrb[188].mxu1 %v3989_v10  ;;  %5289 = vmatmul.mubr.f32.gmra.mrb[10].mxu0 %v3989_v10 }
 0x4a2   : > { %4780 = vmatprep.mubr.f32.mxu1 %v3994_v38  ;;  %5294 = vmatprep.mubr.f32.mxu0 %v3994_v38 }
 0x4a5   : > { %4781 = vmatmul.mubr.f32.gmra.mrb[190].mxu1 %v3993_v22  ;;  %5295 = vmatmul.mubr.f32.gmra.mrb[12].mxu0 %v3993_v22  ;;  %v6939_v22 = vpack.c.bf16 %v5470_v60, %v5469_v3 }
 0x4fc   : > { %v4596_v6 = vpop.f32.mrb[128].mxu1  ;;  %v11236_v35 = vpop.f32.mrb[206].mxu0 }
 0x4fd   : > { %v7150_v48 = vadd.f32 %v4596_v6, %v11230_v27  ;;  %v4598_v29 = vpop.f32.mrb[129].mxu1  ;;  %v11239_v2 = vpop.f32.mrb[207].mxu0 }
 0x4fe   : > { %v7151_v40 = vadd.f32 %v4598_v29, %v11234_v59  ;;  %v5471_v29 = vld [vmem:[%s11763_s9 + $0x150] sm:$0xff] }
 0x4ff   : > { %v5301_v51 = vmax.f32 %v7150_v48, 0.0 }
 0x500   : > { %v5302_v14 = vmax.f32 %v7151_v40, 0.0  ;;  %v4602_v4 = vpop.f32.mrb[130].mxu1  ;;  %v11248_v42 = vpop.f32.mrb[208].mxu0 }
 0x501   : > { %v7152_v45 = vadd.f32 %v4602_v4, %v11230_v27  ;;  %v4604_v25 = vpop.f32.mrb[131].mxu1  ;;  %v11251_v44 = vpop.f32.mrb[209].mxu0 }
 0x502   : > { %v7153_v21 = vadd.f32 %v4604_v25, %v11234_v59  ;;  %5564 = vmatprep.mubr.f32.mxu1 %v5302_v14 }
 0x503   : > { %5565 = vmatmul.mubr.f32.vlgmr.msra.gmra.mrb[192].mxu1 %v5301_v51  ;;  %v5305_v8 = vmax.f32 %v7152_v45, 0.0 }
 0x504   : > { %v5306_v49 = vmax.f32 %v7153_v21, 0.0  ;;  %6928 = vmatpush1.bf16.msra.mxu1 %v6927_v5  ;;  %v4608_v56 = vpop.f32.mrb[132].mxu1  ;;  %v11260_v58 = vpop.f32.mrb[210].mxu0  ;;  %v6942_v5 = vpack.c.bf16 %v5472_v57, %v5471_v29  ;;  %v5474_v21 = vld [vmem:[%s11763_s9 + $0x168] sm:$0xff] }
 0x505   : > { %v7154_v43 = vadd.f32 %v4608_v56, %v11230_v27  ;;  %v4610_v33 = vpop.f32.mrb[133].mxu1  ;;  %v11263_v50 = vpop.f32.mrb[211].mxu0  ;;  %6929 = vmatprep.subr.bf16.mxu1 %v11807_v11 }
 0x506   : > { %v7155_v12 = vadd.f32 %v4610_v33, %v11234_v59  ;;  %5569 = vmatprep.mubr.f32.mxu1 %v5306_v49 }
 0x507   : > { %5570 = vmatmul.mubr.f32.gmra.mrb[194].mxu1 %v5305_v8  ;;  %v5309_v34 = vmax.f32 %v7154_v43, 0.0  ;;  %v6945_v43 = vpack.c.bf16 %v5474_v21, %v5473_v24  ;;  %v5481_v24 = vld [vmem:[%s11763_s9 + $0x1a0] sm:$0xff]  ;;  %v5482_v21 = vld [vmem:[%s11763_s9 + $0x1a8] sm:$0xff] }
 0x508   : > { %v5310_v18 = vmax.f32 %v7155_v12, 0.0  ;;  %v4614_v32 = vpop.f32.mrb[134].mxu1  ;;  %v11273_v47 = vpop.f32.mrb[212].mxu0  ;;  %6931 = vmatpush1.bf16.msra.mxu1 %v6930_v26 }
 0x509   : > { %v7156_v52 = vadd.f32 %v4614_v32, %v11230_v27  ;;  %v4616_v39 = vpop.f32.mrb[135].mxu1  ;;  %v11276_v41 = vpop.f32.mrb[213].mxu0  ;;  %6932 = vmatprep.subr.bf16.mxu1 %v11807_v11  ;;  %v5476_v32 = vld [vmem:[%s11763_s9 + $0x178] sm:$0xff] }
 0x50a   : > { %v7157_v37 = vadd.f32 %v4616_v39, %v11234_v59  ;;  %5574 = vmatprep.mubr.f32.mxu1 %v5310_v18  ;;  %v5475_v18 = vld [vmem:[%s11763_s9 + $0x170] sm:$0xff] }
 0x50b   : > { %5575 = vmatmul.mubr.f32.gmra.mrb[196].mxu1 %v5309_v34  ;;  %v5313_v23 = vmax.f32 %v7156_v52, 0.0  ;;  %v6948_v7 = vpack.c.bf16 %v5476_v32, %v5475_v18 }
 0x50c   : > { %v5314_v63 = vmax.f32 %v7157_v37, 0.0  ;;  %v4620_v30 = vpop.f32.mrb[136].mxu1  ;;  %v11286_v0 = vpop.f32.mrb[214].mxu0  ;;  %6934 = vmatpush1.bf16.msra.mxu1 %v6933_v9 }
 0x50d   : > { %v7158_v53 = vadd.f32 %v4620_v30, %v11230_v27  ;;  %v4622_v13 = vpop.f32.mrb[137].mxu1  ;;  %v11289_v55 = vpop.f32.mrb[215].mxu0  ;;  %6935 = vmatprep.subr.bf16.mxu1 %v11807_v11 }
 0x50e   : > { %v7159_v61 = vadd.f32 %v4622_v13, %v11234_v59  ;;  %5579 = vmatprep.mubr.f32.mxu1 %v5314_v63 }
 0x50f   : > { %5580 = vmatmul.mubr.f32.gmra.mrb[198].mxu1 %v5313_v23  ;;  %v5317_v36 = vmax.f32 %v7158_v53, 0.0  ;;  %v5478_v23 = vld [vmem:[%s11763_s9 + $0x188] sm:$0xff] }
 0x510   : > { %v5318_v10 = vmax.f32 %v7159_v61, 0.0  ;;  %v4626_v1 = vpop.f32.mrb[138].mxu1  ;;  %v11299_v38 = vpop.f32.mrb[216].mxu0  ;;  %6937 = vmatpush1.bf16.msra.mxu1 %v6936_v54  ;;  %v5477_v54 = vld [vmem:[%s11763_s9 + $0x180] sm:$0xff] }
 0x511   : > { %v7160_v15 = vadd.f32 %v4626_v1, %v11230_v27  ;;  %v4628_v6 = vpop.f32.mrb[139].mxu1  ;;  %v11302_v48 = vpop.f32.mrb[217].mxu0  ;;  %6938 = vmatprep.subr.bf16.mxu1 %v11807_v11  ;;  %v6951_v61 = vpack.c.bf16 %v5478_v23, %v5477_v54 }
 0x512   : > { %v7161_v16 = vadd.f32 %v4628_v6, %v11234_v59  ;;  %5584 = vmatprep.mubr.f32.mxu1 %v5318_v10  ;;  %v5480_v6 = vld [vmem:[%s11763_s9 + $0x198] sm:$0xff] }
 0x513   : > { %5585 = vmatmul.mubr.f32.gmra.mrb[200].mxu1 %v5317_v36  ;;  %v5321_v51 = vmax.f32 %v7160_v15, 0.0  ;;  %v5479_v15 = vld [vmem:[%s11763_s9 + $0x190] sm:$0xff] }
 0x514   : > { %v5322_v40 = vmax.f32 %v7161_v16, 0.0  ;;  %v4632_v14 = vpop.f32.mrb[140].mxu1  ;;  %v11312_v4 = vpop.f32.mrb[218].mxu0  ;;  %6940 = vmatpush1.bf16.msra.mxu1 %v6939_v22 }
 0x515   : > { %v7162_v45 = vadd.f32 %v4632_v14, %v11230_v27  ;;  %v4634_v25 = vpop.f32.mrb[141].mxu1  ;;  %v11315_v62 = vpop.f32.mrb[219].mxu0  ;;  %6941 = vmatprep.subr.bf16.mxu1 %v11807_v11  ;;  %v6954_v14 = vpack.c.bf16 %v5480_v6, %v5479_v15 }
 0x516   : > { %v7163_v49 = vadd.f32 %v4634_v25, %v11234_v59  ;;  %5589 = vmatprep.mubr.f32.mxu1 %v5322_v40 }
 0x517   : > { %5590 = vmatmul.mubr.f32.gmra.mrb[202].mxu1 %v5321_v51  ;;  %v5325_v33 = vmax.f32 %v7162_v45, 0.0 }
 0x518   : > { %v5326_v56 = vmax.f32 %v7163_v49, 0.0  ;;  %v4638_v26 = vpop.f32.mrb[142].mxu1  ;;  %v11325_v8 = vpop.f32.mrb[220].mxu0  ;;  %6943 = vmatpush1.bf16.msra.mxu1 %v6942_v5 }
 0x519   : > { %v7164_v28 = vadd.f32 %v4638_v26, %v11230_v27  ;;  %v4640_v17 = vpop.f32.mrb[143].mxu1  ;;  %v11328_v12 = vpop.f32.mrb[221].mxu0  ;;  %6944 = vmatprep.subr.bf16.mxu1 %v11807_v11 }
 0x51a   : > { %v7165_v9 = vadd.f32 %v4640_v17, %v11234_v59  ;;  %5594 = vmatprep.mubr.f32.mxu1 %v5326_v56 }
 0x51b   : > { %5595 = vmatmul.mubr.f32.gmra.mrb[204].mxu1 %v5325_v33  ;;  %v5329_v19 = vmax.f32 %v7164_v28, 0.0  ;;  %v6957_v33 = vpack.c.bf16 %v5482_v21, %v5481_v24 }
 0x51c   : > { %v5330_v34 = vmax.f32 %v7165_v9, 0.0  ;;  %v4644_v52 = vpop.f32.mrb[144].mxu1  ;;  %v11338_v39 = vpop.f32.mrb[222].mxu0  ;;  %6946 = vmatpush1.bf16.msra.mxu1 %v6945_v43  ;;  %v5483_v9 = vld [vmem:[%s11763_s9 + $0x1b0] sm:$0xff] }
 0x51d   : > { %v7166_v37 = vadd.f32 %v4644_v52, %v11230_v27  ;;  %v4646_v63 = vpop.f32.mrb[145].mxu1  ;;  %v11341_v30 = vpop.f32.mrb[223].mxu0  ;;  %6947 = vmatprep.subr.bf16.mxu1 %v11807_v11 }
 0x51e   : > { %v7167_v53 = vadd.f32 %v4646_v63, %v11234_v59  ;;  %5599 = vmatprep.mubr.f32.mxu1 %v5330_v34  ;;  %v5484_v34 = vld [vmem:[%s11763_s9 + $0x1b8] sm:$0xff] }
 0x51f   : > { %5600 = vmatmul.mubr.f32.gmra.mrb[206].mxu1 %v5329_v19  ;;  %v5333_v10 = vmax.f32 %v7166_v37, 0.0  ;;  %v6960_v63 = vpack.c.bf16 %v5484_v34, %v5483_v9  ;;  %v5490_v9 = vld [vmem:[%s11763_s9 + $0x1e8] sm:$0xff] }
 0x520   : > { %v5334_v13 = vmax.f32 %v7167_v53, 0.0  ;;  %v4650_v3 = vpop.f32.mrb[146].mxu1  ;;  %v11351_v60 = vpop.f32.mrb[224].mxu0  ;;  %6949 = vmatpush1.bf16.msra.mxu1 %v6948_v7 }
 0x521   : > { %v7168_v1 = vadd.f32 %v4650_v3, %v11230_v27  ;;  %v4652_v22 = vpop.f32.mrb[147].mxu1  ;;  %v11354_v36 = vpop.f32.mrb[225].mxu0  ;;  %6950 = vmatprep.subr.bf16.mxu1 %v11807_v11  ;;  %v5485_v3 = vld [vmem:[%s11763_s9 + $0x1c0] sm:$0xff] }
 0x522   : > { %v7169_v29 = vadd.f32 %v4652_v22, %v11234_v59  ;;  %5604 = vmatprep.mubr.f32.mxu1 %v5334_v13 }
 0x523   : > { %5605 = vmatmul.mubr.f32.gmra.mrb[208].mxu1 %v5333_v10  ;;  %v5337_v5 = vmax.f32 %v7168_v1, 0.0 }
 0x524   : > { %v5338_v57 = vmax.f32 %v7169_v29, 0.0  ;;  %v4656_v16 = vpop.f32.mrb[148].mxu1  ;;  %v11364_v40 = vpop.f32.mrb[226].mxu0  ;;  %6952 = vmatpush1.bf16.msra.mxu1 %v6951_v61  ;;  %v5486_v61 = vld [vmem:[%s11763_s9 + $0x1c8] sm:$0xff] }
 0x525   : > { %v7170_v51 = vadd.f32 %v4656_v16, %v11230_v27  ;;  %v4658_v45 = vpop.f32.mrb[149].mxu1  ;;  %v11367_v25 = vpop.f32.mrb[227].mxu0  ;;  %6953 = vmatprep.subr.bf16.mxu1 %v11807_v11  ;;  %v6963_v6 = vpack.c.bf16 %v5486_v61, %v5485_v3  ;;  %v5491_v61 = vld [vmem:[%s11763_s9 + $0x1f0] sm:$0xff] }
 0x526   : > { %v7171_v49 = vadd.f32 %v4658_v45, %v11234_v59  ;;  %5609 = vmatprep.mubr.f32.mxu1 %v5338_v57 }
 0x527   : > { %5610 = vmatmul.mubr.f32.gmra.mrb[210].mxu1 %v5337_v5  ;;  %v5341_v28 = vmax.f32 %v7170_v51, 0.0  ;;  %v5487_v5 = vld [vmem:[%s11763_s9 + $0x1d0] sm:$0xff]  ;;  %v5488_v51 = vld [vmem:[%s11763_s9 + $0x1d8] sm:$0xff] }
 0x528   : > { %v5342_v56 = vmax.f32 %v7171_v49, 0.0  ;;  %v4662_v26 = vpop.f32.mrb[150].mxu1  ;;  %v11377_v43 = vpop.f32.mrb[228].mxu0  ;;  %6955 = vmatpush1.bf16.msra.mxu1 %v6954_v14 }
 0x529   : > { %v7172_v17 = vadd.f32 %v4662_v26, %v11230_v27  ;;  %v4664_v18 = vpop.f32.mrb[151].mxu1  ;;  %v11380_v32 = vpop.f32.mrb[229].mxu0  ;;  %6956 = vmatprep.subr.bf16.mxu1 %v11807_v11 }
 0x52a   : > { %v7173_v52 = vadd.f32 %v4664_v18, %v11234_v59  ;;  %5614 = vmatprep.mubr.f32.mxu1 %v5342_v56  ;;  %v6966_v56 = vpack.c.bf16 %v5488_v51, %v5487_v5  ;;  %v5489_v18 = vld [vmem:[%s11763_s9 + $0x1e0] sm:$0xff] }
 0x52b   : > { %5615 = vmatmul.mubr.f32.gmra.mrb[212].mxu1 %v5341_v28  ;;  %v5345_v54 = vmax.f32 %v7172_v17, 0.0 }
 0x52c   : > { %v5346_v7 = vmax.f32 %v7173_v52, 0.0  ;;  %v4668_v19 = vpop.f32.mrb[152].mxu1  ;;  %v11390_v37 = vpop.f32.mrb[230].mxu0  ;;  %6958 = vmatpush1.bf16.msra.mxu1 %v6957_v33 }
 0x52d   : > { %v7174_v23 = vadd.f32 %v4668_v19, %v11230_v27  ;;  %v4670_v53 = vpop.f32.mrb[153].mxu1  ;;  %v11393_v13 = vpop.f32.mrb[231].mxu0  ;;  %6959 = vmatprep.subr.bf16.mxu1 %v11807_v11 }
 0x52e   : > { %v7175_v10 = vadd.f32 %v4670_v53, %v11234_v59  ;;  %5619 = vmatprep.mubr.f32.mxu1 %v5346_v7 }
 0x52f   : > { %5620 = vmatmul.mubr.f32.gmra.mrb[214].mxu1 %v5345_v54  ;;  %v5349_v29 = vmax.f32 %v7174_v23, 0.0 }
 0x530   : > { %v5350_v1 = vmax.f32 %v7175_v10, 0.0  ;;  %v4674_v22 = vpop.f32.mrb[154].mxu1  ;;  %v11403_v15 = vpop.f32.mrb[232].mxu0  ;;  %6961 = vmatpush1.bf16.msra.mxu1 %v6960_v63  ;;  %v6969_v63 = vpack.c.bf16 %v5490_v9, %v5489_v18  ;;  %v5492_v10 = vld [vmem:[%s11763_s9 + $0x1f8] sm:$0xff] }
 0x531   : > { %v7176_v57 = vadd.f32 %v4674_v22, %v11230_v27  ;;  %v4676_v16 = vpop.f32.mrb[155].mxu1  ;;  %v11406_v14 = vpop.f32.mrb[233].mxu0  ;;  %6962 = vmatprep.subr.bf16.mxu1 %v11807_v11 }
 0x532   : > { %v7177_v45 = vadd.f32 %v4676_v16, %v11234_v59  ;;  %5624 = vmatprep.mubr.f32.mxu1 %v5350_v1 }
 0x533   : > { %5625 = vmatmul.mubr.f32.gmra.mrb[216].mxu1 %v5349_v29  ;;  %v5353_v26 = vmax.f32 %v7176_v57, 0.0  ;;  %v6972_v57 = vpack.c.bf16 %v5492_v10, %v5491_v61 }
 0x534   : > { %v5354_v24 = vmax.f32 %v7177_v45, 0.0  ;;  %v4680_v21 = vpop.f32.mrb[156].mxu1  ;;  %v11416_v49 = vpop.f32.mrb[234].mxu0  ;;  %6964 = vmatpush1.bf16.msra.mxu1 %v6963_v6 }
 0x535   : > { %v7178_v33 = vadd.f32 %v4680_v21, %v11230_v27  ;;  %v4682_v28 = vpop.f32.mrb[157].mxu1  ;;  %v11419_v17 = vpop.f32.mrb[235].mxu0  ;;  %6965 = vmatprep.subr.bf16.mxu1 %v11807_v11 }
 0x536   : > { %v7179_v34 = vadd.f32 %v4682_v28, %v11234_v59  ;;  %5629 = vmatprep.mubr.f32.mxu1 %v5354_v24 }
 0x537   : > { %5630 = vmatmul.mubr.f32.gmra.mrb[218].mxu1 %v5353_v26  ;;  %v5357_v54 = vmax.f32 %v7178_v33, 0.0 }
 0x538   : > { %v5358_v52 = vmax.f32 %v7179_v34, 0.0  ;;  %v4686_v7 = vpop.f32.mrb[158].mxu1  ;;  %v11429_v19 = vpop.f32.mrb[236].mxu0  ;;  %6967 = vmatpush1.bf16.msra.mxu1 %v6966_v56 }
 0x539   : > { %v7180_v23 = vadd.f32 %v4686_v7, %v11230_v27  ;;  %v4688_v53 = vpop.f32.mrb[159].mxu1  ;;  %v11432_v3 = vpop.f32.mrb[237].mxu0  ;;  %6968 = vmatprep.subr.bf16.mxu1 %v11807_v11 }
 0x53a   : > { %v7181_v1 = vadd.f32 %v4688_v53, %v11234_v59  ;;  %5634 = vmatprep.mubr.f32.mxu1 %v5358_v52 }
 0x53b   : > { %5635 = vmatmul.mubr.f32.gmra.mrb[220].mxu1 %v5357_v54  ;;  %v5361_v16 = vmax.f32 %v7180_v23, 0.0 }
 0x53c   : > { %v5362_v22 = vmax.f32 %v7181_v1, 0.0  ;;  %v4692_v6 = vpop.f32.mrb[160].mxu1  ;;  %v11442_v29 = vpop.f32.mrb[238].mxu0  ;;  %6970 = vmatpush1.bf16.msra.mxu1 %v6969_v63 }
 0x53d   : > { %v7182_v5 = vadd.f32 %v4692_v6, %v11230_v27  ;;  %v4694_v51 = vpop.f32.mrb[161].mxu1  ;;  %v11445_v45 = vpop.f32.mrb[239].mxu0  ;;  %6971 = vmatprep.subr.bf16.mxu1 %v11807_v11 }
 0x53e   : > { %v7183_v24 = vadd.f32 %v4694_v51, %v11234_v59  ;;  %5639 = vmatprep.mubr.f32.mxu1 %v5362_v22 }
 0x53f   : > { %5640 = vmatmul.mubr.f32.gmra.mrb[222].mxu1 %v5361_v16  ;;  %v5365_v33 = vmax.f32 %v7182_v5, 0.0 }
 0x540   : > { %v5366_v21 = vmax.f32 %v7183_v24, 0.0  ;;  %v4698_v56 = vpop.f32.mrb[162].mxu1  ;;  %v11449_v26 = vpop.f32.mrb[240].mxu0  ;;  %6973 = vmatpush1.bf16.msra.mxu1 %v6972_v57 }
 0x541   : > { %v7184_v28 = vadd.f32 %v4698_v56, %v11230_v27  ;;  %v4700_v18 = vpop.f32.mrb[163].mxu1  ;;  %v11452_v9 = vpop.f32.mrb[241].mxu0 }
 0x542   : > { %v7185_v34 = vadd.f32 %v4700_v18, %v11234_v59  ;;  %5644 = vmatprep.mubr.f32.mxu1 %v5366_v21 }
 0x543   : > { %5645 = vmatmul.mubr.f32.gmra.mrb[224].mxu1 %v5365_v33  ;;  %v5369_v63 = vmax.f32 %v7184_v28, 0.0 }
 0x544   : > { %v5370_v11 = vmax.f32 %v7185_v34, 0.0  ;;  %v4704_v52 = vpop.f32.mrb[164].mxu1  ;;  %v11455_v7 = vpop.f32.mrb[242].mxu0 }
 0x545   : > { %v7186_v54 = vadd.f32 %v4704_v52, %v11230_v27  ;;  %v4706_v23 = vpop.f32.mrb[165].mxu1  ;;  %v11458_v53 = vpop.f32.mrb[243].mxu0 }
 0x546   : > { %v7187_v61 = vadd.f32 %v4706_v23, %v11234_v59  ;;  %5649 = vmatprep.mubr.f32.mxu1 %v5370_v11 }
 0x547   : > { %5650 = vmatmul.mubr.f32.gmra.mrb[226].mxu1 %v5369_v63  ;;  %v5373_v6 = vmax.f32 %v7186_v54, 0.0 }
 0x548   : > { %v5374_v10 = vmax.f32 %v7187_v61, 0.0  ;;  %v4710_v1 = vpop.f32.mrb[166].mxu1  ;;  %v11461_v22 = vpop.f32.mrb[244].mxu0 }
 0x549   : > { %v7188_v57 = vadd.f32 %v4710_v1, %v11230_v27  ;;  %v4712_v16 = vpop.f32.mrb[167].mxu1  ;;  %v11464_v5 = vpop.f32.mrb[245].mxu0 }
 0x54a   : > { %v7189_v51 = vadd.f32 %v4712_v16, %v11234_v59  ;;  %5654 = vmatprep.mubr.f32.mxu1 %v5374_v10 }
 0x54b   : > { %5655 = vmatmul.mubr.f32.gmra.mrb[228].mxu1 %v5373_v6  ;;  %v5377_v33 = vmax.f32 %v7188_v57, 0.0 }
 0x54c   : > { %v5378_v24 = vmax.f32 %v7189_v51, 0.0  ;;  %v4716_v21 = vpop.f32.mrb[168].mxu1  ;;  %v11467_v56 = vpop.f32.mrb[246].mxu0 }
 0x54d   : > { %v7190_v28 = vadd.f32 %v4716_v21, %v11230_v27  ;;  %v4718_v18 = vpop.f32.mrb[169].mxu1  ;;  %v11470_v34 = vpop.f32.mrb[247].mxu0 }
 0x54e   : > { %v7191_v11 = vadd.f32 %v4718_v18, %v11234_v59  ;;  %5659 = vmatprep.mubr.f32.mxu1 %v5378_v24 }
 0x54f   : > { %5660 = vmatmul.mubr.f32.gmra.mrb[230].mxu1 %v5377_v33  ;;  %v5381_v23 = vmax.f32 %v7190_v28, 0.0 }
 0x550   : > { %v5382_v52 = vmax.f32 %v7191_v11, 0.0  ;;  %v4722_v63 = vpop.f32.mrb[170].mxu1  ;;  %v11473_v54 = vpop.f32.mrb[248].mxu0 }
 0x551   : > { %11827 = vst [vmem:[#allocation2_spill] sm:$0xff] %v11473_v54  ;;  %v7192_v61 = vadd.f32 %v4722_v63, %v11230_v27  ;;  %v4724_v10 = vpop.f32.mrb[171].mxu1  ;;  %v11476_v1 = vpop.f32.mrb[249].mxu0 }
 0x552   : > { %v7193_v6 = vadd.f32 %v4724_v10, %v11234_v59  ;;  %5664 = vmatprep.mubr.f32.mxu1 %v5382_v52 }
 0x553   : > { %5665 = vmatmul.mubr.f32.gmra.mrb[232].mxu1 %v5381_v23  ;;  %v5385_v24 = vmax.f32 %v7192_v61, 0.0 }
 0x554   : > { %v5386_v57 = vmax.f32 %v7193_v6, 0.0  ;;  %v4728_v16 = vpop.f32.mrb[172].mxu1  ;;  %v11479_v51 = vpop.f32.mrb[250].mxu0 }
 0x555   : > { %11828 = vst [vmem:[#allocation4_spill] sm:$0xff] %v11479_v51  ;;  %v7194_v21 = vadd.f32 %v4728_v16, %v11230_v27  ;;  %v4730_v33 = vpop.f32.mrb[173].mxu1  ;;  %v11482_v18 = vpop.f32.mrb[251].mxu0 }
 0x556   : > { %11829 = vst [vmem:[#allocation3_spill] sm:$0xff] %v11482_v18  ;;  %v7195_v28 = vadd.f32 %v4730_v33, %v11234_v59  ;;  %5669 = vmatprep.mubr.f32.mxu1 %v5386_v57 }
 0x557   : > { %5670 = vmatmul.mubr.f32.gmra.mrb[234].mxu1 %v5385_v24  ;;  %v5389_v52 = vmax.f32 %v7194_v21, 0.0 }
 0x558   : > { %v5390_v11 = vmax.f32 %v7195_v28, 0.0  ;;  %v4734_v63 = vpop.f32.mrb[174].mxu1  ;;  %v11485_v54 = vpop.f32.mrb[252].mxu0 }
 0x559   : > { %11830 = vst [vmem:[#allocation6_spill] sm:$0xff] %v11485_v54  ;;  %v7196_v23 = vadd.f32 %v4734_v63, %v11230_v27  ;;  %v4736_v10 = vpop.f32.mrb[175].mxu1  ;;  %v11488_v6 = vpop.f32.mrb[253].mxu0 }
 0x55a   : > { %11831 = vst [vmem:[#allocation5_spill] sm:$0xff] %v11488_v6  ;;  %v7197_v61 = vadd.f32 %v4736_v10, %v11234_v59  ;;  %5674 = vmatprep.mubr.f32.mxu1 %v5390_v11 }
 0x55b   : > { %5675 = vmatmul.mubr.f32.gmra.mrb[236].mxu1 %v5389_v52  ;;  %v5393_v57 = vmax.f32 %v7196_v23, 0.0 }
 0x55c   : > { %v5394_v16 = vmax.f32 %v7197_v61, 0.0  ;;  %v4740_v51 = vpop.f32.mrb[176].mxu1  ;;  %v11491_v18 = vpop.f32.mrb[254].mxu0 }
 0x55d   : > { %11832 = vst [vmem:[#allocation10_spill] sm:$0xff] %v11491_v18  ;;  %v7198_v24 = vadd.f32 %v4740_v51, %v11230_v27  ;;  %v4742_v33 = vpop.f32.mrb[177].mxu1  ;;  %v11494_v28 = vpop.f32.mrb[255].mxu0 }
 0x55e   : > { %11833 = vst [vmem:[#allocation7_spill] sm:$0xff] %v11494_v28  ;;  %v7199_v21 = vadd.f32 %v4742_v33, %v11234_v59  ;;  %5679 = vmatprep.mubr.f32.mxu1 %v5394_v16 }
 0x55f   : > { %5680 = vmatmul.mubr.f32.gmra.mrb[238].mxu1 %v5393_v57  ;;  %v5397_v11 = vmax.f32 %v7198_v24, 0.0 }
 0x560   : > { %v5398_v63 = vmax.f32 %v7199_v21, 0.0  ;;  %v4746_v54 = vpop.f32.mrb[178].mxu1  ;;  %v11497_v6 = vpop.f32.mrb[0].mxu0 }
 0x561   : > { %11834 = vst [vmem:[#allocation12_spill] sm:$0xff] %v11497_v6  ;;  %v7200_v52 = vadd.f32 %v4746_v54, %v11230_v27  ;;  %v4748_v10 = vpop.f32.mrb[179].mxu1  ;;  %v11500_v61 = vpop.f32.mrb[1].mxu0 }
 0x562   : > { %11835 = vst [vmem:[#allocation11_spill] sm:$0xff] %v11500_v61  ;;  %v7201_v23 = vadd.f32 %v4748_v10, %v11234_v59  ;;  %5684 = vmatprep.mubr.f32.mxu1 %v5398_v63 }
 0x563   : > { %5685 = vmatmul.mubr.f32.gmra.mrb[240].mxu1 %v5397_v11  ;;  %v5401_v16 = vmax.f32 %v7200_v52, 0.0 }
 0x564   : > { %v5402_v51 = vmax.f32 %v7201_v23, 0.0  ;;  %v4752_v18 = vpop.f32.mrb[180].mxu1  ;;  %v11503_v28 = vpop.f32.mrb[2].mxu0 }
 0x565   : > { %11836 = vst [vmem:[#allocation14_spill] sm:$0xff] %v11503_v28  ;;  %v7202_v57 = vadd.f32 %v4752_v18, %v11230_v27  ;;  %v4754_v33 = vpop.f32.mrb[181].mxu1  ;;  %v11506_v21 = vpop.f32.mrb[3].mxu0 }
 0x566   : > { %11837 = vst [vmem:[#allocation13_spill] sm:$0xff] %v11506_v21  ;;  %v7203_v24 = vadd.f32 %v4754_v33, %v11234_v59  ;;  %5689 = vmatprep.mubr.f32.mxu1 %v5402_v51 }
 0x567   : > { %5690 = vmatmul.mubr.f32.gmra.mrb[242].mxu1 %v5401_v16  ;;  %v5405_v63 = vmax.f32 %v7202_v57, 0.0 }
 0x568   : > { %v5406_v54 = vmax.f32 %v7203_v24, 0.0  ;;  %v4758_v6 = vpop.f32.mrb[182].mxu1  ;;  %v11509_v61 = vpop.f32.mrb[4].mxu0 }
 0x569   : > { %11838 = vst [vmem:[#allocation16_spill] sm:$0xff] %v11509_v61  ;;  %v7204_v11 = vadd.f32 %v4758_v6, %v11230_v27  ;;  %v4760_v10 = vpop.f32.mrb[183].mxu1  ;;  %v11512_v23 = vpop.f32.mrb[5].mxu0 }
 0x56a   : > { %11839 = vst [vmem:[#allocation15_spill] sm:$0xff] %v11512_v23  ;;  %v7205_v52 = vadd.f32 %v4760_v10, %v11234_v59  ;;  %5694 = vmatprep.mubr.f32.mxu1 %v5406_v54 }
 0x56b   : > { %5695 = vmatmul.mubr.f32.gmra.mrb[244].mxu1 %v5405_v63  ;;  %v5409_v51 = vmax.f32 %v7204_v11, 0.0 }
 0x56c   : > { %v5410_v18 = vmax.f32 %v7205_v52, 0.0  ;;  %v4764_v28 = vpop.f32.mrb[184].mxu1  ;;  %v11515_v21 = vpop.f32.mrb[6].mxu0 }
 0x56d   : > { %11840 = vst [vmem:[#allocation18_spill] sm:$0xff] %v11515_v21  ;;  %v7206_v16 = vadd.f32 %v4764_v28, %v11230_v27  ;;  %v4766_v33 = vpop.f32.mrb[185].mxu1  ;;  %v11518_v24 = vpop.f32.mrb[7].mxu0 }
 0x56e   : > { %11841 = vst [vmem:[#allocation17_spill] sm:$0xff] %v11518_v24  ;;  %v7207_v57 = vadd.f32 %v4766_v33, %v11234_v59  ;;  %5699 = vmatprep.mubr.f32.mxu1 %v5410_v18 }
 0x56f   : > { %5700 = vmatmul.mubr.f32.gmra.mrb[246].mxu1 %v5409_v51  ;;  %v5413_v54 = vmax.f32 %v7206_v16, 0.0 }
 0x570   : > { %v5414_v6 = vmax.f32 %v7207_v57, 0.0  ;;  %v4770_v61 = vpop.f32.mrb[186].mxu1  ;;  %v11521_v23 = vpop.f32.mrb[8].mxu0 }
 0x571   : > { %v7208_v63 = vadd.f32 %v4770_v61, %v11230_v27  ;;  %v4772_v10 = vpop.f32.mrb[187].mxu1  ;;  %v11524_v52 = vpop.f32.mrb[9].mxu0  ;;  %v11534_v61 = vrot.slane %v11226_v20, %v9786_v46 }
 0x572   : > { %v7209_v11 = vadd.f32 %v4772_v10, %v11234_v59  ;;  %5704 = vmatprep.mubr.f32.mxu1 %v5414_v6 }
 0x573   : > { %5705 = vmatmul.mubr.f32.gmra.mrb[248].mxu1 %v5413_v54  ;;  %v5417_v18 = vmax.f32 %v7208_v63, 0.0  ;;  %v11541_v63 = vrot.slane %v11226_v20, %v9792_v31  ;;  %v7215_v46 = vadd.f32 %v11239_v2, %v11534_v61  ;;  %v7217_v20 = vadd.f32 %v11251_v44, %v11534_v61 }
 0x574   : > { %v5418_v28 = vmax.f32 %v7209_v11, 0.0  ;;  %v4776_v21 = vpop.f32.mrb[188].mxu1  ;;  %v11527_v24 = vpop.f32.mrb[10].mxu0  ;;  %v7221_v44 = vadd.f32 %v11276_v41, %v11534_v61  ;;  %v7225_v41 = vadd.f32 %v11302_v48, %v11534_v61  ;;  %v7229_v48 = vadd.f32 %v11328_v12, %v11534_v61 }
 0x575   : > { %11842 = vst [vmem:[#allocation20_spill] sm:$0xff] %v11527_v24  ;;  %v7210_v51 = vadd.f32 %v4776_v21, %v11230_v27  ;;  %v4778_v33 = vpop.f32.mrb[189].mxu1  ;;  %v11530_v57 = vpop.f32.mrb[11].mxu0  ;;  %v5304_v31 = vmax.f32 %v7215_v46, 0.0  ;;  %v7216_v2 = vadd.f32 %v11248_v42, %v11541_v63  ;;  %v7220_v42 = vadd.f32 %v11273_v47, %v11541_v63 }
 0x576   : > { %11843 = vst [vmem:[#allocation19_spill] sm:$0xff] %v11530_v57  ;;  %v7211_v16 = vadd.f32 %v4778_v33, %v11234_v59  ;;  %5709 = vmatprep.mubr.f32.mxu1 %v5418_v28  ;;  %v7214_v33 = vadd.f32 %v11236_v35, %v11541_v63  ;;  %v7218_v35 = vadd.f32 %v11260_v58, %v11541_v63 }
 0x577   : > { %5710 = vmatmul.mubr.f32.gmra.mrb[250].mxu1 %v5417_v18  ;;  %v5421_v21 = vmax.f32 %v7210_v51, 0.0  ;;  %v5308_v51 = vmax.f32 %v7217_v20, 0.0  ;;  %v7222_v58 = vadd.f32 %v11286_v0, %v11541_v63  ;;  %v7224_v47 = vadd.f32 %v11299_v38, %v11541_v63 }
 0x578   : > { %v5422_v6 = vmax.f32 %v7211_v16, 0.0  ;;  %v4782_v54 = vpop.f32.mrb[190].mxu1  ;;  %v11537_v10 = vpop.f32.mrb[12].mxu0  ;;  %v7226_v0 = vadd.f32 %v11312_v4, %v11541_v63  ;;  %v7228_v38 = vadd.f32 %v11325_v8, %v11541_v63  ;;  %v5332_v20 = vmax.f32 %v7229_v48, 0.0 }
 0x579   : > { %v7212_v11 = vadd.f32 %v4782_v54, %v11230_v27  ;;  %v4784_v24 = vpop.f32.mrb[191].mxu1  ;;  %v11544_v57 = vpop.f32.mrb[13].mxu0  ;;  %v5303_v27 = vmax.f32 %v7214_v33, 0.0  ;;  %v5311_v54 = vmax.f32 %v7218_v35, 0.0  ;;  %v5323_v33 = vmax.f32 %v7224_v47, 0.0 }
 0x57a   : > { %v7213_v28 = vadd.f32 %v4784_v24, %v11234_v59  ;;  %5714 = vmatprep.mubr.f32.mxu1 %v5422_v6  ;;  %v7219_v59 = vadd.f32 %v11263_v50, %v11534_v61  ;;  %v5307_v24 = vmax.f32 %v7216_v2, 0.0  ;;  %v7223_v50 = vadd.f32 %v11289_v55, %v11534_v61 }
 0x57b   : > { %5715 = vmatmul.mubr.f32.gmra.mrb[252].mxu1 %v5421_v21  ;;  %v5425_v16 = vmax.f32 %v7212_v11, 0.0  ;;  %v5316_v21 = vmax.f32 %v7221_v44, 0.0  ;;  %v5315_v11 = vmax.f32 %v7220_v42, 0.0  ;;  %v7227_v55 = vadd.f32 %v11315_v62, %v11534_v61 }
 0x57c   : > { %v5426_v18 = vmax.f32 %v7213_v28, 0.0  ;;  %v5312_v6 = vmax.f32 %v7219_v59, 0.0  ;;  %v5320_v46 = vmax.f32 %v7223_v50, 0.0  ;;  %v5319_v28 = vmax.f32 %v7222_v58, 0.0 }
 0x57d   : > { %v7231_v62 = vadd.f32 %v11341_v30, %v11534_v61  ;;  %v7230_v4 = vadd.f32 %v11338_v39, %v11541_v63  ;;  %v7233_v12 = vadd.f32 %v11354_v36, %v11534_v61  ;;  %v7232_v8 = vadd.f32 %v11351_v60, %v11541_v63 }
 0x57e   : > { %5719 = vmatprep.mubr.f32.mxu1 %v5426_v18  ;;  %v5324_v18 = vmax.f32 %v7225_v41, 0.0  ;;  %v7235_v30 = vadd.f32 %v11367_v25, %v11534_v61  ;;  %v7234_v39 = vadd.f32 %v11364_v40, %v11541_v63  ;;  %v7237_v36 = vadd.f32 %v11380_v32, %v11534_v61 }
 0x57f   : > { %5720 = vmatmul.mubr.f32.gmra.mrb[254].mxu1 %v5425_v16  ;;  %v5328_v16 = vmax.f32 %v7227_v55, 0.0  ;;  %v5336_v2 = vmax.f32 %v7231_v62, 0.0  ;;  %v5340_v59 = vmax.f32 %v7233_v12, 0.0  ;;  %v7236_v60 = vadd.f32 %v11377_v43, %v11541_v63  ;;  %v11844_v62 = vld [vmem:[#allocation2_spill] sm:$0xff]  ;;  %v11846_v12 = vld [vmem:[#allocation4_spill] sm:$0xff] }
 0x580   : > { %5789 = vmatprep.mubr.f32.mxu1 %v5304_v31  ;;  %v5327_v31 = vmax.f32 %v7226_v0, 0.0  ;;  %v5344_v35 = vmax.f32 %v7235_v30, 0.0  ;;  %v5348_v44 = vmax.f32 %v7237_v36, 0.0  ;;  %v7239_v25 = vadd.f32 %v11393_v13, %v11534_v61  ;;  %v11848_v30 = vld [vmem:[#allocation6_spill] sm:$0xff] }
 0x581   : > { %v7238_v40 = vadd.f32 %v11390_v37, %v11541_v63  ;;  %v7241_v32 = vadd.f32 %v11406_v14, %v11534_v61  ;;  %v7240_v43 = vadd.f32 %v11403_v15, %v11541_v63  ;;  %v7243_v13 = vadd.f32 %v11419_v17, %v11534_v61 }
 0x582   : > { %v5352_v42 = vmax.f32 %v7239_v25, 0.0  ;;  %v7242_v37 = vadd.f32 %v11416_v49, %v11541_v63  ;;  %v7245_v14 = vadd.f32 %v11432_v3, %v11534_v61  ;;  %v7244_v15 = vadd.f32 %v11429_v19, %v11541_v63 }
 0x583   : > { %5790 = vmatmul.mubr.f32.vlgmr.msra.gmra.mrb[192].mxu1 %v5303_v27  ;;  %v5331_v27 = vmax.f32 %v7228_v38, 0.0  ;;  %v5356_v50 = vmax.f32 %v7241_v32, 0.0  ;;  %v5360_v58 = vmax.f32 %v7243_v13, 0.0  ;;  %v7247_v17 = vadd.f32 %v11445_v45, %v11534_v61  ;;  %v11852_v32 = vld [vmem:[#allocation12_spill] sm:$0xff] }
 0x584   : > { %5794 = vmatprep.mubr.f32.mxu1 %v5308_v51  ;;  %v5335_v51 = vmax.f32 %v7230_v4, 0.0  ;;  %v5364_v41 = vmax.f32 %v7245_v14, 0.0  ;;  %v7246_v49 = vadd.f32 %v11442_v29, %v11541_v63  ;;  %v7249_v3 = vadd.f32 %v11452_v9, %v11534_v61  ;;  %v11845_v4 = vld [vmem:[#allocation3_spill] sm:$0xff] }
 0x585   : > { %v5368_v47 = vmax.f32 %v7247_v17, 0.0  ;;  %v7248_v19 = vadd.f32 %v11449_v26, %v11541_v63  ;;  %v7251_v45 = vadd.f32 %v11458_v53, %v11534_v61  ;;  %v7250_v29 = vadd.f32 %v11455_v7, %v11541_v63  ;;  %v11856_v17 = vld [vmem:[#allocation16_spill] sm:$0xff] }
 0x586   : > { %v5372_v55 = vmax.f32 %v7249_v3, 0.0  ;;  %v7253_v9 = vadd.f32 %v11464_v5, %v11534_v61  ;;  %v7252_v26 = vadd.f32 %v11461_v22, %v11541_v63  ;;  %v7255_v53 = vadd.f32 %v11470_v34, %v11534_v61 }
 0x587   : > { %5795 = vmatmul.mubr.f32.gmra.mrb[194].mxu1 %v5307_v24  ;;  %v5339_v24 = vmax.f32 %v7232_v8, 0.0  ;;  %v5376_v0 = vmax.f32 %v7251_v45, 0.0  ;;  %v7254_v7 = vadd.f32 %v11467_v56, %v11541_v63  ;;  %v7257_v5 = vadd.f32 %v11476_v1, %v11534_v61  ;;  %v11847_v8 = vld [vmem:[#allocation5_spill] sm:$0xff] }
 0x588   : > { %5799 = vmatprep.mubr.f32.mxu1 %v5312_v6  ;;  %v5343_v6 = vmax.f32 %v7234_v39, 0.0  ;;  %v5380_v48 = vmax.f32 %v7253_v9, 0.0  ;;  %v5384_v38 = vmax.f32 %v7255_v53, 0.0  ;;  %v7256_v22 = vadd.f32 %v11844_v62, %v11541_v63  ;;  %v11860_v53 = vld [vmem:[#allocation20_spill] sm:$0xff]  ;;  %v11678_v62 = vld [vmem:[%s11764_s10] ss:$0 sm:$0xff] }
 0x589   : > { %v7259_v34 = vadd.f32 %v11845_v4, %v11534_v61  ;;  %v7258_v56 = vadd.f32 %v11846_v12, %v11541_v63  ;;  %v7261_v1 = vadd.f32 %v11847_v8, %v11534_v61 }
 0x58b   : > { %5800 = vmatmul.mubr.f32.gmra.mrb[196].mxu1 %v5311_v54  ;;  %v5347_v54 = vmax.f32 %v7236_v60, 0.0  ;;  %v5396_v39 = vmax.f32 %v7261_v1, 0.0  ;;  %v11850_v60 = vld [vmem:[#allocation10_spill] sm:$0xff] }
 0x58c   : > { %5804 = vmatprep.mubr.f32.mxu1 %v5316_v21  ;;  %v5351_v21 = vmax.f32 %v7238_v40, 0.0 }
 0x58f   : > { %5805 = vmatmul.mubr.f32.gmra.mrb[198].mxu1 %v5315_v11  ;;  %v5355_v11 = vmax.f32 %v7240_v43, 0.0 }
 0x590   : > { %5809 = vmatprep.mubr.f32.mxu1 %v5320_v46  ;;  %v5359_v46 = vmax.f32 %v7242_v37, 0.0  ;;  %v11854_v37 = vld [vmem:[#allocation14_spill] sm:$0xff] }
 0x593   : > { %5810 = vmatmul.mubr.f32.gmra.mrb[200].mxu1 %v5319_v28  ;;  %v5363_v28 = vmax.f32 %v7244_v15, 0.0 }
 0x594   : > { %5814 = vmatprep.mubr.f32.mxu1 %v5324_v18  ;;  %v5367_v18 = vmax.f32 %v7246_v49, 0.0 }
 0x597   : > { %5815 = vmatmul.mubr.f32.gmra.mrb[202].mxu1 %v5323_v33  ;;  %v5371_v33 = vmax.f32 %v7248_v19, 0.0  ;;  %v11858_v19 = vld [vmem:[#allocation18_spill] sm:$0xff] }
 0x598   : > { %5819 = vmatprep.mubr.f32.mxu1 %v5328_v16  ;;  %v5375_v16 = vmax.f32 %v7250_v29, 0.0 }
 0x59b   : > { %5820 = vmatmul.mubr.f32.gmra.mrb[204].mxu1 %v5327_v31  ;;  %v5379_v31 = vmax.f32 %v7252_v26, 0.0 }
 0x59c   : > { %5824 = vmatprep.mubr.f32.mxu1 %v5332_v20  ;;  %v5383_v20 = vmax.f32 %v7254_v7, 0.0 }
 0x59f   : > { %5825 = vmatmul.mubr.f32.gmra.mrb[206].mxu1 %v5331_v27  ;;  %v5388_v27 = vmax.f32 %v7257_v5, 0.0 }
 0x5a0   : > { %5829 = vmatprep.mubr.f32.mxu1 %v5336_v2  ;;  %v5387_v2 = vmax.f32 %v7256_v22, 0.0 }
 0x5a3   : > { %5830 = vmatmul.mubr.f32.gmra.mrb[208].mxu1 %v5335_v51  ;;  %v5392_v51 = vmax.f32 %v7259_v34, 0.0 }
 0x5a4   : > { %5834 = vmatprep.mubr.f32.mxu1 %v5340_v59  ;;  %v5391_v59 = vmax.f32 %v7258_v56, 0.0 }
 0x5a7   : > { %5835 = vmatmul.mubr.f32.gmra.mrb[210].mxu1 %v5339_v24  ;;  %v7260_v24 = vadd.f32 %v11848_v30, %v11541_v63 }
 0x5a8   : > { %5839 = vmatprep.mubr.f32.mxu1 %v5344_v35  ;;  %v11849_v35 = vld [vmem:[#allocation7_spill] sm:$0xff] }
 0x5a9   : > { %v7263_v36 = vadd.f32 %v11849_v35, %v11534_v61 }
 0x5ab   : > { %5840 = vmatmul.mubr.f32.gmra.mrb[212].mxu1 %v5343_v6  ;;  %v5395_v6 = vmax.f32 %v7260_v24, 0.0  ;;  %v5400_v25 = vmax.f32 %v7263_v36, 0.0 }
 0x5ac   : > { %5844 = vmatprep.mubr.f32.mxu1 %v5348_v44  ;;  %v7262_v44 = vadd.f32 %v11850_v60, %v11541_v63 }
 0x5af   : > { %5845 = vmatmul.mubr.f32.gmra.mrb[214].mxu1 %v5347_v54  ;;  %v11851_v54 = vld [vmem:[#allocation11_spill] sm:$0xff] }
 0x5b0   : > { %5849 = vmatprep.mubr.f32.mxu1 %v5352_v42  ;;  %v7265_v40 = vadd.f32 %v11851_v54, %v11534_v61  ;;  %v5399_v42 = vmax.f32 %v7262_v44, 0.0 }
 0x5b2   : > { %v5404_v43 = vmax.f32 %v7265_v40, 0.0 }
 0x5b3   : > { %5850 = vmatmul.mubr.f32.gmra.mrb[216].mxu1 %v5351_v21  ;;  %v7264_v21 = vadd.f32 %v11852_v32, %v11541_v63 }
 0x5b4   : > { %5854 = vmatprep.mubr.f32.mxu1 %v5356_v50  ;;  %v11853_v50 = vld [vmem:[#allocation13_spill] sm:$0xff] }
 0x5b5   : > { %v7267_v13 = vadd.f32 %v11853_v50, %v11534_v61 }
 0x5b7   : > { %5855 = vmatmul.mubr.f32.gmra.mrb[218].mxu1 %v5355_v11  ;;  %v5403_v11 = vmax.f32 %v7264_v21, 0.0  ;;  %v5408_v14 = vmax.f32 %v7267_v13, 0.0 }
 0x5b8   : > { %5859 = vmatprep.mubr.f32.mxu1 %v5360_v58  ;;  %v7266_v58 = vadd.f32 %v11854_v37, %v11541_v63 }
 0x5bb   : > { %5860 = vmatmul.mubr.f32.gmra.mrb[220].mxu1 %v5359_v46  ;;  %v11855_v46 = vld [vmem:[#allocation15_spill] sm:$0xff] }
 0x5bc   : > { %5864 = vmatprep.mubr.f32.mxu1 %v5364_v41  ;;  %v7269_v15 = vadd.f32 %v11855_v46, %v11534_v61  ;;  %v5407_v41 = vmax.f32 %v7266_v58, 0.0 }
 0x5be   : > { %v5412_v49 = vmax.f32 %v7269_v15, 0.0 }
 0x5bf   : > { %5865 = vmatmul.mubr.f32.gmra.mrb[222].mxu1 %v5363_v28  ;;  %v7268_v28 = vadd.f32 %v11856_v17, %v11541_v63 }
 0x5c0   : > { %5869 = vmatprep.mubr.f32.mxu1 %v5368_v47  ;;  %v11857_v47 = vld [vmem:[#allocation17_spill] sm:$0xff] }
 0x5c1   : > { %v7271_v3 = vadd.f32 %v11857_v47, %v11534_v61 }
 0x5c3   : > { %5870 = vmatmul.mubr.f32.gmra.mrb[224].mxu1 %v5367_v18  ;;  %v5411_v18 = vmax.f32 %v7268_v28, 0.0  ;;  %v5416_v45 = vmax.f32 %v7271_v3, 0.0 }
 0x5c4   : > { %5874 = vmatprep.mubr.f32.mxu1 %v5372_v55  ;;  %v7270_v55 = vadd.f32 %v11858_v19, %v11541_v63 }
 0x5c6   : > { %v5415_v29 = vmax.f32 %v7270_v55, 0.0 }
 0x5c7   : > { %5875 = vmatmul.mubr.f32.gmra.mrb[226].mxu1 %v5371_v33  ;;  %v7273_v33 = vadd.f32 %v11524_v52, %v11534_v61  ;;  %v7277_v52 = vadd.f32 %v11544_v57, %v11534_v61 }
 0x5c8   : > { %5879 = vmatprep.mubr.f32.mxu1 %v5376_v0  ;;  %v7272_v0 = vadd.f32 %v11521_v23, %v11541_v63  ;;  %v7276_v23 = vadd.f32 %v11537_v10, %v11541_v63 }
 0x5c9   : > { %v5420_v9 = vmax.f32 %v7273_v33, 0.0  ;;  %v5428_v5 = vmax.f32 %v7277_v52, 0.0 }
 0x5cb   : > { %5880 = vmatmul.mubr.f32.gmra.mrb[228].mxu1 %v5375_v16  ;;  %v11859_v16 = vld [vmem:[#allocation19_spill] sm:$0xff] }
 0x5cc   : > { %5884 = vmatprep.mubr.f32.mxu1 %v5380_v48  ;;  %v7275_v26 = vadd.f32 %v11859_v16, %v11534_v61  ;;  %v5419_v48 = vmax.f32 %v7272_v0, 0.0 }
 0x5ce   : > { %v5424_v7 = vmax.f32 %v7275_v26, 0.0 }
 0x5cf   : > { %5885 = vmatmul.mubr.f32.gmra.mrb[230].mxu1 %v5379_v31  ;;  %v7274_v31 = vadd.f32 %v11860_v53, %v11541_v63 }
 0x5d0   : > { %5889 = vmatprep.mubr.f32.mxu1 %v5384_v38 }
 0x5d1   : > { %v5423_v38 = vmax.f32 %v7274_v31, 0.0 }
 0x5d3   : > { %5890 = vmatmul.mubr.f32.gmra.mrb[232].mxu1 %v5383_v20  ;;  %v5427_v20 = vmax.f32 %v7276_v23, 0.0 }
 0x5d4   : > { %5894 = vmatprep.mubr.f32.mxu1 %v5388_v27 }
 0x5d7   : > { %5895 = vmatmul.mubr.f32.gmra.mrb[234].mxu1 %v5387_v2 }
 0x5d8   : > { %5899 = vmatprep.mubr.f32.mxu1 %v5392_v51 }
 0x5db   : > { %5900 = vmatmul.mubr.f32.gmra.mrb[236].mxu1 %v5391_v59 }
 0x5dc   : > { %5904 = vmatprep.mubr.f32.mxu1 %v5396_v39 }
 0x5df   : > { %5905 = vmatmul.mubr.f32.gmra.mrb[238].mxu1 %v5395_v6 }
 0x5e0   : > { %5909 = vmatprep.mubr.f32.mxu1 %v5400_v25 }
 0x5e3   : > { %5910 = vmatmul.mubr.f32.gmra.mrb[240].mxu1 %v5399_v42 }
 0x5e4   : > { %5914 = vmatprep.mubr.f32.mxu1 %v5404_v43 }
 0x5e7   : > { %5915 = vmatmul.mubr.f32.gmra.mrb[242].mxu1 %v5403_v11 }
 0x5e8   : > { %5919 = vmatprep.mubr.f32.mxu1 %v5408_v14 }
 0x5eb   : > { %5920 = vmatmul.mubr.f32.gmra.mrb[244].mxu1 %v5407_v41 }
 0x5ec   : > { %5924 = vmatprep.mubr.f32.mxu1 %v5412_v49 }
 0x5ef   : > { %5925 = vmatmul.mubr.f32.gmra.mrb[246].mxu1 %v5411_v18 }
 0x5f0   : > { %5929 = vmatprep.mubr.f32.mxu1 %v5416_v45 }
 0x5f3   : > { %5930 = vmatmul.mubr.f32.gmra.mrb[248].mxu1 %v5415_v29 }
 0x5f4   : > { %5934 = vmatprep.mubr.f32.mxu1 %v5420_v9 }
 0x5f7   : > { %5935 = vmatmul.mubr.f32.gmra.mrb[250].mxu1 %v5419_v48 }
 0x5f8   : > { %5939 = vmatprep.mubr.f32.mxu1 %v5424_v7 }
 0x5fb   : > { %5940 = vmatmul.mubr.f32.gmra.mrb[252].mxu1 %v5423_v38 }
 0x5fc   : > { %5944 = vmatprep.mubr.f32.mxu1 %v5428_v5 }
 0x5ff   : > { %5945 = vmatmul.mubr.f32.gmra.mrb[254].mxu1 %v5427_v20 }
 0x656   : > { %v5791_v57 = vpop.f32.mrb[192].mxu1 }
 0x657   : > { %v7278_v61 = vadd.f32 %v11678_v62, %v5791_v57  ;;  %v5793_v10 = vpop.f32.mrb[193].mxu1 }
 0x659   : > { %5950 = vst [vmem:[%s11685_s12] sm:$0xff] %v7278_v61 }
 0x65a   : > { %v5796_v63 = vpop.f32.mrb[194].mxu1 }
 0x65b   : > { %v7279_v22 = vadd.f32 %v11678_v62, %v5796_v63  ;;  %v5798_v27 = vpop.f32.mrb[195].mxu1 }
 0x65d   : > { %5951 = vst [vmem:[%s11685_s12 + $0x8] sm:$0xff] %v7279_v22 }
 0x65e   : > { %v5801_v4 = vpop.f32.mrb[196].mxu1 }
 0x65f   : > { %v7280_v34 = vadd.f32 %v11678_v62, %v5801_v4  ;;  %v5803_v2 = vpop.f32.mrb[197].mxu1 }
 0x661   : > { %5952 = vst [vmem:[%s11685_s12 + $0x10] sm:$0xff] %v7280_v34 }
 0x662   : > { %v5806_v12 = vpop.f32.mrb[198].mxu1 }
 0x663   : > { %v7281_v56 = vadd.f32 %v11678_v62, %v5806_v12  ;;  %v5808_v51 = vpop.f32.mrb[199].mxu1 }
 0x665   : > { %5953 = vst [vmem:[%s11685_s12 + $0x18] sm:$0xff] %v7281_v56 }
 0x666   : > { %v5811_v8 = vpop.f32.mrb[200].mxu1 }
 0x667   : > { %v7282_v1 = vadd.f32 %v11678_v62, %v5811_v8  ;;  %v5813_v59 = vpop.f32.mrb[201].mxu1 }
 0x669   : > { %5954 = vst [vmem:[%s11685_s12 + $0x20] sm:$0xff] %v7282_v1 }
 0x66a   : > { %v5816_v30 = vpop.f32.mrb[202].mxu1 }
 0x66b   : > { %v7283_v24 = vadd.f32 %v11678_v62, %v5816_v30  ;;  %v5818_v39 = vpop.f32.mrb[203].mxu1 }
 0x66d   : > { %5955 = vst [vmem:[%s11685_s12 + $0x28] sm:$0xff] %v7283_v24 }
 0x66e   : > { %v5821_v35 = vpop.f32.mrb[204].mxu1 }
 0x66f   : > { %v7284_v36 = vadd.f32 %v11678_v62, %v5821_v35  ;;  %v5823_v6 = vpop.f32.mrb[205].mxu1 }
 0x671   : > { %5956 = vst [vmem:[%s11685_s12 + $0x30] sm:$0xff] %v7284_v36 }
 0x672   : > { %v5826_v60 = vpop.f32.mrb[206].mxu1 }
 0x673   : > { %v7285_v44 = vadd.f32 %v11678_v62, %v5826_v60  ;;  %v5828_v25 = vpop.f32.mrb[207].mxu1 }
 0x675   : > { %5957 = vst [vmem:[%s11685_s12 + $0x38] sm:$0xff] %v7285_v44 }
 0x676   : > { %v5831_v54 = vpop.f32.mrb[208].mxu1 }
 0x677   : > { %v7286_v40 = vadd.f32 %v11678_v62, %v5831_v54  ;;  %v5833_v42 = vpop.f32.mrb[209].mxu1 }
 0x679   : > { %5958 = vst [vmem:[%s11685_s12 + $0x40] sm:$0xff] %v7286_v40 }
 0x67a   : > { %v5836_v32 = vpop.f32.mrb[210].mxu1 }
 0x67b   : > { %v7287_v21 = vadd.f32 %v11678_v62, %v5836_v32  ;;  %v5838_v43 = vpop.f32.mrb[211].mxu1 }
 0x67d   : > { %5959 = vst [vmem:[%s11685_s12 + $0x48] sm:$0xff] %v7287_v21 }
 0x67e   : > { %v5841_v50 = vpop.f32.mrb[212].mxu1 }
 0x67f   : > { %v7288_v13 = vadd.f32 %v11678_v62, %v5841_v50  ;;  %v5843_v11 = vpop.f32.mrb[213].mxu1 }
 0x681   : > { %5960 = vst [vmem:[%s11685_s12 + $0x50] sm:$0xff] %v7288_v13 }
 0x682   : > { %v5846_v37 = vpop.f32.mrb[214].mxu1 }
 0x683   : > { %v7289_v58 = vadd.f32 %v11678_v62, %v5846_v37  ;;  %v5848_v14 = vpop.f32.mrb[215].mxu1 }
 0x685   : > { %5961 = vst [vmem:[%s11685_s12 + $0x58] sm:$0xff] %v7289_v58 }
 0x686   : > { %v5851_v46 = vpop.f32.mrb[216].mxu1 }
 0x687   : > { %v7290_v15 = vadd.f32 %v11678_v62, %v5851_v46  ;;  %v5853_v41 = vpop.f32.mrb[217].mxu1 }
 0x689   : > { %5962 = vst [vmem:[%s11685_s12 + $0x60] sm:$0xff] %v7290_v15 }
 0x68a   : > { %v5856_v17 = vpop.f32.mrb[218].mxu1 }
 0x68b   : > { %v7291_v28 = vadd.f32 %v11678_v62, %v5856_v17  ;;  %v5858_v49 = vpop.f32.mrb[219].mxu1 }
 0x68d   : > { %5963 = vst [vmem:[%s11685_s12 + $0x68] sm:$0xff] %v7291_v28 }
 0x68e   : > { %v5861_v47 = vpop.f32.mrb[220].mxu1 }
 0x68f   : > { %v7292_v3 = vadd.f32 %v11678_v62, %v5861_v47  ;;  %v5863_v18 = vpop.f32.mrb[221].mxu1 }
 0x691   : > { %5964 = vst [vmem:[%s11685_s12 + $0x70] sm:$0xff] %v7292_v3 }
 0x692   : > { %v5866_v19 = vpop.f32.mrb[222].mxu1 }
 0x693   : > { %v7293_v55 = vadd.f32 %v11678_v62, %v5866_v19  ;;  %v5868_v45 = vpop.f32.mrb[223].mxu1 }
 0x695   : > { %5965 = vst [vmem:[%s11685_s12 + $0x78] sm:$0xff] %v7293_v55 }
 0x696   : > { %v5871_v33 = vpop.f32.mrb[224].mxu1 }
 0x697   : > { %v7294_v29 = vadd.f32 %v11678_v62, %v5871_v33  ;;  %v5873_v0 = vpop.f32.mrb[225].mxu1 }
 0x699   : > { %5966 = vst [vmem:[%s11685_s12 + $0x80] sm:$0xff] %v7294_v29 }
 0x69a   : > { %v5876_v9 = vpop.f32.mrb[226].mxu1 }
 0x69b   : > { %v7295_v16 = vadd.f32 %v11678_v62, %v5876_v9  ;;  %v5878_v26 = vpop.f32.mrb[227].mxu1 }
 0x69d   : > { %5967 = vst [vmem:[%s11685_s12 + $0x88] sm:$0xff] %v7295_v16 }
 0x69e   : > { %v5881_v48 = vpop.f32.mrb[228].mxu1 }
 0x69f   : > { %v7296_v53 = vadd.f32 %v11678_v62, %v5881_v48  ;;  %v5883_v31 = vpop.f32.mrb[229].mxu1 }
 0x6a1   : > { %5968 = vst [vmem:[%s11685_s12 + $0x90] sm:$0xff] %v7296_v53 }
 0x6a2   : > { %v5886_v7 = vpop.f32.mrb[230].mxu1 }
 0x6a3   : > { %v7297_v52 = vadd.f32 %v11678_v62, %v5886_v7  ;;  %v5888_v38 = vpop.f32.mrb[231].mxu1 }
 0x6a5   : > { %5969 = vst [vmem:[%s11685_s12 + $0x98] sm:$0xff] %v7297_v52 }
 0x6a6   : > { %v5891_v23 = vpop.f32.mrb[232].mxu1 }
 0x6a7   : > { %v7298_v5 = vadd.f32 %v11678_v62, %v5891_v23  ;;  %v5893_v20 = vpop.f32.mrb[233].mxu1 }
 0x6a9   : > { %5970 = vst [vmem:[%s11685_s12 + $0xa0] sm:$0xff] %v7298_v5 }
 0x6aa   : > { %v5896_v57 = vpop.f32.mrb[234].mxu1 }
 0x6ab   : > { %v7299_v61 = vadd.f32 %v11678_v62, %v5896_v57  ;;  %v5898_v10 = vpop.f32.mrb[235].mxu1 }
 0x6ad   : > { %5971 = vst [vmem:[%s11685_s12 + $0xa8] sm:$0xff] %v7299_v61 }
 0x6ae   : > { %v5901_v63 = vpop.f32.mrb[236].mxu1 }
 0x6af   : > { %v7300_v22 = vadd.f32 %v11678_v62, %v5901_v63  ;;  %v5903_v27 = vpop.f32.mrb[237].mxu1 }
 0x6b1   : > { %5972 = vst [vmem:[%s11685_s12 + $0xb0] sm:$0xff] %v7300_v22 }
 0x6b2   : > { %v5906_v4 = vpop.f32.mrb[238].mxu1 }
 0x6b3   : > { %v7301_v34 = vadd.f32 %v11678_v62, %v5906_v4  ;;  %v5908_v2 = vpop.f32.mrb[239].mxu1 }
 0x6b5   : > { %5973 = vst [vmem:[%s11685_s12 + $0xb8] sm:$0xff] %v7301_v34 }
 0x6b6   : > { %v5911_v12 = vpop.f32.mrb[240].mxu1 }
 0x6b7   : > { %v7302_v56 = vadd.f32 %v11678_v62, %v5911_v12  ;;  %v5913_v51 = vpop.f32.mrb[241].mxu1 }
 0x6b9   : > { %5974 = vst [vmem:[%s11685_s12 + $0xc0] sm:$0xff] %v7302_v56 }
 0x6ba   : > { %v5916_v8 = vpop.f32.mrb[242].mxu1 }
 0x6bb   : > { %v7303_v1 = vadd.f32 %v11678_v62, %v5916_v8  ;;  %v5918_v59 = vpop.f32.mrb[243].mxu1 }
 0x6bd   : > { %5975 = vst [vmem:[%s11685_s12 + $0xc8] sm:$0xff] %v7303_v1 }
 0x6be   : > { %v5921_v30 = vpop.f32.mrb[244].mxu1 }
 0x6bf   : > { %v7304_v24 = vadd.f32 %v11678_v62, %v5921_v30  ;;  %v5923_v39 = vpop.f32.mrb[245].mxu1 }
 0x6c1   : > { %5976 = vst [vmem:[%s11685_s12 + $0xd0] sm:$0xff] %v7304_v24 }
 0x6c2   : > { %v5926_v35 = vpop.f32.mrb[246].mxu1 }
 0x6c3   : > { %v7305_v36 = vadd.f32 %v11678_v62, %v5926_v35  ;;  %v5928_v6 = vpop.f32.mrb[247].mxu1 }
 0x6c5   : > { %5977 = vst [vmem:[%s11685_s12 + $0xd8] sm:$0xff] %v7305_v36 }
 0x6c6   : > { %v5931_v60 = vpop.f32.mrb[248].mxu1 }
 0x6c7   : > { %v7306_v44 = vadd.f32 %v11678_v62, %v5931_v60  ;;  %v5933_v25 = vpop.f32.mrb[249].mxu1 }
 0x6c9   : > { %5978 = vst [vmem:[%s11685_s12 + $0xe0] sm:$0xff] %v7306_v44 }
 0x6ca   : > { %v5936_v54 = vpop.f32.mrb[250].mxu1 }
 0x6cb   : > { %v7307_v40 = vadd.f32 %v11678_v62, %v5936_v54  ;;  %v5938_v42 = vpop.f32.mrb[251].mxu1 }
 0x6cd   : > { %5979 = vst [vmem:[%s11685_s12 + $0xe8] sm:$0xff] %v7307_v40 }
 0x6ce   : > { %v5941_v32 = vpop.f32.mrb[252].mxu1 }
 0x6cf   : > { %v7308_v21 = vadd.f32 %v11678_v62, %v5941_v32  ;;  %v5943_v43 = vpop.f32.mrb[253].mxu1 }
 0x6d1   : > { %5980 = vst [vmem:[%s11685_s12 + $0xf0] sm:$0xff] %v7308_v21 }
 0x6d2   : > { %v5946_v50 = vpop.f32.mrb[254].mxu1 }
 0x6d3   : > { %v7309_v13 = vadd.f32 %v11678_v62, %v5946_v50  ;;  %v5948_v11 = vpop.f32.mrb[255].mxu1 }
 0x6d5   : > { %5981 = vst [vmem:[%s11685_s12 + $0xf8] sm:$0xff] %v7309_v13 }
 0x6d6 PF: > { %s21_s17 = sadd.s32 1, %s7798_s17  }
 0x6d7   : > { %p18_p4 = scmp.ge.s32.totalorder %s21_s17, 4  }
 0x6d9   :  { %20 = sbr.rel (!%p18_p4) target bundleno = 1 (0x1), region = 94 }

</bundles_post_ra>
